<compile_context>
chip_gen: v7x
topology: tpu7x:2x2x1
jax: 0.10.0
libtpu: 0.0.40
codegen_flags: <defaults>
</compile_context>

<pallas_src>
import jax
import jax.numpy as jnp
from jax import lax
from jax.experimental import pallas as pl
from jax.experimental.pallas import tpu as pltpu


def nnl_attn_kernel(x_ref, wqkv_ref, bqkv_ref, gamma_ref, o_ref,
                    q_ref, v_ref, kt_ref):
    # x_ref    : (1, C, HW)   f32   full spatial extent of this batch
    # wqkv_ref : (2*C4+C, C)  bf16  fused [Wq; Wk; Wv]
    # bqkv_ref : (2*C4+C, 1)  f32   fused [bq; bk; bv] (lane-broadcast column)
    # gamma_ref: SMEM (1,)    f32
    # o_ref    : (1, C, TQ)   f32   lane-dense output tile
    # q_ref    : VMEM (C4, HW) bf16  cached Q projection (persists across tiles)
    # v_ref    : VMEM (C,  HW) bf16  cached V projection
    # kt_ref   : VMEM (HW, C4) bf16  cached K^T projection
    C4 = q_ref.shape[0]
    TQ = o_ref.shape[2]
    qi = pl.program_id(1)

    # ---- fused Q/K/V projection, once per batch (first query tile) ----------
    # NOTE: relies on the query grid axis executing sequentially from qi == 0
    # on a single core; it must stay "arbitrary" (never "parallel").
    @pl.when(qi == 0)
    def _():
        x_bf = x_ref[0].astype(jnp.bfloat16)                         # (C, HW)
        qkv = jnp.dot(wqkv_ref[...], x_bf,
                      preferred_element_type=jnp.float32)            # (2C4+C, HW)
        qkv = qkv + bqkv_ref[...]                                    # f32 bias add
        q_ref[...] = qkv[0:C4, :].astype(jnp.bfloat16)
        v_ref[...] = qkv[2 * C4:, :].astype(jnp.bfloat16)
        # one-time f32 transpose of K so no attention matmul needs a transpose
        kt_ref[...] = jnp.transpose(qkv[C4:2 * C4, :]).astype(jnp.bfloat16)

    start = pl.multiple_of(qi * TQ, TQ)
    q_cols = q_ref[:, pl.ds(start, TQ)]                              # (C4, TQ) bf16

    # energy_T[j, t] = <k_j, q_t>  — standard (HW,C4)@(C4,TQ) MXU matmul
    energy = jnp.dot(kt_ref[...], q_cols,
                     preferred_element_type=jnp.float32)             # (HW, TQ) f32

    # softmax over keys (sublane axis), kept in f32
    m = jnp.max(energy, axis=0, keepdims=True)                       # (1, TQ)
    p = jnp.exp(energy - m)                                          # (HW, TQ)
    denom = jnp.sum(p, axis=0, keepdims=True)                        # (1, TQ)

    # out_u[c, t] = sum_j v[c, j] * p[j, t]  — standard (C,HW)@(HW,TQ) matmul;
    # normalize AFTER the matmul on the small (C, TQ) result.
    out_u = jnp.dot(v_ref[...], p.astype(jnp.bfloat16),
                    preferred_element_type=jnp.float32)              # (C, TQ)
    out = out_u * pl.reciprocal(denom, approx=True)                  # (C, TQ)

    x_res = x_ref[0, :, pl.ds(start, TQ)]                            # (C, TQ) f32
    o_ref[0] = x_res + gamma_ref[0] * out


def nnl_repl_forward(x_nchw, wq, bq, wk, bk, wv, bv, gamma, *, tq=None):
    """x_nchw: (B, C, H, W) f32.  wq/wk: (C//4, C), wv: (C, C), biases 1-D."""
    B, C, H, W = x_nchw.shape
    assert C % 4 == 0, "in_channels must be divisible by 4"
    HW = H * W
    C4 = C // 4
    Cqkv = 2 * C4 + C

    # Query-tile size: largest 128-aligned divisor of HW (prefer 512/256 for the
    # 256x256 MXU on v6e/v7x), else the full spatial extent.
    if tq is None:
        tq = HW
        for cand in (512, 256, 128):
            if HW % cand == 0:
                tq = cand
                break
    assert HW % tq == 0, "tq must divide H*W"
    assert tq % 128 == 0 or tq == HW, "tq must be a multiple of 128 (or == H*W)"
    nq = HW // tq

    # NCHW -> (B, C, HW): pure reshape (no transpose); lane-dense layout.
    x_flat = x_nchw.reshape(B, C, HW).astype(jnp.float32)

    # Fused [Wq; Wk; Wv] weights (bf16 MXU inputs) and biases (f32 column).
    w_qkv = jnp.concatenate([wq, wk, wv], axis=0).astype(jnp.bfloat16)   # (Cqkv, C)
    b_qkv = jnp.concatenate([bq, bk, bv], axis=0).astype(jnp.float32).reshape(Cqkv, 1)
    gamma1 = gamma.reshape(1).astype(jnp.float32)

    out_flat = pl.pallas_call(
        nnl_attn_kernel,
        out_shape=jax.ShapeDtypeStruct((B, C, HW), jnp.float32),
        grid_spec=pltpu.PrefetchScalarGridSpec(
            num_scalar_prefetch=0,
            grid=(B, nq),
            in_specs=[
                pl.BlockSpec((1, C, HW), lambda b, q: (b, 0, 0)),    # x (full spatial)
                pl.BlockSpec((Cqkv, C), lambda b, q: (0, 0)),        # fused [Wq;Wk;Wv]
                pl.BlockSpec((Cqkv, 1), lambda b, q: (0, 0)),        # fused biases
                pl.BlockSpec(memory_space=pltpu.MemorySpace.SMEM),   # gamma scalar
            ],
            out_specs=pl.BlockSpec((1, C, tq), lambda b, q: (b, 0, q)),
            scratch_shapes=[
                pltpu.VMEM((C4, HW), jnp.bfloat16),                  # cached Q
                pltpu.VMEM((C, HW), jnp.bfloat16),                   # cached V
                pltpu.VMEM((HW, C4), jnp.bfloat16),                  # cached K^T
            ],
        ),
        compiler_params=pltpu.CompilerParams(
            # Query axis must stay "arbitrary": scratch caching assumes
            # sequential qi starting at 0 within each batch.
            dimension_semantics=("parallel", "arbitrary"),
            # 48 MiB leaves headroom on v7x (64 MiB physical VMEM per core).
            vmem_limit_bytes=48 * 1024 * 1024,
        ),
    )(x_flat, w_qkv, b_qkv, gamma1)

    return out_flat.reshape(B, C, H, W)


def nnl_repl_reference(x_nchw, wq, bq, wk, bk, wv, bv, gamma):
    """Pure-JAX f32 reference mirroring the PyTorch forward."""
    B, C, H, W = x_nchw.shape
    HW = H * W
    hp = lax.Precision.HIGHEST
    xf = x_nchw.reshape(B, C, HW)                                        # (B, C, HW)
    q = jnp.einsum('oc,bcp->bop', wq, xf, precision=hp) + bq[None, :, None]
    k = jnp.einsum('oc,bcp->bop', wk, xf, precision=hp) + bk[None, :, None]
    v = jnp.einsum('oc,bcp->bop', wv, xf, precision=hp) + bv[None, :, None]
    energy = jnp.einsum('bcp,bcq->bpq', q, k, precision=hp)              # (B, HW, HW)
    attn = jax.nn.softmax(energy, axis=2)
    out = jnp.einsum('bcq,bpq->bcp', v, attn, precision=hp)              # (B, C, HW)
    return x_nchw + gamma.reshape(()) * out.reshape(B, C, H, W)


if __name__ == "__main__":
    B, C, H, W = 2, 32, 32, 32          # HW = 1024 -> two query tiles of 512
    C4 = C // 4

    key = jax.random.PRNGKey(0)
    ks = jax.random.split(key, 7)
    x = jax.random.normal(ks[0], (B, C, H, W), dtype=jnp.float32)

    # Deterministic parameter init (PyTorch Conv2d-like uniform fan-in bound).
    bound = 1.0 / (C ** 0.5)
    wq = jax.random.uniform(ks[1], (C4, C), jnp.float32, -bound, bound)
    bq = jax.random.uniform(ks[2], (C4,), jnp.float32, -bound, bound)
    wk = jax.random.uniform(ks[3], (C4, C), jnp.float32, -bound, bound)
    bk = jax.random.uniform(ks[4], (C4,), jnp.float32, -bound, bound)
    wv = jax.random.uniform(ks[5], (C, C), jnp.float32, -bound, bound)
    bv = jax.random.uniform(ks[6], (C,), jnp.float32, -bound, bound)
    # NNLREPL.__init__ sets gamma = 0 (output == x); use a nonzero value here so
    # the attention path is actually exercised / validated.
    gamma = jnp.array([0.5], dtype=jnp.float32)

    y = nnl_repl_forward(x, wq, bq, wk, bk, wv, bv, gamma)
    jax.block_until_ready(y)

    y_ref = nnl_repl_reference(x, wq, bq, wk, bk, wv, bv, gamma)
    assert y.shape == (B, C, H, W)
    # bf16 MXU inputs + approx reciprocal -> ~1e-2 level differences vs f32 ref.
    max_err = float(jnp.max(jnp.abs(y - y_ref)))
    assert jnp.allclose(y, y_ref, atol=5e-2, rtol=5e-2), \
        f"mismatch vs reference (max abs err {max_err})"

    print("KERNEL_OK")
</pallas_src>

<mosaic_0001>
module attributes {stable_mosaic.version = 11 : i64} {
  func.func @nnl_attn_kernel(%arg0: i32, %arg1: i32, %arg2: memref<1x32x1024xf32, #tpu.memory_space<vmem>>, %arg3: memref<48x32xbf16, #tpu.memory_space<vmem>>, %arg4: memref<48x1xf32, #tpu.memory_space<vmem>>, %arg5: memref<1xf32, #tpu.memory_space<smem>>, %arg6: memref<1x32x512xf32, #tpu.memory_space<vmem>>, %arg7: memref<8x1024xbf16, #tpu.memory_space<vmem>>, %arg8: memref<32x1024xbf16, #tpu.memory_space<vmem>>, %arg9: memref<1024x8xbf16, #tpu.memory_space<vmem>>) attributes {dimension_semantics = [#tpu.dimension_semantics<parallel>, #tpu.dimension_semantics<arbitrary>], iteration_bounds = array<i64: 2, 2>, scalar_prefetch = 0 : i64, scratch_operands = 3 : i64, tpu.core_type = #tpu.core_type<tc>, window_params = [{transform_indices = @transform_0, window_bounds = array<i64: 1, 32, 1024>}, {pipeline_mode = #tpu.pipeline_mode<synchronous>, transform_indices = @transform_1, window_bounds = array<i64: 48, 32>}, {pipeline_mode = #tpu.pipeline_mode<synchronous>, transform_indices = @transform_2, window_bounds = array<i64: 48, 1>}, {transform_indices = @transform_3, window_bounds = array<i64: 1>}, {transform_indices = @transform_4, window_bounds = array<i64: 1, 32, 512>}]} {
    %c0_i32 = arith.constant 0 : i32
    %0 = arith.cmpi eq, %arg1, %c0_i32 : i32
    %1 = arith.extui %0 : i1 to i32
    %c0_i32_0 = arith.constant 0 : i32
    %2 = arith.cmpi ne, %1, %c0_i32_0 : i32
    scf.if %2 {
      %c0_14 = arith.constant 0 : index
      %c0_15 = arith.constant 0 : index
      %c0_16 = arith.constant 0 : index
      %32 = vector.load %arg2[%c0_14, %c0_15, %c0_16] : memref<1x32x1024xf32, #tpu.memory_space<vmem>>, vector<1x32x1024xf32>
      %33 = vector.shape_cast %32 : vector<1x32x1024xf32> to vector<32x1024xf32>
      %34 = arith.truncf %33 : vector<32x1024xf32> to vector<32x1024xbf16>
      %c0_17 = arith.constant 0 : index
      %c0_18 = arith.constant 0 : index
      %35 = vector.load %arg3[%c0_17, %c0_18] : memref<48x32xbf16, #tpu.memory_space<vmem>>, vector<48x32xbf16>
      %cst_19 = arith.constant dense<0.000000e+00> : vector<48x1024xf32>
      %36 = tpu.matmul %35, %34, %cst_19 {dimension_numbers = #tpu.dot_dimension_numbers<[1], [0], [0], [1], [0, 0, 1, 1], [], []>} : vector<48x32xbf16>, vector<32x1024xbf16>, vector<48x1024xf32> -> vector<48x1024xf32>
      %c0_20 = arith.constant 0 : index
      %c0_21 = arith.constant 0 : index
      %37 = vector.load %arg4[%c0_20, %c0_21] : memref<48x1xf32, #tpu.memory_space<vmem>>, vector<48x1xf32>
      %38 = vector.broadcast %37 : vector<48x1xf32> to vector<48x1024xf32>
      %39 = arith.addf %36, %38 : vector<48x1024xf32>
      %40 = vector.extract_strided_slice %39 {offsets = [0, 0], sizes = [8, 1024], strides = [1, 1]} : vector<48x1024xf32> to vector<8x1024xf32>
      %41 = arith.truncf %40 : vector<8x1024xf32> to vector<8x1024xbf16>
      %c0_22 = arith.constant 0 : index
      %c0_23 = arith.constant 0 : index
      %42 = vector.load %arg7[%c0_22, %c0_23] : memref<8x1024xbf16, #tpu.memory_space<vmem>>, vector<8x1024xbf16>
      tpu.vector_store %arg7[%c0_22, %c0_23], %41 {strides = array<i32>} : memref<8x1024xbf16, #tpu.memory_space<vmem>>, vector<8x1024xbf16>,
      %43 = vector.extract_strided_slice %39 {offsets = [16, 0], sizes = [32, 1024], strides = [1, 1]} : vector<48x1024xf32> to vector<32x1024xf32>
      %44 = arith.truncf %43 : vector<32x1024xf32> to vector<32x1024xbf16>
      %c0_24 = arith.constant 0 : index
      %c0_25 = arith.constant 0 : index
      %45 = vector.load %arg8[%c0_24, %c0_25] : memref<32x1024xbf16, #tpu.memory_space<vmem>>, vector<32x1024xbf16>
      tpu.vector_store %arg8[%c0_24, %c0_25], %44 {strides = array<i32>} : memref<32x1024xbf16, #tpu.memory_space<vmem>>, vector<32x1024xbf16>,
      %46 = vector.extract_strided_slice %39 {offsets = [8, 0], sizes = [8, 1024], strides = [1, 1]} : vector<48x1024xf32> to vector<8x1024xf32>
      %47 = tpu.transpose %46, [1, 0] : vector<8x1024xf32> -> vector<1024x8xf32>
      %48 = arith.truncf %47 : vector<1024x8xf32> to vector<1024x8xbf16>
      %c0_26 = arith.constant 0 : index
      %c0_27 = arith.constant 0 : index
      %49 = vector.load %arg9[%c0_26, %c0_27] : memref<1024x8xbf16, #tpu.memory_space<vmem>>, vector<1024x8xbf16>
      tpu.vector_store %arg9[%c0_26, %c0_27], %48 {strides = array<i32>} : memref<1024x8xbf16, #tpu.memory_space<vmem>>, vector<1024x8xbf16>,
    } else {
    }
    %c512_i32 = arith.constant 512 : i32
    %3 = arith.muli %arg1, %c512_i32 : i32
    %4 = tpu.assume_multiple %3, 512 : i32
    %c0 = arith.constant 0 : index
    %5 = arith.index_cast %4 : i32 to index
    %6 = vector.load %arg7[%c0, %5] : memref<8x1024xbf16, #tpu.memory_space<vmem>>, vector<8x512xbf16>
    %c0_1 = arith.constant 0 : index
    %c0_2 = arith.constant 0 : index
    %7 = vector.load %arg9[%c0_1, %c0_2] : memref<1024x8xbf16, #tpu.memory_space<vmem>>, vector<1024x8xbf16>
    %cst = arith.constant dense<0.000000e+00> : vector<1024x512xf32>
    %8 = tpu.matmul %7, %6, %cst {dimension_numbers = #tpu.dot_dimension_numbers<[1], [0], [0], [1], [0, 0, 1, 1], [], []>} : vector<1024x8xbf16>, vector<8x512xbf16>, vector<1024x512xf32> -> vector<1024x512xf32>
    %cst_3 = arith.constant dense<0xFF800000> : vector<512xf32>
    %9 = vector.multi_reduction <maximumf>, %8, %cst_3 [0] : vector<1024x512xf32> to vector<512xf32>
    %10 = vector.shape_cast %9 : vector<512xf32> to vector<1x512xf32>
    %11 = vector.broadcast %10 : vector<1x512xf32> to vector<1024x512xf32>
    %12 = arith.subf %8, %11 : vector<1024x512xf32>
    %13 = math.exp %12 : vector<1024x512xf32>
    %cst_4 = arith.constant dense<0.000000e+00> : vector<512xf32>
    %14 = vector.multi_reduction <add>, %13, %cst_4 [0] : vector<1024x512xf32> to vector<512xf32>
    %15 = vector.shape_cast %14 : vector<512xf32> to vector<1x512xf32>
    %c0_5 = arith.constant 0 : index
    %c0_6 = arith.constant 0 : index
    %16 = vector.load %arg8[%c0_5, %c0_6] : memref<32x1024xbf16, #tpu.memory_space<vmem>>, vector<32x1024xbf16>
    %17 = arith.truncf %13 : vector<1024x512xf32> to vector<1024x512xbf16>
    %cst_7 = arith.constant dense<0.000000e+00> : vector<32x512xf32>
    %18 = tpu.matmul %16, %17, %cst_7 {dimension_numbers = #tpu.dot_dimension_numbers<[1], [0], [0], [1], [0, 0, 1, 1], [], []>} : vector<32x1024xbf16>, vector<1024x512xbf16>, vector<32x512xf32> -> vector<32x512xf32>
    %19 = tpu.reciprocal %15 {approx = true} : vector<1x512xf32> -> vector<1x512xf32>
    %20 = vector.broadcast %19 : vector<1x512xf32> to vector<32x512xf32>
    %21 = arith.mulf %18, %20 : vector<32x512xf32>
    %c0_8 = arith.constant 0 : index
    %c0_9 = arith.constant 0 : index
    %22 = arith.index_cast %4 : i32 to index
    %23 = vector.load %arg2[%c0_8, %c0_9, %22] : memref<1x32x1024xf32, #tpu.memory_space<vmem>>, vector<1x32x512xf32>
    %24 = vector.shape_cast %23 : vector<1x32x512xf32> to vector<32x512xf32>
    %c0_10 = arith.constant 0 : index
    %25 = memref.load %arg5[%c0_10] : memref<1xf32, #tpu.memory_space<smem>>
    %26 = vector.broadcast %25 : f32 to vector<32x512xf32>
    %27 = arith.mulf %26, %21 : vector<32x512xf32>
    %28 = arith.addf %24, %27 : vector<32x512xf32>
    %c0_11 = arith.constant 0 : index
    %c0_12 = arith.constant 0 : index
    %c0_13 = arith.constant 0 : index
    %29 = vector.load %arg6[%c0_11, %c0_12, %c0_13] : memref<1x32x512xf32, #tpu.memory_space<vmem>>, vector<1x32x512xf32>
    %30 = vector.shape_cast %29 : vector<1x32x512xf32> to vector<32x512xf32>
    %31 = vector.shape_cast %28 : vector<32x512xf32> to vector<1x32x512xf32>
    tpu.vector_store %arg6[%c0_11, %c0_12, %c0_13], %31 {strides = array<i32>} : memref<1x32x512xf32, #tpu.memory_space<vmem>>, vector<1x32x512xf32>,
    return
  }
  func.func @transform_0(%arg0: i32, %arg1: i32) -> (i32, i32, i32) {
    %c0_i32 = arith.constant 0 : i32
    %c0_i32_0 = arith.constant 0 : i32
    %c0_i32_1 = arith.constant 0 : i32
    return %arg0, %c0_i32, %c0_i32_0 : i32, i32, i32
  }
  func.func @transform_1(%arg0: i32, %arg1: i32) -> (i32, i32) {
    %c0_i32 = arith.constant 0 : i32
    %c0_i32_0 = arith.constant 0 : i32
    %c0_i32_1 = arith.constant 0 : i32
    return %c0_i32, %c0_i32_0 : i32, i32
  }
  func.func @transform_2(%arg0: i32, %arg1: i32) -> (i32, i32) {
    %c0_i32 = arith.constant 0 : i32
    %c0_i32_0 = arith.constant 0 : i32
    %c0_i32_1 = arith.constant 0 : i32
    return %c0_i32, %c0_i32_0 : i32, i32
  }
  func.func @transform_3(%arg0: i32, %arg1: i32) -> i32 {
    %c0_i32 = arith.constant 0 : i32
    %c0_i32_0 = arith.constant 0 : i32
    return %c0_i32 : i32
  }
  func.func @transform_4(%arg0: i32, %arg1: i32) -> (i32, i32, i32) {
    %c0_i32 = arith.constant 0 : i32
    %c0_i32_0 = arith.constant 0 : i32
    return %arg0, %c0_i32, %arg1 : i32, i32, i32
  }
}

</mosaic_0001>

<bundles_post_ra>
// kernel: tpu_custom_call.1
= control target key start
LH: loop header
LB: loop body
LE: loop exit
PB: predicated region body
PF: predicated region fallthrough
CT: control target
= control target key end

     0   :  { %s15476_s0 = inlined_call_operand.hbm [shape: f32[2,32,1024], index: 0, kind: input, shape index: {}]   ;;  %s15477_s1 = inlined_call_operand.vmem [shape: bf16[48,32], index: 1, kind: input, shape index: {}]   ;;  %s15478_s2 = inlined_call_operand.vmem [shape: f32[48,1], index: 2, kind: input, shape index: {}]   ;;  %s15479_s3 = inlined_call_operand.<no memory space> [shape: f32[1], index: 3, kind: input, shape index: {}]   ;;  %s15480_s4 = inlined_call_operand.hbm [shape: f32[2,32,1024], index: 4, kind: output, shape index: {}]  }
   0x1   :  { %9 = sst [smem:[#allocation5]] %s15479_s3 }
   0x2   :  { %10 = vsyncpa [#allocation7], 0 }
   0x3   :  { %12 = vsyncpa [#allocation7 + $0x1], 0 }
   0x4   :  { %13 = vsyncpa [#allocation8], 0 }
   0x5   :  { %15 = vsyncpa [#allocation8 + $0x1], 0  ;;  %s8077_s17 = smov 0   ;;  %s8079_s18 = smov 0  }
   0x6   :  { %s8081_s19 = smov 0   ;;  %s8083_s20 = smov 0  }
   0x7   :  { %s8085_s21 = smov 0   ;;  %s8087_s22 = smov 0  }
   0x8   :  { %s8089_s23 = smov 0   ;;  %s8091_s24 = smov 0  }
   0x9   :  { %s8093_s3 = smov 0   ;;  %s8095_s25 = smov 0  }
   0xa   :  { %s8097_s26 = smov 0  }
   0xb LB: > { %s6181_s27 = sadd.s32 4294967295, %s8038_s26   ;;  %s6182_s28 = sadd.s32 4294967294, %s8038_s26   ;;  %s8038_s26 = sphi %s8097_s26, %s21_s26   ;;  %s8034_s25 = sphi %s8095_s25, %s19722_s25   ;;  %s8030_s3 = sphi %s8093_s3, %s19721_s3   ;;  %s8026_s24 = sphi %s8091_s24, %s19720_s24   ;;  %s8022_s23 = sphi %s8089_s23, %s19719_s23   ;;  %s8018_s22 = sphi %s8087_s22, %s19718_s22   ;;  %s8014_s21 = sphi %s8085_s21, %s19717_s21   ;;  %s8010_s20 = sphi %s8083_s20, %s19716_s20   ;;  %s8006_s19 = sphi %s8081_s19, %s19715_s19   ;;  %s8002_s18 = sphi %s8079_s18, %s19714_s18   ;;  %s7998_s17 = sphi %s8077_s17, %s19713_s17  }
   0xc   : > { %s30_s29 = sadd.s32 1, %s8030_s3  ;;  %s33_s30 = sadd.s32 1, %s8034_s25 }
   0xd   : > { %p31_p0 = scmp.ge.s32.totalorder %s30_s29, 2  ;;  %s40_s5 = sadd.s32 1, %s8018_s22 }
   0xe   : > { %p47_p1 = scmp.ne.s32.totalorder %s8018_s22, %s8014_s21  ;;  %p48_p2 = scmp.eq.s32.totalorder %s8038_s26, 0 }
   0xf   : > { %s19724_s29 = smov (%p31_p0, %s30_s29), 0  ;;  %s19726_s30 = smov (!%p31_p0, %s33_s30), %s8034_s25 }
  0x10   : > { %p8141_p3 = por %p48_p2, %p47_p1  ;;  %p53_p4 = scmp.ne.s32.totalorder %s8014_s21, %s8010_s20 }
  0x11   : > { %p35_p5 = scmp.ge.s32.totalorder %s19726_s30, 2  ;;  %p54_p6 = scmp.eq.s32.totalorder %s6181_s27, 0 }
  0x12   : > { %s127_s7 = ssub.s32 %s8030_s3, %s19724_s29  ;;  %s131_s8 = sadd.s32 1, %s8006_s19 }
  0x13   : > { %s19728_s30 = smov (%p35_p5, %s19726_s30), 0  ;;  %p8151_p7 = por %p54_p6, %p53_p4 }
  0x14   : > { %16857 = sst [smem:[#allocation12_spill]] %s19728_s30  ;;  %p141_p8 = scmp.ne.s32.totalorder %s8006_s19, %s8002_s18 }
  0x15   : > { %s37_s10 = ssub.s32 %s8034_s25, %s19728_s30  ;;  %p142_p9 = scmp.eq.s32.totalorder %s6181_s27, 3 }
  0x16   : > { %p38_p10 = scmp.eq.s32.totalorder %s37_s10, 0  ;;  %s128_s11 = sor.u32 %s127_s7, %s37_s10 }
  0x17   : > { %p129_p11 = scmp.eq.s32.totalorder %s128_s11, 0  ;;  %p8159_p12 = por %p142_p9, %p141_p8 }
  0x18   : > { %s8164_s13 = scalar_select %p38_p10, %s8018_s22, %s40_s5  }
  0x19   : > { %s16859_s12 = scalar_select %p8159_p12, 1, 0 }
  0x1a   : > { %s8167_s14 = scalar_select %p129_p11, %s8006_s19, %s131_s8  }
  0x1b   : > { %p147_p13 = scmp.ne.s32.totalorder %s8002_s18, %s7998_s17  ;;  %p148_p0 = scmp.eq.s32.totalorder %s6182_s28, 3 }
  0x1c   : > { %p6419_p1 = scmp.lt.s32.totalorder %s8038_s26, 4  ;;  %s177_s16 = sand.u32 1, %s8018_s22  }
  0x1d   : > { %p8172_p2 = por %p148_p0, %p147_p13  ;;  %s6185_s20 = sshll.u32 %s177_s16, 8 }
  0x1e   : > { %s6354_s27 = sshll.u32 %s8034_s25, 12  ;;  %s181_s5 = scalar_lea.vmem [#allocation6], %s6185_s20 }
  0x1f   : > { %s16860_s15 = scalar_select %p8172_p2, 1, 0 }
  0x20   : > { %s8181_s11 = scalar_lea.hbm %s15476_s0, %s6354_s27  ;;  %s188_s8 = sshll.u32 %s181_s5, 4  ;;  %s8183_s8 = int_to_ptr.vmem [resolvable:$true] %s188_s8 }
  0x21   : > { %p8187_p4 = pnand %p6419_p1, %p8141_p3  ;;  %s8192_s30 = scalar_lea.sflag [#allocation7], %s177_s16 }
  0x22   : > { %s7886_s27 = scalar_lea.hbm %s8181_s11, 4096  ;;  %s7891_s6 = scalar_lea.hbm %s15476_s0, 8192 }
  0x23   : > { %p7887_p6 = scmp.ne.s32.totalorder %s8181_s11, %s7886_s27  ;;  %p7888_p8 = pneg %p8187_p4 }
  0x24   : > { %p7892_p3 = scmp.lt.u32.totalorder %s8181_s11, %s15476_s0  ;;  %p7893_p11 = scmp.lt.u32.totalorder %s7891_s6, %s7886_s27 }
  0x25   : > { %p7889_p9 = pnand %p7888_p8, %p7887_p6  ;;  %p7895_p0 = scmp.lt.u32.totalorder %s7886_s27, %s8181_s11 }
  0x26   : > { %p7894_p13 = por %p7893_p11, %p7892_p3 }
  0x27   : > { %p7890_p10 = pneg %p7889_p9 }
  0x28   : > { %p7896_p1 = por %p7895_p0, %p7894_p13 }
  0x2a   : > { %p7897_p5 = pnand %p7896_p1, %p7890_p10 }
  0x2c   : > { %7900 = shalt.err (!%p7897_p5)
}
  0x2d   : > { %s7901_s16 = scalar_lea.vmem %s8183_s8, 4096  ;;  %s8040_s20 = smov [#allocation6]  }
  0x2e   : > { %p7902_p6 = scmp.ne.s32.totalorder %s8183_s8, %s7901_s16  ;;  %s7906_s7 = sshll.u32 %s8040_s20, 4  ;;  %s7907_s7 = int_to_ptr.vmem [resolvable:$false] %s7906_s7 }
  0x2f   : > { %s7908_s10 = scalar_lea.vmem %s7907_s7, 8192  ;;  %p7909_p12 = scmp.lt.s32.totalorder %s8183_s8, %s7907_s7 }
  0x30   : > { %p7904_p9 = pnand %p7902_p6, %p7888_p8  ;;  %p7910_p3 = scmp.lt.s32.totalorder %s7908_s10, %s7901_s16 }
  0x32   : > { %p7905_p2 = pneg %p7904_p9  ;;  %p7911_p11 = por %p7910_p3, %p7909_p12 }
  0x34   : > { %p7912_p13 = pnand %p7911_p11, %p7905_p2 }
  0x36   : > { %7915 = shalt.err (!%p7912_p13)
}
  0x37   : > { %s8041_s27 = smov 1024   ;;  %s8042_s6 = smov 64  }
  0x38   : > { %6414 = dma.hbm_to_vmem [thread:$0]  (!%p8187_p4), %s8181_s11, 4096, %s8183_s8, %s8192_s30, %s8041_s27, %s8041_s27, %s8042_s6  }
  0x39   : > { %p196_p5 = scmp.lt.s32.totalorder %s8038_s26, 5  ;;  %p16862_p8 = scmp.ge.s32.totalorder %s8038_s26, 1 }
  0x3b   : > { %p197_p10 = pnand %p16862_p8, %p196_p5 }
  0x3d   : > { %200 = sbr.rel (%p197_p10) target bundleno = 2181 (0x885), region = 36 }
  0x44   : > { %s202_s5 = sand.u32 1, %s8014_s21  }
  0x45   : > { %s6189_s16 = sshll.u32 %s202_s5, 8  ;;  %s203_s20 = scalar_lea.sflag [#allocation7], %s202_s5 }
  0x46   : > { %s8224_s7 = scalar_lea.vmem [#allocation6], %s6189_s16 }
  0x47   : > { %7989 = dma.done.wait (%p8151_p7), %s203_s20, 4096  }
  0x48   : > { %7991 = vsyncadd (%p8151_p7), %s203_s20, 4294963200  ;;  %s228_s28 = sand.u32 1, %s8002_s18   ;;  %p6191_p12 = scmp.ne.s32.totalorder %s8022_s23, 0 }
  0x49   : > { %s6190_s30 = sshll.u32 %s228_s28, 7  ;;  %v238_v0 = vld [vmem:[%s8224_s7 + $0x8] sm:$0xff] (!%p6191_p12)  ;;  %v240_v2 = vld [vmem:[%s8224_s7 + $0x18] sm:$0xff] (!%p6191_p12)  ;;  %v237_v5 = vld [vmem:[%s8224_s7] sm:$0xff] (!%p6191_p12)  ;;  %v8043_v7 = vmov (!%p6191_p12), 0   ;;  %vm342_vm0 = vcmask (!%p6191_p12), 261120  }
  0x4a   : > { %s8233_s11 = scalar_lea.vmem [#allocation9], %s6190_s30  ;;  %236 = sbr.rel (%p6191_p12) target bundleno = 563 (0x233), region = 44  ;;  %v246_v1 = vld [vmem:[%s8224_s7 + $0x48] sm:$0xff] (!%p6191_p12)  ;;  %v248_v4 = vld [vmem:[%s8224_s7 + $0x58] sm:$0xff] (!%p6191_p12)  ;;  %v245_v6 = vld [vmem:[%s8224_s7 + $0x40] sm:$0xff] (!%p6191_p12)  ;;  %384 = vmatprep.mubr.bf16.mxu0 (!%p6191_p12), %v8043_v7  ;;  %447 = vmatprep.mubr.bf16.mxu1 (!%p6191_p12), %v8043_v7  ;;  %vm992_vm1 = vcmask (!%p6191_p12), 64512  }
  0x4b   : > { %v270_v3 = vpack.c.bf16 (!%p6191_p12), %v246_v1, %v238_v0  ;;  %v272_v8 = vpack.c.bf16 (!%p6191_p12), %v248_v4, %v240_v2  ;;  %v269_v9 = vpack.c.bf16 (!%p6191_p12), %v245_v6, %v237_v5  ;;  %v239_v10 = vld [vmem:[%s8224_s7 + $0x10] sm:$0xff] (!%p6191_p12)  ;;  %v254_v12 = vld [vmem:[%s8224_s7 + $0x88] sm:$0xff] (!%p6191_p12)  ;;  %6517 = vset.pattern.permute.xlu0 (!%p6191_p12), %v8043_v7  ;;  %6518 = vset.pattern.permute.xlu1 (!%p6191_p12), %v8043_v7  ;;  %v256_v15 = vld [vmem:[%s8224_s7 + $0x98] sm:$0xff] (!%p6191_p12) }
  0x4c   : > { %v247_v11 = vld [vmem:[%s8224_s7 + $0x50] sm:$0xff] (!%p6191_p12)  ;;  %v262_v14 = vld [vmem:[%s8224_s7 + $0xc8] sm:$0xff] (!%p6191_p12)  ;;  %v264_v16 = vld [vmem:[%s8224_s7 + $0xd8] sm:$0xff] (!%p6191_p12) }
  0x4d   : > { %352 = vmatprep.subr.bf16.mxu0 (!%p6191_p12), %v270_v3  ;;  %v271_v13 = vpack.c.bf16 (!%p6191_p12), %v247_v11, %v239_v10  ;;  %415 = vmatprep.subr.bf16.mxu1 (!%p6191_p12), %v272_v8  ;;  %v278_v17 = vpack.c.bf16 (!%p6191_p12), %v262_v14, %v254_v12  ;;  %v280_v18 = vpack.c.bf16 (!%p6191_p12), %v264_v16, %v256_v15  ;;  %v253_v19 = vld [vmem:[%s8224_s7 + $0x80] sm:$0xff] (!%p6191_p12)  ;;  %v255_v21 = vld [vmem:[%s8224_s7 + $0x90] sm:$0xff] (!%p6191_p12)  ;;  %v242_v26 = vld [vmem:[%s8224_s7 + $0x28] sm:$0xff] (!%p6191_p12) }
  0x4e   : > { %353 = vmatpush1.bf16.msra.mxu0 (!%p6191_p12), %v269_v9  ;;  %v261_v20 = vld [vmem:[%s8224_s7 + $0xc0] sm:$0xff] (!%p6191_p12)  ;;  %v263_v23 = vld [vmem:[%s8224_s7 + $0xd0] sm:$0xff] (!%p6191_p12)  ;;  %v250_v27 = vld [vmem:[%s8224_s7 + $0x68] sm:$0xff] (!%p6191_p12) }
  0x4f   : > { %416 = vmatpush1.bf16.msra.mxu1 (!%p6191_p12), %v271_v13  ;;  %v277_v22 = vpack.c.bf16 (!%p6191_p12), %v261_v20, %v253_v19  ;;  %354 = vmatprep.subr.bf16.mxu0 (!%p6191_p12), %v278_v17  ;;  %v279_v24 = vpack.c.bf16 (!%p6191_p12), %v263_v23, %v255_v21  ;;  %v8259_v25 = vld [vmem:[%s15477_s1] sm:$0xff] (!%p6191_p12)   ;;  %v274_v28 = vpack.c.bf16 (!%p6191_p12), %v250_v27, %v242_v26  ;;  %v244_v29 = vld [vmem:[%s8224_s7 + $0x38] sm:$0xff] (!%p6191_p12)  ;;  %v243_v34 = vld [vmem:[%s8224_s7 + $0x30] sm:$0xff] (!%p6191_p12) }
  0x50   : > { %417 = vmatprep.subr.bf16.mxu1 (!%p6191_p12), %v280_v18  ;;  %v252_v30 = vld [vmem:[%s8224_s7 + $0x78] sm:$0xff] (!%p6191_p12)  ;;  %v241_v31 = vld [vmem:[%s8224_s7 + $0x20] sm:$0xff] (!%p6191_p12)  ;;  %v251_v35 = vld [vmem:[%s8224_s7 + $0x70] sm:$0xff] (!%p6191_p12) }
  0x51   : > { %v276_v32 = vpack.c.bf16 %v252_v30, %v244_v29  ;;  %v249_v33 = vld [vmem:[%s8224_s7 + $0x60] sm:$0xff]  ;;  %v275_v37 = vpack.c.bf16 %v251_v35, %v243_v34  ;;  %v258_v38 = vld [vmem:[%s8224_s7 + $0xa8] sm:$0xff]  ;;  %v260_v40 = vld [vmem:[%s8224_s7 + $0xb8] sm:$0xff] }
  0x52   : > { %355 = vmatpush1.bf16.msra.mxu0 %v277_v22  ;;  %v273_v36 = vpack.c.bf16 %v249_v33, %v241_v31  ;;  %v266_v39 = vld [vmem:[%s8224_s7 + $0xe8] sm:$0xff]  ;;  %v268_v42 = vld [vmem:[%s8224_s7 + $0xf8] sm:$0xff]  ;;  %v257_v43 = vld [vmem:[%s8224_s7 + $0xa0] sm:$0xff] }
  0x53   : > { %418 = vmatpush1.bf16.msra.mxu1 %v279_v24  ;;  %478 = vmatprep.subr.bf16.mxu0 %v274_v28  ;;  %v282_v41 = vpack.c.bf16 %v266_v39, %v258_v38  ;;  %v265_v44 = vld [vmem:[%s8224_s7 + $0xe0] sm:$0xff]  ;;  %v284_v45 = vpack.c.bf16 %v268_v42, %v260_v40  ;;  %v259_v46 = vld [vmem:[%s8224_s7 + $0xb0] sm:$0xff]  ;;  %v6848_v52 = vld [vmem:[%s15477_s1 + $0x8] sm:$0xff]  }
  0x54   : > { %541 = vmatprep.subr.bf16.mxu1 %v276_v32  ;;  %v267_v47 = vld [vmem:[%s8224_s7 + $0xf0] sm:$0xff]  ;;  %v291_v48 = vld [vmem:[%s15478_s2] sm:$0xff]  ;;  %v281_v49 = vpack.c.bf16 %v265_v44, %v257_v43  ;;  %v292_v53 = vld [vmem:[%s15478_s2 + $0x8] sm:$0xff] }
  0x55   : > { %6195 = vmatmul.mubr.msk.bf16.vlgmr.msra.gmra.mrb[0].mxu0 %vm342_vm0, %v8259_v25  ;;  %v283_v50 = vpack.c.bf16 %v267_v47, %v259_v46  ;;  %v293_v51 = vld [vmem:[%s15478_s2 + $0x10] sm:$0xff]  ;;  %299 = vperm.xlu0 %6517, %v291_v48   ;;  %v294_v54 = vld [vmem:[%s15478_s2 + $0x18] sm:$0xff]  ;;  %v295_v55 = vld [vmem:[%s15478_s2 + $0x20] sm:$0xff] }
  0x56   : > { %6198 = vmatmul.mubr.msk.bf16.vlgmr.msra.gmra.mrb[0].mxu1 %vm342_vm0, %v8259_v25  ;;  %394 = vmatprep.mubr.bf16.mxu0 %v8043_v7  ;;  %v6849_v56 = vld [vmem:[%s15477_s1 + $0x10] sm:$0xff]   ;;  %v296_v57 = vld [vmem:[%s15478_s2 + $0x28] sm:$0xff] }
  0x57   : > { %457 = vmatprep.mubr.bf16.mxu1 %v8043_v7  ;;  %479 = vmatpush1.bf16.msra.mxu0 %v273_v36 }
  0x58   : > { %542 = vmatpush1.bf16.msra.mxu1 %v275_v37  ;;  %480 = vmatprep.subr.bf16.mxu0 %v282_v41 }
  0x59   : > { %543 = vmatprep.subr.bf16.mxu1 %v284_v45  ;;  %309 = vperm.xlu1 %6518, %v293_v51  }
  0x5a   : > { %304 = vperm.xlu0 %6517, %v292_v53  }
  0x5b   : > { %481 = vmatpush1.bf16.msra.mxu0 %v281_v49 }
  0x5c   : > { %544 = vmatpush1.bf16.msra.mxu1 %v283_v50 }
  0x5d   : > { %6196 = vmatmul.mubr.msk.bf16.gmra.mrb[4].mxu0 %vm342_vm0, %v6848_v52  ;;  %314 = vperm.xlu1 %6518, %v294_v54  }
  0x5e   : > { %6199 = vmatmul.mubr.msk.bf16.gmra.mrb[4].mxu1 %vm342_vm0, %v6848_v52  ;;  %404 = vmatprep.mubr.bf16.mxu0 %v8043_v7 }
  0x5f   : > { %467 = vmatprep.mubr.bf16.mxu1 %v8043_v7  ;;  %319 = vperm.xlu0 %6517, %v295_v55  }
  0x61   : > { %324 = vperm.xlu1 %6518, %v296_v57  }
  0x65   : > { %6197 = vmatmul.mubr.msk.bf16.gmra.mrb[8].mxu0 %vm342_vm0, %v6849_v56 }
  0x66   : > { %6200 = vmatmul.mubr.msk.bf16.gmra.mrb[8].mxu1 %vm342_vm0, %v6849_v56  ;;  %510 = vmatprep.mubr.bf16.mxu0 %v8043_v7 }
  0x67   : > { %573 = vmatprep.mubr.bf16.mxu1 %v8043_v7 }
  0x6d   : > { %6201 = vmatmul.mubr.msk.bf16.vlgmr.msra.gmra.mrb[12].mxu0 %vm342_vm0, %v8259_v25 }
  0x6e   : > { %6204 = vmatmul.mubr.msk.bf16.vlgmr.msra.gmra.mrb[12].mxu1 %vm342_vm0, %v8259_v25  ;;  %520 = vmatprep.mubr.bf16.mxu0 %v8043_v7 }
  0x6f   : > { %583 = vmatprep.mubr.bf16.mxu1 %v8043_v7 }
  0x75   : > { %6202 = vmatmul.mubr.msk.bf16.gmra.mrb[16].mxu0 %vm342_vm0, %v6848_v52 }
  0x76   : > { %6205 = vmatmul.mubr.msk.bf16.gmra.mrb[16].mxu1 %vm342_vm0, %v6848_v52  ;;  %530 = vmatprep.mubr.bf16.mxu0 %v8043_v7 }
  0x77   : > { %593 = vmatprep.mubr.bf16.mxu1 %v8043_v7 }
  0x7d   : > { %6203 = vmatmul.mubr.msk.bf16.gmra.mrb[20].mxu0 %vm342_vm0, %v6849_v56 }
  0x7e   : > { %6206 = vmatmul.mubr.msk.bf16.gmra.mrb[20].mxu1 %vm342_vm0, %v6849_v56 }
  0xd4   : > { %v8327_v58 = vpop.permute.xlu0 %299 }
  0xd8   : > { %v8329_v59 = vpop.permute.xlu1 %309 }
  0xd9   : > { %v8331_v60 = vpop.permute.xlu0 %304 }
  0xdc   : > { %v8341_v18 = vpop.permute.xlu1 %314 }
  0xde   : > { %v8351_v37 = vpop.permute.xlu0 %319 }
  0xe0   : > { %v8353_v40 = vpop.permute.xlu1 %324 }
 0x128   : > { %v386_v61 = vpop.f32.mrb[0].mxu0 }
 0x129   : > { %v387_v62 = vadd.f32 %v386_v61, %v8327_v58  ;;  %v449_v63 = vpop.f32.mrb[0].mxu1  ;;  %v388_v0 = vpop.f32.mrb[1].mxu0 }
 0x12a   : > { %v450_v1 = vadd.f32 %v449_v63, %v8327_v58  ;;  %v389_v2 = vadd.f32 %v388_v0, %v8327_v58  ;;  %v451_v3 = vpop.f32.mrb[1].mxu1  ;;  %v390_v4 = vpop.f32.mrb[2].mxu0 }
 0x12b   : > { %v452_v5 = vadd.f32 %v451_v3, %v8327_v58  ;;  %v391_v6 = vadd.f32 %v390_v4, %v8331_v60  ;;  %v453_v7 = vpop.f32.mrb[2].mxu1  ;;  %v392_v8 = vpop.f32.mrb[3].mxu0 }
 0x12c   : > { %v6355_v9 = vpack.c.bf16 %v389_v2, %v387_v62  ;;  %v454_v10 = vadd.f32 %v453_v7, %v8331_v60  ;;  %v393_v11 = vadd.f32 %v392_v8, %v8331_v60  ;;  %v455_v12 = vpop.f32.mrb[3].mxu1 }
 0x12d   : > { %v6356_v13 = vpack.c.bf16 %v452_v5, %v450_v1  ;;  %v456_v14 = vadd.f32 %v455_v12, %v8331_v60 }
 0x12e   : > { %636 = vst [vmem:[#allocation2] sm:$0xff] %v6355_v9  ;;  %v6519_v15 = vpack.i.bf16 %v393_v11, %v391_v6 }
 0x12f   : > { %637 = vst [vmem:[#allocation2 + $0x8] sm:$0xff] %v6356_v13  ;;  %v6601_v16 = vpack.i.bf16 %v456_v14, %v454_v10 }
 0x130   : > { %6520 = vxpose.xlu0.b32.start.end [1/1] (short) %v6519_v15, 128  ;;  %v396_v17 = vpop.f32.mrb[4].mxu0 }
 0x131   : > { %6602 = vxpose.xlu1.b32.start.end [1/1] (short) %v6601_v16, 128  ;;  %v397_v19 = vadd.f32 %v396_v17, %v8329_v59  ;;  %v459_v20 = vpop.f32.mrb[4].mxu1  ;;  %v398_v21 = vpop.f32.mrb[5].mxu0 }
 0x132   : > { %v460_v22 = vadd.f32 %v459_v20, %v8329_v59  ;;  %v399_v23 = vadd.f32 %v398_v21, %v8329_v59  ;;  %v461_v24 = vpop.f32.mrb[5].mxu1  ;;  %v400_v25 = vpop.f32.mrb[6].mxu0 }
 0x133   : > { %v462_v26 = vadd.f32 %v461_v24, %v8329_v59  ;;  %v401_v27 = vadd.f32 %v400_v25, %v8341_v18  ;;  %v463_v28 = vpop.f32.mrb[6].mxu1  ;;  %v402_v29 = vpop.f32.mrb[7].mxu0 }
 0x134   : > { %v464_v30 = vadd.f32 %v463_v28, %v8341_v18  ;;  %v403_v31 = vadd.f32 %v402_v29, %v8341_v18  ;;  %v465_v32 = vpop.f32.mrb[7].mxu1 }
 0x135   : > { %v640_v33 = vpack.c.bf16 %v401_v27, %v397_v19  ;;  %v466_v34 = vadd.f32 %v465_v32, %v8341_v18 }
 0x136   : > { %v642_v35 = vpack.c.bf16 %v464_v30, %v460_v22  ;;  %v641_v36 = vpack.c.bf16 %v403_v31, %v399_v23 }
 0x137   : > { %656 = vst [vmem:[#allocation3] sm:$0xff] %v640_v33  ;;  %v643_v38 = vpack.c.bf16 %v466_v34, %v462_v26 }
 0x138   : > { %658 = vst [vmem:[#allocation3 + $0x10] sm:$0xff] %v642_v35  ;;  %657 = vst [vmem:[#allocation3 + $0x8] sm:$0xff] %v641_v36  ;;  %v406_v39 = vpop.f32.mrb[8].mxu0 }
 0x139   : > { %659 = vst [vmem:[#allocation3 + $0x18] sm:$0xff] %v643_v38  ;;  %v469_v41 = vpop.f32.mrb[8].mxu1  ;;  %v408_v42 = vpop.f32.mrb[9].mxu0  ;;  %v407_v45 = vadd.f32 %v406_v39, %v8351_v37 }
 0x13a   : > { %v471_v43 = vpop.f32.mrb[9].mxu1  ;;  %v410_v44 = vpop.f32.mrb[10].mxu0  ;;  %v470_v49 = vadd.f32 %v469_v41, %v8351_v37  ;;  %v409_v50 = vadd.f32 %v408_v42, %v8351_v37 }
 0x13b   : > { %v411_v46 = vadd.f32 %v410_v44, %v8353_v40  ;;  %v473_v47 = vpop.f32.mrb[10].mxu1  ;;  %v412_v48 = vpop.f32.mrb[11].mxu0  ;;  %v472_v54 = vadd.f32 %v471_v43, %v8351_v37 }
 0x13c   : > { %v474_v51 = vadd.f32 %v473_v47, %v8353_v40  ;;  %v413_v52 = vadd.f32 %v412_v48, %v8353_v40  ;;  %v475_v53 = vpop.f32.mrb[11].mxu1 }
 0x13d   : > { %v648_v55 = vpack.c.bf16 %v411_v46, %v407_v45  ;;  %v476_v56 = vadd.f32 %v475_v53, %v8353_v40 }
 0x13e   : > { %v650_v57 = vpack.c.bf16 %v474_v51, %v470_v49  ;;  %v649_v61 = vpack.c.bf16 %v413_v52, %v409_v50 }
 0x13f   : > { %664 = vst [vmem:[#allocation3 + $0x40] sm:$0xff] %v648_v55  ;;  %v651_v62 = vpack.c.bf16 %v476_v56, %v472_v54 }
 0x140   : > { %666 = vst [vmem:[#allocation3 + $0x50] sm:$0xff] %v650_v57  ;;  %665 = vst [vmem:[#allocation3 + $0x48] sm:$0xff] %v649_v61  ;;  %v512_v63 = vpop.f32.mrb[12].mxu0 }
 0x141   : > { %667 = vst [vmem:[#allocation3 + $0x58] sm:$0xff] %v651_v62  ;;  %v513_v0 = vadd.f32 %v512_v63, %v8327_v58  ;;  %v575_v1 = vpop.f32.mrb[12].mxu1  ;;  %v514_v2 = vpop.f32.mrb[13].mxu0 }
 0x142   : > { %v576_v3 = vadd.f32 %v575_v1, %v8327_v58  ;;  %v515_v4 = vadd.f32 %v514_v2, %v8327_v58  ;;  %v577_v5 = vpop.f32.mrb[13].mxu1  ;;  %v516_v6 = vpop.f32.mrb[14].mxu0 }
 0x143   : > { %v578_v7 = vadd.f32 %v577_v5, %v8327_v58  ;;  %v517_v8 = vadd.f32 %v516_v6, %v8331_v60  ;;  %v579_v9 = vpop.f32.mrb[14].mxu1  ;;  %v518_v10 = vpop.f32.mrb[15].mxu0 }
 0x144   : > { %v6357_v11 = vpack.c.bf16 %v515_v4, %v513_v0  ;;  %v580_v12 = vadd.f32 %v579_v9, %v8331_v60  ;;  %v519_v13 = vadd.f32 %v518_v10, %v8331_v60  ;;  %v581_v14 = vpop.f32.mrb[15].mxu1 }
 0x145   : > { %v6358_v15 = vpack.c.bf16 %v578_v7, %v576_v3  ;;  %v582_v16 = vadd.f32 %v581_v14, %v8331_v60 }
 0x146   : > { %638 = vst [vmem:[#allocation2 + $0x10] sm:$0xff] %v6357_v11  ;;  %v6683_v17 = vpack.i.bf16 %v519_v13, %v517_v8 }
 0x147   : > { %639 = vst [vmem:[#allocation2 + $0x18] sm:$0xff] %v6358_v15  ;;  %v6765_v19 = vpack.i.bf16 %v582_v16, %v580_v12 }
 0x148   : > { %v522_v20 = vpop.f32.mrb[16].mxu0 }
 0x149   : > { %v523_v58 = vadd.f32 %v522_v20, %v8329_v59  ;;  %v585_v21 = vpop.f32.mrb[16].mxu1  ;;  %v524_v22 = vpop.f32.mrb[17].mxu0 }
 0x14a   : > { %v586_v23 = vadd.f32 %v585_v21, %v8329_v59  ;;  %v525_v24 = vadd.f32 %v524_v22, %v8329_v59  ;;  %v587_v25 = vpop.f32.mrb[17].mxu1  ;;  %v526_v26 = vpop.f32.mrb[18].mxu0 }
 0x14b   : > { %v588_v27 = vadd.f32 %v587_v25, %v8329_v59  ;;  %v527_v28 = vadd.f32 %v526_v26, %v8341_v18  ;;  %v589_v60 = vpop.f32.mrb[18].mxu1  ;;  %v528_v29 = vpop.f32.mrb[19].mxu0 }
 0x14c   : > { %v590_v30 = vadd.f32 %v589_v60, %v8341_v18  ;;  %v529_v31 = vadd.f32 %v528_v29, %v8341_v18  ;;  %v591_v32 = vpop.f32.mrb[19].mxu1 }
 0x14d   : > { %v644_v33 = vpack.c.bf16 %v527_v28, %v523_v58  ;;  %v592_v34 = vadd.f32 %v591_v32, %v8341_v18 }
 0x14e   : > { %v646_v35 = vpack.c.bf16 %v590_v30, %v586_v23  ;;  %v645_v36 = vpack.c.bf16 %v529_v31, %v525_v24 }
 0x14f   : > { %660 = vst [vmem:[#allocation3 + $0x20] sm:$0xff] %v644_v33  ;;  %v647_v38 = vpack.c.bf16 %v592_v34, %v588_v27 }
 0x150   : > { %662 = vst [vmem:[#allocation3 + $0x30] sm:$0xff] %v646_v35  ;;  %661 = vst [vmem:[#allocation3 + $0x28] sm:$0xff] %v645_v36  ;;  %v532_v39 = vpop.f32.mrb[20].mxu0 }
 0x151   : > { %663 = vst [vmem:[#allocation3 + $0x38] sm:$0xff] %v647_v38  ;;  %v595_v59 = vpop.f32.mrb[20].mxu1  ;;  %v534_v41 = vpop.f32.mrb[21].mxu0  ;;  %v533_v44 = vadd.f32 %v532_v39, %v8351_v37 }
 0x152   : > { %v597_v42 = vpop.f32.mrb[21].mxu1  ;;  %v536_v43 = vpop.f32.mrb[22].mxu0  ;;  %v596_v18 = vadd.f32 %v595_v59, %v8351_v37  ;;  %v535_v48 = vadd.f32 %v534_v41, %v8351_v37 }
 0x153   : > { %v537_v45 = vadd.f32 %v536_v43, %v8353_v40  ;;  %v599_v46 = vpop.f32.mrb[22].mxu1  ;;  %v538_v47 = vpop.f32.mrb[23].mxu0  ;;  %v598_v52 = vadd.f32 %v597_v42, %v8351_v37 }
 0x154   : > { %v600_v49 = vadd.f32 %v599_v46, %v8353_v40  ;;  %v539_v50 = vadd.f32 %v538_v47, %v8353_v40  ;;  %v601_v51 = vpop.f32.mrb[23].mxu1 }
 0x155   : > { %v652_v53 = vpack.c.bf16 %v537_v45, %v533_v44  ;;  %v602_v54 = vadd.f32 %v601_v51, %v8353_v40 }
 0x156   : > { %v654_v55 = vpack.c.bf16 %v600_v49, %v596_v18  ;;  %v653_v56 = vpack.c.bf16 %v539_v50, %v535_v48 }
 0x157   : > { %668 = vst [vmem:[#allocation3 + $0x60] sm:$0xff] %v652_v53  ;;  %v655_v57 = vpack.c.bf16 %v602_v54, %v598_v52 }
 0x158   : > { %670 = vst [vmem:[#allocation3 + $0x70] sm:$0xff] %v654_v55  ;;  %669 = vst [vmem:[#allocation3 + $0x68] sm:$0xff] %v653_v56 }
 0x159   : > { %671 = vst [vmem:[#allocation3 + $0x78] sm:$0xff] %v655_v57 }
 0x16d   : > { %6684 = vxpose.xlu0.b32.start.end [1/1] (short) %v6683_v17, 128 }
 0x16e   : > { %6766 = vxpose.xlu1.b32.start.end [1/1] (short) %v6765_v19, 128 }
 0x1b0   : > { %v6521_v61 = vpop.trf.xlu0 }
 0x1b1   : > { %v6603_v62 = vpop.trf.xlu1  ;;  %v6525_v1 = vunpack.i.h.bf16 %v6521_v61  ;;  %v6522_v2 = vunpack.i.l.bf16 %v6521_v61 }
 0x1b2   : > { %v6607_v63 = vunpack.i.h.bf16 %v6603_v62  ;;  %v6604_v0 = vunpack.i.l.bf16 %v6603_v62 }
 0x1b4   : > { %v6526_v37 = vpop.trf.xlu0 }
 0x1b5   : > { %v6608_v3 = vpop.trf.xlu1  ;;  %v6530_v4 = vunpack.i.h.bf16 %v6526_v37  ;;  %v6527_v40 = vunpack.i.l.bf16 %v6526_v37 }
 0x1b6   : > { %v6612_v5 = vunpack.i.h.bf16 %v6608_v3  ;;  %v6609_v6 = vunpack.i.l.bf16 %v6608_v3 }
 0x1b7   : > { %v928_v7 = vpack.c.bf16 %v6527_v40, %v6522_v2  ;;  %v936_v8 = vpack.c.bf16 %v6530_v4, %v6525_v1 }
 0x1b8   : > { %v944_v9 = vpack.c.bf16 %v6609_v6, %v6604_v0  ;;  %v952_v10 = vpack.c.bf16 %v6612_v5, %v6607_v63  ;;  %v6531_v11 = vpop.trf.xlu0 }
 0x1b9   : > { %993 = vst.msk [vmem:[#allocation4] sm:$0xff] %vm992_vm1, %v928_v7  ;;  %1001 = vst.msk [vmem:[#allocation4 + $0x40] sm:$0xff] %vm992_vm1, %v936_v8  ;;  %v6613_v12 = vpop.trf.xlu1  ;;  %v6535_v15 = vunpack.i.h.bf16 %v6531_v11  ;;  %v6532_v16 = vunpack.i.l.bf16 %v6531_v11 }
 0x1ba   : > { %1009 = vst.msk [vmem:[#allocation4 + $0x80] sm:$0xff] %vm992_vm1, %v944_v9  ;;  %1017 = vst.msk [vmem:[#allocation4 + $0xc0] sm:$0xff] %vm992_vm1, %v952_v10  ;;  %v6617_v13 = vunpack.i.h.bf16 %v6613_v12  ;;  %v6614_v14 = vunpack.i.l.bf16 %v6613_v12 }
 0x1bc   : > { %v6536_v17 = vpop.trf.xlu0 }
 0x1bd   : > { %v6618_v19 = vpop.trf.xlu1  ;;  %v6540_v20 = vunpack.i.h.bf16 %v6536_v17  ;;  %v6537_v58 = vunpack.i.l.bf16 %v6536_v17 }
 0x1be   : > { %v6622_v21 = vunpack.i.h.bf16 %v6618_v19  ;;  %v6619_v22 = vunpack.i.l.bf16 %v6618_v19 }
 0x1bf   : > { %v929_v23 = vpack.c.bf16 %v6537_v58, %v6532_v16  ;;  %v937_v24 = vpack.c.bf16 %v6540_v20, %v6535_v15 }
 0x1c0   : > { %v945_v25 = vpack.c.bf16 %v6619_v22, %v6614_v14  ;;  %v953_v26 = vpack.c.bf16 %v6622_v21, %v6617_v13  ;;  %v6541_v27 = vpop.trf.xlu0 }
 0x1c1   : > { %994 = vst.msk [vmem:[#allocation4 + $0x8] sm:$0xff] %vm992_vm1, %v929_v23  ;;  %1002 = vst.msk [vmem:[#allocation4 + $0x48] sm:$0xff] %vm992_vm1, %v937_v24  ;;  %v6623_v28 = vpop.trf.xlu1  ;;  %v6545_v30 = vunpack.i.h.bf16 %v6541_v27  ;;  %v6542_v31 = vunpack.i.l.bf16 %v6541_v27 }
 0x1c2   : > { %1010 = vst.msk [vmem:[#allocation4 + $0x88] sm:$0xff] %vm992_vm1, %v945_v25  ;;  %1018 = vst.msk [vmem:[#allocation4 + $0xc8] sm:$0xff] %vm992_vm1, %v953_v26  ;;  %v6627_v60 = vunpack.i.h.bf16 %v6623_v28  ;;  %v6624_v29 = vunpack.i.l.bf16 %v6623_v28 }
 0x1c4   : > { %v6546_v32 = vpop.trf.xlu0 }
 0x1c5   : > { %v6628_v33 = vpop.trf.xlu1  ;;  %v6550_v34 = vunpack.i.h.bf16 %v6546_v32  ;;  %v6547_v35 = vunpack.i.l.bf16 %v6546_v32 }
 0x1c6   : > { %v6632_v36 = vunpack.i.h.bf16 %v6628_v33  ;;  %v6629_v38 = vunpack.i.l.bf16 %v6628_v33 }
 0x1c7   : > { %v930_v39 = vpack.c.bf16 %v6547_v35, %v6542_v31  ;;  %v938_v59 = vpack.c.bf16 %v6550_v34, %v6545_v30 }
 0x1c8   : > { %v946_v41 = vpack.c.bf16 %v6629_v38, %v6624_v29  ;;  %v954_v42 = vpack.c.bf16 %v6632_v36, %v6627_v60  ;;  %v6551_v43 = vpop.trf.xlu0 }
 0x1c9   : > { %995 = vst.msk [vmem:[#allocation4 + $0x10] sm:$0xff] %vm992_vm1, %v930_v39  ;;  %1003 = vst.msk [vmem:[#allocation4 + $0x50] sm:$0xff] %vm992_vm1, %v938_v59  ;;  %v6633_v44 = vpop.trf.xlu1  ;;  %v6555_v47 = vunpack.i.h.bf16 %v6551_v43  ;;  %v6552_v18 = vunpack.i.l.bf16 %v6551_v43 }
 0x1ca   : > { %1011 = vst.msk [vmem:[#allocation4 + $0x90] sm:$0xff] %vm992_vm1, %v946_v41  ;;  %1019 = vst.msk [vmem:[#allocation4 + $0xd0] sm:$0xff] %vm992_vm1, %v954_v42  ;;  %v6637_v45 = vunpack.i.h.bf16 %v6633_v44  ;;  %v6634_v46 = vunpack.i.l.bf16 %v6633_v44 }
 0x1cc   : > { %v6556_v48 = vpop.trf.xlu0 }
 0x1cd   : > { %v6638_v49 = vpop.trf.xlu1  ;;  %v6560_v50 = vunpack.i.h.bf16 %v6556_v48  ;;  %v6557_v51 = vunpack.i.l.bf16 %v6556_v48 }
 0x1ce   : > { %v6642_v52 = vunpack.i.h.bf16 %v6638_v49  ;;  %v6639_v53 = vunpack.i.l.bf16 %v6638_v49 }
 0x1cf   : > { %v931_v54 = vpack.c.bf16 %v6557_v51, %v6552_v18  ;;  %v939_v55 = vpack.c.bf16 %v6560_v50, %v6555_v47 }
 0x1d0   : > { %v947_v56 = vpack.c.bf16 %v6639_v53, %v6634_v46  ;;  %v955_v57 = vpack.c.bf16 %v6642_v52, %v6637_v45  ;;  %v6561_v61 = vpop.trf.xlu0 }
 0x1d1   : > { %996 = vst.msk [vmem:[#allocation4 + $0x18] sm:$0xff] %vm992_vm1, %v931_v54  ;;  %1004 = vst.msk [vmem:[#allocation4 + $0x58] sm:$0xff] %vm992_vm1, %v939_v55  ;;  %v6643_v62 = vpop.trf.xlu1  ;;  %v6565_v1 = vunpack.i.h.bf16 %v6561_v61  ;;  %v6562_v2 = vunpack.i.l.bf16 %v6561_v61 }
 0x1d2   : > { %1012 = vst.msk [vmem:[#allocation4 + $0x98] sm:$0xff] %vm992_vm1, %v947_v56  ;;  %1020 = vst.msk [vmem:[#allocation4 + $0xd8] sm:$0xff] %vm992_vm1, %v955_v57  ;;  %v6647_v63 = vunpack.i.h.bf16 %v6643_v62  ;;  %v6644_v0 = vunpack.i.l.bf16 %v6643_v62 }
 0x1d4   : > { %v6566_v37 = vpop.trf.xlu0 }
 0x1d5   : > { %v6648_v3 = vpop.trf.xlu1  ;;  %v6570_v4 = vunpack.i.h.bf16 %v6566_v37  ;;  %v6567_v40 = vunpack.i.l.bf16 %v6566_v37 }
 0x1d6   : > { %v6652_v5 = vunpack.i.h.bf16 %v6648_v3  ;;  %v6649_v6 = vunpack.i.l.bf16 %v6648_v3 }
 0x1d7   : > { %v932_v7 = vpack.c.bf16 %v6567_v40, %v6562_v2  ;;  %v940_v8 = vpack.c.bf16 %v6570_v4, %v6565_v1 }
 0x1d8   : > { %v948_v9 = vpack.c.bf16 %v6649_v6, %v6644_v0  ;;  %v956_v10 = vpack.c.bf16 %v6652_v5, %v6647_v63  ;;  %v6571_v11 = vpop.trf.xlu0 }
 0x1d9   : > { %997 = vst.msk [vmem:[#allocation4 + $0x20] sm:$0xff] %vm992_vm1, %v932_v7  ;;  %1005 = vst.msk [vmem:[#allocation4 + $0x60] sm:$0xff] %vm992_vm1, %v940_v8  ;;  %v6653_v12 = vpop.trf.xlu1  ;;  %v6575_v15 = vunpack.i.h.bf16 %v6571_v11  ;;  %v6572_v16 = vunpack.i.l.bf16 %v6571_v11 }
 0x1da   : > { %1013 = vst.msk [vmem:[#allocation4 + $0xa0] sm:$0xff] %vm992_vm1, %v948_v9  ;;  %1021 = vst.msk [vmem:[#allocation4 + $0xe0] sm:$0xff] %vm992_vm1, %v956_v10  ;;  %v6657_v13 = vunpack.i.h.bf16 %v6653_v12  ;;  %v6654_v14 = vunpack.i.l.bf16 %v6653_v12 }
 0x1dc   : > { %v6576_v17 = vpop.trf.xlu0 }
 0x1dd   : > { %v6658_v19 = vpop.trf.xlu1  ;;  %v6580_v20 = vunpack.i.h.bf16 %v6576_v17  ;;  %v6577_v58 = vunpack.i.l.bf16 %v6576_v17 }
 0x1de   : > { %v6662_v21 = vunpack.i.h.bf16 %v6658_v19  ;;  %v6659_v22 = vunpack.i.l.bf16 %v6658_v19 }
 0x1df   : > { %v933_v23 = vpack.c.bf16 %v6577_v58, %v6572_v16  ;;  %v941_v24 = vpack.c.bf16 %v6580_v20, %v6575_v15 }
 0x1e0   : > { %v949_v25 = vpack.c.bf16 %v6659_v22, %v6654_v14  ;;  %v957_v26 = vpack.c.bf16 %v6662_v21, %v6657_v13  ;;  %v6581_v27 = vpop.trf.xlu0 }
 0x1e1   : > { %998 = vst.msk [vmem:[#allocation4 + $0x28] sm:$0xff] %vm992_vm1, %v933_v23  ;;  %1006 = vst.msk [vmem:[#allocation4 + $0x68] sm:$0xff] %vm992_vm1, %v941_v24  ;;  %v6663_v28 = vpop.trf.xlu1  ;;  %v6585_v30 = vunpack.i.h.bf16 %v6581_v27  ;;  %v6582_v31 = vunpack.i.l.bf16 %v6581_v27 }
 0x1e2   : > { %1014 = vst.msk [vmem:[#allocation4 + $0xa8] sm:$0xff] %vm992_vm1, %v949_v25  ;;  %1022 = vst.msk [vmem:[#allocation4 + $0xe8] sm:$0xff] %vm992_vm1, %v957_v26  ;;  %v6667_v60 = vunpack.i.h.bf16 %v6663_v28  ;;  %v6664_v29 = vunpack.i.l.bf16 %v6663_v28 }
 0x1e4   : > { %v6586_v32 = vpop.trf.xlu0 }
 0x1e5   : > { %v6668_v33 = vpop.trf.xlu1  ;;  %v6590_v34 = vunpack.i.h.bf16 %v6586_v32  ;;  %v6587_v35 = vunpack.i.l.bf16 %v6586_v32 }
 0x1e6   : > { %v6672_v36 = vunpack.i.h.bf16 %v6668_v33  ;;  %v6669_v38 = vunpack.i.l.bf16 %v6668_v33 }
 0x1e7   : > { %v934_v39 = vpack.c.bf16 %v6587_v35, %v6582_v31  ;;  %v942_v59 = vpack.c.bf16 %v6590_v34, %v6585_v30 }
 0x1e8   : > { %v950_v41 = vpack.c.bf16 %v6669_v38, %v6664_v29  ;;  %v958_v42 = vpack.c.bf16 %v6672_v36, %v6667_v60  ;;  %v6591_v43 = vpop.trf.xlu0 }
 0x1e9   : > { %999 = vst.msk [vmem:[#allocation4 + $0x30] sm:$0xff] %vm992_vm1, %v934_v39  ;;  %1007 = vst.msk [vmem:[#allocation4 + $0x70] sm:$0xff] %vm992_vm1, %v942_v59  ;;  %v6673_v44 = vpop.trf.xlu1  ;;  %v6595_v47 = vunpack.i.h.bf16 %v6591_v43  ;;  %v6592_v18 = vunpack.i.l.bf16 %v6591_v43 }
 0x1ea   : > { %1015 = vst.msk [vmem:[#allocation4 + $0xb0] sm:$0xff] %vm992_vm1, %v950_v41  ;;  %1023 = vst.msk [vmem:[#allocation4 + $0xf0] sm:$0xff] %vm992_vm1, %v958_v42  ;;  %v6677_v45 = vunpack.i.h.bf16 %v6673_v44  ;;  %v6674_v46 = vunpack.i.l.bf16 %v6673_v44 }
 0x1ec   : > { %v6596_v48 = vpop.trf.xlu0 }
 0x1ed   : > { %v6678_v49 = vpop.trf.xlu1  ;;  %v6600_v50 = vunpack.i.h.bf16 %v6596_v48  ;;  %v6597_v51 = vunpack.i.l.bf16 %v6596_v48 }
 0x1ee   : > { %v6682_v52 = vunpack.i.h.bf16 %v6678_v49  ;;  %v6679_v53 = vunpack.i.l.bf16 %v6678_v49 }
 0x1ef   : > { %v935_v54 = vpack.c.bf16 %v6597_v51, %v6592_v18  ;;  %v943_v55 = vpack.c.bf16 %v6600_v50, %v6595_v47 }
 0x1f0   : > { %v951_v56 = vpack.c.bf16 %v6679_v53, %v6674_v46  ;;  %v959_v57 = vpack.c.bf16 %v6682_v52, %v6677_v45  ;;  %v6685_v61 = vpop.trf.xlu0 }
 0x1f1   : > { %1000 = vst.msk [vmem:[#allocation4 + $0x38] sm:$0xff] %vm992_vm1, %v935_v54  ;;  %1008 = vst.msk [vmem:[#allocation4 + $0x78] sm:$0xff] %vm992_vm1, %v943_v55  ;;  %v6767_v62 = vpop.trf.xlu1  ;;  %v6689_v1 = vunpack.i.h.bf16 %v6685_v61  ;;  %v6686_v2 = vunpack.i.l.bf16 %v6685_v61 }
 0x1f2   : > { %1016 = vst.msk [vmem:[#allocation4 + $0xb8] sm:$0xff] %vm992_vm1, %v951_v56  ;;  %1024 = vst.msk [vmem:[#allocation4 + $0xf8] sm:$0xff] %vm992_vm1, %v959_v57  ;;  %v6771_v63 = vunpack.i.h.bf16 %v6767_v62  ;;  %v6768_v0 = vunpack.i.l.bf16 %v6767_v62 }
 0x1f4   : > { %v6690_v37 = vpop.trf.xlu0 }
 0x1f5   : > { %v6772_v3 = vpop.trf.xlu1  ;;  %v6694_v4 = vunpack.i.h.bf16 %v6690_v37  ;;  %v6691_v40 = vunpack.i.l.bf16 %v6690_v37 }
 0x1f6   : > { %v6776_v5 = vunpack.i.h.bf16 %v6772_v3  ;;  %v6773_v6 = vunpack.i.l.bf16 %v6772_v3 }
 0x1f7   : > { %v960_v7 = vpack.c.bf16 %v6691_v40, %v6686_v2  ;;  %v968_v8 = vpack.c.bf16 %v6694_v4, %v6689_v1 }
 0x1f8   : > { %v976_v9 = vpack.c.bf16 %v6773_v6, %v6768_v0  ;;  %v984_v10 = vpack.c.bf16 %v6776_v5, %v6771_v63  ;;  %v6695_v11 = vpop.trf.xlu0 }
 0x1f9   : > { %1025 = vst.msk [vmem:[#allocation4 + $0x100] sm:$0xff] %vm992_vm1, %v960_v7  ;;  %1033 = vst.msk [vmem:[#allocation4 + $0x140] sm:$0xff] %vm992_vm1, %v968_v8  ;;  %v6777_v12 = vpop.trf.xlu1  ;;  %v6699_v15 = vunpack.i.h.bf16 %v6695_v11  ;;  %v6696_v16 = vunpack.i.l.bf16 %v6695_v11 }
 0x1fa   : > { %1041 = vst.msk [vmem:[#allocation4 + $0x180] sm:$0xff] %vm992_vm1, %v976_v9  ;;  %1049 = vst.msk [vmem:[#allocation4 + $0x1c0] sm:$0xff] %vm992_vm1, %v984_v10  ;;  %v6781_v13 = vunpack.i.h.bf16 %v6777_v12  ;;  %v6778_v14 = vunpack.i.l.bf16 %v6777_v12 }
 0x1fc   : > { %v6700_v17 = vpop.trf.xlu0 }
 0x1fd   : > { %v6782_v19 = vpop.trf.xlu1  ;;  %v6704_v20 = vunpack.i.h.bf16 %v6700_v17  ;;  %v6701_v58 = vunpack.i.l.bf16 %v6700_v17 }
 0x1fe   : > { %v6786_v21 = vunpack.i.h.bf16 %v6782_v19  ;;  %v6783_v22 = vunpack.i.l.bf16 %v6782_v19 }
 0x1ff   : > { %v961_v23 = vpack.c.bf16 %v6701_v58, %v6696_v16  ;;  %v969_v24 = vpack.c.bf16 %v6704_v20, %v6699_v15 }
 0x200   : > { %v977_v25 = vpack.c.bf16 %v6783_v22, %v6778_v14  ;;  %v985_v26 = vpack.c.bf16 %v6786_v21, %v6781_v13  ;;  %v6705_v27 = vpop.trf.xlu0 }
 0x201   : > { %1026 = vst.msk [vmem:[#allocation4 + $0x108] sm:$0xff] %vm992_vm1, %v961_v23  ;;  %1034 = vst.msk [vmem:[#allocation4 + $0x148] sm:$0xff] %vm992_vm1, %v969_v24  ;;  %v6787_v28 = vpop.trf.xlu1  ;;  %v6709_v30 = vunpack.i.h.bf16 %v6705_v27  ;;  %v6706_v31 = vunpack.i.l.bf16 %v6705_v27 }
 0x202   : > { %1042 = vst.msk [vmem:[#allocation4 + $0x188] sm:$0xff] %vm992_vm1, %v977_v25  ;;  %1050 = vst.msk [vmem:[#allocation4 + $0x1c8] sm:$0xff] %vm992_vm1, %v985_v26  ;;  %v6791_v60 = vunpack.i.h.bf16 %v6787_v28  ;;  %v6788_v29 = vunpack.i.l.bf16 %v6787_v28 }
 0x204   : > { %v6710_v32 = vpop.trf.xlu0 }
 0x205   : > { %v6792_v33 = vpop.trf.xlu1  ;;  %v6714_v34 = vunpack.i.h.bf16 %v6710_v32  ;;  %v6711_v35 = vunpack.i.l.bf16 %v6710_v32 }
 0x206   : > { %v6796_v36 = vunpack.i.h.bf16 %v6792_v33  ;;  %v6793_v38 = vunpack.i.l.bf16 %v6792_v33 }
 0x207   : > { %v962_v39 = vpack.c.bf16 %v6711_v35, %v6706_v31  ;;  %v970_v59 = vpack.c.bf16 %v6714_v34, %v6709_v30 }
 0x208   : > { %v978_v41 = vpack.c.bf16 %v6793_v38, %v6788_v29  ;;  %v986_v42 = vpack.c.bf16 %v6796_v36, %v6791_v60  ;;  %v6715_v43 = vpop.trf.xlu0 }
 0x209   : > { %1027 = vst.msk [vmem:[#allocation4 + $0x110] sm:$0xff] %vm992_vm1, %v962_v39  ;;  %1035 = vst.msk [vmem:[#allocation4 + $0x150] sm:$0xff] %vm992_vm1, %v970_v59  ;;  %v6797_v44 = vpop.trf.xlu1  ;;  %v6719_v47 = vunpack.i.h.bf16 %v6715_v43  ;;  %v6716_v18 = vunpack.i.l.bf16 %v6715_v43 }
 0x20a   : > { %1043 = vst.msk [vmem:[#allocation4 + $0x190] sm:$0xff] %vm992_vm1, %v978_v41  ;;  %1051 = vst.msk [vmem:[#allocation4 + $0x1d0] sm:$0xff] %vm992_vm1, %v986_v42  ;;  %v6801_v45 = vunpack.i.h.bf16 %v6797_v44  ;;  %v6798_v46 = vunpack.i.l.bf16 %v6797_v44 }
 0x20c   : > { %v6720_v48 = vpop.trf.xlu0 }
 0x20d   : > { %v6802_v49 = vpop.trf.xlu1  ;;  %v6724_v50 = vunpack.i.h.bf16 %v6720_v48  ;;  %v6721_v51 = vunpack.i.l.bf16 %v6720_v48 }
 0x20e   : > { %v6806_v52 = vunpack.i.h.bf16 %v6802_v49  ;;  %v6803_v53 = vunpack.i.l.bf16 %v6802_v49 }
 0x20f   : > { %v963_v54 = vpack.c.bf16 %v6721_v51, %v6716_v18  ;;  %v971_v55 = vpack.c.bf16 %v6724_v50, %v6719_v47 }
 0x210   : > { %v979_v56 = vpack.c.bf16 %v6803_v53, %v6798_v46  ;;  %v987_v57 = vpack.c.bf16 %v6806_v52, %v6801_v45  ;;  %v6725_v61 = vpop.trf.xlu0 }
 0x211   : > { %1028 = vst.msk [vmem:[#allocation4 + $0x118] sm:$0xff] %vm992_vm1, %v963_v54  ;;  %1036 = vst.msk [vmem:[#allocation4 + $0x158] sm:$0xff] %vm992_vm1, %v971_v55  ;;  %v6807_v62 = vpop.trf.xlu1  ;;  %v6729_v1 = vunpack.i.h.bf16 %v6725_v61  ;;  %v6726_v2 = vunpack.i.l.bf16 %v6725_v61 }
 0x212   : > { %1044 = vst.msk [vmem:[#allocation4 + $0x198] sm:$0xff] %vm992_vm1, %v979_v56  ;;  %1052 = vst.msk [vmem:[#allocation4 + $0x1d8] sm:$0xff] %vm992_vm1, %v987_v57  ;;  %v6811_v63 = vunpack.i.h.bf16 %v6807_v62  ;;  %v6808_v0 = vunpack.i.l.bf16 %v6807_v62 }
 0x214   : > { %v6730_v37 = vpop.trf.xlu0 }
 0x215   : > { %v6812_v3 = vpop.trf.xlu1  ;;  %v6734_v4 = vunpack.i.h.bf16 %v6730_v37  ;;  %v6731_v40 = vunpack.i.l.bf16 %v6730_v37 }
 0x216   : > { %v6816_v5 = vunpack.i.h.bf16 %v6812_v3  ;;  %v6813_v6 = vunpack.i.l.bf16 %v6812_v3 }
 0x217   : > { %v964_v7 = vpack.c.bf16 %v6731_v40, %v6726_v2  ;;  %v972_v8 = vpack.c.bf16 %v6734_v4, %v6729_v1 }
 0x218   : > { %v980_v9 = vpack.c.bf16 %v6813_v6, %v6808_v0  ;;  %v988_v10 = vpack.c.bf16 %v6816_v5, %v6811_v63  ;;  %v6735_v11 = vpop.trf.xlu0 }
 0x219   : > { %1029 = vst.msk [vmem:[#allocation4 + $0x120] sm:$0xff] %vm992_vm1, %v964_v7  ;;  %1037 = vst.msk [vmem:[#allocation4 + $0x160] sm:$0xff] %vm992_vm1, %v972_v8  ;;  %v6817_v12 = vpop.trf.xlu1  ;;  %v6739_v15 = vunpack.i.h.bf16 %v6735_v11  ;;  %v6736_v16 = vunpack.i.l.bf16 %v6735_v11 }
 0x21a   : > { %1045 = vst.msk [vmem:[#allocation4 + $0x1a0] sm:$0xff] %vm992_vm1, %v980_v9  ;;  %1053 = vst.msk [vmem:[#allocation4 + $0x1e0] sm:$0xff] %vm992_vm1, %v988_v10  ;;  %v6821_v13 = vunpack.i.h.bf16 %v6817_v12  ;;  %v6818_v14 = vunpack.i.l.bf16 %v6817_v12 }
 0x21c   : > { %v6740_v17 = vpop.trf.xlu0 }
 0x21d   : > { %v6822_v19 = vpop.trf.xlu1  ;;  %v6744_v20 = vunpack.i.h.bf16 %v6740_v17  ;;  %v6741_v58 = vunpack.i.l.bf16 %v6740_v17 }
 0x21e   : > { %v6826_v21 = vunpack.i.h.bf16 %v6822_v19  ;;  %v6823_v22 = vunpack.i.l.bf16 %v6822_v19 }
 0x21f   : > { %v965_v23 = vpack.c.bf16 %v6741_v58, %v6736_v16  ;;  %v973_v24 = vpack.c.bf16 %v6744_v20, %v6739_v15 }
 0x220   : > { %v981_v25 = vpack.c.bf16 %v6823_v22, %v6818_v14  ;;  %v989_v26 = vpack.c.bf16 %v6826_v21, %v6821_v13  ;;  %v6745_v27 = vpop.trf.xlu0 }
 0x221   : > { %1030 = vst.msk [vmem:[#allocation4 + $0x128] sm:$0xff] %vm992_vm1, %v965_v23  ;;  %1038 = vst.msk [vmem:[#allocation4 + $0x168] sm:$0xff] %vm992_vm1, %v973_v24  ;;  %v6827_v28 = vpop.trf.xlu1  ;;  %v6749_v30 = vunpack.i.h.bf16 %v6745_v27  ;;  %v6746_v31 = vunpack.i.l.bf16 %v6745_v27 }
 0x222   : > { %1046 = vst.msk [vmem:[#allocation4 + $0x1a8] sm:$0xff] %vm992_vm1, %v981_v25  ;;  %1054 = vst.msk [vmem:[#allocation4 + $0x1e8] sm:$0xff] %vm992_vm1, %v989_v26  ;;  %v6831_v60 = vunpack.i.h.bf16 %v6827_v28  ;;  %v6828_v29 = vunpack.i.l.bf16 %v6827_v28 }
 0x224   : > { %v6750_v32 = vpop.trf.xlu0 }
 0x225   : > { %v6832_v33 = vpop.trf.xlu1  ;;  %v6754_v34 = vunpack.i.h.bf16 %v6750_v32  ;;  %v6751_v35 = vunpack.i.l.bf16 %v6750_v32 }
 0x226   : > { %v6836_v36 = vunpack.i.h.bf16 %v6832_v33  ;;  %v6833_v38 = vunpack.i.l.bf16 %v6832_v33 }
 0x227   : > { %v966_v39 = vpack.c.bf16 %v6751_v35, %v6746_v31  ;;  %v974_v59 = vpack.c.bf16 %v6754_v34, %v6749_v30 }
 0x228   : > { %v982_v41 = vpack.c.bf16 %v6833_v38, %v6828_v29  ;;  %v990_v42 = vpack.c.bf16 %v6836_v36, %v6831_v60  ;;  %v6755_v43 = vpop.trf.xlu0 }
 0x229   : > { %1031 = vst.msk [vmem:[#allocation4 + $0x130] sm:$0xff] %vm992_vm1, %v966_v39  ;;  %1039 = vst.msk [vmem:[#allocation4 + $0x170] sm:$0xff] %vm992_vm1, %v974_v59  ;;  %v6837_v44 = vpop.trf.xlu1  ;;  %v6759_v47 = vunpack.i.h.bf16 %v6755_v43  ;;  %v6756_v18 = vunpack.i.l.bf16 %v6755_v43 }
 0x22a   : > { %1047 = vst.msk [vmem:[#allocation4 + $0x1b0] sm:$0xff] %vm992_vm1, %v982_v41  ;;  %1055 = vst.msk [vmem:[#allocation4 + $0x1f0] sm:$0xff] %vm992_vm1, %v990_v42  ;;  %v6841_v45 = vunpack.i.h.bf16 %v6837_v44  ;;  %v6838_v46 = vunpack.i.l.bf16 %v6837_v44 }
 0x22c   : > { %v6760_v48 = vpop.trf.xlu0 }
 0x22d   : > { %v6842_v49 = vpop.trf.xlu1  ;;  %v6764_v50 = vunpack.i.h.bf16 %v6760_v48  ;;  %v6761_v51 = vunpack.i.l.bf16 %v6760_v48 }
 0x22e   : > { %v6846_v52 = vunpack.i.h.bf16 %v6842_v49  ;;  %v6843_v53 = vunpack.i.l.bf16 %v6842_v49 }
 0x22f   : > { %v967_v54 = vpack.c.bf16 %v6761_v51, %v6756_v18  ;;  %v975_v55 = vpack.c.bf16 %v6764_v50, %v6759_v47 }
 0x230   : > { %v983_v56 = vpack.c.bf16 %v6843_v53, %v6838_v46  ;;  %v991_v57 = vpack.c.bf16 %v6846_v52, %v6841_v45 }
 0x231   : > { %1032 = vst.msk [vmem:[#allocation4 + $0x138] sm:$0xff] %vm992_vm1, %v967_v54  ;;  %1040 = vst.msk [vmem:[#allocation4 + $0x178] sm:$0xff] %vm992_vm1, %v975_v55 }
 0x232   : > { %1048 = vst.msk [vmem:[#allocation4 + $0x1b8] sm:$0xff] %vm992_vm1, %v983_v56  ;;  %1056 = vst.msk [vmem:[#allocation4 + $0x1f8] sm:$0xff] %vm992_vm1, %v991_v57 }
 0x233 PF: > { %s6211_s9 = sshll.u32 %s8022_s23, 9  ;;  %v15483_v61 = vmov 0   ;;  %vm1331_vm2 = vcmask 1043456   ;;  %v1064_v40 = vld [vmem:[#allocation4] sm:$0xff]  ;;  %vm1138_vm3 = vcmask 64512   ;;  %v1065_v5 = vld [vmem:[#allocation4 + $0x8] sm:$0xff] }
 0x234   : > { %s8452_s8 = sshra.s32 %s6211_s9, 7  ;;  %1376 = vmatprep.mubr.bf16.mxu0 %v15483_v61  ;;  %2049 = vmatprep.mubr.bf16.mxu1 %v15483_v61  ;;  %v1066_v6 = vld [vmem:[#allocation4 + $0x10] sm:$0xff]  ;;  %v1067_v7 = vld [vmem:[#allocation4 + $0x18] sm:$0xff]  ;;  %v1068_v8 = vld [vmem:[#allocation4 + $0x20] sm:$0xff]  ;;  %s6024_s6 = sld [smem:[#allocation5]] }
 0x235   : > { %s6212_s10 = sshll.u32 %s8452_s8, 2  ;;  %v1069_v9 = vld [vmem:[#allocation4 + $0x28] sm:$0xff]  ;;  %v1070_v10 = vld [vmem:[#allocation4 + $0x30] sm:$0xff]  ;;  %v1071_v11 = vld [vmem:[#allocation4 + $0x38] sm:$0xff]  ;;  %s6347_s5 = sshll.u32 %s8452_s8, 3 }
 0x236   : > { %s1061_s27 = scalar_lea.vmem [#allocation2], %s6212_s10  ;;  %v1072_v12 = vld [vmem:[#allocation4 + $0x40] sm:$0xff]  ;;  %v1073_v13 = vld [vmem:[#allocation4 + $0x48] sm:$0xff]  ;;  %v1074_v14 = vld [vmem:[#allocation4 + $0x50] sm:$0xff]  ;;  %s15328_s16 = scalar_lea.vmem %s8224_s7, %s6347_s5 [#allocation6] }
 0x237   : > { %v1062_v62 = vld [vmem:[%s1061_s27] sm:$0xff]  ;;  %v1063_v63 = vld [vmem:[%s1061_s27 + $0x8] sm:$0xff]  ;;  %v1075_v15 = vld [vmem:[#allocation4 + $0x58] sm:$0xff]  ;;  %s6349_s7 = sshll.u32 %s8022_s23, 2  ;;  %s6350_s20 = sshll.u32 %s8026_s24, 5 }
 0x238   : > { %v6214_v0 = vcombine.high %v1062_v62, %v1062_v62  ;;  %v6216_v1 = vcombine.high %v1063_v63, %v1063_v63  ;;  %v6213_v2 = vcombine.low %v1062_v62, %v1062_v62  ;;  %v6215_v37 = vcombine.low %v1063_v63, %v1063_v63  ;;  %v1076_v16 = vld [vmem:[#allocation4 + $0x60] sm:$0xff]  ;;  %v1077_v17 = vld [vmem:[#allocation4 + $0x68] sm:$0xff]  ;;  %v1078_v19 = vld [vmem:[#allocation4 + $0x70] sm:$0xff]  ;;  %s15370_s23 = sadd.s32 %s6350_s20, %s6349_s7  ;;  %s6090_s24 = sshll.u32 %s8233_s11, 4  ;;  %s15398_s24 = int_to_ptr.vmem [resolvable:$true] %s6090_s24 }
 0x239   : > { %v1079_v20 = vld [vmem:[#allocation4 + $0x78] sm:$0xff]  ;;  %v1080_v58 = vld [vmem:[#allocation4 + $0x80] sm:$0xff]  ;;  %v1081_v21 = vld [vmem:[#allocation4 + $0x88] sm:$0xff]  ;;  %s6351_s30 = sshll.u32 %s15370_s23, 7  ;;  %s15415_s27 = scalar_lea.sflag [#allocation8], %s228_s28 }
 0x23a   : > { %6217 = vmatprep.subr.msk.bf16.mxu0 %vm1331_vm2, %v6214_v0  ;;  %6282 = vmatprep.subr.msk.bf16.mxu1 %vm1331_vm2, %v6216_v1  ;;  %v1333_v3 = vsel %vm1331_vm2, %v6213_v2, 0  ;;  %v1339_v4 = vsel %vm1331_vm2, %v6215_v37, 0  ;;  %v1082_v22 = vld [vmem:[#allocation4 + $0x90] sm:$0xff]  ;;  %v1083_v23 = vld [vmem:[#allocation4 + $0x98] sm:$0xff]  ;;  %v1084_v24 = vld [vmem:[#allocation4 + $0xa0] sm:$0xff]  ;;  %s15405_s10 = scalar_lea.hbm %s15480_s4, %s6351_s30  ;;  %p19710_p2 = scmp.ne.s32.totalorder %s16859_s12, 0 }
 0x23b   : > { %1345 = vmatpush1.bf16.msra.mxu0 %v1333_v3  ;;  %2018 = vmatpush1.bf16.msra.mxu1 %v1339_v4  ;;  %v1085_v25 = vld [vmem:[#allocation4 + $0xa8] sm:$0xff]  ;;  %v1086_v26 = vld [vmem:[#allocation4 + $0xb0] sm:$0xff]  ;;  %v1087_v27 = vld [vmem:[#allocation4 + $0xb8] sm:$0xff]  ;;  %s8045_s5 = smov [#allocation9]  }
 0x23c   : > { %v1088_v28 = vld [vmem:[#allocation4 + $0xc0] sm:$0xff]  ;;  %v1089_v60 = vld [vmem:[#allocation4 + $0xc8] sm:$0xff]  ;;  %v1090_v29 = vld [vmem:[#allocation4 + $0xd0] sm:$0xff] }
 0x23d   : > { %v1091_v36 = vld [vmem:[#allocation4 + $0xd8] sm:$0xff]  ;;  %v1092_v53 = vld [vmem:[#allocation4 + $0xe0] sm:$0xff] }
 0x23e   : > { %6218 = vmatmul.mubr.msk.bf16.vlgmr.msra.gmra.mrb[0].mxu0 %vm1138_vm3, %v1064_v40  ;;  %6283 = vmatmul.mubr.msk.bf16.vlgmr.msra.gmra.mrb[0].mxu1 %vm1138_vm3, %v1064_v40 }
 0x23f   : > { %1386 = vmatprep.mubr.bf16.mxu0 %v15483_v61  ;;  %2059 = vmatprep.mubr.bf16.mxu1 %v15483_v61 }
 0x246   : > { %6219 = vmatmul.mubr.msk.bf16.gmra.mrb[4].mxu0 %vm1138_vm3, %v1065_v5  ;;  %6284 = vmatmul.mubr.msk.bf16.gmra.mrb[4].mxu1 %vm1138_vm3, %v1065_v5 }
 0x247   : > { %1396 = vmatprep.mubr.bf16.mxu0 %v15483_v61  ;;  %2069 = vmatprep.mubr.bf16.mxu1 %v15483_v61 }
 0x24e   : > { %6220 = vmatmul.mubr.msk.bf16.gmra.mrb[8].mxu0 %vm1138_vm3, %v1066_v6  ;;  %6285 = vmatmul.mubr.msk.bf16.gmra.mrb[8].mxu1 %vm1138_vm3, %v1066_v6 }
 0x24f   : > { %1406 = vmatprep.mubr.bf16.mxu0 %v15483_v61  ;;  %2079 = vmatprep.mubr.bf16.mxu1 %v15483_v61 }
 0x256   : > { %6221 = vmatmul.mubr.msk.bf16.gmra.mrb[12].mxu0 %vm1138_vm3, %v1067_v7  ;;  %6286 = vmatmul.mubr.msk.bf16.gmra.mrb[12].mxu1 %vm1138_vm3, %v1067_v7 }
 0x257   : > { %1416 = vmatprep.mubr.bf16.mxu0 %v15483_v61  ;;  %2089 = vmatprep.mubr.bf16.mxu1 %v15483_v61 }
 0x25e   : > { %6222 = vmatmul.mubr.msk.bf16.gmra.mrb[16].mxu0 %vm1138_vm3, %v1068_v8  ;;  %6287 = vmatmul.mubr.msk.bf16.gmra.mrb[16].mxu1 %vm1138_vm3, %v1068_v8  ;;  %v1093_v8 = vld [vmem:[#allocation4 + $0xe8] sm:$0xff] }
 0x25f   : > { %1426 = vmatprep.mubr.bf16.mxu0 %v15483_v61  ;;  %2099 = vmatprep.mubr.bf16.mxu1 %v15483_v61 }
 0x266   : > { %6223 = vmatmul.mubr.msk.bf16.gmra.mrb[20].mxu0 %vm1138_vm3, %v1069_v9  ;;  %6288 = vmatmul.mubr.msk.bf16.gmra.mrb[20].mxu1 %vm1138_vm3, %v1069_v9 }
 0x267   : > { %1436 = vmatprep.mubr.bf16.mxu0 %v15483_v61  ;;  %2109 = vmatprep.mubr.bf16.mxu1 %v15483_v61 }
 0x26e   : > { %6224 = vmatmul.mubr.msk.bf16.gmra.mrb[24].mxu0 %vm1138_vm3, %v1070_v10  ;;  %6289 = vmatmul.mubr.msk.bf16.gmra.mrb[24].mxu1 %vm1138_vm3, %v1070_v10 }
 0x26f   : > { %1446 = vmatprep.mubr.bf16.mxu0 %v15483_v61  ;;  %2119 = vmatprep.mubr.bf16.mxu1 %v15483_v61 }
 0x276   : > { %6225 = vmatmul.mubr.msk.bf16.gmra.mrb[28].mxu0 %vm1138_vm3, %v1071_v11  ;;  %6290 = vmatmul.mubr.msk.bf16.gmra.mrb[28].mxu1 %vm1138_vm3, %v1071_v11 }
 0x277   : > { %1456 = vmatprep.mubr.bf16.mxu0 %v15483_v61  ;;  %2129 = vmatprep.mubr.bf16.mxu1 %v15483_v61 }
 0x27e   : > { %6226 = vmatmul.mubr.msk.bf16.gmra.mrb[32].mxu0 %vm1138_vm3, %v1072_v12  ;;  %6291 = vmatmul.mubr.msk.bf16.gmra.mrb[32].mxu1 %vm1138_vm3, %v1072_v12 }
 0x27f   : > { %1466 = vmatprep.mubr.bf16.mxu0 %v15483_v61  ;;  %2139 = vmatprep.mubr.bf16.mxu1 %v15483_v61 }
 0x286   : > { %6227 = vmatmul.mubr.msk.bf16.gmra.mrb[36].mxu0 %vm1138_vm3, %v1073_v13  ;;  %6292 = vmatmul.mubr.msk.bf16.gmra.mrb[36].mxu1 %vm1138_vm3, %v1073_v13 }
 0x287   : > { %1476 = vmatprep.mubr.bf16.mxu0 %v15483_v61  ;;  %2149 = vmatprep.mubr.bf16.mxu1 %v15483_v61 }
 0x28e   : > { %6228 = vmatmul.mubr.msk.bf16.gmra.mrb[40].mxu0 %vm1138_vm3, %v1074_v14  ;;  %6293 = vmatmul.mubr.msk.bf16.gmra.mrb[40].mxu1 %vm1138_vm3, %v1074_v14 }
 0x28f   : > { %1486 = vmatprep.mubr.bf16.mxu0 %v15483_v61  ;;  %2159 = vmatprep.mubr.bf16.mxu1 %v15483_v61 }
 0x296   : > { %6229 = vmatmul.mubr.msk.bf16.gmra.mrb[44].mxu0 %vm1138_vm3, %v1075_v15  ;;  %6294 = vmatmul.mubr.msk.bf16.gmra.mrb[44].mxu1 %vm1138_vm3, %v1075_v15 }
 0x297   : > { %1496 = vmatprep.mubr.bf16.mxu0 %v15483_v61  ;;  %2169 = vmatprep.mubr.bf16.mxu1 %v15483_v61 }
 0x29e   : > { %6230 = vmatmul.mubr.msk.bf16.gmra.mrb[48].mxu0 %vm1138_vm3, %v1076_v16  ;;  %6295 = vmatmul.mubr.msk.bf16.gmra.mrb[48].mxu1 %vm1138_vm3, %v1076_v16 }
 0x29f   : > { %1506 = vmatprep.mubr.bf16.mxu0 %v15483_v61  ;;  %2179 = vmatprep.mubr.bf16.mxu1 %v15483_v61 }
 0x2a6   : > { %6231 = vmatmul.mubr.msk.bf16.gmra.mrb[52].mxu0 %vm1138_vm3, %v1077_v17  ;;  %6296 = vmatmul.mubr.msk.bf16.gmra.mrb[52].mxu1 %vm1138_vm3, %v1077_v17 }
 0x2a7   : > { %1516 = vmatprep.mubr.bf16.mxu0 %v15483_v61  ;;  %2189 = vmatprep.mubr.bf16.mxu1 %v15483_v61 }
 0x2ae   : > { %6232 = vmatmul.mubr.msk.bf16.gmra.mrb[56].mxu0 %vm1138_vm3, %v1078_v19  ;;  %6297 = vmatmul.mubr.msk.bf16.gmra.mrb[56].mxu1 %vm1138_vm3, %v1078_v19 }
 0x2af   : > { %1526 = vmatprep.mubr.bf16.mxu0 %v15483_v61  ;;  %2199 = vmatprep.mubr.bf16.mxu1 %v15483_v61 }
 0x2b6   : > { %6233 = vmatmul.mubr.msk.bf16.gmra.mrb[60].mxu0 %vm1138_vm3, %v1079_v20  ;;  %6298 = vmatmul.mubr.msk.bf16.gmra.mrb[60].mxu1 %vm1138_vm3, %v1079_v20 }
 0x2b7   : > { %1536 = vmatprep.mubr.bf16.mxu0 %v15483_v61  ;;  %2209 = vmatprep.mubr.bf16.mxu1 %v15483_v61 }
 0x2be   : > { %6234 = vmatmul.mubr.msk.bf16.gmra.mrb[64].mxu0 %vm1138_vm3, %v1080_v58  ;;  %6299 = vmatmul.mubr.msk.bf16.gmra.mrb[64].mxu1 %vm1138_vm3, %v1080_v58 }
 0x2bf   : > { %1546 = vmatprep.mubr.bf16.mxu0 %v15483_v61  ;;  %2219 = vmatprep.mubr.bf16.mxu1 %v15483_v61 }
 0x2c6   : > { %6235 = vmatmul.mubr.msk.bf16.gmra.mrb[68].mxu0 %vm1138_vm3, %v1081_v21  ;;  %6300 = vmatmul.mubr.msk.bf16.gmra.mrb[68].mxu1 %vm1138_vm3, %v1081_v21 }
 0x2c7   : > { %1556 = vmatprep.mubr.bf16.mxu0 %v15483_v61  ;;  %2229 = vmatprep.mubr.bf16.mxu1 %v15483_v61 }
 0x2ce   : > { %6236 = vmatmul.mubr.msk.bf16.gmra.mrb[72].mxu0 %vm1138_vm3, %v1082_v22  ;;  %6301 = vmatmul.mubr.msk.bf16.gmra.mrb[72].mxu1 %vm1138_vm3, %v1082_v22 }
 0x2cf   : > { %1566 = vmatprep.mubr.bf16.mxu0 %v15483_v61  ;;  %2239 = vmatprep.mubr.bf16.mxu1 %v15483_v61 }
 0x2d6   : > { %6237 = vmatmul.mubr.msk.bf16.gmra.mrb[76].mxu0 %vm1138_vm3, %v1083_v23  ;;  %6302 = vmatmul.mubr.msk.bf16.gmra.mrb[76].mxu1 %vm1138_vm3, %v1083_v23 }
 0x2d7   : > { %1576 = vmatprep.mubr.bf16.mxu0 %v15483_v61  ;;  %2249 = vmatprep.mubr.bf16.mxu1 %v15483_v61 }
 0x2de   : > { %6238 = vmatmul.mubr.msk.bf16.gmra.mrb[80].mxu0 %vm1138_vm3, %v1084_v24  ;;  %6303 = vmatmul.mubr.msk.bf16.gmra.mrb[80].mxu1 %vm1138_vm3, %v1084_v24 }
 0x2df   : > { %1586 = vmatprep.mubr.bf16.mxu0 %v15483_v61  ;;  %2259 = vmatprep.mubr.bf16.mxu1 %v15483_v61 }
 0x2e6   : > { %6239 = vmatmul.mubr.msk.bf16.gmra.mrb[84].mxu0 %vm1138_vm3, %v1085_v25  ;;  %6304 = vmatmul.mubr.msk.bf16.gmra.mrb[84].mxu1 %vm1138_vm3, %v1085_v25  ;;  %v1094_v25 = vld [vmem:[#allocation4 + $0xf0] sm:$0xff] }
 0x2e7   : > { %1596 = vmatprep.mubr.bf16.mxu0 %v15483_v61  ;;  %2269 = vmatprep.mubr.bf16.mxu1 %v15483_v61 }
 0x2ee   : > { %6240 = vmatmul.mubr.msk.bf16.gmra.mrb[88].mxu0 %vm1138_vm3, %v1086_v26  ;;  %6305 = vmatmul.mubr.msk.bf16.gmra.mrb[88].mxu1 %vm1138_vm3, %v1086_v26 }
 0x2ef   : > { %1606 = vmatprep.mubr.bf16.mxu0 %v15483_v61  ;;  %2279 = vmatprep.mubr.bf16.mxu1 %v15483_v61 }
 0x2f6   : > { %6241 = vmatmul.mubr.msk.bf16.gmra.mrb[92].mxu0 %vm1138_vm3, %v1087_v27  ;;  %6306 = vmatmul.mubr.msk.bf16.gmra.mrb[92].mxu1 %vm1138_vm3, %v1087_v27 }
 0x2f7   : > { %1616 = vmatprep.mubr.bf16.mxu0 %v15483_v61  ;;  %2289 = vmatprep.mubr.bf16.mxu1 %v15483_v61 }
 0x2fe   : > { %6242 = vmatmul.mubr.msk.bf16.gmra.mrb[96].mxu0 %vm1138_vm3, %v1088_v28  ;;  %6307 = vmatmul.mubr.msk.bf16.gmra.mrb[96].mxu1 %vm1138_vm3, %v1088_v28 }
 0x2ff   : > { %1626 = vmatprep.mubr.bf16.mxu0 %v15483_v61  ;;  %2299 = vmatprep.mubr.bf16.mxu1 %v15483_v61 }
 0x306   : > { %6243 = vmatmul.mubr.msk.bf16.gmra.mrb[100].mxu0 %vm1138_vm3, %v1089_v60  ;;  %6308 = vmatmul.mubr.msk.bf16.gmra.mrb[100].mxu1 %vm1138_vm3, %v1089_v60 }
 0x307   : > { %1636 = vmatprep.mubr.bf16.mxu0 %v15483_v61  ;;  %2309 = vmatprep.mubr.bf16.mxu1 %v15483_v61 }
 0x30e   : > { %6244 = vmatmul.mubr.msk.bf16.gmra.mrb[104].mxu0 %vm1138_vm3, %v1090_v29  ;;  %6309 = vmatmul.mubr.msk.bf16.gmra.mrb[104].mxu1 %vm1138_vm3, %v1090_v29 }
 0x30f   : > { %1646 = vmatprep.mubr.bf16.mxu0 %v15483_v61  ;;  %2319 = vmatprep.mubr.bf16.mxu1 %v15483_v61 }
 0x311   : > { %v8565_v30 = vpop.f32.mrb[0].mxu0  ;;  %v8567_v31 = vpop.f32.mrb[0].mxu1 }
 0x312   : > { %16863 = vst [vmem:[#allocation13_spill] sm:$0xff] %v8567_v31  ;;  %v8569_v32 = vpop.f32.mrb[1].mxu0  ;;  %v8571_v33 = vpop.f32.mrb[1].mxu1 }
 0x313   : > { %16864 = vst [vmem:[#allocation14_spill] sm:$0xff] %v8569_v32  ;;  %16865 = vst [vmem:[#allocation15_spill] sm:$0xff] %v8571_v33  ;;  %v8573_v34 = vpop.f32.mrb[2].mxu0  ;;  %v8575_v35 = vpop.f32.mrb[2].mxu1 }
 0x314   : > { %16866 = vst [vmem:[#allocation16_spill] sm:$0xff] %v8575_v35  ;;  %v2690_v38 = vmax.f32 %v8565_v30, %v8573_v34  ;;  %v2956_v39 = vmax.f32 %v8567_v31, %v8575_v35  ;;  %v8581_v59 = vpop.f32.mrb[3].mxu0  ;;  %v8583_v41 = vpop.f32.mrb[3].mxu1 }
 0x315   : > { %16867 = vst [vmem:[#allocation17_spill] sm:$0xff] %v8581_v59  ;;  %16868 = vst [vmem:[#allocation18_spill] sm:$0xff] %v8583_v41  ;;  %v2823_v42 = vmax.f32 %v8569_v32, %v8581_v59  ;;  %v3089_v43 = vmax.f32 %v8571_v33, %v8583_v41  ;;  %v1099_v33 = vld [vmem:[#allocation4 + $0x118] sm:$0xff] }
 0x316   : > { %6245 = vmatmul.mubr.msk.bf16.gmra.mrb[108].mxu0 %vm1138_vm3, %v1091_v36  ;;  %6310 = vmatmul.mubr.msk.bf16.gmra.mrb[108].mxu1 %vm1138_vm3, %v1091_v36 }
 0x317   : > { %1656 = vmatprep.mubr.bf16.mxu0 %v15483_v61  ;;  %2329 = vmatprep.mubr.bf16.mxu1 %v15483_v61 }
 0x319   : > { %v8593_v44 = vpop.f32.mrb[4].mxu0  ;;  %v8595_v45 = vpop.f32.mrb[4].mxu1 }
 0x31a   : > { %16869 = vst [vmem:[#allocation19_spill] sm:$0xff] %v8595_v45  ;;  %v2691_v46 = vmax.f32 %v2690_v38, %v8593_v44  ;;  %v2957_v47 = vmax.f32 %v2956_v39, %v8595_v45  ;;  %v8599_v18 = vpop.f32.mrb[5].mxu0  ;;  %v8601_v48 = vpop.f32.mrb[5].mxu1 }
 0x31b   : > { %16870 = vst [vmem:[#allocation20_spill] sm:$0xff] %v8599_v18  ;;  %16871 = vst [vmem:[#allocation21_spill] sm:$0xff] %v8601_v48  ;;  %v2824_v49 = vmax.f32 %v2823_v42, %v8599_v18  ;;  %v3090_v50 = vmax.f32 %v3089_v43, %v8601_v48  ;;  %v8605_v51 = vpop.f32.mrb[6].mxu0  ;;  %v8607_v52 = vpop.f32.mrb[6].mxu1 }
 0x31c   : > { %16872 = vst [vmem:[#allocation22_spill] sm:$0xff] %v8607_v52  ;;  %v2692_v54 = vmax.f32 %v2691_v46, %v8605_v51  ;;  %v2958_v55 = vmax.f32 %v2957_v47, %v8607_v52  ;;  %v8611_v56 = vpop.f32.mrb[7].mxu0  ;;  %v8613_v57 = vpop.f32.mrb[7].mxu1 }
 0x31d   : > { %16873 = vst [vmem:[#allocation23_spill] sm:$0xff] %v8611_v56  ;;  %16874 = vst [vmem:[#allocation24_spill] sm:$0xff] %v8613_v57  ;;  %v2825_v62 = vmax.f32 %v2824_v49, %v8611_v56  ;;  %v3091_v63 = vmax.f32 %v3090_v50, %v8613_v57 }
 0x31e   : > { %6246 = vmatmul.mubr.msk.bf16.gmra.mrb[112].mxu0 %vm1138_vm3, %v1092_v53  ;;  %6311 = vmatmul.mubr.msk.bf16.gmra.mrb[112].mxu1 %vm1138_vm3, %v1092_v53 }
 0x31f   : > { %1666 = vmatprep.mubr.bf16.mxu0 %v15483_v61  ;;  %2339 = vmatprep.mubr.bf16.mxu1 %v15483_v61 }
 0x321   : > { %v8621_v0 = vpop.f32.mrb[8].mxu0  ;;  %v8623_v1 = vpop.f32.mrb[8].mxu1 }
 0x322   : > { %16875 = vst [vmem:[#allocation25_spill] sm:$0xff] %v8623_v1  ;;  %v2693_v2 = vmax.f32 %v2692_v54, %v8621_v0  ;;  %v2959_v37 = vmax.f32 %v2958_v55, %v8623_v1  ;;  %v8627_v3 = vpop.f32.mrb[9].mxu0  ;;  %v8629_v4 = vpop.f32.mrb[9].mxu1  ;;  %v1095_v55 = vld [vmem:[#allocation4 + $0xf8] sm:$0xff] }
 0x323   : > { %16876 = vst [vmem:[#allocation26_spill] sm:$0xff] %v8627_v3  ;;  %16877 = vst [vmem:[#allocation27_spill] sm:$0xff] %v8629_v4  ;;  %v2826_v40 = vmax.f32 %v2825_v62, %v8627_v3  ;;  %v3092_v5 = vmax.f32 %v3091_v63, %v8629_v4  ;;  %v8633_v6 = vpop.f32.mrb[10].mxu0  ;;  %v8635_v7 = vpop.f32.mrb[10].mxu1 }
 0x324   : > { %16878 = vst [vmem:[#allocation28_spill] sm:$0xff] %v8635_v7  ;;  %v2694_v9 = vmax.f32 %v2693_v2, %v8633_v6  ;;  %v2960_v10 = vmax.f32 %v2959_v37, %v8635_v7  ;;  %v8639_v11 = vpop.f32.mrb[11].mxu0  ;;  %v8641_v12 = vpop.f32.mrb[11].mxu1 }
 0x325   : > { %16879 = vst [vmem:[#allocation29_spill] sm:$0xff] %v8639_v11  ;;  %16880 = vst [vmem:[#allocation30_spill] sm:$0xff] %v8641_v12  ;;  %v2827_v13 = vmax.f32 %v2826_v40, %v8639_v11  ;;  %v3093_v14 = vmax.f32 %v3092_v5, %v8641_v12 }
 0x326   : > { %6247 = vmatmul.mubr.msk.bf16.gmra.mrb[116].mxu0 %vm1138_vm3, %v1093_v8  ;;  %6312 = vmatmul.mubr.msk.bf16.gmra.mrb[116].mxu1 %vm1138_vm3, %v1093_v8 }
 0x327   : > { %1676 = vmatprep.mubr.bf16.mxu0 %v15483_v61  ;;  %2349 = vmatprep.mubr.bf16.mxu1 %v15483_v61 }
 0x329   : > { %v8649_v15 = vpop.f32.mrb[12].mxu0  ;;  %v8651_v16 = vpop.f32.mrb[12].mxu1 }
 0x32a   : > { %16881 = vst [vmem:[#allocation31_spill] sm:$0xff] %v8651_v16  ;;  %v2695_v17 = vmax.f32 %v2694_v9, %v8649_v15  ;;  %v2961_v19 = vmax.f32 %v2960_v10, %v8651_v16  ;;  %v8655_v20 = vpop.f32.mrb[13].mxu0  ;;  %v8657_v58 = vpop.f32.mrb[13].mxu1 }
 0x32b   : > { %16882 = vst [vmem:[#allocation32_spill] sm:$0xff] %v8655_v20  ;;  %16883 = vst [vmem:[#allocation33_spill] sm:$0xff] %v8657_v58  ;;  %v2828_v21 = vmax.f32 %v2827_v13, %v8655_v20  ;;  %v3094_v22 = vmax.f32 %v3093_v14, %v8657_v58  ;;  %v8661_v23 = vpop.f32.mrb[14].mxu0  ;;  %v8663_v24 = vpop.f32.mrb[14].mxu1  ;;  %v1098_v58 = vld [vmem:[#allocation4 + $0x110] sm:$0xff] }
 0x32c   : > { %16884 = vst [vmem:[#allocation34_spill] sm:$0xff] %v8663_v24  ;;  %v2696_v26 = vmax.f32 %v2695_v17, %v8661_v23  ;;  %v2962_v27 = vmax.f32 %v2961_v19, %v8663_v24  ;;  %v8667_v28 = vpop.f32.mrb[15].mxu0  ;;  %v8669_v60 = vpop.f32.mrb[15].mxu1 }
 0x32d   : > { %16885 = vst [vmem:[#allocation35_spill] sm:$0xff] %v8667_v28  ;;  %16886 = vst [vmem:[#allocation36_spill] sm:$0xff] %v8669_v60  ;;  %v2829_v29 = vmax.f32 %v2828_v21, %v8667_v28  ;;  %v3095_v36 = vmax.f32 %v3094_v22, %v8669_v60 }
 0x32e   : > { %6248 = vmatmul.mubr.msk.bf16.gmra.mrb[120].mxu0 %vm1138_vm3, %v1094_v25  ;;  %6313 = vmatmul.mubr.msk.bf16.gmra.mrb[120].mxu1 %vm1138_vm3, %v1094_v25 }
 0x32f   : > { %1686 = vmatprep.mubr.bf16.mxu0 %v15483_v61  ;;  %2359 = vmatprep.mubr.bf16.mxu1 %v15483_v61 }
 0x331   : > { %v8677_v38 = vpop.f32.mrb[16].mxu0  ;;  %v8679_v39 = vpop.f32.mrb[16].mxu1 }
 0x332   : > { %16887 = vst [vmem:[#allocation37_spill] sm:$0xff] %v8679_v39  ;;  %v2697_v42 = vmax.f32 %v2696_v26, %v8677_v38  ;;  %v2963_v43 = vmax.f32 %v2962_v27, %v8679_v39  ;;  %v8683_v46 = vpop.f32.mrb[17].mxu0  ;;  %v8685_v47 = vpop.f32.mrb[17].mxu1  ;;  %v1096_v26 = vld [vmem:[#allocation4 + $0x100] sm:$0xff] }
 0x333   : > { %16888 = vst [vmem:[#allocation38_spill] sm:$0xff] %v8683_v46  ;;  %16889 = vst [vmem:[#allocation39_spill] sm:$0xff] %v8685_v47  ;;  %v2830_v49 = vmax.f32 %v2829_v29, %v8683_v46  ;;  %v3096_v50 = vmax.f32 %v3095_v36, %v8685_v47  ;;  %v8689_v53 = vpop.f32.mrb[18].mxu0  ;;  %v8691_v54 = vpop.f32.mrb[18].mxu1 }
 0x334   : > { %16890 = vst [vmem:[#allocation40_spill] sm:$0xff] %v8691_v54  ;;  %v2698_v62 = vmax.f32 %v2697_v42, %v8689_v53  ;;  %v2964_v63 = vmax.f32 %v2963_v43, %v8691_v54  ;;  %v8695_v2 = vpop.f32.mrb[19].mxu0  ;;  %v8697_v37 = vpop.f32.mrb[19].mxu1 }
 0x335   : > { %16891 = vst [vmem:[#allocation41_spill] sm:$0xff] %v8695_v2  ;;  %16892 = vst [vmem:[#allocation42_spill] sm:$0xff] %v8697_v37  ;;  %v2831_v40 = vmax.f32 %v2830_v49, %v8695_v2  ;;  %v3097_v5 = vmax.f32 %v3096_v50, %v8697_v37 }
 0x336   : > { %6249 = vmatmul.mubr.msk.bf16.gmra.mrb[124].mxu0 %vm1138_vm3, %v1095_v55  ;;  %6314 = vmatmul.mubr.msk.bf16.gmra.mrb[124].mxu1 %vm1138_vm3, %v1095_v55 }
 0x337   : > { %1696 = vmatprep.mubr.bf16.mxu0 %v15483_v61  ;;  %2369 = vmatprep.mubr.bf16.mxu1 %v15483_v61 }
 0x339   : > { %v8705_v8 = vpop.f32.mrb[20].mxu0  ;;  %v8707_v9 = vpop.f32.mrb[20].mxu1 }
 0x33a   : > { %16893 = vst [vmem:[#allocation43_spill] sm:$0xff] %v8707_v9  ;;  %v2699_v10 = vmax.f32 %v2698_v62, %v8705_v8  ;;  %v2965_v13 = vmax.f32 %v2964_v63, %v8707_v9  ;;  %v8711_v14 = vpop.f32.mrb[21].mxu0  ;;  %v8713_v17 = vpop.f32.mrb[21].mxu1 }
 0x33b   : > { %16894 = vst [vmem:[#allocation44_spill] sm:$0xff] %v8711_v14  ;;  %16895 = vst [vmem:[#allocation45_spill] sm:$0xff] %v8713_v17  ;;  %v2832_v19 = vmax.f32 %v2831_v40, %v8711_v14  ;;  %v3098_v21 = vmax.f32 %v3097_v5, %v8713_v17  ;;  %v8717_v22 = vpop.f32.mrb[22].mxu0  ;;  %v8719_v25 = vpop.f32.mrb[22].mxu1 }
 0x33c   : > { %16896 = vst [vmem:[#allocation46_spill] sm:$0xff] %v8719_v25  ;;  %v2700_v27 = vmax.f32 %v2699_v10, %v8717_v22  ;;  %v2966_v29 = vmax.f32 %v2965_v13, %v8719_v25  ;;  %v8723_v36 = vpop.f32.mrb[23].mxu0  ;;  %v8725_v42 = vpop.f32.mrb[23].mxu1 }
 0x33d   : > { %16897 = vst [vmem:[#allocation47_spill] sm:$0xff] %v8723_v36  ;;  %16898 = vst [vmem:[#allocation48_spill] sm:$0xff] %v8725_v42  ;;  %v2833_v43 = vmax.f32 %v2832_v19, %v8723_v36  ;;  %v3099_v49 = vmax.f32 %v3098_v21, %v8725_v42 }
 0x33e   : > { %6250 = vmatmul.mubr.msk.bf16.gmra.mrb[128].mxu0 %vm1138_vm3, %v1096_v26  ;;  %6315 = vmatmul.mubr.msk.bf16.gmra.mrb[128].mxu1 %vm1138_vm3, %v1096_v26  ;;  %v1097_v26 = vld [vmem:[#allocation4 + $0x108] sm:$0xff] }
 0x33f   : > { %1706 = vmatprep.mubr.bf16.mxu0 %v15483_v61  ;;  %2379 = vmatprep.mubr.bf16.mxu1 %v15483_v61 }
 0x341   : > { %v8733_v50 = vpop.f32.mrb[24].mxu0  ;;  %v8735_v55 = vpop.f32.mrb[24].mxu1 }
 0x342   : > { %16899 = vst [vmem:[#allocation49_spill] sm:$0xff] %v8735_v55  ;;  %v2701_v62 = vmax.f32 %v2700_v27, %v8733_v50  ;;  %v2967_v63 = vmax.f32 %v2966_v29, %v8735_v55  ;;  %v8739_v40 = vpop.f32.mrb[25].mxu0  ;;  %v8741_v5 = vpop.f32.mrb[25].mxu1 }
 0x343   : > { %16900 = vst [vmem:[#allocation50_spill] sm:$0xff] %v8739_v40  ;;  %16901 = vst [vmem:[#allocation51_spill] sm:$0xff] %v8741_v5  ;;  %v2834_v10 = vmax.f32 %v2833_v43, %v8739_v40  ;;  %v3100_v13 = vmax.f32 %v3099_v49, %v8741_v5  ;;  %v8745_v19 = vpop.f32.mrb[26].mxu0  ;;  %v8747_v21 = vpop.f32.mrb[26].mxu1  ;;  %v16905_v43 = vmov 0  }
 0x344   : > { %16902 = vst [vmem:[#allocation52_spill] sm:$0xff] %v8747_v21  ;;  %v2702_v61 = vmax.f32 %v2701_v62, %v8745_v19  ;;  %v2968_v42 = vmax.f32 %v2967_v63, %v8747_v21  ;;  %v8751_v27 = vpop.f32.mrb[27].mxu0  ;;  %v8753_v29 = vpop.f32.mrb[27].mxu1 }
 0x345   : > { %16903 = vst [vmem:[#allocation53_spill] sm:$0xff] %v8751_v27  ;;  %16904 = vst [vmem:[#allocation54_spill] sm:$0xff] %v8753_v29  ;;  %v2835_v17 = vmax.f32 %v2834_v10, %v8751_v27  ;;  %v3101_v37 = vmax.f32 %v3100_v13, %v8753_v29 }
 0x346   : > { %6251 = vmatmul.mubr.msk.bf16.gmra.mrb[132].mxu0 %vm1138_vm3, %v1097_v26  ;;  %6316 = vmatmul.mubr.msk.bf16.gmra.mrb[132].mxu1 %vm1138_vm3, %v1097_v26 }
 0x347   : > { %1716 = vmatprep.mubr.bf16.mxu0 %v16905_v43  ;;  %2389 = vmatprep.mubr.bf16.mxu1 %v16905_v43 }
 0x349   : > { %v8761_v49 = vpop.f32.mrb[28].mxu0  ;;  %v8763_v62 = vpop.f32.mrb[28].mxu1 }
 0x34a   : > { %16906 = vst [vmem:[#allocation55_spill] sm:$0xff] %v8763_v62  ;;  %v2703_v63 = vmax.f32 %v2702_v61, %v8761_v49  ;;  %v2969_v5 = vmax.f32 %v2968_v42, %v8763_v62  ;;  %v8767_v47 = vpop.f32.mrb[29].mxu0  ;;  %v8769_v10 = vpop.f32.mrb[29].mxu1 }
 0x34b   : > { %16907 = vst [vmem:[#allocation56_spill] sm:$0xff] %v8767_v47  ;;  %16908 = vst [vmem:[#allocation57_spill] sm:$0xff] %v8769_v10  ;;  %v2836_v13 = vmax.f32 %v2835_v17, %v8767_v47  ;;  %v3102_v26 = vmax.f32 %v3101_v37, %v8769_v10  ;;  %v8773_v29 = vpop.f32.mrb[30].mxu0  ;;  %v8775_v60 = vpop.f32.mrb[30].mxu1 }
 0x34c   : > { %16909 = vst [vmem:[#allocation58_spill] sm:$0xff] %v8775_v60  ;;  %v2704_v12 = vmax.f32 %v2703_v63, %v8773_v29  ;;  %v2970_v4 = vmax.f32 %v2969_v5, %v8775_v60  ;;  %v8779_v61 = vpop.f32.mrb[31].mxu0  ;;  %v8781_v42 = vpop.f32.mrb[31].mxu1 }
 0x34d   : > { %16910 = vst [vmem:[#allocation59_spill] sm:$0xff] %v8779_v61  ;;  %16911 = vst [vmem:[#allocation60_spill] sm:$0xff] %v8781_v42  ;;  %v2837_v57 = vmax.f32 %v2836_v13, %v8779_v61  ;;  %v3103_v48 = vmax.f32 %v3102_v26, %v8781_v42 }
 0x34e   : > { %6252 = vmatmul.mubr.msk.bf16.gmra.mrb[136].mxu0 %vm1138_vm3, %v1098_v58  ;;  %6317 = vmatmul.mubr.msk.bf16.gmra.mrb[136].mxu1 %vm1138_vm3, %v1098_v58 }
 0x34f   : > { %1726 = vmatprep.mubr.bf16.mxu0 %v16905_v43  ;;  %2399 = vmatprep.mubr.bf16.mxu1 %v16905_v43 }
 0x351   : > { %v8789_v37 = vpop.f32.mrb[32].mxu0  ;;  %v8791_v17 = vpop.f32.mrb[32].mxu1 }
 0x352   : > { %16912 = vst [vmem:[#allocation61_spill] sm:$0xff] %v8791_v17  ;;  %v2705_v5 = vmax.f32 %v2704_v12, %v8789_v37  ;;  %v2971_v63 = vmax.f32 %v2970_v4, %v8791_v17  ;;  %v8795_v10 = vpop.f32.mrb[33].mxu0  ;;  %v8797_v13 = vpop.f32.mrb[33].mxu1 }
 0x353   : > { %16913 = vst [vmem:[#allocation62_spill] sm:$0xff] %v8795_v10  ;;  %16914 = vst [vmem:[#allocation63_spill] sm:$0xff] %v8797_v13  ;;  %v2838_v26 = vmax.f32 %v2837_v57, %v8795_v10  ;;  %v3104_v58 = vmax.f32 %v3103_v48, %v8797_v13  ;;  %v8801_v42 = vpop.f32.mrb[34].mxu0  ;;  %v8803_v41 = vpop.f32.mrb[34].mxu1  ;;  %v1100_v10 = vld [vmem:[#allocation4 + $0x120] sm:$0xff] }
 0x354   : > { %16915 = vst [vmem:[#allocation64_spill] sm:$0xff] %v8803_v41  ;;  %v2706_v61 = vmax.f32 %v2705_v5, %v8801_v42  ;;  %v2972_v47 = vmax.f32 %v2971_v63, %v8803_v41  ;;  %v8807_v12 = vpop.f32.mrb[35].mxu0  ;;  %v8809_v4 = vpop.f32.mrb[35].mxu1 }
 0x355   : > { %16916 = vst [vmem:[#allocation65_spill] sm:$0xff] %v8807_v12  ;;  %16917 = vst [vmem:[#allocation66_spill] sm:$0xff] %v8809_v4  ;;  %v2839_v27 = vmax.f32 %v2838_v26, %v8807_v12  ;;  %v3105_v40 = vmax.f32 %v3104_v58, %v8809_v4 }
 0x356   : > { %6253 = vmatmul.mubr.msk.bf16.gmra.mrb[140].mxu0 %vm1138_vm3, %v1099_v33  ;;  %6318 = vmatmul.mubr.msk.bf16.gmra.mrb[140].mxu1 %vm1138_vm3, %v1099_v33 }
 0x357   : > { %1736 = vmatprep.mubr.bf16.mxu0 %v16905_v43  ;;  %2409 = vmatprep.mubr.bf16.mxu1 %v16905_v43 }
 0x359   : > { %v8817_v48 = vpop.f32.mrb[36].mxu0  ;;  %v8819_v57 = vpop.f32.mrb[36].mxu1 }
 0x35a   : > { %16918 = vst [vmem:[#allocation67_spill] sm:$0xff] %v8819_v57  ;;  %v2707_v5 = vmax.f32 %v2706_v61, %v8817_v48  ;;  %v2973_v63 = vmax.f32 %v2972_v47, %v8819_v57  ;;  %v8823_v13 = vpop.f32.mrb[37].mxu0  ;;  %v8825_v26 = vpop.f32.mrb[37].mxu1 }
 0x35b   : > { %16919 = vst [vmem:[#allocation68_spill] sm:$0xff] %v8823_v13  ;;  %16920 = vst [vmem:[#allocation69_spill] sm:$0xff] %v8825_v26  ;;  %v2840_v58 = vmax.f32 %v2839_v27, %v8823_v13  ;;  %v3106_v33 = vmax.f32 %v3105_v40, %v8825_v26  ;;  %v8829_v4 = vpop.f32.mrb[38].mxu0  ;;  %v8831_v12 = vpop.f32.mrb[38].mxu1  ;;  %v1101_v13 = vld [vmem:[#allocation4 + $0x128] sm:$0xff] }
 0x35c   : > { %16921 = vst [vmem:[#allocation70_spill] sm:$0xff] %v8831_v12  ;;  %v2708_v36 = vmax.f32 %v2707_v5, %v8829_v4  ;;  %v2974_v14 = vmax.f32 %v2973_v63, %v8831_v12  ;;  %v8835_v61 = vpop.f32.mrb[39].mxu0  ;;  %v8837_v47 = vpop.f32.mrb[39].mxu1 }
 0x35d   : > { %16922 = vst [vmem:[#allocation71_spill] sm:$0xff] %v8835_v61  ;;  %16923 = vst [vmem:[#allocation72_spill] sm:$0xff] %v8837_v47  ;;  %v2841_v2 = vmax.f32 %v2840_v58, %v8835_v61  ;;  %v3107_v46 = vmax.f32 %v3106_v33, %v8837_v47 }
 0x35e   : > { %6254 = vmatmul.mubr.msk.bf16.gmra.mrb[144].mxu0 %vm1138_vm3, %v1100_v10  ;;  %6319 = vmatmul.mubr.msk.bf16.gmra.mrb[144].mxu1 %vm1138_vm3, %v1100_v10 }
 0x35f   : > { %1746 = vmatprep.mubr.bf16.mxu0 %v16905_v43  ;;  %2419 = vmatprep.mubr.bf16.mxu1 %v16905_v43 }
 0x361   : > { %v8845_v40 = vpop.f32.mrb[40].mxu0  ;;  %v8847_v27 = vpop.f32.mrb[40].mxu1 }
 0x362   : > { %16924 = vst [vmem:[#allocation73_spill] sm:$0xff] %v8847_v27  ;;  %v2709_v5 = vmax.f32 %v2708_v36, %v8845_v40  ;;  %v2975_v63 = vmax.f32 %v2974_v14, %v8847_v27  ;;  %v8851_v26 = vpop.f32.mrb[41].mxu0  ;;  %v8853_v58 = vpop.f32.mrb[41].mxu1 }
 0x363   : > { %16925 = vst [vmem:[#allocation74_spill] sm:$0xff] %v8851_v26  ;;  %16926 = vst [vmem:[#allocation75_spill] sm:$0xff] %v8853_v58  ;;  %v2842_v33 = vmax.f32 %v2841_v2, %v8851_v26  ;;  %v3108_v10 = vmax.f32 %v3107_v46, %v8853_v58  ;;  %v8857_v47 = vpop.f32.mrb[42].mxu0  ;;  %v8859_v61 = vpop.f32.mrb[42].mxu1  ;;  %v1102_v26 = vld [vmem:[#allocation4 + $0x130] sm:$0xff] }
 0x364   : > { %16927 = vst [vmem:[#allocation76_spill] sm:$0xff] %v8859_v61  ;;  %v2710_v28 = vmax.f32 %v2709_v5, %v8857_v47  ;;  %v2976_v20 = vmax.f32 %v2975_v63, %v8859_v61  ;;  %v8863_v36 = vpop.f32.mrb[43].mxu0  ;;  %v8865_v14 = vpop.f32.mrb[43].mxu1 }
 0x365   : > { %16928 = vst [vmem:[#allocation77_spill] sm:$0xff] %v8863_v36  ;;  %16929 = vst [vmem:[#allocation78_spill] sm:$0xff] %v8865_v14  ;;  %v2843_v11 = vmax.f32 %v2842_v33, %v8863_v36  ;;  %v3109_v3 = vmax.f32 %v3108_v10, %v8865_v14 }
 0x366   : > { %6255 = vmatmul.mubr.msk.bf16.gmra.mrb[148].mxu0 %vm1138_vm3, %v1101_v13  ;;  %6320 = vmatmul.mubr.msk.bf16.gmra.mrb[148].mxu1 %vm1138_vm3, %v1101_v13 }
 0x367   : > { %1756 = vmatprep.mubr.bf16.mxu0 %v16905_v43  ;;  %2429 = vmatprep.mubr.bf16.mxu1 %v16905_v43 }
 0x369   : > { %v8873_v46 = vpop.f32.mrb[44].mxu0  ;;  %v8875_v2 = vpop.f32.mrb[44].mxu1 }
 0x36a   : > { %16930 = vst [vmem:[#allocation79_spill] sm:$0xff] %v8875_v2  ;;  %v2711_v5 = vmax.f32 %v2710_v28, %v8873_v46  ;;  %v2977_v63 = vmax.f32 %v2976_v20, %v8875_v2  ;;  %v8879_v58 = vpop.f32.mrb[45].mxu0  ;;  %v8881_v33 = vpop.f32.mrb[45].mxu1 }
 0x36b   : > { %16931 = vst [vmem:[#allocation80_spill] sm:$0xff] %v8879_v58  ;;  %16932 = vst [vmem:[#allocation81_spill] sm:$0xff] %v8881_v33  ;;  %v2844_v10 = vmax.f32 %v2843_v11, %v8879_v58  ;;  %v3110_v13 = vmax.f32 %v3109_v3, %v8881_v33  ;;  %v8885_v14 = vpop.f32.mrb[46].mxu0  ;;  %v8887_v36 = vpop.f32.mrb[46].mxu1  ;;  %v1103_v58 = vld [vmem:[#allocation4 + $0x138] sm:$0xff] }
 0x36c   : > { %16933 = vst [vmem:[#allocation82_spill] sm:$0xff] %v8887_v36  ;;  %v2712_v56 = vmax.f32 %v2711_v5, %v8885_v14  ;;  %v2978_v18 = vmax.f32 %v2977_v63, %v8887_v36  ;;  %v8891_v28 = vpop.f32.mrb[47].mxu0  ;;  %v8893_v20 = vpop.f32.mrb[47].mxu1 }
 0x36d   : > { %16934 = vst [vmem:[#allocation83_spill] sm:$0xff] %v8891_v28  ;;  %16935 = vst [vmem:[#allocation84_spill] sm:$0xff] %v8893_v20  ;;  %v2845_v59 = vmax.f32 %v2844_v10, %v8891_v28  ;;  %v3111_v32 = vmax.f32 %v3110_v13, %v8893_v20 }
 0x36e   : > { %6256 = vmatmul.mubr.msk.bf16.gmra.mrb[152].mxu0 %vm1138_vm3, %v1102_v26  ;;  %6321 = vmatmul.mubr.msk.bf16.gmra.mrb[152].mxu1 %vm1138_vm3, %v1102_v26 }
 0x36f   : > { %1766 = vmatprep.mubr.bf16.mxu0 %v16905_v43  ;;  %2439 = vmatprep.mubr.bf16.mxu1 %v16905_v43 }
 0x371   : > { %v8901_v3 = vpop.f32.mrb[48].mxu0  ;;  %v8903_v11 = vpop.f32.mrb[48].mxu1 }
 0x372   : > { %16936 = vst [vmem:[#allocation85_spill] sm:$0xff] %v8903_v11  ;;  %v2713_v5 = vmax.f32 %v2712_v56, %v8901_v3  ;;  %v2979_v63 = vmax.f32 %v2978_v18, %v8903_v11  ;;  %v8907_v33 = vpop.f32.mrb[49].mxu0  ;;  %v8909_v10 = vpop.f32.mrb[49].mxu1 }
 0x373   : > { %16937 = vst [vmem:[#allocation86_spill] sm:$0xff] %v8907_v33  ;;  %16938 = vst [vmem:[#allocation87_spill] sm:$0xff] %v8909_v10  ;;  %v2846_v13 = vmax.f32 %v2845_v59, %v8907_v33  ;;  %v3112_v26 = vmax.f32 %v3111_v32, %v8909_v10  ;;  %v8913_v20 = vpop.f32.mrb[50].mxu0  ;;  %v8915_v28 = vpop.f32.mrb[50].mxu1  ;;  %v1104_v33 = vld [vmem:[#allocation4 + $0x140] sm:$0xff] }
 0x374   : > { %16939 = vst [vmem:[#allocation88_spill] sm:$0xff] %v8915_v28  ;;  %v2714_v36 = vmax.f32 %v2713_v5, %v8913_v20  ;;  %v2980_v2 = vmax.f32 %v2979_v63, %v8915_v28  ;;  %v8919_v56 = vpop.f32.mrb[51].mxu0  ;;  %v8921_v18 = vpop.f32.mrb[51].mxu1 }
 0x375   : > { %16940 = vst [vmem:[#allocation89_spill] sm:$0xff] %v8919_v56  ;;  %16941 = vst [vmem:[#allocation90_spill] sm:$0xff] %v8921_v18  ;;  %v2847_v11 = vmax.f32 %v2846_v13, %v8919_v56  ;;  %v3113_v61 = vmax.f32 %v3112_v26, %v8921_v18 }
 0x376   : > { %6257 = vmatmul.mubr.msk.bf16.gmra.mrb[156].mxu0 %vm1138_vm3, %v1103_v58  ;;  %6322 = vmatmul.mubr.msk.bf16.gmra.mrb[156].mxu1 %vm1138_vm3, %v1103_v58 }
 0x377   : > { %1776 = vmatprep.mubr.bf16.mxu0 %v16905_v43  ;;  %2449 = vmatprep.mubr.bf16.mxu1 %v16905_v43 }
 0x379   : > { %v8929_v32 = vpop.f32.mrb[52].mxu0  ;;  %v8931_v59 = vpop.f32.mrb[52].mxu1 }
 0x37a   : > { %16942 = vst [vmem:[#allocation91_spill] sm:$0xff] %v8931_v59  ;;  %v2715_v5 = vmax.f32 %v2714_v36, %v8929_v32  ;;  %v2981_v63 = vmax.f32 %v2980_v2, %v8931_v59  ;;  %v8935_v10 = vpop.f32.mrb[53].mxu0  ;;  %v8937_v13 = vpop.f32.mrb[53].mxu1 }
 0x37b   : > { %16943 = vst [vmem:[#allocation92_spill] sm:$0xff] %v8935_v10  ;;  %16944 = vst [vmem:[#allocation93_spill] sm:$0xff] %v8937_v13  ;;  %v2848_v26 = vmax.f32 %v2847_v11, %v8935_v10  ;;  %v3114_v58 = vmax.f32 %v3113_v61, %v8937_v13  ;;  %v8941_v18 = vpop.f32.mrb[54].mxu0  ;;  %v8943_v56 = vpop.f32.mrb[54].mxu1  ;;  %v1105_v10 = vld [vmem:[#allocation4 + $0x148] sm:$0xff] }
 0x37c   : > { %16945 = vst [vmem:[#allocation94_spill] sm:$0xff] %v8943_v56  ;;  %v2716_v28 = vmax.f32 %v2715_v5, %v8941_v18  ;;  %v2982_v27 = vmax.f32 %v2981_v63, %v8943_v56  ;;  %v8947_v36 = vpop.f32.mrb[55].mxu0  ;;  %v8949_v2 = vpop.f32.mrb[55].mxu1 }
 0x37d   : > { %16946 = vst [vmem:[#allocation95_spill] sm:$0xff] %v8947_v36  ;;  %16947 = vst [vmem:[#allocation96_spill] sm:$0xff] %v8949_v2  ;;  %v2849_v59 = vmax.f32 %v2848_v26, %v8947_v36  ;;  %v3115_v12 = vmax.f32 %v3114_v58, %v8949_v2 }
 0x37e   : > { %6258 = vmatmul.mubr.msk.bf16.gmra.mrb[160].mxu0 %vm1138_vm3, %v1104_v33  ;;  %6323 = vmatmul.mubr.msk.bf16.gmra.mrb[160].mxu1 %vm1138_vm3, %v1104_v33 }
 0x37f   : > { %1786 = vmatprep.mubr.bf16.mxu0 %v16905_v43  ;;  %2459 = vmatprep.mubr.bf16.mxu1 %v16905_v43 }
 0x381   : > { %v8957_v61 = vpop.f32.mrb[56].mxu0  ;;  %v8959_v11 = vpop.f32.mrb[56].mxu1 }
 0x382   : > { %16948 = vst [vmem:[#allocation97_spill] sm:$0xff] %v8959_v11  ;;  %v2717_v5 = vmax.f32 %v2716_v28, %v8957_v61  ;;  %v2983_v63 = vmax.f32 %v2982_v27, %v8959_v11  ;;  %v8963_v13 = vpop.f32.mrb[57].mxu0  ;;  %v8965_v26 = vpop.f32.mrb[57].mxu1 }
 0x383   : > { %16949 = vst [vmem:[#allocation98_spill] sm:$0xff] %v8963_v13  ;;  %16950 = vst [vmem:[#allocation99_spill] sm:$0xff] %v8965_v26  ;;  %v2850_v58 = vmax.f32 %v2849_v59, %v8963_v13  ;;  %v3116_v33 = vmax.f32 %v3115_v12, %v8965_v26  ;;  %v8969_v2 = vpop.f32.mrb[58].mxu0  ;;  %v8971_v36 = vpop.f32.mrb[58].mxu1  ;;  %v1106_v13 = vld [vmem:[#allocation4 + $0x150] sm:$0xff] }
 0x384   : > { %16951 = vst [vmem:[#allocation100_spill] sm:$0xff] %v8971_v36  ;;  %v2718_v56 = vmax.f32 %v2717_v5, %v8969_v2  ;;  %v2984_v57 = vmax.f32 %v2983_v63, %v8971_v36  ;;  %v8975_v28 = vpop.f32.mrb[59].mxu0  ;;  %v8977_v27 = vpop.f32.mrb[59].mxu1 }
 0x385   : > { %16952 = vst [vmem:[#allocation101_spill] sm:$0xff] %v8975_v28  ;;  %16953 = vst [vmem:[#allocation102_spill] sm:$0xff] %v8977_v27  ;;  %v2851_v11 = vmax.f32 %v2850_v58, %v8975_v28  ;;  %v3117_v41 = vmax.f32 %v3116_v33, %v8977_v27 }
 0x386   : > { %6259 = vmatmul.mubr.msk.bf16.gmra.mrb[164].mxu0 %vm1138_vm3, %v1105_v10  ;;  %6324 = vmatmul.mubr.msk.bf16.gmra.mrb[164].mxu1 %vm1138_vm3, %v1105_v10 }
 0x387   : > { %1796 = vmatprep.mubr.bf16.mxu0 %v16905_v43  ;;  %2469 = vmatprep.mubr.bf16.mxu1 %v16905_v43 }
 0x389   : > { %v8985_v12 = vpop.f32.mrb[60].mxu0  ;;  %v8987_v59 = vpop.f32.mrb[60].mxu1 }
 0x38a   : > { %16954 = vst [vmem:[#allocation103_spill] sm:$0xff] %v8987_v59  ;;  %v2719_v5 = vmax.f32 %v2718_v56, %v8985_v12  ;;  %v2985_v63 = vmax.f32 %v2984_v57, %v8987_v59  ;;  %v8991_v26 = vpop.f32.mrb[61].mxu0  ;;  %v8993_v58 = vpop.f32.mrb[61].mxu1 }
 0x38b   : > { %16955 = vst [vmem:[#allocation104_spill] sm:$0xff] %v8991_v26  ;;  %16956 = vst [vmem:[#allocation105_spill] sm:$0xff] %v8993_v58  ;;  %v2852_v33 = vmax.f32 %v2851_v11, %v8991_v26  ;;  %v3118_v10 = vmax.f32 %v3117_v41, %v8993_v58  ;;  %v8997_v27 = vpop.f32.mrb[62].mxu0  ;;  %v8999_v28 = vpop.f32.mrb[62].mxu1  ;;  %v1107_v26 = vld [vmem:[#allocation4 + $0x158] sm:$0xff] }
 0x38c   : > { %16957 = vst [vmem:[#allocation106_spill] sm:$0xff] %v8999_v28  ;;  %v2720_v36 = vmax.f32 %v2719_v5, %v8997_v27  ;;  %v2986_v17 = vmax.f32 %v2985_v63, %v8999_v28  ;;  %v9003_v56 = vpop.f32.mrb[63].mxu0  ;;  %v9005_v57 = vpop.f32.mrb[63].mxu1 }
 0x38d   : > { %16958 = vst [vmem:[#allocation107_spill] sm:$0xff] %v9003_v56  ;;  %16959 = vst [vmem:[#allocation108_spill] sm:$0xff] %v9005_v57  ;;  %v2853_v59 = vmax.f32 %v2852_v33, %v9003_v56  ;;  %v3119_v60 = vmax.f32 %v3118_v10, %v9005_v57 }
 0x38e   : > { %6260 = vmatmul.mubr.msk.bf16.gmra.mrb[168].mxu0 %vm1138_vm3, %v1106_v13  ;;  %6325 = vmatmul.mubr.msk.bf16.gmra.mrb[168].mxu1 %vm1138_vm3, %v1106_v13 }
 0x38f   : > { %1806 = vmatprep.mubr.bf16.mxu0 %v16905_v43  ;;  %2479 = vmatprep.mubr.bf16.mxu1 %v16905_v43 }
 0x391   : > { %v9013_v41 = vpop.f32.mrb[64].mxu0  ;;  %v9015_v11 = vpop.f32.mrb[64].mxu1 }
 0x392   : > { %16960 = vst [vmem:[#allocation109_spill] sm:$0xff] %v9015_v11  ;;  %v2721_v5 = vmax.f32 %v2720_v36, %v9013_v41  ;;  %v2987_v63 = vmax.f32 %v2986_v17, %v9015_v11  ;;  %v9019_v58 = vpop.f32.mrb[65].mxu0  ;;  %v9021_v33 = vpop.f32.mrb[65].mxu1 }
 0x393   : > { %16961 = vst [vmem:[#allocation110_spill] sm:$0xff] %v9019_v58  ;;  %16962 = vst [vmem:[#allocation111_spill] sm:$0xff] %v9021_v33  ;;  %v2854_v10 = vmax.f32 %v2853_v59, %v9019_v58  ;;  %v3120_v13 = vmax.f32 %v3119_v60, %v9021_v33  ;;  %v9025_v57 = vpop.f32.mrb[66].mxu0  ;;  %v9027_v56 = vpop.f32.mrb[66].mxu1  ;;  %v1108_v58 = vld [vmem:[#allocation4 + $0x160] sm:$0xff] }
 0x394   : > { %16963 = vst [vmem:[#allocation112_spill] sm:$0xff] %v9027_v56  ;;  %v2722_v28 = vmax.f32 %v2721_v5, %v9025_v57  ;;  %v2988_v62 = vmax.f32 %v2987_v63, %v9027_v56  ;;  %v9031_v36 = vpop.f32.mrb[67].mxu0  ;;  %v9033_v17 = vpop.f32.mrb[67].mxu1 }
 0x395   : > { %16964 = vst [vmem:[#allocation113_spill] sm:$0xff] %v9031_v36  ;;  %16965 = vst [vmem:[#allocation114_spill] sm:$0xff] %v9033_v17  ;;  %v2855_v11 = vmax.f32 %v2854_v10, %v9031_v36  ;;  %v3121_v21 = vmax.f32 %v3120_v13, %v9033_v17 }
 0x396   : > { %6261 = vmatmul.mubr.msk.bf16.gmra.mrb[172].mxu0 %vm1138_vm3, %v1107_v26  ;;  %6326 = vmatmul.mubr.msk.bf16.gmra.mrb[172].mxu1 %vm1138_vm3, %v1107_v26 }
 0x397   : > { %1816 = vmatprep.mubr.bf16.mxu0 %v16905_v43  ;;  %2489 = vmatprep.mubr.bf16.mxu1 %v16905_v43 }
 0x399   : > { %v9041_v60 = vpop.f32.mrb[68].mxu0  ;;  %v9043_v59 = vpop.f32.mrb[68].mxu1 }
 0x39a   : > { %16966 = vst [vmem:[#allocation115_spill] sm:$0xff] %v9043_v59  ;;  %v2723_v5 = vmax.f32 %v2722_v28, %v9041_v60  ;;  %v2989_v63 = vmax.f32 %v2988_v62, %v9043_v59  ;;  %v9047_v33 = vpop.f32.mrb[69].mxu0  ;;  %v9049_v10 = vpop.f32.mrb[69].mxu1 }
 0x39b   : > { %16967 = vst [vmem:[#allocation116_spill] sm:$0xff] %v9047_v33  ;;  %16968 = vst [vmem:[#allocation117_spill] sm:$0xff] %v9049_v10  ;;  %v2856_v13 = vmax.f32 %v2855_v11, %v9047_v33  ;;  %v3122_v26 = vmax.f32 %v3121_v21, %v9049_v10  ;;  %v9053_v17 = vpop.f32.mrb[70].mxu0  ;;  %v9055_v36 = vpop.f32.mrb[70].mxu1  ;;  %v1109_v33 = vld [vmem:[#allocation4 + $0x168] sm:$0xff] }
 0x39c   : > { %16969 = vst [vmem:[#allocation118_spill] sm:$0xff] %v9055_v36  ;;  %v2724_v56 = vmax.f32 %v2723_v5, %v9053_v17  ;;  %v2990_v55 = vmax.f32 %v2989_v63, %v9055_v36  ;;  %v9059_v28 = vpop.f32.mrb[71].mxu0  ;;  %v9061_v62 = vpop.f32.mrb[71].mxu1 }
 0x39d   : > { %16970 = vst [vmem:[#allocation119_spill] sm:$0xff] %v9059_v28  ;;  %16971 = vst [vmem:[#allocation120_spill] sm:$0xff] %v9061_v62  ;;  %v2857_v59 = vmax.f32 %v2856_v13, %v9059_v28  ;;  %v3123_v25 = vmax.f32 %v3122_v26, %v9061_v62 }
 0x39e   : > { %6262 = vmatmul.mubr.msk.bf16.gmra.mrb[176].mxu0 %vm1138_vm3, %v1108_v58  ;;  %6327 = vmatmul.mubr.msk.bf16.gmra.mrb[176].mxu1 %vm1138_vm3, %v1108_v58 }
 0x39f   : > { %1826 = vmatprep.mubr.bf16.mxu0 %v16905_v43  ;;  %2499 = vmatprep.mubr.bf16.mxu1 %v16905_v43 }
 0x3a1   : > { %v9069_v21 = vpop.f32.mrb[72].mxu0  ;;  %v9071_v11 = vpop.f32.mrb[72].mxu1 }
 0x3a2   : > { %16972 = vst [vmem:[#allocation121_spill] sm:$0xff] %v9071_v11  ;;  %v2725_v5 = vmax.f32 %v2724_v56, %v9069_v21  ;;  %v2991_v63 = vmax.f32 %v2990_v55, %v9071_v11  ;;  %v9075_v10 = vpop.f32.mrb[73].mxu0  ;;  %v9077_v13 = vpop.f32.mrb[73].mxu1 }
 0x3a3   : > { %16973 = vst [vmem:[#allocation122_spill] sm:$0xff] %v9075_v10  ;;  %16974 = vst [vmem:[#allocation123_spill] sm:$0xff] %v9077_v13  ;;  %v2858_v26 = vmax.f32 %v2857_v59, %v9075_v10  ;;  %v3124_v58 = vmax.f32 %v3123_v25, %v9077_v13  ;;  %v9081_v62 = vpop.f32.mrb[74].mxu0  ;;  %v9083_v28 = vpop.f32.mrb[74].mxu1  ;;  %v1110_v10 = vld [vmem:[#allocation4 + $0x170] sm:$0xff] }
 0x3a4   : > { %16975 = vst [vmem:[#allocation124_spill] sm:$0xff] %v9083_v28  ;;  %v2726_v36 = vmax.f32 %v2725_v5, %v9081_v62  ;;  %v2992_v9 = vmax.f32 %v2991_v63, %v9083_v28  ;;  %v9087_v56 = vpop.f32.mrb[75].mxu0  ;;  %v9089_v55 = vpop.f32.mrb[75].mxu1 }
 0x3a5   : > { %16976 = vst [vmem:[#allocation125_spill] sm:$0xff] %v9087_v56  ;;  %16977 = vst [vmem:[#allocation126_spill] sm:$0xff] %v9089_v55  ;;  %v2859_v11 = vmax.f32 %v2858_v26, %v9087_v56  ;;  %v3125_v54 = vmax.f32 %v3124_v58, %v9089_v55 }
 0x3a6   : > { %6263 = vmatmul.mubr.msk.bf16.gmra.mrb[180].mxu0 %vm1138_vm3, %v1109_v33  ;;  %6328 = vmatmul.mubr.msk.bf16.gmra.mrb[180].mxu1 %vm1138_vm3, %v1109_v33 }
 0x3a7   : > { %1836 = vmatprep.mubr.bf16.mxu0 %v16905_v43  ;;  %2509 = vmatprep.mubr.bf16.mxu1 %v16905_v43 }
 0x3a9   : > { %v9097_v25 = vpop.f32.mrb[76].mxu0  ;;  %v9099_v59 = vpop.f32.mrb[76].mxu1 }
 0x3aa   : > { %16978 = vst [vmem:[#allocation127_spill] sm:$0xff] %v9099_v59  ;;  %v2727_v5 = vmax.f32 %v2726_v36, %v9097_v25  ;;  %v2993_v63 = vmax.f32 %v2992_v9, %v9099_v59  ;;  %v9103_v13 = vpop.f32.mrb[77].mxu0  ;;  %v9105_v26 = vpop.f32.mrb[77].mxu1 }
 0x3ab   : > { %16979 = vst [vmem:[#allocation128_spill] sm:$0xff] %v9103_v13  ;;  %16980 = vst [vmem:[#allocation129_spill] sm:$0xff] %v9105_v26  ;;  %v2860_v58 = vmax.f32 %v2859_v11, %v9103_v13  ;;  %v3126_v33 = vmax.f32 %v3125_v54, %v9105_v26  ;;  %v9109_v55 = vpop.f32.mrb[78].mxu0  ;;  %v9111_v56 = vpop.f32.mrb[78].mxu1  ;;  %v1111_v13 = vld [vmem:[#allocation4 + $0x178] sm:$0xff] }
 0x3ac   : > { %16981 = vst [vmem:[#allocation130_spill] sm:$0xff] %v9111_v56  ;;  %v2728_v28 = vmax.f32 %v2727_v5, %v9109_v55  ;;  %v2994_v39 = vmax.f32 %v2993_v63, %v9111_v56  ;;  %v9115_v36 = vpop.f32.mrb[79].mxu0  ;;  %v9117_v9 = vpop.f32.mrb[79].mxu1 }
 0x3ad   : > { %16982 = vst [vmem:[#allocation131_spill] sm:$0xff] %v9115_v36  ;;  %16983 = vst [vmem:[#allocation132_spill] sm:$0xff] %v9117_v9  ;;  %v2861_v59 = vmax.f32 %v2860_v58, %v9115_v36  ;;  %v3127_v24 = vmax.f32 %v3126_v33, %v9117_v9 }
 0x3ae   : > { %6264 = vmatmul.mubr.msk.bf16.gmra.mrb[184].mxu0 %vm1138_vm3, %v1110_v10  ;;  %6329 = vmatmul.mubr.msk.bf16.gmra.mrb[184].mxu1 %vm1138_vm3, %v1110_v10 }
 0x3af   : > { %1846 = vmatprep.mubr.bf16.mxu0 %v16905_v43  ;;  %2519 = vmatprep.mubr.bf16.mxu1 %v16905_v43 }
 0x3b1   : > { %v9125_v54 = vpop.f32.mrb[80].mxu0  ;;  %v9127_v11 = vpop.f32.mrb[80].mxu1 }
 0x3b2   : > { %16984 = vst [vmem:[#allocation133_spill] sm:$0xff] %v9127_v11  ;;  %v2729_v5 = vmax.f32 %v2728_v28, %v9125_v54  ;;  %v2995_v63 = vmax.f32 %v2994_v39, %v9127_v11  ;;  %v9131_v26 = vpop.f32.mrb[81].mxu0  ;;  %v9133_v58 = vpop.f32.mrb[81].mxu1 }
 0x3b3   : > { %16985 = vst [vmem:[#allocation134_spill] sm:$0xff] %v9131_v26  ;;  %16986 = vst [vmem:[#allocation135_spill] sm:$0xff] %v9133_v58  ;;  %v2862_v33 = vmax.f32 %v2861_v59, %v9131_v26  ;;  %v3128_v10 = vmax.f32 %v3127_v24, %v9133_v58  ;;  %v9137_v9 = vpop.f32.mrb[82].mxu0  ;;  %v9139_v36 = vpop.f32.mrb[82].mxu1  ;;  %v1112_v26 = vld [vmem:[#allocation4 + $0x180] sm:$0xff] }
 0x3b4   : > { %16987 = vst [vmem:[#allocation136_spill] sm:$0xff] %v9139_v36  ;;  %v2730_v56 = vmax.f32 %v2729_v5, %v9137_v9  ;;  %v2996_v16 = vmax.f32 %v2995_v63, %v9139_v36  ;;  %v9143_v28 = vpop.f32.mrb[83].mxu0  ;;  %v9145_v39 = vpop.f32.mrb[83].mxu1 }
 0x3b5   : > { %16988 = vst [vmem:[#allocation137_spill] sm:$0xff] %v9143_v28  ;;  %16989 = vst [vmem:[#allocation138_spill] sm:$0xff] %v9145_v39  ;;  %v2863_v11 = vmax.f32 %v2862_v33, %v9143_v28  ;;  %v3129_v7 = vmax.f32 %v3128_v10, %v9145_v39 }
 0x3b6   : > { %6265 = vmatmul.mubr.msk.bf16.gmra.mrb[188].mxu0 %vm1138_vm3, %v1111_v13  ;;  %6330 = vmatmul.mubr.msk.bf16.gmra.mrb[188].mxu1 %vm1138_vm3, %v1111_v13 }
 0x3b7   : > { %1856 = vmatprep.mubr.bf16.mxu0 %v16905_v43  ;;  %2529 = vmatprep.mubr.bf16.mxu1 %v16905_v43 }
 0x3b9   : > { %v9153_v24 = vpop.f32.mrb[84].mxu0  ;;  %v9155_v59 = vpop.f32.mrb[84].mxu1 }
 0x3ba   : > { %16990 = vst [vmem:[#allocation139_spill] sm:$0xff] %v9155_v59  ;;  %v2731_v5 = vmax.f32 %v2730_v56, %v9153_v24  ;;  %v2997_v63 = vmax.f32 %v2996_v16, %v9155_v59  ;;  %v9159_v58 = vpop.f32.mrb[85].mxu0  ;;  %v9161_v33 = vpop.f32.mrb[85].mxu1 }
 0x3bb   : > { %16991 = vst [vmem:[#allocation140_spill] sm:$0xff] %v9159_v58  ;;  %16992 = vst [vmem:[#allocation141_spill] sm:$0xff] %v9161_v33  ;;  %v2864_v10 = vmax.f32 %v2863_v11, %v9159_v58  ;;  %v3130_v13 = vmax.f32 %v3129_v7, %v9161_v33  ;;  %v9165_v39 = vpop.f32.mrb[86].mxu0  ;;  %v9167_v28 = vpop.f32.mrb[86].mxu1  ;;  %v1113_v58 = vld [vmem:[#allocation4 + $0x188] sm:$0xff] }
 0x3bc   : > { %16993 = vst [vmem:[#allocation142_spill] sm:$0xff] %v9167_v28  ;;  %v2732_v36 = vmax.f32 %v2731_v5, %v9165_v39  ;;  %v2998_v1 = vmax.f32 %v2997_v63, %v9167_v28  ;;  %v9171_v56 = vpop.f32.mrb[87].mxu0  ;;  %v9173_v16 = vpop.f32.mrb[87].mxu1 }
 0x3bd   : > { %16994 = vst [vmem:[#allocation143_spill] sm:$0xff] %v9171_v56  ;;  %16995 = vst [vmem:[#allocation144_spill] sm:$0xff] %v9173_v16  ;;  %v2865_v59 = vmax.f32 %v2864_v10, %v9171_v56  ;;  %v3131_v52 = vmax.f32 %v3130_v13, %v9173_v16 }
 0x3be   : > { %6266 = vmatmul.mubr.msk.bf16.gmra.mrb[192].mxu0 %vm1138_vm3, %v1112_v26  ;;  %6331 = vmatmul.mubr.msk.bf16.gmra.mrb[192].mxu1 %vm1138_vm3, %v1112_v26 }
 0x3bf   : > { %1866 = vmatprep.mubr.bf16.mxu0 %v16905_v43  ;;  %2539 = vmatprep.mubr.bf16.mxu1 %v16905_v43 }
 0x3c1   : > { %v9181_v7 = vpop.f32.mrb[88].mxu0  ;;  %v9183_v11 = vpop.f32.mrb[88].mxu1 }
 0x3c2   : > { %16996 = vst [vmem:[#allocation145_spill] sm:$0xff] %v9181_v7  ;;  %16997 = vst [vmem:[#allocation146_spill] sm:$0xff] %v9183_v11  ;;  %v2733_v5 = vmax.f32 %v2732_v36, %v9181_v7  ;;  %v2999_v63 = vmax.f32 %v2998_v1, %v9183_v11  ;;  %v9187_v33 = vpop.f32.mrb[89].mxu0  ;;  %v9189_v10 = vpop.f32.mrb[89].mxu1 }
 0x3c3   : > { %16998 = vst [vmem:[#allocation147_spill] sm:$0xff] %v9187_v33  ;;  %16999 = vst [vmem:[#allocation148_spill] sm:$0xff] %v9189_v10  ;;  %v2866_v13 = vmax.f32 %v2865_v59, %v9187_v33  ;;  %v3132_v26 = vmax.f32 %v3131_v52, %v9189_v10  ;;  %v9193_v16 = vpop.f32.mrb[90].mxu0  ;;  %v9195_v56 = vpop.f32.mrb[90].mxu1  ;;  %v1114_v33 = vld [vmem:[#allocation4 + $0x190] sm:$0xff] }
 0x3c4   : > { %17000 = vst [vmem:[#allocation149_spill] sm:$0xff] %v9193_v16  ;;  %17001 = vst [vmem:[#allocation150_spill] sm:$0xff] %v9195_v56  ;;  %v2734_v28 = vmax.f32 %v2733_v5, %v9193_v16  ;;  %v3000_v45 = vmax.f32 %v2999_v63, %v9195_v56  ;;  %v9199_v36 = vpop.f32.mrb[91].mxu0  ;;  %v9201_v1 = vpop.f32.mrb[91].mxu1 }
 0x3c5   : > { %17002 = vst [vmem:[#allocation151_spill] sm:$0xff] %v9199_v36  ;;  %17003 = vst [vmem:[#allocation152_spill] sm:$0xff] %v9201_v1  ;;  %v2867_v11 = vmax.f32 %v2866_v13, %v9199_v36  ;;  %v3133_v35 = vmax.f32 %v3132_v26, %v9201_v1 }
 0x3c6   : > { %6267 = vmatmul.mubr.msk.bf16.gmra.mrb[196].mxu0 %vm1138_vm3, %v1113_v58  ;;  %6332 = vmatmul.mubr.msk.bf16.gmra.mrb[196].mxu1 %vm1138_vm3, %v1113_v58 }
 0x3c7   : > { %1876 = vmatprep.mubr.bf16.mxu0 %v16905_v43  ;;  %2549 = vmatprep.mubr.bf16.mxu1 %v16905_v43 }
 0x3c9   : > { %v9209_v52 = vpop.f32.mrb[92].mxu0  ;;  %v9211_v59 = vpop.f32.mrb[92].mxu1 }
 0x3ca   : > { %17004 = vst [vmem:[#allocation153_spill] sm:$0xff] %v9209_v52  ;;  %17005 = vst [vmem:[#allocation154_spill] sm:$0xff] %v9211_v59  ;;  %v2735_v5 = vmax.f32 %v2734_v28, %v9209_v52  ;;  %v3001_v63 = vmax.f32 %v3000_v45, %v9211_v59  ;;  %v9215_v10 = vpop.f32.mrb[93].mxu0  ;;  %v9217_v13 = vpop.f32.mrb[93].mxu1 }
 0x3cb   : > { %17006 = vst [vmem:[#allocation155_spill] sm:$0xff] %v9215_v10  ;;  %17007 = vst [vmem:[#allocation156_spill] sm:$0xff] %v9217_v13  ;;  %v2868_v26 = vmax.f32 %v2867_v11, %v9215_v10  ;;  %v3134_v58 = vmax.f32 %v3133_v35, %v9217_v13  ;;  %v9221_v1 = vpop.f32.mrb[94].mxu0  ;;  %v9223_v36 = vpop.f32.mrb[94].mxu1  ;;  %v1115_v10 = vld [vmem:[#allocation4 + $0x198] sm:$0xff] }
 0x3cc   : > { %17008 = vst [vmem:[#allocation157_spill] sm:$0xff] %v9221_v1  ;;  %17009 = vst [vmem:[#allocation158_spill] sm:$0xff] %v9223_v36  ;;  %v2736_v56 = vmax.f32 %v2735_v5, %v9221_v1  ;;  %v3002_v31 = vmax.f32 %v3001_v63, %v9223_v36  ;;  %v9227_v28 = vpop.f32.mrb[95].mxu0  ;;  %v9229_v45 = vpop.f32.mrb[95].mxu1 }
 0x3cd   : > { %17010 = vst [vmem:[#allocation159_spill] sm:$0xff] %v9227_v28  ;;  %17011 = vst [vmem:[#allocation160_spill] sm:$0xff] %v9229_v45  ;;  %v2869_v59 = vmax.f32 %v2868_v26, %v9227_v28  ;;  %v3135_v52 = vmax.f32 %v3134_v58, %v9229_v45 }
 0x3ce   : > { %6268 = vmatmul.mubr.msk.bf16.gmra.mrb[200].mxu0 %vm1138_vm3, %v1114_v33  ;;  %6333 = vmatmul.mubr.msk.bf16.gmra.mrb[200].mxu1 %vm1138_vm3, %v1114_v33 }
 0x3cf   : > { %1886 = vmatprep.mubr.bf16.mxu0 %v16905_v43  ;;  %2559 = vmatprep.mubr.bf16.mxu1 %v16905_v43 }
 0x3d1   : > { %v9237_v35 = vpop.f32.mrb[96].mxu0  ;;  %v9239_v11 = vpop.f32.mrb[96].mxu1 }
 0x3d2   : > { %17012 = vst [vmem:[#allocation161_spill] sm:$0xff] %v9237_v35  ;;  %17013 = vst [vmem:[#allocation162_spill] sm:$0xff] %v9239_v11  ;;  %v2737_v5 = vmax.f32 %v2736_v56, %v9237_v35  ;;  %v3003_v63 = vmax.f32 %v3002_v31, %v9239_v11  ;;  %v9243_v13 = vpop.f32.mrb[97].mxu0  ;;  %v9245_v26 = vpop.f32.mrb[97].mxu1 }
 0x3d3   : > { %17014 = vst [vmem:[#allocation163_spill] sm:$0xff] %v9243_v13  ;;  %17015 = vst [vmem:[#allocation164_spill] sm:$0xff] %v9245_v26  ;;  %v2870_v58 = vmax.f32 %v2869_v59, %v9243_v13  ;;  %v3136_v33 = vmax.f32 %v3135_v52, %v9245_v26  ;;  %v9249_v45 = vpop.f32.mrb[98].mxu0  ;;  %v9251_v28 = vpop.f32.mrb[98].mxu1  ;;  %v1116_v13 = vld [vmem:[#allocation4 + $0x1a0] sm:$0xff] }
 0x3d4   : > { %17016 = vst [vmem:[#allocation165_spill] sm:$0xff] %v9249_v45  ;;  %17017 = vst [vmem:[#allocation166_spill] sm:$0xff] %v9251_v28  ;;  %v2738_v36 = vmax.f32 %v2737_v5, %v9249_v45  ;;  %v3004_v1 = vmax.f32 %v3003_v63, %v9251_v28  ;;  %v9255_v56 = vpop.f32.mrb[99].mxu0  ;;  %v9257_v31 = vpop.f32.mrb[99].mxu1 }
 0x3d5   : > { %17018 = vst [vmem:[#allocation167_spill] sm:$0xff] %v9255_v56  ;;  %17019 = vst [vmem:[#allocation168_spill] sm:$0xff] %v9257_v31  ;;  %v2871_v11 = vmax.f32 %v2870_v58, %v9255_v56  ;;  %v3137_v35 = vmax.f32 %v3136_v33, %v9257_v31 }
 0x3d6   : > { %6269 = vmatmul.mubr.msk.bf16.gmra.mrb[204].mxu0 %vm1138_vm3, %v1115_v10  ;;  %6334 = vmatmul.mubr.msk.bf16.gmra.mrb[204].mxu1 %vm1138_vm3, %v1115_v10 }
 0x3d7   : > { %1896 = vmatprep.mubr.bf16.mxu0 %v16905_v43  ;;  %2569 = vmatprep.mubr.bf16.mxu1 %v16905_v43 }
 0x3d9   : > { %v9265_v52 = vpop.f32.mrb[100].mxu0  ;;  %v9267_v59 = vpop.f32.mrb[100].mxu1 }
 0x3da   : > { %17020 = vst [vmem:[#allocation169_spill] sm:$0xff] %v9265_v52  ;;  %17021 = vst [vmem:[#allocation170_spill] sm:$0xff] %v9267_v59  ;;  %v2739_v5 = vmax.f32 %v2738_v36, %v9265_v52  ;;  %v3005_v63 = vmax.f32 %v3004_v1, %v9267_v59  ;;  %v9271_v26 = vpop.f32.mrb[101].mxu0  ;;  %v9273_v58 = vpop.f32.mrb[101].mxu1 }
 0x3db   : > { %17022 = vst [vmem:[#allocation171_spill] sm:$0xff] %v9271_v26  ;;  %17023 = vst [vmem:[#allocation172_spill] sm:$0xff] %v9273_v58  ;;  %v2872_v33 = vmax.f32 %v2871_v11, %v9271_v26  ;;  %v3138_v10 = vmax.f32 %v3137_v35, %v9273_v58  ;;  %v9277_v31 = vpop.f32.mrb[102].mxu0  ;;  %v9279_v56 = vpop.f32.mrb[102].mxu1  ;;  %v1117_v26 = vld [vmem:[#allocation4 + $0x1a8] sm:$0xff] }
 0x3dc   : > { %17024 = vst [vmem:[#allocation173_spill] sm:$0xff] %v9277_v31  ;;  %17025 = vst [vmem:[#allocation174_spill] sm:$0xff] %v9279_v56  ;;  %v2740_v28 = vmax.f32 %v2739_v5, %v9277_v31  ;;  %v3006_v45 = vmax.f32 %v3005_v63, %v9279_v56  ;;  %v9283_v36 = vpop.f32.mrb[103].mxu0  ;;  %v9285_v1 = vpop.f32.mrb[103].mxu1 }
 0x3dd   : > { %17026 = vst [vmem:[#allocation175_spill] sm:$0xff] %v9283_v36  ;;  %17027 = vst [vmem:[#allocation176_spill] sm:$0xff] %v9285_v1  ;;  %v2873_v59 = vmax.f32 %v2872_v33, %v9283_v36  ;;  %v3139_v52 = vmax.f32 %v3138_v10, %v9285_v1 }
 0x3de   : > { %6270 = vmatmul.mubr.msk.bf16.gmra.mrb[208].mxu0 %vm1138_vm3, %v1116_v13  ;;  %6335 = vmatmul.mubr.msk.bf16.gmra.mrb[208].mxu1 %vm1138_vm3, %v1116_v13 }
 0x3df   : > { %1906 = vmatprep.mubr.bf16.mxu0 %v16905_v43  ;;  %2579 = vmatprep.mubr.bf16.mxu1 %v16905_v43 }
 0x3e1   : > { %v9293_v35 = vpop.f32.mrb[104].mxu0  ;;  %v9295_v11 = vpop.f32.mrb[104].mxu1 }
 0x3e2   : > { %17028 = vst [vmem:[#allocation177_spill] sm:$0xff] %v9293_v35  ;;  %17029 = vst [vmem:[#allocation178_spill] sm:$0xff] %v9295_v11  ;;  %v2741_v5 = vmax.f32 %v2740_v28, %v9293_v35  ;;  %v3007_v63 = vmax.f32 %v3006_v45, %v9295_v11  ;;  %v9299_v58 = vpop.f32.mrb[105].mxu0  ;;  %v9301_v33 = vpop.f32.mrb[105].mxu1 }
 0x3e3   : > { %17030 = vst [vmem:[#allocation179_spill] sm:$0xff] %v9299_v58  ;;  %17031 = vst [vmem:[#allocation180_spill] sm:$0xff] %v9301_v33  ;;  %v2874_v10 = vmax.f32 %v2873_v59, %v9299_v58  ;;  %v3140_v13 = vmax.f32 %v3139_v52, %v9301_v33  ;;  %v9305_v1 = vpop.f32.mrb[106].mxu0  ;;  %v9307_v36 = vpop.f32.mrb[106].mxu1  ;;  %v1118_v58 = vld [vmem:[#allocation4 + $0x1b0] sm:$0xff] }
 0x3e4   : > { %17032 = vst [vmem:[#allocation181_spill] sm:$0xff] %v9305_v1  ;;  %17033 = vst [vmem:[#allocation182_spill] sm:$0xff] %v9307_v36  ;;  %v2742_v56 = vmax.f32 %v2741_v5, %v9305_v1  ;;  %v3008_v31 = vmax.f32 %v3007_v63, %v9307_v36  ;;  %v9311_v28 = vpop.f32.mrb[107].mxu0  ;;  %v9313_v45 = vpop.f32.mrb[107].mxu1 }
 0x3e5   : > { %17034 = vst [vmem:[#allocation183_spill] sm:$0xff] %v9311_v28  ;;  %17035 = vst [vmem:[#allocation184_spill] sm:$0xff] %v9313_v45  ;;  %v2875_v11 = vmax.f32 %v2874_v10, %v9311_v28  ;;  %v3141_v35 = vmax.f32 %v3140_v13, %v9313_v45 }
 0x3e6   : > { %6271 = vmatmul.mubr.msk.bf16.gmra.mrb[212].mxu0 %vm1138_vm3, %v1117_v26  ;;  %6336 = vmatmul.mubr.msk.bf16.gmra.mrb[212].mxu1 %vm1138_vm3, %v1117_v26 }
 0x3e7   : > { %1916 = vmatprep.mubr.bf16.mxu0 %v16905_v43  ;;  %2589 = vmatprep.mubr.bf16.mxu1 %v16905_v43 }
 0x3e9   : > { %v9321_v52 = vpop.f32.mrb[108].mxu0  ;;  %v9323_v59 = vpop.f32.mrb[108].mxu1 }
 0x3ea   : > { %17036 = vst [vmem:[#allocation185_spill] sm:$0xff] %v9321_v52  ;;  %17037 = vst [vmem:[#allocation186_spill] sm:$0xff] %v9323_v59  ;;  %v2743_v5 = vmax.f32 %v2742_v56, %v9321_v52  ;;  %v3009_v63 = vmax.f32 %v3008_v31, %v9323_v59  ;;  %v9327_v33 = vpop.f32.mrb[109].mxu0  ;;  %v9329_v10 = vpop.f32.mrb[109].mxu1 }
 0x3eb   : > { %17038 = vst [vmem:[#allocation187_spill] sm:$0xff] %v9327_v33  ;;  %17039 = vst [vmem:[#allocation188_spill] sm:$0xff] %v9329_v10  ;;  %v2876_v13 = vmax.f32 %v2875_v11, %v9327_v33  ;;  %v3142_v26 = vmax.f32 %v3141_v35, %v9329_v10  ;;  %v9333_v45 = vpop.f32.mrb[110].mxu0  ;;  %v9335_v28 = vpop.f32.mrb[110].mxu1  ;;  %v1119_v33 = vld [vmem:[#allocation4 + $0x1b8] sm:$0xff] }
 0x3ec   : > { %17040 = vst [vmem:[#allocation189_spill] sm:$0xff] %v9333_v45  ;;  %17041 = vst [vmem:[#allocation190_spill] sm:$0xff] %v9335_v28  ;;  %v2744_v36 = vmax.f32 %v2743_v5, %v9333_v45  ;;  %v3010_v1 = vmax.f32 %v3009_v63, %v9335_v28  ;;  %v9339_v56 = vpop.f32.mrb[111].mxu0  ;;  %v9341_v31 = vpop.f32.mrb[111].mxu1 }
 0x3ed   : > { %17042 = vst [vmem:[#allocation191_spill] sm:$0xff] %v9339_v56  ;;  %17043 = vst [vmem:[#allocation192_spill] sm:$0xff] %v9341_v31  ;;  %v2877_v59 = vmax.f32 %v2876_v13, %v9339_v56  ;;  %v3143_v52 = vmax.f32 %v3142_v26, %v9341_v31 }
 0x3ee   : > { %6272 = vmatmul.mubr.msk.bf16.gmra.mrb[216].mxu0 %vm1138_vm3, %v1118_v58  ;;  %6337 = vmatmul.mubr.msk.bf16.gmra.mrb[216].mxu1 %vm1138_vm3, %v1118_v58 }
 0x3ef   : > { %1926 = vmatprep.mubr.bf16.mxu0 %v16905_v43  ;;  %2599 = vmatprep.mubr.bf16.mxu1 %v16905_v43 }
 0x3f1   : > { %v9349_v35 = vpop.f32.mrb[112].mxu0  ;;  %v9351_v11 = vpop.f32.mrb[112].mxu1 }
 0x3f2   : > { %17044 = vst [vmem:[#allocation193_spill] sm:$0xff] %v9349_v35  ;;  %17045 = vst [vmem:[#allocation194_spill] sm:$0xff] %v9351_v11  ;;  %v2745_v5 = vmax.f32 %v2744_v36, %v9349_v35  ;;  %v3011_v63 = vmax.f32 %v3010_v1, %v9351_v11  ;;  %v9355_v10 = vpop.f32.mrb[113].mxu0  ;;  %v9357_v13 = vpop.f32.mrb[113].mxu1 }
 0x3f3   : > { %17046 = vst [vmem:[#allocation195_spill] sm:$0xff] %v9355_v10  ;;  %17047 = vst [vmem:[#allocation196_spill] sm:$0xff] %v9357_v13  ;;  %v2878_v26 = vmax.f32 %v2877_v59, %v9355_v10  ;;  %v3144_v58 = vmax.f32 %v3143_v52, %v9357_v13  ;;  %v9361_v31 = vpop.f32.mrb[114].mxu0  ;;  %v9363_v56 = vpop.f32.mrb[114].mxu1  ;;  %v1120_v10 = vld [vmem:[#allocation4 + $0x1c0] sm:$0xff] }
 0x3f4   : > { %17048 = vst [vmem:[#allocation197_spill] sm:$0xff] %v9361_v31  ;;  %17049 = vst [vmem:[#allocation198_spill] sm:$0xff] %v9363_v56  ;;  %v2746_v28 = vmax.f32 %v2745_v5, %v9361_v31  ;;  %v3012_v45 = vmax.f32 %v3011_v63, %v9363_v56  ;;  %v9367_v36 = vpop.f32.mrb[115].mxu0  ;;  %v9369_v1 = vpop.f32.mrb[115].mxu1 }
 0x3f5   : > { %17050 = vst [vmem:[#allocation199_spill] sm:$0xff] %v9367_v36  ;;  %17051 = vst [vmem:[#allocation200_spill] sm:$0xff] %v9369_v1  ;;  %v2879_v11 = vmax.f32 %v2878_v26, %v9367_v36  ;;  %v3145_v35 = vmax.f32 %v3144_v58, %v9369_v1 }
 0x3f6   : > { %6273 = vmatmul.mubr.msk.bf16.gmra.mrb[220].mxu0 %vm1138_vm3, %v1119_v33  ;;  %6338 = vmatmul.mubr.msk.bf16.gmra.mrb[220].mxu1 %vm1138_vm3, %v1119_v33 }
 0x3f7   : > { %1936 = vmatprep.mubr.bf16.mxu0 %v16905_v43  ;;  %2609 = vmatprep.mubr.bf16.mxu1 %v16905_v43 }
 0x3f9   : > { %v9377_v52 = vpop.f32.mrb[116].mxu0  ;;  %v9379_v59 = vpop.f32.mrb[116].mxu1 }
 0x3fa   : > { %17052 = vst [vmem:[#allocation201_spill] sm:$0xff] %v9377_v52  ;;  %17053 = vst [vmem:[#allocation202_spill] sm:$0xff] %v9379_v59  ;;  %v2747_v5 = vmax.f32 %v2746_v28, %v9377_v52  ;;  %v3013_v63 = vmax.f32 %v3012_v45, %v9379_v59  ;;  %v9383_v13 = vpop.f32.mrb[117].mxu0  ;;  %v9385_v26 = vpop.f32.mrb[117].mxu1 }
 0x3fb   : > { %17054 = vst [vmem:[#allocation203_spill] sm:$0xff] %v9383_v13  ;;  %17055 = vst [vmem:[#allocation204_spill] sm:$0xff] %v9385_v26  ;;  %v2880_v58 = vmax.f32 %v2879_v11, %v9383_v13  ;;  %v3146_v33 = vmax.f32 %v3145_v35, %v9385_v26  ;;  %v9389_v1 = vpop.f32.mrb[118].mxu0  ;;  %v9391_v36 = vpop.f32.mrb[118].mxu1  ;;  %v1121_v13 = vld [vmem:[#allocation4 + $0x1c8] sm:$0xff] }
 0x3fc   : > { %17056 = vst [vmem:[#allocation205_spill] sm:$0xff] %v9389_v1  ;;  %17057 = vst [vmem:[#allocation206_spill] sm:$0xff] %v9391_v36  ;;  %v2748_v56 = vmax.f32 %v2747_v5, %v9389_v1  ;;  %v3014_v31 = vmax.f32 %v3013_v63, %v9391_v36  ;;  %v9395_v28 = vpop.f32.mrb[119].mxu0  ;;  %v9397_v45 = vpop.f32.mrb[119].mxu1 }
 0x3fd   : > { %17058 = vst [vmem:[#allocation207_spill] sm:$0xff] %v9395_v28  ;;  %17059 = vst [vmem:[#allocation208_spill] sm:$0xff] %v9397_v45  ;;  %v2881_v59 = vmax.f32 %v2880_v58, %v9395_v28  ;;  %v3147_v52 = vmax.f32 %v3146_v33, %v9397_v45 }
 0x3fe   : > { %6274 = vmatmul.mubr.msk.bf16.gmra.mrb[224].mxu0 %vm1138_vm3, %v1120_v10  ;;  %6339 = vmatmul.mubr.msk.bf16.gmra.mrb[224].mxu1 %vm1138_vm3, %v1120_v10 }
 0x3ff   : > { %1946 = vmatprep.mubr.bf16.mxu0 %v16905_v43  ;;  %2619 = vmatprep.mubr.bf16.mxu1 %v16905_v43 }
 0x401   : > { %v9405_v35 = vpop.f32.mrb[120].mxu0  ;;  %v9407_v11 = vpop.f32.mrb[120].mxu1 }
 0x402   : > { %17060 = vst [vmem:[#allocation209_spill] sm:$0xff] %v9405_v35  ;;  %17061 = vst [vmem:[#allocation210_spill] sm:$0xff] %v9407_v11  ;;  %v2749_v5 = vmax.f32 %v2748_v56, %v9405_v35  ;;  %v3015_v63 = vmax.f32 %v3014_v31, %v9407_v11  ;;  %v9411_v26 = vpop.f32.mrb[121].mxu0  ;;  %v9413_v58 = vpop.f32.mrb[121].mxu1 }
 0x403   : > { %17062 = vst [vmem:[#allocation211_spill] sm:$0xff] %v9411_v26  ;;  %17063 = vst [vmem:[#allocation212_spill] sm:$0xff] %v9413_v58  ;;  %v2882_v33 = vmax.f32 %v2881_v59, %v9411_v26  ;;  %v3148_v10 = vmax.f32 %v3147_v52, %v9413_v58  ;;  %v9417_v45 = vpop.f32.mrb[122].mxu0  ;;  %v9419_v28 = vpop.f32.mrb[122].mxu1  ;;  %v1122_v26 = vld [vmem:[#allocation4 + $0x1d0] sm:$0xff] }
 0x404   : > { %17064 = vst [vmem:[#allocation213_spill] sm:$0xff] %v9417_v45  ;;  %17065 = vst [vmem:[#allocation214_spill] sm:$0xff] %v9419_v28  ;;  %v2750_v36 = vmax.f32 %v2749_v5, %v9417_v45  ;;  %v3016_v1 = vmax.f32 %v3015_v63, %v9419_v28  ;;  %v9423_v56 = vpop.f32.mrb[123].mxu0  ;;  %v9425_v31 = vpop.f32.mrb[123].mxu1 }
 0x405   : > { %17066 = vst [vmem:[#allocation215_spill] sm:$0xff] %v9423_v56  ;;  %17067 = vst [vmem:[#allocation216_spill] sm:$0xff] %v9425_v31  ;;  %v2883_v11 = vmax.f32 %v2882_v33, %v9423_v56  ;;  %v3149_v35 = vmax.f32 %v3148_v10, %v9425_v31 }
 0x406   : > { %6275 = vmatmul.mubr.msk.bf16.gmra.mrb[228].mxu0 %vm1138_vm3, %v1121_v13  ;;  %6340 = vmatmul.mubr.msk.bf16.gmra.mrb[228].mxu1 %vm1138_vm3, %v1121_v13 }
 0x407   : > { %1956 = vmatprep.mubr.bf16.mxu0 %v16905_v43  ;;  %2629 = vmatprep.mubr.bf16.mxu1 %v16905_v43 }
 0x409   : > { %v9433_v52 = vpop.f32.mrb[124].mxu0  ;;  %v9435_v59 = vpop.f32.mrb[124].mxu1 }
 0x40a   : > { %17068 = vst [vmem:[#allocation217_spill] sm:$0xff] %v9433_v52  ;;  %17069 = vst [vmem:[#allocation218_spill] sm:$0xff] %v9435_v59  ;;  %v2751_v5 = vmax.f32 %v2750_v36, %v9433_v52  ;;  %v3017_v63 = vmax.f32 %v3016_v1, %v9435_v59  ;;  %v9439_v58 = vpop.f32.mrb[125].mxu0  ;;  %v9441_v33 = vpop.f32.mrb[125].mxu1 }
 0x40b   : > { %17070 = vst [vmem:[#allocation219_spill] sm:$0xff] %v9439_v58  ;;  %17071 = vst [vmem:[#allocation220_spill] sm:$0xff] %v9441_v33  ;;  %v2884_v10 = vmax.f32 %v2883_v11, %v9439_v58  ;;  %v3150_v13 = vmax.f32 %v3149_v35, %v9441_v33  ;;  %v9445_v31 = vpop.f32.mrb[126].mxu0  ;;  %v9447_v56 = vpop.f32.mrb[126].mxu1  ;;  %v1123_v58 = vld [vmem:[#allocation4 + $0x1d8] sm:$0xff] }
 0x40c   : > { %17072 = vst [vmem:[#allocation221_spill] sm:$0xff] %v9445_v31  ;;  %17073 = vst [vmem:[#allocation222_spill] sm:$0xff] %v9447_v56  ;;  %v2752_v28 = vmax.f32 %v2751_v5, %v9445_v31  ;;  %v3018_v45 = vmax.f32 %v3017_v63, %v9447_v56  ;;  %v9451_v36 = vpop.f32.mrb[127].mxu0  ;;  %v9453_v1 = vpop.f32.mrb[127].mxu1 }
 0x40d   : > { %17074 = vst [vmem:[#allocation223_spill] sm:$0xff] %v9451_v36  ;;  %17075 = vst [vmem:[#allocation224_spill] sm:$0xff] %v9453_v1  ;;  %v2885_v59 = vmax.f32 %v2884_v10, %v9451_v36  ;;  %v3151_v52 = vmax.f32 %v3150_v13, %v9453_v1 }
 0x40e   : > { %6276 = vmatmul.mubr.msk.bf16.gmra.mrb[232].mxu0 %vm1138_vm3, %v1122_v26  ;;  %6341 = vmatmul.mubr.msk.bf16.gmra.mrb[232].mxu1 %vm1138_vm3, %v1122_v26 }
 0x40f   : > { %1966 = vmatprep.mubr.bf16.mxu0 %v16905_v43  ;;  %2639 = vmatprep.mubr.bf16.mxu1 %v16905_v43 }
 0x411   : > { %v9461_v35 = vpop.f32.mrb[128].mxu0  ;;  %v9463_v11 = vpop.f32.mrb[128].mxu1 }
 0x412   : > { %17076 = vst [vmem:[#allocation225_spill] sm:$0xff] %v9461_v35  ;;  %17077 = vst [vmem:[#allocation226_spill] sm:$0xff] %v9463_v11  ;;  %v2753_v5 = vmax.f32 %v2752_v28, %v9461_v35  ;;  %v3019_v63 = vmax.f32 %v3018_v45, %v9463_v11  ;;  %v9467_v33 = vpop.f32.mrb[129].mxu0  ;;  %v9469_v10 = vpop.f32.mrb[129].mxu1 }
 0x413   : > { %17078 = vst [vmem:[#allocation227_spill] sm:$0xff] %v9467_v33  ;;  %17079 = vst [vmem:[#allocation228_spill] sm:$0xff] %v9469_v10  ;;  %v2886_v13 = vmax.f32 %v2885_v59, %v9467_v33  ;;  %v3152_v26 = vmax.f32 %v3151_v52, %v9469_v10  ;;  %v9473_v1 = vpop.f32.mrb[130].mxu0  ;;  %v9475_v36 = vpop.f32.mrb[130].mxu1  ;;  %v1124_v33 = vld [vmem:[#allocation4 + $0x1e0] sm:$0xff] }
 0x414   : > { %17080 = vst [vmem:[#allocation229_spill] sm:$0xff] %v9473_v1  ;;  %17081 = vst [vmem:[#allocation230_spill] sm:$0xff] %v9475_v36  ;;  %v2754_v56 = vmax.f32 %v2753_v5, %v9473_v1  ;;  %v3020_v31 = vmax.f32 %v3019_v63, %v9475_v36  ;;  %v9479_v28 = vpop.f32.mrb[131].mxu0  ;;  %v9481_v45 = vpop.f32.mrb[131].mxu1 }
 0x415   : > { %17082 = vst [vmem:[#allocation231_spill] sm:$0xff] %v9479_v28  ;;  %17083 = vst [vmem:[#allocation232_spill] sm:$0xff] %v9481_v45  ;;  %v2887_v11 = vmax.f32 %v2886_v13, %v9479_v28  ;;  %v3153_v35 = vmax.f32 %v3152_v26, %v9481_v45 }
 0x416   : > { %6277 = vmatmul.mubr.msk.bf16.gmra.mrb[236].mxu0 %vm1138_vm3, %v1123_v58  ;;  %6342 = vmatmul.mubr.msk.bf16.gmra.mrb[236].mxu1 %vm1138_vm3, %v1123_v58 }
 0x417   : > { %1976 = vmatprep.mubr.bf16.mxu0 %v16905_v43  ;;  %2649 = vmatprep.mubr.bf16.mxu1 %v16905_v43 }
 0x419   : > { %v9489_v52 = vpop.f32.mrb[132].mxu0  ;;  %v9491_v59 = vpop.f32.mrb[132].mxu1 }
 0x41a   : > { %17084 = vst [vmem:[#allocation233_spill] sm:$0xff] %v9489_v52  ;;  %17085 = vst [vmem:[#allocation234_spill] sm:$0xff] %v9491_v59  ;;  %v2755_v5 = vmax.f32 %v2754_v56, %v9489_v52  ;;  %v3021_v63 = vmax.f32 %v3020_v31, %v9491_v59  ;;  %v9495_v10 = vpop.f32.mrb[133].mxu0  ;;  %v9497_v13 = vpop.f32.mrb[133].mxu1 }
 0x41b   : > { %17086 = vst [vmem:[#allocation235_spill] sm:$0xff] %v9495_v10  ;;  %17087 = vst [vmem:[#allocation236_spill] sm:$0xff] %v9497_v13  ;;  %v2888_v26 = vmax.f32 %v2887_v11, %v9495_v10  ;;  %v3154_v58 = vmax.f32 %v3153_v35, %v9497_v13  ;;  %v9501_v45 = vpop.f32.mrb[134].mxu0  ;;  %v9503_v28 = vpop.f32.mrb[134].mxu1  ;;  %v1125_v10 = vld [vmem:[#allocation4 + $0x1e8] sm:$0xff] }
 0x41c   : > { %17088 = vst [vmem:[#allocation237_spill] sm:$0xff] %v9501_v45  ;;  %17089 = vst [vmem:[#allocation238_spill] sm:$0xff] %v9503_v28  ;;  %v2756_v36 = vmax.f32 %v2755_v5, %v9501_v45  ;;  %v3022_v1 = vmax.f32 %v3021_v63, %v9503_v28  ;;  %v9507_v56 = vpop.f32.mrb[135].mxu0  ;;  %v9509_v31 = vpop.f32.mrb[135].mxu1 }
 0x41d   : > { %17090 = vst [vmem:[#allocation239_spill] sm:$0xff] %v9507_v56  ;;  %17091 = vst [vmem:[#allocation240_spill] sm:$0xff] %v9509_v31  ;;  %v2889_v59 = vmax.f32 %v2888_v26, %v9507_v56  ;;  %v3155_v52 = vmax.f32 %v3154_v58, %v9509_v31 }
 0x41e   : > { %6278 = vmatmul.mubr.msk.bf16.gmra.mrb[240].mxu0 %vm1138_vm3, %v1124_v33  ;;  %6343 = vmatmul.mubr.msk.bf16.gmra.mrb[240].mxu1 %vm1138_vm3, %v1124_v33 }
 0x41f   : > { %1986 = vmatprep.mubr.bf16.mxu0 %v16905_v43  ;;  %2659 = vmatprep.mubr.bf16.mxu1 %v16905_v43 }
 0x421   : > { %v9517_v35 = vpop.f32.mrb[136].mxu0  ;;  %v9519_v11 = vpop.f32.mrb[136].mxu1 }
 0x422   : > { %17092 = vst [vmem:[#allocation241_spill] sm:$0xff] %v9517_v35  ;;  %17093 = vst [vmem:[#allocation242_spill] sm:$0xff] %v9519_v11  ;;  %v2757_v5 = vmax.f32 %v2756_v36, %v9517_v35  ;;  %v3023_v63 = vmax.f32 %v3022_v1, %v9519_v11  ;;  %v9523_v13 = vpop.f32.mrb[137].mxu0  ;;  %v9525_v26 = vpop.f32.mrb[137].mxu1 }
 0x423   : > { %17094 = vst [vmem:[#allocation243_spill] sm:$0xff] %v9523_v13  ;;  %17095 = vst [vmem:[#allocation244_spill] sm:$0xff] %v9525_v26  ;;  %v2890_v58 = vmax.f32 %v2889_v59, %v9523_v13  ;;  %v3156_v33 = vmax.f32 %v3155_v52, %v9525_v26  ;;  %v9529_v31 = vpop.f32.mrb[138].mxu0  ;;  %v9531_v56 = vpop.f32.mrb[138].mxu1  ;;  %v1126_v13 = vld [vmem:[#allocation4 + $0x1f0] sm:$0xff] }
 0x424   : > { %17096 = vst [vmem:[#allocation245_spill] sm:$0xff] %v9529_v31  ;;  %17097 = vst [vmem:[#allocation246_spill] sm:$0xff] %v9531_v56  ;;  %v2758_v28 = vmax.f32 %v2757_v5, %v9529_v31  ;;  %v3024_v45 = vmax.f32 %v3023_v63, %v9531_v56  ;;  %v9535_v36 = vpop.f32.mrb[139].mxu0  ;;  %v9537_v1 = vpop.f32.mrb[139].mxu1 }
 0x425   : > { %17098 = vst [vmem:[#allocation247_spill] sm:$0xff] %v9535_v36  ;;  %17099 = vst [vmem:[#allocation248_spill] sm:$0xff] %v9537_v1  ;;  %v2891_v11 = vmax.f32 %v2890_v58, %v9535_v36  ;;  %v3157_v35 = vmax.f32 %v3156_v33, %v9537_v1 }
 0x426   : > { %6279 = vmatmul.mubr.msk.bf16.gmra.mrb[244].mxu0 %vm1138_vm3, %v1125_v10  ;;  %6344 = vmatmul.mubr.msk.bf16.gmra.mrb[244].mxu1 %vm1138_vm3, %v1125_v10 }
 0x427   : > { %1996 = vmatprep.mubr.bf16.mxu0 %v16905_v43  ;;  %2669 = vmatprep.mubr.bf16.mxu1 %v16905_v43 }
 0x429   : > { %v9545_v52 = vpop.f32.mrb[140].mxu0  ;;  %v9547_v59 = vpop.f32.mrb[140].mxu1 }
 0x42a   : > { %17100 = vst [vmem:[#allocation249_spill] sm:$0xff] %v9545_v52  ;;  %17101 = vst [vmem:[#allocation250_spill] sm:$0xff] %v9547_v59  ;;  %v2759_v5 = vmax.f32 %v2758_v28, %v9545_v52  ;;  %v3025_v63 = vmax.f32 %v3024_v45, %v9547_v59  ;;  %v9551_v26 = vpop.f32.mrb[141].mxu0  ;;  %v9553_v58 = vpop.f32.mrb[141].mxu1 }
 0x42b   : > { %17102 = vst [vmem:[#allocation251_spill] sm:$0xff] %v9551_v26  ;;  %17103 = vst [vmem:[#allocation252_spill] sm:$0xff] %v9553_v58  ;;  %v2892_v33 = vmax.f32 %v2891_v11, %v9551_v26  ;;  %v3158_v10 = vmax.f32 %v3157_v35, %v9553_v58  ;;  %v9557_v1 = vpop.f32.mrb[142].mxu0  ;;  %v9559_v36 = vpop.f32.mrb[142].mxu1 }
 0x42c   : > { %17104 = vst [vmem:[#allocation253_spill] sm:$0xff] %v9557_v1  ;;  %17105 = vst [vmem:[#allocation254_spill] sm:$0xff] %v9559_v36  ;;  %v2760_v56 = vmax.f32 %v2759_v5, %v9557_v1  ;;  %v3026_v31 = vmax.f32 %v3025_v63, %v9559_v36  ;;  %v9563_v28 = vpop.f32.mrb[143].mxu0  ;;  %v9565_v45 = vpop.f32.mrb[143].mxu1 }
 0x42d   : > { %17106 = vst [vmem:[#allocation255_spill] sm:$0xff] %v9563_v28  ;;  %17107 = vst [vmem:[#allocation256_spill] sm:$0xff] %v9565_v45  ;;  %v2893_v59 = vmax.f32 %v2892_v33, %v9563_v28  ;;  %v3159_v52 = vmax.f32 %v3158_v10, %v9565_v45 }
 0x42e   : > { %6280 = vmatmul.mubr.msk.bf16.gmra.mrb[248].mxu0 %vm1138_vm3, %v1126_v13  ;;  %6345 = vmatmul.mubr.msk.bf16.gmra.mrb[248].mxu1 %vm1138_vm3, %v1126_v13 }
 0x42f   : > { %2006 = vmatprep.mubr.bf16.mxu0 %v16905_v43  ;;  %2679 = vmatprep.mubr.bf16.mxu1 %v16905_v43  ;;  %v1127_v43 = vld [vmem:[#allocation4 + $0x1f8] sm:$0xff] }
 0x431   : > { %v9573_v35 = vpop.f32.mrb[144].mxu0  ;;  %v9575_v11 = vpop.f32.mrb[144].mxu1 }
 0x432   : > { %17108 = vst [vmem:[#allocation257_spill] sm:$0xff] %v9573_v35  ;;  %17109 = vst [vmem:[#allocation258_spill] sm:$0xff] %v9575_v11  ;;  %v2761_v5 = vmax.f32 %v2760_v56, %v9573_v35  ;;  %v3027_v63 = vmax.f32 %v3026_v31, %v9575_v11  ;;  %v9579_v58 = vpop.f32.mrb[145].mxu0  ;;  %v9581_v33 = vpop.f32.mrb[145].mxu1 }
 0x433   : > { %17110 = vst [vmem:[#allocation259_spill] sm:$0xff] %v9579_v58  ;;  %17111 = vst [vmem:[#allocation260_spill] sm:$0xff] %v9581_v33  ;;  %v2894_v10 = vmax.f32 %v2893_v59, %v9579_v58  ;;  %v3160_v13 = vmax.f32 %v3159_v52, %v9581_v33  ;;  %v9585_v45 = vpop.f32.mrb[146].mxu0  ;;  %v9587_v28 = vpop.f32.mrb[146].mxu1 }
 0x434   : > { %17112 = vst [vmem:[#allocation261_spill] sm:$0xff] %v9585_v45  ;;  %17113 = vst [vmem:[#allocation262_spill] sm:$0xff] %v9587_v28  ;;  %v2762_v26 = vmax.f32 %v2761_v5, %v9585_v45  ;;  %v3028_v36 = vmax.f32 %v3027_v63, %v9587_v28  ;;  %v9591_v56 = vpop.f32.mrb[147].mxu0  ;;  %v9593_v31 = vpop.f32.mrb[147].mxu1 }
 0x435   : > { %17114 = vst [vmem:[#allocation263_spill] sm:$0xff] %v9591_v56  ;;  %17115 = vst [vmem:[#allocation264_spill] sm:$0xff] %v9593_v31  ;;  %v2895_v11 = vmax.f32 %v2894_v10, %v9591_v56  ;;  %v3161_v35 = vmax.f32 %v3160_v13, %v9593_v31 }
 0x436   : > { %6281 = vmatmul.mubr.msk.bf16.gmra.mrb[252].mxu0 %vm1138_vm3, %v1127_v43  ;;  %6346 = vmatmul.mubr.msk.bf16.gmra.mrb[252].mxu1 %vm1138_vm3, %v1127_v43 }
 0x439   : > { %v9599_v52 = vpop.f32.mrb[148].mxu0  ;;  %v9601_v59 = vpop.f32.mrb[148].mxu1 }
 0x43a   : > { %17116 = vst [vmem:[#allocation265_spill] sm:$0xff] %v9599_v52  ;;  %17117 = vst [vmem:[#allocation266_spill] sm:$0xff] %v9601_v59  ;;  %v2763_v5 = vmax.f32 %v2762_v26, %v9599_v52  ;;  %v3029_v63 = vmax.f32 %v3028_v36, %v9601_v59  ;;  %v9605_v33 = vpop.f32.mrb[149].mxu0  ;;  %v9607_v58 = vpop.f32.mrb[149].mxu1 }
 0x43b   : > { %17118 = vst [vmem:[#allocation267_spill] sm:$0xff] %v9605_v33  ;;  %17119 = vst [vmem:[#allocation268_spill] sm:$0xff] %v9607_v58  ;;  %v2896_v10 = vmax.f32 %v2895_v11, %v9605_v33  ;;  %v3162_v13 = vmax.f32 %v3161_v35, %v9607_v58  ;;  %v9611_v31 = vpop.f32.mrb[150].mxu0  ;;  %v9613_v56 = vpop.f32.mrb[150].mxu1 }
 0x43c   : > { %17120 = vst [vmem:[#allocation269_spill] sm:$0xff] %v9611_v31  ;;  %17121 = vst [vmem:[#allocation270_spill] sm:$0xff] %v9613_v56  ;;  %v2764_v43 = vmax.f32 %v2763_v5, %v9611_v31  ;;  %v3030_v28 = vmax.f32 %v3029_v63, %v9613_v56  ;;  %v9617_v45 = vpop.f32.mrb[151].mxu0  ;;  %v9619_v26 = vpop.f32.mrb[151].mxu1 }
 0x43d   : > { %17122 = vst [vmem:[#allocation271_spill] sm:$0xff] %v9617_v45  ;;  %17123 = vst [vmem:[#allocation272_spill] sm:$0xff] %v9619_v26  ;;  %v2897_v36 = vmax.f32 %v2896_v10, %v9617_v45  ;;  %v3163_v59 = vmax.f32 %v3162_v13, %v9619_v26 }
 0x441   : > { %v9623_v52 = vpop.f32.mrb[152].mxu0  ;;  %v9625_v11 = vpop.f32.mrb[152].mxu1 }
 0x442   : > { %17124 = vst [vmem:[#allocation273_spill] sm:$0xff] %v9623_v52  ;;  %17125 = vst [vmem:[#allocation274_spill] sm:$0xff] %v9625_v11  ;;  %v2765_v35 = vmax.f32 %v2764_v43, %v9623_v52  ;;  %v3031_v58 = vmax.f32 %v3030_v28, %v9625_v11  ;;  %v9629_v33 = vpop.f32.mrb[153].mxu0  ;;  %v9631_v5 = vpop.f32.mrb[153].mxu1 }
 0x443   : > { %17126 = vst [vmem:[#allocation275_spill] sm:$0xff] %v9629_v33  ;;  %17127 = vst [vmem:[#allocation276_spill] sm:$0xff] %v9631_v5  ;;  %v2898_v63 = vmax.f32 %v2897_v36, %v9629_v33  ;;  %v3164_v56 = vmax.f32 %v3163_v59, %v9631_v5  ;;  %v9635_v31 = vpop.f32.mrb[154].mxu0  ;;  %v9637_v10 = vpop.f32.mrb[154].mxu1 }
 0x444   : > { %17128 = vst [vmem:[#allocation277_spill] sm:$0xff] %v9635_v31  ;;  %17129 = vst [vmem:[#allocation278_spill] sm:$0xff] %v9637_v10  ;;  %v2766_v13 = vmax.f32 %v2765_v35, %v9635_v31  ;;  %v3032_v26 = vmax.f32 %v3031_v58, %v9637_v10  ;;  %v9641_v45 = vpop.f32.mrb[155].mxu0  ;;  %v9643_v43 = vpop.f32.mrb[155].mxu1 }
 0x445   : > { %17130 = vst [vmem:[#allocation279_spill] sm:$0xff] %v9641_v45  ;;  %17131 = vst [vmem:[#allocation280_spill] sm:$0xff] %v9643_v43  ;;  %v2899_v28 = vmax.f32 %v2898_v63, %v9641_v45  ;;  %v3165_v11 = vmax.f32 %v3164_v56, %v9643_v43 }
 0x449   : > { %v9647_v52 = vpop.f32.mrb[156].mxu0  ;;  %v9649_v36 = vpop.f32.mrb[156].mxu1 }
 0x44a   : > { %17132 = vst [vmem:[#allocation281_spill] sm:$0xff] %v9647_v52  ;;  %17133 = vst [vmem:[#allocation282_spill] sm:$0xff] %v9649_v36  ;;  %v2767_v59 = vmax.f32 %v2766_v13, %v9647_v52  ;;  %v3033_v5 = vmax.f32 %v3032_v26, %v9649_v36  ;;  %v9653_v33 = vpop.f32.mrb[157].mxu0  ;;  %v9655_v35 = vpop.f32.mrb[157].mxu1 }
 0x44b   : > { %17134 = vst [vmem:[#allocation283_spill] sm:$0xff] %v9653_v33  ;;  %17135 = vst [vmem:[#allocation284_spill] sm:$0xff] %v9655_v35  ;;  %v2900_v58 = vmax.f32 %v2899_v28, %v9653_v33  ;;  %v3166_v10 = vmax.f32 %v3165_v11, %v9655_v35  ;;  %v9659_v31 = vpop.f32.mrb[158].mxu0  ;;  %v9661_v63 = vpop.f32.mrb[158].mxu1 }
 0x44c   : > { %17136 = vst [vmem:[#allocation285_spill] sm:$0xff] %v9659_v31  ;;  %17137 = vst [vmem:[#allocation286_spill] sm:$0xff] %v9661_v63  ;;  %v2768_v56 = vmax.f32 %v2767_v59, %v9659_v31  ;;  %v3034_v43 = vmax.f32 %v3033_v5, %v9661_v63  ;;  %v9665_v45 = vpop.f32.mrb[159].mxu0  ;;  %v9667_v13 = vpop.f32.mrb[159].mxu1 }
 0x44d   : > { %17138 = vst [vmem:[#allocation287_spill] sm:$0xff] %v9665_v45  ;;  %17139 = vst [vmem:[#allocation288_spill] sm:$0xff] %v9667_v13  ;;  %v2901_v26 = vmax.f32 %v2900_v58, %v9665_v45  ;;  %v3167_v36 = vmax.f32 %v3166_v10, %v9667_v13 }
 0x451   : > { %v9671_v52 = vpop.f32.mrb[160].mxu0  ;;  %v9673_v28 = vpop.f32.mrb[160].mxu1 }
 0x452   : > { %17140 = vst [vmem:[#allocation289_spill] sm:$0xff] %v9671_v52  ;;  %17141 = vst [vmem:[#allocation290_spill] sm:$0xff] %v9673_v28  ;;  %v2769_v11 = vmax.f32 %v2768_v56, %v9671_v52  ;;  %v3035_v35 = vmax.f32 %v3034_v43, %v9673_v28  ;;  %v9677_v33 = vpop.f32.mrb[161].mxu0  ;;  %v9679_v59 = vpop.f32.mrb[161].mxu1 }
 0x453   : > { %17142 = vst [vmem:[#allocation291_spill] sm:$0xff] %v9677_v33  ;;  %17143 = vst [vmem:[#allocation292_spill] sm:$0xff] %v9679_v59  ;;  %v2902_v5 = vmax.f32 %v2901_v26, %v9677_v33  ;;  %v3168_v63 = vmax.f32 %v3167_v36, %v9679_v59  ;;  %v9683_v31 = vpop.f32.mrb[162].mxu0  ;;  %v9685_v58 = vpop.f32.mrb[162].mxu1 }
 0x454   : > { %17144 = vst [vmem:[#allocation293_spill] sm:$0xff] %v9683_v31  ;;  %17145 = vst [vmem:[#allocation294_spill] sm:$0xff] %v9685_v58  ;;  %v2770_v10 = vmax.f32 %v2769_v11, %v9683_v31  ;;  %v3036_v13 = vmax.f32 %v3035_v35, %v9685_v58  ;;  %v9689_v45 = vpop.f32.mrb[163].mxu0  ;;  %v9691_v56 = vpop.f32.mrb[163].mxu1 }
 0x455   : > { %17146 = vst [vmem:[#allocation295_spill] sm:$0xff] %v9689_v45  ;;  %17147 = vst [vmem:[#allocation296_spill] sm:$0xff] %v9691_v56  ;;  %v2903_v43 = vmax.f32 %v2902_v5, %v9689_v45  ;;  %v3169_v28 = vmax.f32 %v3168_v63, %v9691_v56 }
 0x459   : > { %v9695_v52 = vpop.f32.mrb[164].mxu0  ;;  %v9697_v26 = vpop.f32.mrb[164].mxu1 }
 0x45a   : > { %17148 = vst [vmem:[#allocation297_spill] sm:$0xff] %v9695_v52  ;;  %17149 = vst [vmem:[#allocation298_spill] sm:$0xff] %v9697_v26  ;;  %v2771_v36 = vmax.f32 %v2770_v10, %v9695_v52  ;;  %v3037_v59 = vmax.f32 %v3036_v13, %v9697_v26  ;;  %v9701_v33 = vpop.f32.mrb[165].mxu0  ;;  %v9703_v11 = vpop.f32.mrb[165].mxu1 }
 0x45b   : > { %17150 = vst [vmem:[#allocation299_spill] sm:$0xff] %v9701_v33  ;;  %17151 = vst [vmem:[#allocation300_spill] sm:$0xff] %v9703_v11  ;;  %v2904_v35 = vmax.f32 %v2903_v43, %v9701_v33  ;;  %v3170_v58 = vmax.f32 %v3169_v28, %v9703_v11  ;;  %v9707_v31 = vpop.f32.mrb[166].mxu0  ;;  %v9709_v5 = vpop.f32.mrb[166].mxu1 }
 0x45c   : > { %17152 = vst [vmem:[#allocation301_spill] sm:$0xff] %v9707_v31  ;;  %17153 = vst [vmem:[#allocation302_spill] sm:$0xff] %v9709_v5  ;;  %v2772_v63 = vmax.f32 %v2771_v36, %v9707_v31  ;;  %v3038_v56 = vmax.f32 %v3037_v59, %v9709_v5  ;;  %v9713_v45 = vpop.f32.mrb[167].mxu0  ;;  %v9715_v10 = vpop.f32.mrb[167].mxu1 }
 0x45d   : > { %17154 = vst [vmem:[#allocation303_spill] sm:$0xff] %v9713_v45  ;;  %17155 = vst [vmem:[#allocation304_spill] sm:$0xff] %v9715_v10  ;;  %v2905_v13 = vmax.f32 %v2904_v35, %v9713_v45  ;;  %v3171_v26 = vmax.f32 %v3170_v58, %v9715_v10 }
 0x461   : > { %v9719_v52 = vpop.f32.mrb[168].mxu0  ;;  %v9721_v43 = vpop.f32.mrb[168].mxu1 }
 0x462   : > { %17156 = vst [vmem:[#allocation305_spill] sm:$0xff] %v9719_v52  ;;  %17157 = vst [vmem:[#allocation306_spill] sm:$0xff] %v9721_v43  ;;  %v2773_v28 = vmax.f32 %v2772_v63, %v9719_v52  ;;  %v3039_v11 = vmax.f32 %v3038_v56, %v9721_v43  ;;  %v9725_v33 = vpop.f32.mrb[169].mxu0  ;;  %v9727_v36 = vpop.f32.mrb[169].mxu1 }
 0x463   : > { %17158 = vst [vmem:[#allocation307_spill] sm:$0xff] %v9725_v33  ;;  %17159 = vst [vmem:[#allocation308_spill] sm:$0xff] %v9727_v36  ;;  %v2906_v59 = vmax.f32 %v2905_v13, %v9725_v33  ;;  %v3172_v5 = vmax.f32 %v3171_v26, %v9727_v36  ;;  %v9731_v31 = vpop.f32.mrb[170].mxu0  ;;  %v9733_v35 = vpop.f32.mrb[170].mxu1 }
 0x464   : > { %17160 = vst [vmem:[#allocation309_spill] sm:$0xff] %v9731_v31  ;;  %17161 = vst [vmem:[#allocation310_spill] sm:$0xff] %v9733_v35  ;;  %v2774_v58 = vmax.f32 %v2773_v28, %v9731_v31  ;;  %v3040_v10 = vmax.f32 %v3039_v11, %v9733_v35  ;;  %v9737_v45 = vpop.f32.mrb[171].mxu0  ;;  %v9739_v63 = vpop.f32.mrb[171].mxu1 }
 0x465   : > { %17162 = vst [vmem:[#allocation311_spill] sm:$0xff] %v9737_v45  ;;  %17163 = vst [vmem:[#allocation312_spill] sm:$0xff] %v9739_v63  ;;  %v2907_v56 = vmax.f32 %v2906_v59, %v9737_v45  ;;  %v3173_v43 = vmax.f32 %v3172_v5, %v9739_v63 }
 0x469   : > { %v9743_v52 = vpop.f32.mrb[172].mxu0  ;;  %v9745_v13 = vpop.f32.mrb[172].mxu1 }
 0x46a   : > { %17164 = vst [vmem:[#allocation313_spill] sm:$0xff] %v9743_v52  ;;  %17165 = vst [vmem:[#allocation314_spill] sm:$0xff] %v9745_v13  ;;  %v2775_v26 = vmax.f32 %v2774_v58, %v9743_v52  ;;  %v3041_v36 = vmax.f32 %v3040_v10, %v9745_v13  ;;  %v9749_v33 = vpop.f32.mrb[173].mxu0  ;;  %v9751_v28 = vpop.f32.mrb[173].mxu1 }
 0x46b   : > { %17166 = vst [vmem:[#allocation315_spill] sm:$0xff] %v9749_v33  ;;  %17167 = vst [vmem:[#allocation316_spill] sm:$0xff] %v9751_v28  ;;  %v2908_v11 = vmax.f32 %v2907_v56, %v9749_v33  ;;  %v3174_v35 = vmax.f32 %v3173_v43, %v9751_v28  ;;  %v9755_v31 = vpop.f32.mrb[174].mxu0  ;;  %v9757_v59 = vpop.f32.mrb[174].mxu1 }
 0x46c   : > { %17168 = vst [vmem:[#allocation317_spill] sm:$0xff] %v9755_v31  ;;  %17169 = vst [vmem:[#allocation318_spill] sm:$0xff] %v9757_v59  ;;  %v2776_v5 = vmax.f32 %v2775_v26, %v9755_v31  ;;  %v3042_v63 = vmax.f32 %v3041_v36, %v9757_v59  ;;  %v9761_v45 = vpop.f32.mrb[175].mxu0  ;;  %v9763_v58 = vpop.f32.mrb[175].mxu1 }
 0x46d   : > { %17170 = vst [vmem:[#allocation319_spill] sm:$0xff] %v9761_v45  ;;  %17171 = vst [vmem:[#allocation320_spill] sm:$0xff] %v9763_v58  ;;  %v2909_v10 = vmax.f32 %v2908_v11, %v9761_v45  ;;  %v3175_v13 = vmax.f32 %v3174_v35, %v9763_v58 }
 0x471   : > { %v9767_v52 = vpop.f32.mrb[176].mxu0  ;;  %v9769_v56 = vpop.f32.mrb[176].mxu1 }
 0x472   : > { %17172 = vst [vmem:[#allocation321_spill] sm:$0xff] %v9767_v52  ;;  %17173 = vst [vmem:[#allocation322_spill] sm:$0xff] %v9769_v56  ;;  %v2777_v43 = vmax.f32 %v2776_v5, %v9767_v52  ;;  %v3043_v28 = vmax.f32 %v3042_v63, %v9769_v56  ;;  %v9773_v33 = vpop.f32.mrb[177].mxu0  ;;  %v9775_v26 = vpop.f32.mrb[177].mxu1 }
 0x473   : > { %17174 = vst [vmem:[#allocation323_spill] sm:$0xff] %v9773_v33  ;;  %17175 = vst [vmem:[#allocation324_spill] sm:$0xff] %v9775_v26  ;;  %v2910_v36 = vmax.f32 %v2909_v10, %v9773_v33  ;;  %v3176_v59 = vmax.f32 %v3175_v13, %v9775_v26  ;;  %v9779_v31 = vpop.f32.mrb[178].mxu0  ;;  %v9781_v11 = vpop.f32.mrb[178].mxu1 }
 0x474   : > { %17176 = vst [vmem:[#allocation325_spill] sm:$0xff] %v9779_v31  ;;  %17177 = vst [vmem:[#allocation326_spill] sm:$0xff] %v9781_v11  ;;  %v2778_v35 = vmax.f32 %v2777_v43, %v9779_v31  ;;  %v3044_v58 = vmax.f32 %v3043_v28, %v9781_v11  ;;  %v9785_v45 = vpop.f32.mrb[179].mxu0  ;;  %v9787_v5 = vpop.f32.mrb[179].mxu1 }
 0x475   : > { %17178 = vst [vmem:[#allocation327_spill] sm:$0xff] %v9785_v45  ;;  %17179 = vst [vmem:[#allocation328_spill] sm:$0xff] %v9787_v5  ;;  %v2911_v63 = vmax.f32 %v2910_v36, %v9785_v45  ;;  %v3177_v56 = vmax.f32 %v3176_v59, %v9787_v5 }
 0x479   : > { %v9791_v52 = vpop.f32.mrb[180].mxu0  ;;  %v9793_v10 = vpop.f32.mrb[180].mxu1 }
 0x47a   : > { %17180 = vst [vmem:[#allocation329_spill] sm:$0xff] %v9791_v52  ;;  %17181 = vst [vmem:[#allocation330_spill] sm:$0xff] %v9793_v10  ;;  %v2779_v13 = vmax.f32 %v2778_v35, %v9791_v52  ;;  %v3045_v26 = vmax.f32 %v3044_v58, %v9793_v10  ;;  %v9797_v33 = vpop.f32.mrb[181].mxu0  ;;  %v9799_v43 = vpop.f32.mrb[181].mxu1 }
 0x47b   : > { %17182 = vst [vmem:[#allocation331_spill] sm:$0xff] %v9797_v33  ;;  %17183 = vst [vmem:[#allocation332_spill] sm:$0xff] %v9799_v43  ;;  %v2912_v28 = vmax.f32 %v2911_v63, %v9797_v33  ;;  %v3178_v11 = vmax.f32 %v3177_v56, %v9799_v43  ;;  %v9803_v31 = vpop.f32.mrb[182].mxu0  ;;  %v9805_v36 = vpop.f32.mrb[182].mxu1 }
 0x47c   : > { %17184 = vst [vmem:[#allocation333_spill] sm:$0xff] %v9803_v31  ;;  %17185 = vst [vmem:[#allocation334_spill] sm:$0xff] %v9805_v36  ;;  %v2780_v59 = vmax.f32 %v2779_v13, %v9803_v31  ;;  %v3046_v5 = vmax.f32 %v3045_v26, %v9805_v36  ;;  %v9809_v45 = vpop.f32.mrb[183].mxu0  ;;  %v9811_v35 = vpop.f32.mrb[183].mxu1 }
 0x47d   : > { %17186 = vst [vmem:[#allocation335_spill] sm:$0xff] %v9809_v45  ;;  %17187 = vst [vmem:[#allocation336_spill] sm:$0xff] %v9811_v35  ;;  %v2913_v58 = vmax.f32 %v2912_v28, %v9809_v45  ;;  %v3179_v10 = vmax.f32 %v3178_v11, %v9811_v35 }
 0x481   : > { %v9815_v52 = vpop.f32.mrb[184].mxu0  ;;  %v9817_v63 = vpop.f32.mrb[184].mxu1 }
 0x482   : > { %17188 = vst [vmem:[#allocation337_spill] sm:$0xff] %v9815_v52  ;;  %17189 = vst [vmem:[#allocation338_spill] sm:$0xff] %v9817_v63  ;;  %v2781_v56 = vmax.f32 %v2780_v59, %v9815_v52  ;;  %v3047_v43 = vmax.f32 %v3046_v5, %v9817_v63  ;;  %v9821_v33 = vpop.f32.mrb[185].mxu0  ;;  %v9823_v13 = vpop.f32.mrb[185].mxu1 }
 0x483   : > { %17190 = vst [vmem:[#allocation339_spill] sm:$0xff] %v9821_v33  ;;  %17191 = vst [vmem:[#allocation340_spill] sm:$0xff] %v9823_v13  ;;  %v2914_v26 = vmax.f32 %v2913_v58, %v9821_v33  ;;  %v3180_v36 = vmax.f32 %v3179_v10, %v9823_v13  ;;  %v9827_v31 = vpop.f32.mrb[186].mxu0  ;;  %v9829_v28 = vpop.f32.mrb[186].mxu1 }
 0x484   : > { %17192 = vst [vmem:[#allocation341_spill] sm:$0xff] %v9827_v31  ;;  %17193 = vst [vmem:[#allocation342_spill] sm:$0xff] %v9829_v28  ;;  %v2782_v11 = vmax.f32 %v2781_v56, %v9827_v31  ;;  %v3048_v35 = vmax.f32 %v3047_v43, %v9829_v28  ;;  %v9833_v45 = vpop.f32.mrb[187].mxu0  ;;  %v9835_v59 = vpop.f32.mrb[187].mxu1 }
 0x485   : > { %17194 = vst [vmem:[#allocation343_spill] sm:$0xff] %v9833_v45  ;;  %17195 = vst [vmem:[#allocation344_spill] sm:$0xff] %v9835_v59  ;;  %v2915_v5 = vmax.f32 %v2914_v26, %v9833_v45  ;;  %v3181_v63 = vmax.f32 %v3180_v36, %v9835_v59 }
 0x489   : > { %v9839_v52 = vpop.f32.mrb[188].mxu0  ;;  %v9841_v58 = vpop.f32.mrb[188].mxu1 }
 0x48a   : > { %17196 = vst [vmem:[#allocation345_spill] sm:$0xff] %v9839_v52  ;;  %17197 = vst [vmem:[#allocation346_spill] sm:$0xff] %v9841_v58  ;;  %v2783_v10 = vmax.f32 %v2782_v11, %v9839_v52  ;;  %v3049_v13 = vmax.f32 %v3048_v35, %v9841_v58  ;;  %v9845_v33 = vpop.f32.mrb[189].mxu0  ;;  %v9847_v56 = vpop.f32.mrb[189].mxu1 }
 0x48b   : > { %17198 = vst [vmem:[#allocation347_spill] sm:$0xff] %v9845_v33  ;;  %17199 = vst [vmem:[#allocation348_spill] sm:$0xff] %v9847_v56  ;;  %v2916_v43 = vmax.f32 %v2915_v5, %v9845_v33  ;;  %v3182_v28 = vmax.f32 %v3181_v63, %v9847_v56  ;;  %v9851_v31 = vpop.f32.mrb[190].mxu0  ;;  %v9853_v26 = vpop.f32.mrb[190].mxu1 }
 0x48c   : > { %17200 = vst [vmem:[#allocation349_spill] sm:$0xff] %v9851_v31  ;;  %17201 = vst [vmem:[#allocation350_spill] sm:$0xff] %v9853_v26  ;;  %v2784_v36 = vmax.f32 %v2783_v10, %v9851_v31  ;;  %v3050_v59 = vmax.f32 %v3049_v13, %v9853_v26  ;;  %v9857_v45 = vpop.f32.mrb[191].mxu0  ;;  %v9859_v11 = vpop.f32.mrb[191].mxu1 }
 0x48d   : > { %17202 = vst [vmem:[#allocation351_spill] sm:$0xff] %v9857_v45  ;;  %17203 = vst [vmem:[#allocation352_spill] sm:$0xff] %v9859_v11  ;;  %v2917_v35 = vmax.f32 %v2916_v43, %v9857_v45  ;;  %v3183_v58 = vmax.f32 %v3182_v28, %v9859_v11 }
 0x491   : > { %v9863_v52 = vpop.f32.mrb[192].mxu0  ;;  %v9865_v5 = vpop.f32.mrb[192].mxu1 }
 0x492   : > { %17204 = vst [vmem:[#allocation353_spill] sm:$0xff] %v9863_v52  ;;  %17205 = vst [vmem:[#allocation354_spill] sm:$0xff] %v9865_v5  ;;  %v2785_v63 = vmax.f32 %v2784_v36, %v9863_v52  ;;  %v3051_v56 = vmax.f32 %v3050_v59, %v9865_v5  ;;  %v9869_v33 = vpop.f32.mrb[193].mxu0  ;;  %v9871_v10 = vpop.f32.mrb[193].mxu1 }
 0x493   : > { %17206 = vst [vmem:[#allocation355_spill] sm:$0xff] %v9869_v33  ;;  %17207 = vst [vmem:[#allocation356_spill] sm:$0xff] %v9871_v10  ;;  %v2918_v13 = vmax.f32 %v2917_v35, %v9869_v33  ;;  %v3184_v26 = vmax.f32 %v3183_v58, %v9871_v10  ;;  %v9875_v31 = vpop.f32.mrb[194].mxu0  ;;  %v9877_v43 = vpop.f32.mrb[194].mxu1 }
 0x494   : > { %17208 = vst [vmem:[#allocation357_spill] sm:$0xff] %v9875_v31  ;;  %17209 = vst [vmem:[#allocation358_spill] sm:$0xff] %v9877_v43  ;;  %v2786_v28 = vmax.f32 %v2785_v63, %v9875_v31  ;;  %v3052_v11 = vmax.f32 %v3051_v56, %v9877_v43  ;;  %v9881_v45 = vpop.f32.mrb[195].mxu0  ;;  %v9883_v36 = vpop.f32.mrb[195].mxu1 }
 0x495   : > { %17210 = vst [vmem:[#allocation359_spill] sm:$0xff] %v9881_v45  ;;  %17211 = vst [vmem:[#allocation360_spill] sm:$0xff] %v9883_v36  ;;  %v2919_v59 = vmax.f32 %v2918_v13, %v9881_v45  ;;  %v3185_v5 = vmax.f32 %v3184_v26, %v9883_v36 }
 0x499   : > { %v9887_v52 = vpop.f32.mrb[196].mxu0  ;;  %v9889_v35 = vpop.f32.mrb[196].mxu1 }
 0x49a   : > { %17212 = vst [vmem:[#allocation361_spill] sm:$0xff] %v9887_v52  ;;  %17213 = vst [vmem:[#allocation362_spill] sm:$0xff] %v9889_v35  ;;  %v2787_v58 = vmax.f32 %v2786_v28, %v9887_v52  ;;  %v3053_v10 = vmax.f32 %v3052_v11, %v9889_v35  ;;  %v9893_v33 = vpop.f32.mrb[197].mxu0  ;;  %v9895_v63 = vpop.f32.mrb[197].mxu1 }
 0x49b   : > { %17214 = vst [vmem:[#allocation363_spill] sm:$0xff] %v9893_v33  ;;  %17215 = vst [vmem:[#allocation364_spill] sm:$0xff] %v9895_v63  ;;  %v2920_v56 = vmax.f32 %v2919_v59, %v9893_v33  ;;  %v3186_v43 = vmax.f32 %v3185_v5, %v9895_v63  ;;  %v9899_v31 = vpop.f32.mrb[198].mxu0  ;;  %v9901_v13 = vpop.f32.mrb[198].mxu1 }
 0x49c   : > { %17216 = vst [vmem:[#allocation365_spill] sm:$0xff] %v9899_v31  ;;  %17217 = vst [vmem:[#allocation366_spill] sm:$0xff] %v9901_v13  ;;  %v2788_v26 = vmax.f32 %v2787_v58, %v9899_v31  ;;  %v3054_v36 = vmax.f32 %v3053_v10, %v9901_v13  ;;  %v9905_v45 = vpop.f32.mrb[199].mxu0  ;;  %v9907_v28 = vpop.f32.mrb[199].mxu1 }
 0x49d   : > { %17218 = vst [vmem:[#allocation367_spill] sm:$0xff] %v9905_v45  ;;  %17219 = vst [vmem:[#allocation368_spill] sm:$0xff] %v9907_v28  ;;  %v2921_v11 = vmax.f32 %v2920_v56, %v9905_v45  ;;  %v3187_v35 = vmax.f32 %v3186_v43, %v9907_v28 }
 0x4a1   : > { %v9911_v52 = vpop.f32.mrb[200].mxu0  ;;  %v9913_v59 = vpop.f32.mrb[200].mxu1 }
 0x4a2   : > { %17220 = vst [vmem:[#allocation369_spill] sm:$0xff] %v9911_v52  ;;  %17221 = vst [vmem:[#allocation370_spill] sm:$0xff] %v9913_v59  ;;  %v2789_v5 = vmax.f32 %v2788_v26, %v9911_v52  ;;  %v3055_v63 = vmax.f32 %v3054_v36, %v9913_v59  ;;  %v9917_v33 = vpop.f32.mrb[201].mxu0  ;;  %v9919_v58 = vpop.f32.mrb[201].mxu1 }
 0x4a3   : > { %17222 = vst [vmem:[#allocation371_spill] sm:$0xff] %v9917_v33  ;;  %17223 = vst [vmem:[#allocation372_spill] sm:$0xff] %v9919_v58  ;;  %v2922_v10 = vmax.f32 %v2921_v11, %v9917_v33  ;;  %v3188_v13 = vmax.f32 %v3187_v35, %v9919_v58  ;;  %v9923_v31 = vpop.f32.mrb[202].mxu0  ;;  %v9925_v56 = vpop.f32.mrb[202].mxu1 }
 0x4a4   : > { %17224 = vst [vmem:[#allocation373_spill] sm:$0xff] %v9923_v31  ;;  %17225 = vst [vmem:[#allocation374_spill] sm:$0xff] %v9925_v56  ;;  %v2790_v43 = vmax.f32 %v2789_v5, %v9923_v31  ;;  %v3056_v28 = vmax.f32 %v3055_v63, %v9925_v56  ;;  %v9929_v45 = vpop.f32.mrb[203].mxu0  ;;  %v9931_v26 = vpop.f32.mrb[203].mxu1 }
 0x4a5   : > { %17226 = vst [vmem:[#allocation375_spill] sm:$0xff] %v9929_v45  ;;  %17227 = vst [vmem:[#allocation376_spill] sm:$0xff] %v9931_v26  ;;  %v2923_v36 = vmax.f32 %v2922_v10, %v9929_v45  ;;  %v3189_v59 = vmax.f32 %v3188_v13, %v9931_v26 }
 0x4a9   : > { %v9935_v52 = vpop.f32.mrb[204].mxu0  ;;  %v9937_v11 = vpop.f32.mrb[204].mxu1 }
 0x4aa   : > { %17228 = vst [vmem:[#allocation377_spill] sm:$0xff] %v9935_v52  ;;  %17229 = vst [vmem:[#allocation378_spill] sm:$0xff] %v9937_v11  ;;  %v2791_v35 = vmax.f32 %v2790_v43, %v9935_v52  ;;  %v3057_v58 = vmax.f32 %v3056_v28, %v9937_v11  ;;  %v9941_v33 = vpop.f32.mrb[205].mxu0  ;;  %v9943_v5 = vpop.f32.mrb[205].mxu1 }
 0x4ab   : > { %17230 = vst [vmem:[#allocation379_spill] sm:$0xff] %v9941_v33  ;;  %17231 = vst [vmem:[#allocation380_spill] sm:$0xff] %v9943_v5  ;;  %v2924_v63 = vmax.f32 %v2923_v36, %v9941_v33  ;;  %v3190_v56 = vmax.f32 %v3189_v59, %v9943_v5  ;;  %v9947_v31 = vpop.f32.mrb[206].mxu0  ;;  %v9949_v10 = vpop.f32.mrb[206].mxu1 }
 0x4ac   : > { %17232 = vst [vmem:[#allocation381_spill] sm:$0xff] %v9947_v31  ;;  %17233 = vst [vmem:[#allocation382_spill] sm:$0xff] %v9949_v10  ;;  %v2792_v13 = vmax.f32 %v2791_v35, %v9947_v31  ;;  %v3058_v26 = vmax.f32 %v3057_v58, %v9949_v10  ;;  %v9953_v45 = vpop.f32.mrb[207].mxu0  ;;  %v9955_v43 = vpop.f32.mrb[207].mxu1 }
 0x4ad   : > { %17234 = vst [vmem:[#allocation383_spill] sm:$0xff] %v9953_v45  ;;  %17235 = vst [vmem:[#allocation384_spill] sm:$0xff] %v9955_v43  ;;  %v2925_v28 = vmax.f32 %v2924_v63, %v9953_v45  ;;  %v3191_v11 = vmax.f32 %v3190_v56, %v9955_v43 }
 0x4b1   : > { %v9959_v52 = vpop.f32.mrb[208].mxu0  ;;  %v9961_v36 = vpop.f32.mrb[208].mxu1 }
 0x4b2   : > { %17236 = vst [vmem:[#allocation385_spill] sm:$0xff] %v9959_v52  ;;  %17237 = vst [vmem:[#allocation386_spill] sm:$0xff] %v9961_v36  ;;  %v2793_v59 = vmax.f32 %v2792_v13, %v9959_v52  ;;  %v3059_v5 = vmax.f32 %v3058_v26, %v9961_v36  ;;  %v9965_v33 = vpop.f32.mrb[209].mxu0  ;;  %v9967_v35 = vpop.f32.mrb[209].mxu1 }
 0x4b3   : > { %17238 = vst [vmem:[#allocation387_spill] sm:$0xff] %v9965_v33  ;;  %17239 = vst [vmem:[#allocation388_spill] sm:$0xff] %v9967_v35  ;;  %v2926_v58 = vmax.f32 %v2925_v28, %v9965_v33  ;;  %v3192_v10 = vmax.f32 %v3191_v11, %v9967_v35  ;;  %v9971_v31 = vpop.f32.mrb[210].mxu0  ;;  %v9973_v63 = vpop.f32.mrb[210].mxu1 }
 0x4b4   : > { %17240 = vst [vmem:[#allocation389_spill] sm:$0xff] %v9971_v31  ;;  %17241 = vst [vmem:[#allocation390_spill] sm:$0xff] %v9973_v63  ;;  %v2794_v56 = vmax.f32 %v2793_v59, %v9971_v31  ;;  %v3060_v43 = vmax.f32 %v3059_v5, %v9973_v63  ;;  %v9977_v45 = vpop.f32.mrb[211].mxu0  ;;  %v9979_v13 = vpop.f32.mrb[211].mxu1 }
 0x4b5   : > { %17242 = vst [vmem:[#allocation391_spill] sm:$0xff] %v9977_v45  ;;  %17243 = vst [vmem:[#allocation392_spill] sm:$0xff] %v9979_v13  ;;  %v2927_v26 = vmax.f32 %v2926_v58, %v9977_v45  ;;  %v3193_v36 = vmax.f32 %v3192_v10, %v9979_v13 }
 0x4b9   : > { %v9983_v52 = vpop.f32.mrb[212].mxu0  ;;  %v9985_v28 = vpop.f32.mrb[212].mxu1 }
 0x4ba   : > { %17244 = vst [vmem:[#allocation393_spill] sm:$0xff] %v9983_v52  ;;  %17245 = vst [vmem:[#allocation394_spill] sm:$0xff] %v9985_v28  ;;  %v2795_v11 = vmax.f32 %v2794_v56, %v9983_v52  ;;  %v3061_v35 = vmax.f32 %v3060_v43, %v9985_v28  ;;  %v9989_v33 = vpop.f32.mrb[213].mxu0  ;;  %v9991_v59 = vpop.f32.mrb[213].mxu1 }
 0x4bb   : > { %17246 = vst [vmem:[#allocation395_spill] sm:$0xff] %v9989_v33  ;;  %17247 = vst [vmem:[#allocation396_spill] sm:$0xff] %v9991_v59  ;;  %v2928_v5 = vmax.f32 %v2927_v26, %v9989_v33  ;;  %v3194_v63 = vmax.f32 %v3193_v36, %v9991_v59  ;;  %v9995_v31 = vpop.f32.mrb[214].mxu0  ;;  %v9997_v58 = vpop.f32.mrb[214].mxu1 }
 0x4bc   : > { %17248 = vst [vmem:[#allocation397_spill] sm:$0xff] %v9995_v31  ;;  %17249 = vst [vmem:[#allocation398_spill] sm:$0xff] %v9997_v58  ;;  %v2796_v10 = vmax.f32 %v2795_v11, %v9995_v31  ;;  %v3062_v13 = vmax.f32 %v3061_v35, %v9997_v58  ;;  %v10001_v45 = vpop.f32.mrb[215].mxu0  ;;  %v10003_v56 = vpop.f32.mrb[215].mxu1 }
 0x4bd   : > { %17250 = vst [vmem:[#allocation399_spill] sm:$0xff] %v10001_v45  ;;  %17251 = vst [vmem:[#allocation400_spill] sm:$0xff] %v10003_v56  ;;  %v2929_v43 = vmax.f32 %v2928_v5, %v10001_v45  ;;  %v3195_v28 = vmax.f32 %v3194_v63, %v10003_v56 }
 0x4c1   : > { %v10007_v52 = vpop.f32.mrb[216].mxu0  ;;  %v10009_v26 = vpop.f32.mrb[216].mxu1 }
 0x4c2   : > { %17252 = vst [vmem:[#allocation401_spill] sm:$0xff] %v10007_v52  ;;  %17253 = vst [vmem:[#allocation402_spill] sm:$0xff] %v10009_v26  ;;  %v2797_v36 = vmax.f32 %v2796_v10, %v10007_v52  ;;  %v3063_v59 = vmax.f32 %v3062_v13, %v10009_v26  ;;  %v10013_v33 = vpop.f32.mrb[217].mxu0  ;;  %v10015_v11 = vpop.f32.mrb[217].mxu1 }
 0x4c3   : > { %17254 = vst [vmem:[#allocation403_spill] sm:$0xff] %v10013_v33  ;;  %17255 = vst [vmem:[#allocation404_spill] sm:$0xff] %v10015_v11  ;;  %v2930_v35 = vmax.f32 %v2929_v43, %v10013_v33  ;;  %v3196_v58 = vmax.f32 %v3195_v28, %v10015_v11  ;;  %v10019_v31 = vpop.f32.mrb[218].mxu0  ;;  %v10021_v5 = vpop.f32.mrb[218].mxu1 }
 0x4c4   : > { %17256 = vst [vmem:[#allocation405_spill] sm:$0xff] %v10019_v31  ;;  %17257 = vst [vmem:[#allocation406_spill] sm:$0xff] %v10021_v5  ;;  %v2798_v63 = vmax.f32 %v2797_v36, %v10019_v31  ;;  %v3064_v56 = vmax.f32 %v3063_v59, %v10021_v5  ;;  %v10025_v45 = vpop.f32.mrb[219].mxu0  ;;  %v10027_v10 = vpop.f32.mrb[219].mxu1 }
 0x4c5   : > { %17258 = vst [vmem:[#allocation407_spill] sm:$0xff] %v10025_v45  ;;  %17259 = vst [vmem:[#allocation408_spill] sm:$0xff] %v10027_v10  ;;  %v2931_v13 = vmax.f32 %v2930_v35, %v10025_v45  ;;  %v3197_v26 = vmax.f32 %v3196_v58, %v10027_v10 }
 0x4c9   : > { %v10031_v52 = vpop.f32.mrb[220].mxu0  ;;  %v10033_v43 = vpop.f32.mrb[220].mxu1 }
 0x4ca   : > { %17260 = vst [vmem:[#allocation409_spill] sm:$0xff] %v10031_v52  ;;  %17261 = vst [vmem:[#allocation410_spill] sm:$0xff] %v10033_v43  ;;  %v2799_v28 = vmax.f32 %v2798_v63, %v10031_v52  ;;  %v3065_v11 = vmax.f32 %v3064_v56, %v10033_v43  ;;  %v10037_v33 = vpop.f32.mrb[221].mxu0  ;;  %v10039_v36 = vpop.f32.mrb[221].mxu1 }
 0x4cb   : > { %17262 = vst [vmem:[#allocation411_spill] sm:$0xff] %v10037_v33  ;;  %17263 = vst [vmem:[#allocation412_spill] sm:$0xff] %v10039_v36  ;;  %v2932_v59 = vmax.f32 %v2931_v13, %v10037_v33  ;;  %v3198_v5 = vmax.f32 %v3197_v26, %v10039_v36  ;;  %v10043_v31 = vpop.f32.mrb[222].mxu0  ;;  %v10045_v35 = vpop.f32.mrb[222].mxu1 }
 0x4cc   : > { %17264 = vst [vmem:[#allocation413_spill] sm:$0xff] %v10043_v31  ;;  %17265 = vst [vmem:[#allocation414_spill] sm:$0xff] %v10045_v35  ;;  %v2800_v58 = vmax.f32 %v2799_v28, %v10043_v31  ;;  %v3066_v10 = vmax.f32 %v3065_v11, %v10045_v35  ;;  %v10049_v45 = vpop.f32.mrb[223].mxu0  ;;  %v10051_v63 = vpop.f32.mrb[223].mxu1 }
 0x4cd   : > { %17266 = vst [vmem:[#allocation415_spill] sm:$0xff] %v10049_v45  ;;  %17267 = vst [vmem:[#allocation416_spill] sm:$0xff] %v10051_v63  ;;  %v2933_v56 = vmax.f32 %v2932_v59, %v10049_v45  ;;  %v3199_v43 = vmax.f32 %v3198_v5, %v10051_v63 }
 0x4d1   : > { %v10055_v52 = vpop.f32.mrb[224].mxu0  ;;  %v10057_v13 = vpop.f32.mrb[224].mxu1 }
 0x4d2   : > { %17268 = vst [vmem:[#allocation417_spill] sm:$0xff] %v10055_v52  ;;  %17269 = vst [vmem:[#allocation418_spill] sm:$0xff] %v10057_v13  ;;  %v2801_v26 = vmax.f32 %v2800_v58, %v10055_v52  ;;  %v3067_v36 = vmax.f32 %v3066_v10, %v10057_v13  ;;  %v10061_v33 = vpop.f32.mrb[225].mxu0  ;;  %v10063_v28 = vpop.f32.mrb[225].mxu1 }
 0x4d3   : > { %17270 = vst [vmem:[#allocation419_spill] sm:$0xff] %v10061_v33  ;;  %17271 = vst [vmem:[#allocation420_spill] sm:$0xff] %v10063_v28  ;;  %v2934_v11 = vmax.f32 %v2933_v56, %v10061_v33  ;;  %v3200_v35 = vmax.f32 %v3199_v43, %v10063_v28  ;;  %v10067_v31 = vpop.f32.mrb[226].mxu0  ;;  %v10069_v59 = vpop.f32.mrb[226].mxu1 }
 0x4d4   : > { %17272 = vst [vmem:[#allocation421_spill] sm:$0xff] %v10067_v31  ;;  %17273 = vst [vmem:[#allocation422_spill] sm:$0xff] %v10069_v59  ;;  %v2802_v5 = vmax.f32 %v2801_v26, %v10067_v31  ;;  %v3068_v63 = vmax.f32 %v3067_v36, %v10069_v59  ;;  %v10073_v45 = vpop.f32.mrb[227].mxu0  ;;  %v10075_v58 = vpop.f32.mrb[227].mxu1 }
 0x4d5   : > { %17274 = vst [vmem:[#allocation423_spill] sm:$0xff] %v10073_v45  ;;  %17275 = vst [vmem:[#allocation424_spill] sm:$0xff] %v10075_v58  ;;  %v2935_v10 = vmax.f32 %v2934_v11, %v10073_v45  ;;  %v3201_v13 = vmax.f32 %v3200_v35, %v10075_v58 }
 0x4d9   : > { %v10079_v52 = vpop.f32.mrb[228].mxu0  ;;  %v10081_v56 = vpop.f32.mrb[228].mxu1 }
 0x4da   : > { %17276 = vst [vmem:[#allocation425_spill] sm:$0xff] %v10079_v52  ;;  %17277 = vst [vmem:[#allocation426_spill] sm:$0xff] %v10081_v56  ;;  %v2803_v43 = vmax.f32 %v2802_v5, %v10079_v52  ;;  %v3069_v28 = vmax.f32 %v3068_v63, %v10081_v56  ;;  %v10085_v33 = vpop.f32.mrb[229].mxu0  ;;  %v10087_v26 = vpop.f32.mrb[229].mxu1 }
 0x4db   : > { %17278 = vst [vmem:[#allocation427_spill] sm:$0xff] %v10085_v33  ;;  %17279 = vst [vmem:[#allocation428_spill] sm:$0xff] %v10087_v26  ;;  %v2936_v36 = vmax.f32 %v2935_v10, %v10085_v33  ;;  %v3202_v59 = vmax.f32 %v3201_v13, %v10087_v26  ;;  %v10091_v31 = vpop.f32.mrb[230].mxu0  ;;  %v10093_v11 = vpop.f32.mrb[230].mxu1 }
 0x4dc   : > { %17280 = vst [vmem:[#allocation429_spill] sm:$0xff] %v10091_v31  ;;  %17281 = vst [vmem:[#allocation430_spill] sm:$0xff] %v10093_v11  ;;  %v2804_v35 = vmax.f32 %v2803_v43, %v10091_v31  ;;  %v3070_v58 = vmax.f32 %v3069_v28, %v10093_v11  ;;  %v10097_v45 = vpop.f32.mrb[231].mxu0  ;;  %v10099_v5 = vpop.f32.mrb[231].mxu1 }
 0x4dd   : > { %17282 = vst [vmem:[#allocation431_spill] sm:$0xff] %v10097_v45  ;;  %17283 = vst [vmem:[#allocation432_spill] sm:$0xff] %v10099_v5  ;;  %v2937_v63 = vmax.f32 %v2936_v36, %v10097_v45  ;;  %v3203_v56 = vmax.f32 %v3202_v59, %v10099_v5 }
 0x4e1   : > { %v10103_v52 = vpop.f32.mrb[232].mxu0  ;;  %v10105_v10 = vpop.f32.mrb[232].mxu1 }
 0x4e2   : > { %17284 = vst [vmem:[#allocation433_spill] sm:$0xff] %v10103_v52  ;;  %17285 = vst [vmem:[#allocation434_spill] sm:$0xff] %v10105_v10  ;;  %v2805_v13 = vmax.f32 %v2804_v35, %v10103_v52  ;;  %v3071_v26 = vmax.f32 %v3070_v58, %v10105_v10  ;;  %v10109_v33 = vpop.f32.mrb[233].mxu0  ;;  %v10111_v43 = vpop.f32.mrb[233].mxu1 }
 0x4e3   : > { %17286 = vst [vmem:[#allocation435_spill] sm:$0xff] %v10109_v33  ;;  %17287 = vst [vmem:[#allocation436_spill] sm:$0xff] %v10111_v43  ;;  %v2938_v28 = vmax.f32 %v2937_v63, %v10109_v33  ;;  %v3204_v11 = vmax.f32 %v3203_v56, %v10111_v43  ;;  %v10115_v31 = vpop.f32.mrb[234].mxu0  ;;  %v10117_v36 = vpop.f32.mrb[234].mxu1 }
 0x4e4   : > { %17288 = vst [vmem:[#allocation437_spill] sm:$0xff] %v10115_v31  ;;  %17289 = vst [vmem:[#allocation438_spill] sm:$0xff] %v10117_v36  ;;  %v2806_v59 = vmax.f32 %v2805_v13, %v10115_v31  ;;  %v3072_v5 = vmax.f32 %v3071_v26, %v10117_v36  ;;  %v10121_v45 = vpop.f32.mrb[235].mxu0  ;;  %v10123_v35 = vpop.f32.mrb[235].mxu1 }
 0x4e5   : > { %17290 = vst [vmem:[#allocation439_spill] sm:$0xff] %v10121_v45  ;;  %17291 = vst [vmem:[#allocation440_spill] sm:$0xff] %v10123_v35  ;;  %v2939_v58 = vmax.f32 %v2938_v28, %v10121_v45  ;;  %v3205_v10 = vmax.f32 %v3204_v11, %v10123_v35 }
 0x4e9   : > { %v10127_v52 = vpop.f32.mrb[236].mxu0  ;;  %v10129_v63 = vpop.f32.mrb[236].mxu1 }
 0x4ea   : > { %17292 = vst [vmem:[#allocation441_spill] sm:$0xff] %v10127_v52  ;;  %17293 = vst [vmem:[#allocation442_spill] sm:$0xff] %v10129_v63  ;;  %v2807_v56 = vmax.f32 %v2806_v59, %v10127_v52  ;;  %v3073_v43 = vmax.f32 %v3072_v5, %v10129_v63  ;;  %v10133_v33 = vpop.f32.mrb[237].mxu0  ;;  %v10135_v13 = vpop.f32.mrb[237].mxu1 }
 0x4eb   : > { %17294 = vst [vmem:[#allocation443_spill] sm:$0xff] %v10133_v33  ;;  %17295 = vst [vmem:[#allocation444_spill] sm:$0xff] %v10135_v13  ;;  %v2940_v26 = vmax.f32 %v2939_v58, %v10133_v33  ;;  %v3206_v36 = vmax.f32 %v3205_v10, %v10135_v13  ;;  %v10139_v31 = vpop.f32.mrb[238].mxu0  ;;  %v10141_v28 = vpop.f32.mrb[238].mxu1 }
 0x4ec   : > { %17296 = vst [vmem:[#allocation445_spill] sm:$0xff] %v10139_v31  ;;  %17297 = vst [vmem:[#allocation446_spill] sm:$0xff] %v10141_v28  ;;  %v2808_v11 = vmax.f32 %v2807_v56, %v10139_v31  ;;  %v3074_v35 = vmax.f32 %v3073_v43, %v10141_v28  ;;  %v10145_v45 = vpop.f32.mrb[239].mxu0  ;;  %v10147_v59 = vpop.f32.mrb[239].mxu1 }
 0x4ed   : > { %17298 = vst [vmem:[#allocation447_spill] sm:$0xff] %v10145_v45  ;;  %17299 = vst [vmem:[#allocation448_spill] sm:$0xff] %v10147_v59  ;;  %v2941_v5 = vmax.f32 %v2940_v26, %v10145_v45  ;;  %v3207_v63 = vmax.f32 %v3206_v36, %v10147_v59 }
 0x4f1   : > { %v10151_v52 = vpop.f32.mrb[240].mxu0  ;;  %v10153_v58 = vpop.f32.mrb[240].mxu1 }
 0x4f2   : > { %17300 = vst [vmem:[#allocation449_spill] sm:$0xff] %v10151_v52  ;;  %17301 = vst [vmem:[#allocation450_spill] sm:$0xff] %v10153_v58  ;;  %v2809_v10 = vmax.f32 %v2808_v11, %v10151_v52  ;;  %v3075_v13 = vmax.f32 %v3074_v35, %v10153_v58  ;;  %v10157_v33 = vpop.f32.mrb[241].mxu0  ;;  %v10159_v56 = vpop.f32.mrb[241].mxu1 }
 0x4f3   : > { %17302 = vst [vmem:[#allocation451_spill] sm:$0xff] %v10157_v33  ;;  %17303 = vst [vmem:[#allocation452_spill] sm:$0xff] %v10159_v56  ;;  %v2942_v43 = vmax.f32 %v2941_v5, %v10157_v33  ;;  %v3208_v28 = vmax.f32 %v3207_v63, %v10159_v56  ;;  %v10163_v31 = vpop.f32.mrb[242].mxu0  ;;  %v10165_v26 = vpop.f32.mrb[242].mxu1 }
 0x4f4   : > { %17304 = vst [vmem:[#allocation453_spill] sm:$0xff] %v10163_v31  ;;  %17305 = vst [vmem:[#allocation454_spill] sm:$0xff] %v10165_v26  ;;  %v2810_v36 = vmax.f32 %v2809_v10, %v10163_v31  ;;  %v3076_v59 = vmax.f32 %v3075_v13, %v10165_v26  ;;  %v10169_v45 = vpop.f32.mrb[243].mxu0  ;;  %v10171_v11 = vpop.f32.mrb[243].mxu1 }
 0x4f5   : > { %17306 = vst [vmem:[#allocation455_spill] sm:$0xff] %v10169_v45  ;;  %17307 = vst [vmem:[#allocation456_spill] sm:$0xff] %v10171_v11  ;;  %v2943_v35 = vmax.f32 %v2942_v43, %v10169_v45  ;;  %v3209_v58 = vmax.f32 %v3208_v28, %v10171_v11 }
 0x4f9   : > { %v10175_v52 = vpop.f32.mrb[244].mxu0  ;;  %v10177_v5 = vpop.f32.mrb[244].mxu1 }
 0x4fa   : > { %17308 = vst [vmem:[#allocation457_spill] sm:$0xff] %v10175_v52  ;;  %17309 = vst [vmem:[#allocation458_spill] sm:$0xff] %v10177_v5  ;;  %v2811_v63 = vmax.f32 %v2810_v36, %v10175_v52  ;;  %v3077_v56 = vmax.f32 %v3076_v59, %v10177_v5  ;;  %v10181_v33 = vpop.f32.mrb[245].mxu0  ;;  %v10183_v10 = vpop.f32.mrb[245].mxu1 }
 0x4fb   : > { %17310 = vst [vmem:[#allocation459_spill] sm:$0xff] %v10181_v33  ;;  %17311 = vst [vmem:[#allocation460_spill] sm:$0xff] %v10183_v10  ;;  %v2944_v13 = vmax.f32 %v2943_v35, %v10181_v33  ;;  %v3210_v26 = vmax.f32 %v3209_v58, %v10183_v10  ;;  %v10187_v31 = vpop.f32.mrb[246].mxu0  ;;  %v10189_v43 = vpop.f32.mrb[246].mxu1 }
 0x4fc   : > { %17312 = vst [vmem:[#allocation461_spill] sm:$0xff] %v10187_v31  ;;  %17313 = vst [vmem:[#allocation462_spill] sm:$0xff] %v10189_v43  ;;  %v2812_v28 = vmax.f32 %v2811_v63, %v10187_v31  ;;  %v3078_v11 = vmax.f32 %v3077_v56, %v10189_v43  ;;  %v10193_v45 = vpop.f32.mrb[247].mxu0  ;;  %v10195_v36 = vpop.f32.mrb[247].mxu1 }
 0x4fd   : > { %17314 = vst [vmem:[#allocation463_spill] sm:$0xff] %v10193_v45  ;;  %17315 = vst [vmem:[#allocation464_spill] sm:$0xff] %v10195_v36  ;;  %v2945_v59 = vmax.f32 %v2944_v13, %v10193_v45  ;;  %v3211_v5 = vmax.f32 %v3210_v26, %v10195_v36 }
 0x501   : > { %v10199_v52 = vpop.f32.mrb[248].mxu0  ;;  %v10201_v35 = vpop.f32.mrb[248].mxu1 }
 0x502   : > { %17316 = vst [vmem:[#allocation465_spill] sm:$0xff] %v10199_v52  ;;  %17317 = vst [vmem:[#allocation466_spill] sm:$0xff] %v10201_v35  ;;  %v2813_v58 = vmax.f32 %v2812_v28, %v10199_v52  ;;  %v3079_v10 = vmax.f32 %v3078_v11, %v10201_v35  ;;  %v10205_v33 = vpop.f32.mrb[249].mxu0  ;;  %v10207_v63 = vpop.f32.mrb[249].mxu1 }
 0x503   : > { %17318 = vst [vmem:[#allocation467_spill] sm:$0xff] %v10205_v33  ;;  %17319 = vst [vmem:[#allocation468_spill] sm:$0xff] %v10207_v63  ;;  %v2946_v56 = vmax.f32 %v2945_v59, %v10205_v33  ;;  %v3212_v43 = vmax.f32 %v3211_v5, %v10207_v63  ;;  %v10211_v31 = vpop.f32.mrb[250].mxu0  ;;  %v10213_v13 = vpop.f32.mrb[250].mxu1 }
 0x504   : > { %17320 = vst [vmem:[#allocation469_spill] sm:$0xff] %v10211_v31  ;;  %17321 = vst [vmem:[#allocation470_spill] sm:$0xff] %v10213_v13  ;;  %v2814_v26 = vmax.f32 %v2813_v58, %v10211_v31  ;;  %v3080_v36 = vmax.f32 %v3079_v10, %v10213_v13  ;;  %v10217_v45 = vpop.f32.mrb[251].mxu0  ;;  %v10219_v28 = vpop.f32.mrb[251].mxu1 }
 0x505   : > { %17322 = vst [vmem:[#allocation471_spill] sm:$0xff] %v10217_v45  ;;  %17323 = vst [vmem:[#allocation472_spill] sm:$0xff] %v10219_v28  ;;  %v2947_v11 = vmax.f32 %v2946_v56, %v10217_v45  ;;  %v3213_v35 = vmax.f32 %v3212_v43, %v10219_v28 }
 0x509   : > { %v10223_v52 = vpop.f32.mrb[252].mxu0  ;;  %v10225_v59 = vpop.f32.mrb[252].mxu1 }
 0x50a   : > { %17324 = vst [vmem:[#allocation473_spill] sm:$0xff] %v10223_v52  ;;  %17325 = vst [vmem:[#allocation474_spill] sm:$0xff] %v10225_v59  ;;  %v2815_v5 = vmax.f32 %v2814_v26, %v10223_v52  ;;  %v10229_v63 = vmax.f32 %v3080_v36, %v10225_v59  ;;  %v10231_v58 = vpop.f32.mrb[253].mxu0  ;;  %v10233_v10 = vpop.f32.mrb[253].mxu1 }
 0x50b   : > { %17327 = vst [vmem:[#allocation476_spill] sm:$0xff] %v10231_v58  ;;  %17328 = vst [vmem:[#allocation477_spill] sm:$0xff] %v10233_v10  ;;  %v10236_v33 = vmax.f32 %v2947_v11, %v10231_v58  ;;  %v10239_v56 = vmax.f32 %v3213_v35, %v10233_v10  ;;  %v10241_v43 = vpop.f32.mrb[254].mxu0  ;;  %v10366_v7 = vpop.f32.mrb[254].mxu1  ;;  %v17414_v35 = vld [vmem:[#allocation13_spill] sm:$0xff] }
 0x50c   : > { %17326 = vst [vmem:[#allocation475_spill] sm:$0xff] %v10229_v63  ;;  %17330 = vst [vmem:[#allocation479_spill] sm:$0xff] %v10241_v43  ;;  %v2816_v28 = vmax.f32 %v2815_v5, %v10241_v43  ;;  %v10764_v31 = vpop.f32.mrb[255].mxu0 }
 0x50d   : > { %17329 = vst [vmem:[#allocation478_spill] sm:$0xff] %v10239_v56  ;;  %17346 = vst [vmem:[#allocation481_spill] sm:$0xff] %v10366_v7  ;;  %v17351_v56 = vld [vmem:[#allocation225_spill] sm:$0xff] }
 0x50e   : > { %v2817_v45 = vrot.slane %v2816_v28, 4 }
 0x510   : > { %v2818_v13 = vmax.f32 %v2816_v28, %v2817_v45 }
 0x512   : > { %v2819_v26 = vrot.slane %v2818_v13, 2 }
 0x514   : > { %v2820_v52 = vmax.f32 %v2818_v13, %v2819_v26 }
 0x516   : > { %v2821_v36 = vrot.slane %v2820_v52, 1 }
 0x518   : > { %v10244_v59 = vmax.f32 %v2820_v52, %v2821_v36  ;;  %v17412_v36 = vld [vmem:[#allocation475_spill] sm:$0xff] }
 0x519   : > { %v3082_v58 = vmax.f32 %v17412_v36, %v10366_v7  ;;  %17541 = vst [vmem:[#allocation475_spill] sm:$0xff] %v10764_v31 }
 0x51a   : > { %17331 = vst [vmem:[#allocation480_spill] sm:$0xff] %v10244_v59  ;;  %v17542_v1 = vsub.f32 %v8565_v30, %v10244_v59  ;;  %v17543_v36 = vsub.f32 %v8573_v34, %v10244_v59  ;;  %v17546_v28 = vsub.f32 %v8621_v0, %v10244_v59  ;;  %v17547_v30 = vsub.f32 %v8633_v6, %v10244_v59 }
 0x51b   : > { %v3083_v26 = vrot.slane %v3082_v58, 4  ;;  %v17548_v34 = vsub.f32 %v8649_v15, %v10244_v59  ;;  %v17550_v0 = vsub.f32 %v8677_v38, %v10244_v59  ;;  %v17551_v6 = vsub.f32 %v8689_v53, %v10244_v59 }
 0x51c   : > { %v3734_v63 = vmul.f32 1.442695, %v17542_v1  ;;  %v3766_v7 = vmul.f32 1.442695, %v17546_v28  ;;  %v3774_v1 = vmul.f32 1.442695, %v17547_v30  ;;  %v17552_v15 = vsub.f32 %v8705_v8, %v10244_v59 }
 0x51d   : > { %v3084_v10 = vmax.f32 %v3082_v58, %v3083_v26  ;;  %v3742_v58 = vmul.f32 1.442695, %v17543_v36  ;;  %v17545_v26 = vsub.f32 %v8605_v51, %v10244_v59  ;;  %v17549_v51 = vsub.f32 %v8661_v23, %v10244_v59 }
 0x51e   : > { %6854 = vpow2.f32 %v3734_v63  ;;  %v3798_v63 = vmul.f32 1.442695, %v17550_v0  ;;  %v3806_v28 = vmul.f32 1.442695, %v17551_v6  ;;  %v17553_v23 = vsub.f32 %v8717_v22, %v10244_v59 }
 0x51f   : > { %v3085_v16 = vrot.slane %v3084_v10, 2  ;;  %v3758_v52 = vmul.f32 1.442695, %v17545_v26  ;;  %6856 = vpow2.f32 %v3742_v58  ;;  %v3790_v36 = vmul.f32 1.442695, %v17549_v51 }
 0x520   : > { %v3814_v58 = vmul.f32 1.442695, %v17552_v15  ;;  %v17554_v38 = vsub.f32 %v8733_v50, %v10244_v59  ;;  %v17555_v53 = vsub.f32 %v8745_v19, %v10244_v59  ;;  %v17557_v8 = vsub.f32 %v8761_v49, %v10244_v59 }
 0x521   : > { %v3086_v11 = vmax.f32 %v3084_v10, %v3085_v16  ;;  %v17544_v16 = vsub.f32 %v8593_v44, %v10244_v59  ;;  %v3782_v44 = vmul.f32 1.442695, %v17548_v34  ;;  %v17559_v22 = vsub.f32 %v8773_v29, %v10244_v59 }
 0x522   : > { %v3846_v26 = vmul.f32 1.442695, %v17557_v8  ;;  %v17561_v19 = vsub.f32 %v8789_v37, %v10244_v59  ;;  %v17563_v49 = vsub.f32 %v8801_v42, %v10244_v59  ;;  %v17565_v29 = vsub.f32 %v8817_v48, %v10244_v59 }
 0x523   : > { %v3087_v45 = vrot.slane %v3086_v11, 1  ;;  %v3854_v50 = vmul.f32 1.442695, %v17559_v22  ;;  %v17567_v37 = vsub.f32 %v8829_v4, %v10244_v59  ;;  %v17569_v42 = vsub.f32 %v8845_v40, %v10244_v59 }
 0x524   : > { %v3862_v34 = vmul.f32 1.442695, %v17561_v19  ;;  %v3870_v51 = vmul.f32 1.442695, %v17563_v49  ;;  %v3878_v0 = vmul.f32 1.442695, %v17565_v29  ;;  %v17571_v48 = vsub.f32 %v8857_v47, %v10244_v59 }
 0x525   : > { %v10506_v13 = vmax.f32 %v3086_v11, %v3087_v45  ;;  %v3750_v11 = vmul.f32 1.442695, %v17544_v16  ;;  %v3838_v16 = vmul.f32 1.442695, %v17555_v53  ;;  %v3886_v6 = vmul.f32 1.442695, %v17567_v37 }
 0x526   : > { %v3894_v15 = vmul.f32 1.442695, %v17569_v42  ;;  %v17573_v4 = vsub.f32 %v8873_v46, %v10244_v59  ;;  %v17575_v40 = vsub.f32 %v8885_v14, %v10244_v59  ;;  %v17577_v47 = vsub.f32 %v8901_v3, %v10244_v59  ;;  %v17641_v45 = vld [vmem:[#allocation185_spill] sm:$0xff] }
 0x527   : > { %17413 = vst [vmem:[#allocation225_spill] sm:$0xff] %v10506_v13  ;;  %6858 = vpow2.f32 %v3750_v11  ;;  %v17579_v46 = vsub.f32 %v8913_v20, %v10244_v59  ;;  %v17581_v14 = vsub.f32 %v8929_v32, %v10244_v59  ;;  %v17583_v3 = vsub.f32 %v8941_v18, %v10244_v59 }
 0x528   : > { %6860 = vpow2.f32 %v3758_v52  ;;  %v3822_v52 = vmul.f32 1.442695, %v17553_v23  ;;  %v10808_v11 = vpop.eup %6854  ;;  %v3902_v23 = vmul.f32 1.442695, %v17571_v48  ;;  %v3918_v53 = vmul.f32 1.442695, %v17575_v40 }
 0x529   : > { %6862 = vpow2.f32 %v3766_v7  ;;  %v3830_v7 = vmul.f32 1.442695, %v17554_v38  ;;  %17556 = vst [vmem:[#allocation13_spill] sm:$0xff] %v10808_v11  ;;  %v10813_v30 = vpop.eup %6856  ;;  %v3910_v38 = vmul.f32 1.442695, %v17573_v4  ;;  %v17585_v20 = vsub.f32 %v8957_v61, %v10244_v59 }
 0x52a   : > { %6864 = vpow2.f32 %v3774_v1  ;;  %17558 = vst [vmem:[#allocation482_spill] sm:$0xff] %v10813_v30  ;;  %v3926_v8 = vmul.f32 1.442695, %v17577_v47  ;;  %v3934_v22 = vmul.f32 1.442695, %v17579_v46  ;;  %v17587_v32 = vsub.f32 %v8969_v2, %v10244_v59 }
 0x52b   : > { %6866 = vpow2.f32 %v3782_v44  ;;  %v3942_v19 = vmul.f32 1.442695, %v17581_v14  ;;  %v3950_v49 = vmul.f32 1.442695, %v17583_v3  ;;  %v3958_v29 = vmul.f32 1.442695, %v17585_v20 }
 0x52c   : > { %6868 = vpow2.f32 %v3790_v36  ;;  %v3966_v37 = vmul.f32 1.442695, %v17587_v32  ;;  %v17589_v18 = vsub.f32 %v8985_v12, %v10244_v59  ;;  %v17591_v61 = vsub.f32 %v8997_v27, %v10244_v59 }
 0x52d   : > { %6870 = vpow2.f32 %v3798_v63  ;;  %v17593_v2 = vsub.f32 %v9013_v41, %v10244_v59  ;;  %v17595_v12 = vsub.f32 %v9025_v57, %v10244_v59  ;;  %v17597_v27 = vsub.f32 %v9041_v60, %v10244_v59 }
 0x52e   : > { %6872 = vpow2.f32 %v3806_v28  ;;  %v3974_v42 = vmul.f32 1.442695, %v17589_v18  ;;  %v3982_v48 = vmul.f32 1.442695, %v17591_v61  ;;  %v17599_v41 = vsub.f32 %v9053_v17, %v10244_v59 }
 0x52f   : > { %6874 = vpow2.f32 %v3814_v58  ;;  %v3990_v4 = vmul.f32 1.442695, %v17593_v2  ;;  %v3998_v40 = vmul.f32 1.442695, %v17595_v12  ;;  %v4006_v47 = vmul.f32 1.442695, %v17597_v27 }
 0x530   : > { %6876 = vpow2.f32 %v3822_v52  ;;  %v4014_v46 = vmul.f32 1.442695, %v17599_v41  ;;  %v17601_v57 = vsub.f32 %v9069_v21, %v10244_v59  ;;  %v17603_v60 = vsub.f32 %v9081_v62, %v10244_v59 }
 0x531   : > { %v10818_v1 = vpop.eup %6858  ;;  %6878 = vpow2.f32 %v3830_v7  ;;  %v17605_v17 = vsub.f32 %v9097_v25, %v10244_v59  ;;  %v17607_v21 = vsub.f32 %v9109_v55, %v10244_v59  ;;  %v17611_v25 = vsub.f32 %v9137_v9, %v10244_v59  ;;  %v17617_v9 = vld [vmem:[#allocation145_spill] sm:$0xff] }
 0x532   : > { %17560 = vst [vmem:[#allocation483_spill] sm:$0xff] %v10818_v1  ;;  %v10823_v44 = vpop.eup %6860  ;;  %6880 = vpow2.f32 %v3838_v16  ;;  %v4022_v14 = vmul.f32 1.442695, %v17601_v57  ;;  %v4030_v3 = vmul.f32 1.442695, %v17603_v60  ;;  %v17613_v55 = vsub.f32 %v9153_v24, %v10244_v59  ;;  %v17620_v24 = vld [vmem:[#allocation149_spill] sm:$0xff] }
 0x533   : > { %17562 = vst [vmem:[#allocation484_spill] sm:$0xff] %v10823_v44  ;;  %v10828_v36 = vpop.eup %6862  ;;  %6882 = vpow2.f32 %v3846_v26  ;;  %v17621_v60 = vsub.f32 %v17620_v24, %v10244_v59  ;;  %v17632_v24 = vld [vmem:[#allocation169_spill] sm:$0xff] }
 0x534   : > { %17564 = vst [vmem:[#allocation485_spill] sm:$0xff] %v10828_v36  ;;  %v10833_v63 = vpop.eup %6864  ;;  %6884 = vpow2.f32 %v3854_v50  ;;  %v4070_v12 = vmul.f32 1.442695, %v17613_v55  ;;  %v17629_v55 = vld [vmem:[#allocation165_spill] sm:$0xff] }
 0x535   : > { %17566 = vst [vmem:[#allocation486_spill] sm:$0xff] %v10833_v63  ;;  %v10838_v28 = vpop.eup %6866  ;;  %6886 = vpow2.f32 %v3862_v34 }
 0x536   : > { %17568 = vst [vmem:[#allocation487_spill] sm:$0xff] %v10838_v28  ;;  %v10843_v58 = vpop.eup %6868  ;;  %6888 = vpow2.f32 %v3870_v51 }
 0x537   : > { %17570 = vst [vmem:[#allocation488_spill] sm:$0xff] %v10843_v58  ;;  %v10848_v52 = vpop.eup %6870  ;;  %6890 = vpow2.f32 %v3878_v0 }
 0x538   : > { %17572 = vst [vmem:[#allocation489_spill] sm:$0xff] %v10848_v52  ;;  %v10853_v7 = vpop.eup %6872  ;;  %6892 = vpow2.f32 %v3886_v6 }
 0x539   : > { %17574 = vst [vmem:[#allocation490_spill] sm:$0xff] %v10853_v7  ;;  %v10858_v16 = vpop.eup %6874  ;;  %6894 = vpow2.f32 %v3894_v15 }
 0x53a   : > { %17576 = vst [vmem:[#allocation491_spill] sm:$0xff] %v10858_v16  ;;  %v10863_v26 = vpop.eup %6876  ;;  %6896 = vpow2.f32 %v3902_v23 }
 0x53b   : > { %17578 = vst [vmem:[#allocation492_spill] sm:$0xff] %v10863_v26  ;;  %v10868_v50 = vpop.eup %6878  ;;  %6898 = vpow2.f32 %v3910_v38 }
 0x53c   : > { %17580 = vst [vmem:[#allocation493_spill] sm:$0xff] %v10868_v50  ;;  %v10873_v34 = vpop.eup %6880  ;;  %6900 = vpow2.f32 %v3918_v53 }
 0x53d   : > { %17582 = vst [vmem:[#allocation494_spill] sm:$0xff] %v10873_v34  ;;  %v10878_v51 = vpop.eup %6882  ;;  %6902 = vpow2.f32 %v3926_v8 }
 0x53e   : > { %17584 = vst [vmem:[#allocation495_spill] sm:$0xff] %v10878_v51  ;;  %v10883_v0 = vpop.eup %6884  ;;  %6904 = vpow2.f32 %v3934_v22 }
 0x53f   : > { %17586 = vst [vmem:[#allocation496_spill] sm:$0xff] %v10883_v0  ;;  %v10888_v6 = vpop.eup %6886  ;;  %6906 = vpow2.f32 %v3942_v19 }
 0x540   : > { %17588 = vst [vmem:[#allocation497_spill] sm:$0xff] %v10888_v6  ;;  %v10893_v15 = vpop.eup %6888  ;;  %6908 = vpow2.f32 %v3950_v49  ;;  %v2949_v49 = vmax.f32 %v10236_v33, %v10764_v31  ;;  %v17609_v33 = vsub.f32 %v9125_v54, %v10244_v59  ;;  %v17615_v54 = vsub.f32 %v9165_v39, %v10244_v59 }
 0x541   : > { %17590 = vst [vmem:[#allocation498_spill] sm:$0xff] %v10893_v15  ;;  %v10898_v23 = vpop.eup %6890  ;;  %6910 = vpow2.f32 %v3958_v29  ;;  %v4038_v29 = vmul.f32 1.442695, %v17605_v17 }
 0x542   : > { %17592 = vst [vmem:[#allocation499_spill] sm:$0xff] %v10898_v23  ;;  %v10903_v38 = vpop.eup %6892  ;;  %6912 = vpow2.f32 %v3966_v37  ;;  %v4046_v37 = vmul.f32 1.442695, %v17607_v21  ;;  %v2950_v18 = vrot.slane %v2949_v49, 4  ;;  %v4078_v27 = vmul.f32 1.442695, %v17615_v54 }
 0x543   : > { %17594 = vst [vmem:[#allocation500_spill] sm:$0xff] %v10903_v38  ;;  %v10908_v53 = vpop.eup %6894  ;;  %6914 = vpow2.f32 %v3974_v42  ;;  %v4054_v42 = vmul.f32 1.442695, %v17609_v33  ;;  %v17630_v54 = vsub.f32 %v17629_v55, %v10244_v59  ;;  %v17639_v55 = vld [vmem:[#allocation181_spill] sm:$0xff] }
 0x544   : > { %17596 = vst [vmem:[#allocation501_spill] sm:$0xff] %v10908_v53  ;;  %v10913_v8 = vpop.eup %6896  ;;  %6916 = vpow2.f32 %v3982_v48  ;;  %v4062_v48 = vmul.f32 1.442695, %v17611_v25  ;;  %v2951_v2 = vmax.f32 %v2949_v49, %v2950_v18  ;;  %v17622_v49 = vld [vmem:[#allocation153_spill] sm:$0xff] }
 0x545   : > { %17598 = vst [vmem:[#allocation502_spill] sm:$0xff] %v10913_v8  ;;  %v10918_v22 = vpop.eup %6898  ;;  %6918 = vpow2.f32 %v3990_v4  ;;  %v17623_v17 = vsub.f32 %v17622_v49, %v10244_v59 }
 0x546   : > { %17600 = vst [vmem:[#allocation503_spill] sm:$0xff] %v10918_v22  ;;  %v10923_v19 = vpop.eup %6900  ;;  %6920 = vpow2.f32 %v3998_v40 }
 0x547   : > { %17602 = vst [vmem:[#allocation504_spill] sm:$0xff] %v10923_v19  ;;  %v10930_v20 = vpop.eup %6902  ;;  %6922 = vpow2.f32 %v4006_v47  ;;  %v2952_v47 = vrot.slane %v2951_v2, 2  ;;  %v4102_v39 = vmul.f32 1.442695, %v17623_v17 }
 0x548   : > { %17604 = vst [vmem:[#allocation505_spill] sm:$0xff] %v10930_v20  ;;  %v10935_v32 = vpop.eup %6904  ;;  %6924 = vpow2.f32 %v4014_v46  ;;  %v17618_v46 = vsub.f32 %v17617_v9, %v10244_v59  ;;  %v4126_v9 = vmul.f32 1.442695, %v17630_v54  ;;  %v17640_v54 = vsub.f32 %v17639_v55, %v10244_v59  ;;  %v17650_v55 = vld [vmem:[#allocation197_spill] sm:$0xff] }
 0x549   : > { %17606 = vst [vmem:[#allocation506_spill] sm:$0xff] %v10935_v32  ;;  %v10940_v62 = vpop.eup %6906  ;;  %6926 = vpow2.f32 %v4022_v14 }
 0x54a   : > { %17608 = vst [vmem:[#allocation507_spill] sm:$0xff] %v10940_v62  ;;  %v10945_v61 = vpop.eup %6908  ;;  %6928 = vpow2.f32 %v4030_v3  ;;  %v4086_v57 = vmul.f32 1.442695, %v17618_v46  ;;  %v4094_v3 = vmul.f32 1.442695, %v17621_v60 }
 0x54b   : > { %17610 = vst [vmem:[#allocation508_spill] sm:$0xff] %v10945_v61  ;;  %v10950_v4 = vpop.eup %6910  ;;  %6930 = vpow2.f32 %v4038_v29  ;;  %v2953_v29 = vmax.f32 %v2951_v2, %v2952_v47  ;;  %v17633_v2 = vsub.f32 %v17632_v24, %v10244_v59  ;;  %v17642_v24 = vsub.f32 %v17641_v45, %v10244_v59 }
 0x54c   : > { %17612 = vst [vmem:[#allocation509_spill] sm:$0xff] %v10950_v4  ;;  %v10955_v40 = vpop.eup %6912  ;;  %6932 = vpow2.f32 %v4046_v37  ;;  %v17625_v37 = vld [vmem:[#allocation157_spill] sm:$0xff]  ;;  %v17651_v45 = vsub.f32 %v17650_v55, %v10244_v59 }
 0x54d   : > { %17614 = vst [vmem:[#allocation510_spill] sm:$0xff] %v10955_v40  ;;  %v10960_v41 = vpop.eup %6914  ;;  %6934 = vpow2.f32 %v4054_v42  ;;  %v17626_v18 = vsub.f32 %v17625_v37, %v10244_v59  ;;  %v17627_v42 = vld [vmem:[#allocation161_spill] sm:$0xff]  ;;  %v4134_v47 = vmul.f32 1.442695, %v17633_v2  ;;  %v2954_v17 = vrot.slane %v2953_v29, 1 }
 0x54e   : > { %17616 = vst [vmem:[#allocation511_spill] sm:$0xff] %v10960_v41  ;;  %v10965_v14 = vpop.eup %6916  ;;  %6936 = vpow2.f32 %v4062_v48  ;;  %v17628_v25 = vsub.f32 %v17627_v42, %v10244_v59  ;;  %v4166_v2 = vmul.f32 1.442695, %v17642_v24  ;;  %v17652_v24 = vld [vmem:[#allocation201_spill] sm:$0xff] }
 0x54f   : > { %17619 = vst [vmem:[#allocation145_spill] sm:$0xff] %v10965_v14  ;;  %v10973_v21 = vpop.eup %6918  ;;  %6938 = vpow2.f32 %v4070_v12  ;;  %v4110_v33 = vmul.f32 1.442695, %v17626_v18  ;;  %v17634_v12 = vld [vmem:[#allocation173_spill] sm:$0xff] }
 0x550   : > { %17624 = vst [vmem:[#allocation149_spill] sm:$0xff] %v10973_v21  ;;  %v4118_v48 = vmul.f32 1.442695, %v17628_v25  ;;  %v10984_v46 = vpop.eup %6920  ;;  %6940 = vpow2.f32 %v4078_v27  ;;  %v17635_v60 = vsub.f32 %v17634_v12, %v10244_v59  ;;  %v17637_v18 = vld [vmem:[#allocation177_spill] sm:$0xff]  ;;  %v4158_v27 = vmul.f32 1.442695, %v17640_v54 }
 0x551   : > { %17631 = vst [vmem:[#allocation153_spill] sm:$0xff] %v10984_v46  ;;  %v10992_v37 = vpop.eup %6922  ;;  %6942 = vpow2.f32 %v4086_v57  ;;  %v17638_v42 = vsub.f32 %v17637_v18, %v10244_v59  ;;  %v17644_v12 = vld [vmem:[#allocation189_spill] sm:$0xff]  ;;  %v4190_v54 = vmul.f32 1.442695, %v17651_v45 }
 0x552   : > { %v4142_v49 = vmul.f32 1.442695, %v17635_v60  ;;  %17636 = vst [vmem:[#allocation157_spill] sm:$0xff] %v10992_v37  ;;  %v11003_v10 = vpop.eup %6924  ;;  %6944 = vpow2.f32 %v4094_v3  ;;  %v17645_v60 = vsub.f32 %v17644_v12, %v10244_v59  ;;  %v17646_v57 = vld [vmem:[#allocation193_spill] sm:$0xff]  ;;  %v17653_v3 = vsub.f32 %v17652_v24, %v10244_v59 }
 0x553   : > { %v4150_v25 = vmul.f32 1.442695, %v17638_v42  ;;  %17643 = vst [vmem:[#allocation161_spill] sm:$0xff] %v11003_v10  ;;  %v17647_v5 = vsub.f32 %v17646_v57, %v10244_v59  ;;  %v11011_v42 = vmax.f32 %v2953_v29, %v2954_v17  ;;  %v11013_v37 = vpop.eup %6926  ;;  %6946 = vpow2.f32 %v4102_v39  ;;  %v17654_v46 = vld [vmem:[#allocation205_spill] sm:$0xff]  ;;  %v17659_v39 = vld [vmem:[#allocation14_spill] sm:$0xff] }
 0x554   : > { %v4174_v43 = vmul.f32 1.442695, %v17645_v60  ;;  %17649 = vst [vmem:[#allocation169_spill] sm:$0xff] %v11013_v37  ;;  %v4198_v10 = vmul.f32 1.442695, %v17653_v3  ;;  %v17655_v12 = vsub.f32 %v17654_v46, %v10244_v59  ;;  %v11024_v21 = vpop.eup %6928  ;;  %6948 = vpow2.f32 %v4110_v33  ;;  %v17660_v55 = vld [vmem:[#allocation17_spill] sm:$0xff] }
 0x555   : > { %v4182_v18 = vmul.f32 1.442695, %v17647_v5  ;;  %17648 = vst [vmem:[#allocation165_spill] sm:$0xff] %v11011_v42  ;;  %17656 = vst [vmem:[#allocation173_spill] sm:$0xff] %v11024_v21  ;;  %v17657_v5 = vld [vmem:[#allocation209_spill] sm:$0xff]  ;;  %v11035_v24 = vpop.eup %6930  ;;  %6950 = vpow2.f32 %v4118_v48  ;;  %v17664_v33 = vld [vmem:[#allocation20_spill] sm:$0xff] }
 0x556   : > { %v4206_v60 = vmul.f32 1.442695, %v17655_v12  ;;  %v17658_v29 = vsub.f32 %v17657_v5, %v10244_v59  ;;  %17661 = vst [vmem:[#allocation177_spill] sm:$0xff] %v11035_v24  ;;  %v17662_v3 = vld [vmem:[#allocation213_spill] sm:$0xff]  ;;  %v17665_v5 = vld [vmem:[#allocation23_spill] sm:$0xff]  ;;  %v11046_v37 = vpop.eup %6932  ;;  %6952 = vpow2.f32 %v4126_v9  ;;  %v17669_v48 = vld [vmem:[#allocation26_spill] sm:$0xff] }
 0x557   : > { %v17663_v46 = vsub.f32 %v17662_v3, %v10244_v59  ;;  %17666 = vst [vmem:[#allocation181_spill] sm:$0xff] %v11046_v37  ;;  %v17667_v57 = vld [vmem:[#allocation217_spill] sm:$0xff]  ;;  %v11057_v41 = vpop.eup %6934  ;;  %6954 = vpow2.f32 %v4134_v47  ;;  %v17674_v9 = vld [vmem:[#allocation32_spill] sm:$0xff] }
 0x558   : > { %v11029_v17 = vmul.f32 1.442695, %v17658_v29  ;;  %v17668_v45 = vsub.f32 %v17667_v57, %v10244_v59  ;;  %v17670_v3 = vld [vmem:[#allocation29_spill] sm:$0xff]  ;;  %17671 = vst [vmem:[#allocation185_spill] sm:$0xff] %v11057_v41  ;;  %v11068_v4 = vpop.eup %6936  ;;  %6956 = vpow2.f32 %v4142_v49 }
 0x559   : > { %v11040_v12 = vmul.f32 1.442695, %v17663_v46  ;;  %v17672_v21 = vld [vmem:[#allocation221_spill] sm:$0xff]  ;;  %17676 = vst [vmem:[#allocation189_spill] sm:$0xff] %v11068_v4  ;;  %v17677_v46 = vsub.f32 %v17351_v56, %v10244_v59  ;;  %v11079_v61 = vpop.eup %6938  ;;  %6958 = vpow2.f32 %v4150_v25 }
 0x55a   : > { %v11051_v14 = vmul.f32 1.442695, %v17668_v45  ;;  %v17673_v29 = vsub.f32 %v17672_v21, %v10244_v59  ;;  %17680 = vst [vmem:[#allocation193_spill] sm:$0xff] %v11079_v61  ;;  %v17681_v37 = vld [vmem:[#allocation229_spill] sm:$0xff]  ;;  %v11090_v57 = vpop.eup %6940  ;;  %6960 = vpow2.f32 %v4158_v27 }
 0x55b   : > { %v11073_v24 = vmul.f32 1.442695, %v17677_v46  ;;  %v17682_v45 = vsub.f32 %v17681_v37, %v10244_v59  ;;  %17685 = vst [vmem:[#allocation197_spill] sm:$0xff] %v11090_v57  ;;  %v17686_v41 = vld [vmem:[#allocation233_spill] sm:$0xff]  ;;  %v11101_v47 = vpop.eup %6942  ;;  %6962 = vpow2.f32 %v4166_v2 }
 0x55c   : > { %v11062_v40 = vmul.f32 1.442695, %v17673_v29  ;;  %v17687_v29 = vsub.f32 %v17686_v41, %v10244_v59  ;;  %17690 = vst [vmem:[#allocation201_spill] sm:$0xff] %v11101_v47  ;;  %v17691_v4 = vld [vmem:[#allocation237_spill] sm:$0xff]  ;;  %v11112_v49 = vpop.eup %6944  ;;  %6964 = vpow2.f32 %v4174_v43 }
 0x55d   : > { %v11084_v62 = vmul.f32 1.442695, %v17682_v45  ;;  %v17692_v46 = vsub.f32 %v17691_v4, %v10244_v59  ;;  %17695 = vst [vmem:[#allocation205_spill] sm:$0xff] %v11112_v49  ;;  %v17696_v61 = vld [vmem:[#allocation241_spill] sm:$0xff]  ;;  %v11123_v25 = vpop.eup %6946  ;;  %6966 = vpow2.f32 %v4182_v18 }
 0x55e   : > { %v11095_v21 = vmul.f32 1.442695, %v17687_v29  ;;  %v17697_v45 = vsub.f32 %v17696_v61, %v10244_v59  ;;  %17700 = vst [vmem:[#allocation209_spill] sm:$0xff] %v11123_v25  ;;  %v17701_v57 = vld [vmem:[#allocation245_spill] sm:$0xff]  ;;  %v11134_v27 = vpop.eup %6948  ;;  %6968 = vpow2.f32 %v4190_v54 }
 0x55f   : > { %v11106_v56 = vmul.f32 1.442695, %v17692_v46  ;;  %v17702_v29 = vsub.f32 %v17701_v57, %v10244_v59  ;;  %17705 = vst [vmem:[#allocation14_spill] sm:$0xff] %v11134_v27  ;;  %v17706_v47 = vld [vmem:[#allocation249_spill] sm:$0xff]  ;;  %v11145_v2 = vpop.eup %6950  ;;  %6970 = vpow2.f32 %v4198_v10 }
 0x560   : > { %v11117_v37 = vmul.f32 1.442695, %v17697_v45  ;;  %v17707_v46 = vsub.f32 %v17706_v47, %v10244_v59  ;;  %17710 = vst [vmem:[#allocation17_spill] sm:$0xff] %v11145_v2  ;;  %v17711_v49 = vld [vmem:[#allocation253_spill] sm:$0xff]  ;;  %v11156_v43 = vpop.eup %6952  ;;  %6972 = vpow2.f32 %v4206_v60 }
 0x561   : > { %v11128_v41 = vmul.f32 1.442695, %v17702_v29  ;;  %v17712_v45 = vsub.f32 %v17711_v49, %v10244_v59  ;;  %17715 = vst [vmem:[#allocation213_spill] sm:$0xff] %v11156_v43  ;;  %v17716_v25 = vld [vmem:[#allocation257_spill] sm:$0xff]  ;;  %v11167_v18 = vpop.eup %6954  ;;  %6974 = vpow2.f32 %v11029_v17 }
 0x562   : > { %v11139_v4 = vmul.f32 1.442695, %v17707_v46  ;;  %v17717_v29 = vsub.f32 %v17716_v25, %v10244_v59  ;;  %17720 = vst [vmem:[#allocation20_spill] sm:$0xff] %v11167_v18  ;;  %v17721_v27 = vld [vmem:[#allocation261_spill] sm:$0xff]  ;;  %v11179_v54 = vpop.eup %6956  ;;  %6976 = vpow2.f32 %v11040_v12 }
 0x563   : > { %v11150_v61 = vmul.f32 1.442695, %v17712_v45  ;;  %v17722_v46 = vsub.f32 %v17721_v27, %v10244_v59  ;;  %17725 = vst [vmem:[#allocation23_spill] sm:$0xff] %v11179_v54  ;;  %v17726_v45 = vld [vmem:[#allocation265_spill] sm:$0xff]  ;;  %v11191_v10 = vpop.eup %6958  ;;  %6978 = vpow2.f32 %v11051_v14 }
 0x564   : > { %v11161_v57 = vmul.f32 1.442695, %v17717_v29  ;;  %v17727_v2 = vsub.f32 %v17726_v45, %v10244_v59  ;;  %17730 = vst [vmem:[#allocation217_spill] sm:$0xff] %v11191_v10  ;;  %v17731_v47 = vld [vmem:[#allocation269_spill] sm:$0xff]  ;;  %v11203_v60 = vpop.eup %6960  ;;  %6980 = vpow2.f32 %v11062_v40 }
 0x565   : > { %v11173_v43 = vmul.f32 1.442695, %v17722_v46  ;;  %v17732_v25 = vsub.f32 %v17731_v47, %v10244_v59  ;;  %17735 = vst [vmem:[#allocation26_spill] sm:$0xff] %v11203_v60  ;;  %v17736_v49 = vld [vmem:[#allocation273_spill] sm:$0xff]  ;;  %v11215_v17 = vpop.eup %6962  ;;  %6982 = vpow2.f32 %v11073_v24 }
 0x566   : > { %v11185_v18 = vmul.f32 1.442695, %v17727_v2  ;;  %v17737_v27 = vsub.f32 %v17736_v49, %v10244_v59  ;;  %17740 = vst [vmem:[#allocation29_spill] sm:$0xff] %v11215_v17  ;;  %v17741_v29 = vld [vmem:[#allocation277_spill] sm:$0xff]  ;;  %v11227_v12 = vpop.eup %6964  ;;  %6984 = vpow2.f32 %v11084_v62 }
 0x567   : > { %v11197_v54 = vmul.f32 1.442695, %v17732_v25  ;;  %v17742_v45 = vsub.f32 %v17741_v29, %v10244_v59  ;;  %17745 = vst [vmem:[#allocation221_spill] sm:$0xff] %v11227_v12  ;;  %v17746_v46 = vld [vmem:[#allocation281_spill] sm:$0xff]  ;;  %v11239_v14 = vpop.eup %6966  ;;  %6986 = vpow2.f32 %v11095_v21 }
 0x568   : > { %v11209_v10 = vmul.f32 1.442695, %v17737_v27  ;;  %v17747_v47 = vsub.f32 %v17746_v46, %v10244_v59  ;;  %17750 = vst [vmem:[#allocation32_spill] sm:$0xff] %v11239_v14  ;;  %v17751_v2 = vld [vmem:[#allocation285_spill] sm:$0xff]  ;;  %v11251_v40 = vpop.eup %6968  ;;  %6988 = vpow2.f32 %v11106_v56 }
 0x569   : > { %v11221_v60 = vmul.f32 1.442695, %v17742_v45  ;;  %v17752_v49 = vsub.f32 %v17751_v2, %v10244_v59  ;;  %17755 = vst [vmem:[#allocation229_spill] sm:$0xff] %v11251_v40  ;;  %v17756_v25 = vld [vmem:[#allocation289_spill] sm:$0xff]  ;;  %v11263_v24 = vpop.eup %6970  ;;  %6990 = vpow2.f32 %v11117_v37 }
 0x56a   : > { %v11233_v17 = vmul.f32 1.442695, %v17747_v47  ;;  %v17757_v29 = vsub.f32 %v17756_v25, %v10244_v59  ;;  %17760 = vst [vmem:[#allocation233_spill] sm:$0xff] %v11263_v24  ;;  %v17761_v27 = vld [vmem:[#allocation293_spill] sm:$0xff]  ;;  %v11275_v62 = vpop.eup %6972  ;;  %6992 = vpow2.f32 %v11128_v41 }
 0x56b   : > { %v11245_v12 = vmul.f32 1.442695, %v17752_v49  ;;  %v17762_v46 = vsub.f32 %v17761_v27, %v10244_v59  ;;  %17765 = vst [vmem:[#allocation237_spill] sm:$0xff] %v11275_v62  ;;  %v17766_v45 = vld [vmem:[#allocation297_spill] sm:$0xff]  ;;  %v11287_v21 = vpop.eup %6974  ;;  %6994 = vpow2.f32 %v11139_v4 }
 0x56c   : > { %v11257_v14 = vmul.f32 1.442695, %v17757_v29  ;;  %v17767_v2 = vsub.f32 %v17766_v45, %v10244_v59  ;;  %17770 = vst [vmem:[#allocation241_spill] sm:$0xff] %v11287_v21  ;;  %v17771_v47 = vld [vmem:[#allocation301_spill] sm:$0xff]  ;;  %v11299_v56 = vpop.eup %6976  ;;  %6996 = vpow2.f32 %v11150_v61 }
 0x56d   : > { %v11269_v40 = vmul.f32 1.442695, %v17762_v46  ;;  %v17772_v25 = vsub.f32 %v17771_v47, %v10244_v59  ;;  %17775 = vst [vmem:[#allocation245_spill] sm:$0xff] %v11299_v56  ;;  %v17776_v49 = vld [vmem:[#allocation305_spill] sm:$0xff]  ;;  %v11311_v37 = vpop.eup %6978  ;;  %6998 = vpow2.f32 %v11161_v57 }
 0x56e   : > { %v11281_v24 = vmul.f32 1.442695, %v17767_v2  ;;  %v17777_v27 = vsub.f32 %v17776_v49, %v10244_v59  ;;  %17780 = vst [vmem:[#allocation249_spill] sm:$0xff] %v11311_v37  ;;  %v17781_v29 = vld [vmem:[#allocation309_spill] sm:$0xff]  ;;  %v11323_v41 = vpop.eup %6980  ;;  %7000 = vpow2.f32 %v11173_v43  ;;  %v17793_v43 = vld [vmem:[#allocation187_spill] sm:$0xff] }
 0x56f   : > { %v11293_v62 = vmul.f32 1.442695, %v17772_v25  ;;  %v17782_v45 = vsub.f32 %v17781_v29, %v10244_v59  ;;  %17785 = vst [vmem:[#allocation253_spill] sm:$0xff] %v11323_v41  ;;  %v17786_v46 = vld [vmem:[#allocation313_spill] sm:$0xff]  ;;  %v11335_v4 = vpop.eup %6982  ;;  %7002 = vpow2.f32 %v11185_v18 }
 0x570   : > { %v11305_v21 = vmul.f32 1.442695, %v17777_v27  ;;  %v17787_v47 = vsub.f32 %v17786_v46, %v10244_v59  ;;  %17790 = vst [vmem:[#allocation257_spill] sm:$0xff] %v11335_v4  ;;  %v17791_v2 = vld [vmem:[#allocation317_spill] sm:$0xff]  ;;  %v11347_v61 = vpop.eup %6984  ;;  %7004 = vpow2.f32 %v11197_v54  ;;  %v4758_v27 = vadd.f32 %v10813_v30, %v10808_v11 }
 0x571   : > { %v11317_v56 = vmul.f32 1.442695, %v17782_v45  ;;  %v17792_v49 = vsub.f32 %v17791_v2, %v10244_v59  ;;  %17795 = vst [vmem:[#allocation261_spill] sm:$0xff] %v11347_v61  ;;  %v17796_v25 = vld [vmem:[#allocation321_spill] sm:$0xff]  ;;  %v11359_v57 = vpop.eup %6986  ;;  %7006 = vpow2.f32 %v11209_v10 }
 0x572   : > { %v11329_v37 = vmul.f32 1.442695, %v17787_v47  ;;  %v17794_v47 = vld [vmem:[#allocation191_spill] sm:$0xff]  ;;  %v17797_v29 = vsub.f32 %v17796_v25, %v10244_v59  ;;  %17800 = vst [vmem:[#allocation265_spill] sm:$0xff] %v11359_v57  ;;  %v11368_v61 = vpop.eup %6988  ;;  %7008 = vpow2.f32 %v11221_v60  ;;  %v17804_v2 = vld [vmem:[#allocation325_spill] sm:$0xff] }
 0x573   : > { %v11341_v41 = vmul.f32 1.442695, %v17792_v49  ;;  %17803 = vst [vmem:[#allocation269_spill] sm:$0xff] %v11368_v61  ;;  %v17805_v45 = vsub.f32 %v17804_v2, %v10244_v59  ;;  %v11378_v11 = vpop.eup %6990  ;;  %7010 = vpow2.f32 %v11233_v17  ;;  %v17809_v46 = vld [vmem:[#allocation329_spill] sm:$0xff]  ;;  %v17811_v60 = vld [vmem:[#allocation219_spill] sm:$0xff] }
 0x574   : > { %v11353_v4 = vmul.f32 1.442695, %v17797_v29  ;;  %17808 = vst [vmem:[#allocation273_spill] sm:$0xff] %v11378_v11  ;;  %v17810_v29 = vsub.f32 %v17809_v46, %v10244_v59  ;;  %v11388_v54 = vpop.eup %6992  ;;  %7012 = vpow2.f32 %v11245_v12  ;;  %v17814_v10 = vld [vmem:[#allocation333_spill] sm:$0xff]  ;;  %v17816_v17 = vld [vmem:[#allocation227_spill] sm:$0xff] }
 0x575   : > { %v4446_v49 = vmul.f32 1.442695, %v17805_v45  ;;  %17813 = vst [vmem:[#allocation277_spill] sm:$0xff] %v11388_v54  ;;  %v17815_v30 = vsub.f32 %v17814_v10, %v10244_v59  ;;  %v11398_v57 = vpop.eup %6994  ;;  %7014 = vpow2.f32 %v11257_v14  ;;  %v4759_v45 = vadd.f32 %v10818_v1, %v4758_v27  ;;  %v17827_v54 = vld [vmem:[#allocation341_spill] sm:$0xff] }
 0x576   : > { %v4454_v61 = vmul.f32 1.442695, %v17810_v29  ;;  %17818 = vst [vmem:[#allocation281_spill] sm:$0xff] %v11398_v57  ;;  %v11406_v10 = vpop.eup %6996  ;;  %7016 = vpow2.f32 %v11269_v40  ;;  %v17828_v2 = vsub.f32 %v17827_v54, %v10244_v59  ;;  %v17829_v40 = vld [vmem:[#allocation251_spill] sm:$0xff]  ;;  %v17832_v46 = vld [vmem:[#allocation345_spill] sm:$0xff] }
 0x577   : > { %v4462_v11 = vmul.f32 1.442695, %v17815_v30  ;;  %17821 = vst [vmem:[#allocation285_spill] sm:$0xff] %v11406_v10  ;;  %v17822_v30 = vld [vmem:[#allocation337_spill] sm:$0xff]  ;;  %v11416_v1 = vpop.eup %6998  ;;  %7018 = vpow2.f32 %v11281_v24  ;;  %v17833_v27 = vsub.f32 %v17832_v46, %v10244_v59  ;;  %v17834_v24 = vld [vmem:[#allocation259_spill] sm:$0xff] }
 0x578   : > { %v17823_v18 = vsub.f32 %v17822_v30, %v10244_v59  ;;  %17826 = vst [vmem:[#allocation289_spill] sm:$0xff] %v11416_v1  ;;  %v4478_v10 = vmul.f32 1.442695, %v17828_v2  ;;  %v11426_v25 = vpop.eup %7000  ;;  %7020 = vpow2.f32 %v11293_v62  ;;  %v17850_v54 = vld [vmem:[#allocation357_spill] sm:$0xff]  ;;  %v17855_v62 = vld [vmem:[#allocation299_spill] sm:$0xff] }
 0x579   : > { %17831 = vst [vmem:[#allocation293_spill] sm:$0xff] %v11426_v25  ;;  %v4486_v1 = vmul.f32 1.442695, %v17833_v27  ;;  %v11436_v57 = vpop.eup %7002  ;;  %7022 = vpow2.f32 %v11305_v21  ;;  %v17840_v27 = vld [vmem:[#allocation349_spill] sm:$0xff] }
 0x57a   : > { %v4470_v29 = vmul.f32 1.442695, %v17823_v18  ;;  %17836 = vst [vmem:[#allocation297_spill] sm:$0xff] %v11436_v57  ;;  %v4760_v18 = vadd.f32 %v10823_v44, %v4759_v45  ;;  %v11444_v46 = vpop.eup %7004  ;;  %7024 = vpow2.f32 %v11317_v56  ;;  %v17841_v14 = vsub.f32 %v17840_v27, %v10244_v59  ;;  %v17845_v25 = vld [vmem:[#allocation353_spill] sm:$0xff]  ;;  %v17847_v56 = vld [vmem:[#allocation283_spill] sm:$0xff] }
 0x57b   : > { %17839 = vst [vmem:[#allocation301_spill] sm:$0xff] %v11444_v46  ;;  %v11454_v44 = vpop.eup %7006  ;;  %7026 = vpow2.f32 %v11329_v37  ;;  %v17846_v30 = vsub.f32 %v17845_v25, %v10244_v59  ;;  %v17851_v45 = vsub.f32 %v17850_v54, %v10244_v59 }
 0x57c   : > { %v4494_v2 = vmul.f32 1.442695, %v17841_v14  ;;  %17844 = vst [vmem:[#allocation305_spill] sm:$0xff] %v11454_v44  ;;  %v11464_v12 = vpop.eup %7008  ;;  %7028 = vpow2.f32 %v11341_v41  ;;  %v4761_v14 = vadd.f32 %v10828_v36, %v4760_v18  ;;  %v17881_v41 = vld [vmem:[#allocation377_spill] sm:$0xff] }
 0x57d   : > { %v4502_v46 = vmul.f32 1.442695, %v17846_v30  ;;  %17849 = vst [vmem:[#allocation309_spill] sm:$0xff] %v11464_v12  ;;  %v4510_v44 = vmul.f32 1.442695, %v17851_v45  ;;  %v11474_v57 = vpop.eup %7010  ;;  %7030 = vpow2.f32 %v11353_v4  ;;  %v17858_v45 = vld [vmem:[#allocation361_spill] sm:$0xff] }
 0x57e   : > { %17854 = vst [vmem:[#allocation313_spill] sm:$0xff] %v11474_v57  ;;  %v11482_v54 = vpop.eup %7012  ;;  %7032 = vpow2.f32 %v4446_v49  ;;  %v17859_v21 = vsub.f32 %v17858_v45, %v10244_v59  ;;  %v17863_v12 = vld [vmem:[#allocation365_spill] sm:$0xff]  ;;  %v4762_v49 = vadd.f32 %v10833_v63, %v4761_v14  ;;  %v17873_v45 = vld [vmem:[#allocation331_spill] sm:$0xff]  ;;  %v17882_v63 = vsub.f32 %v17881_v41, %v10244_v59 }
 0x57f   : > { %17857 = vst [vmem:[#allocation317_spill] sm:$0xff] %v11482_v54  ;;  %v11491_v18 = vpop.eup %7014  ;;  %7034 = vpow2.f32 %v4454_v61  ;;  %v17864_v36 = vsub.f32 %v17863_v12, %v10244_v59  ;;  %v17868_v57 = vld [vmem:[#allocation369_spill] sm:$0xff] }
 0x580   : > { %v4518_v37 = vmul.f32 1.442695, %v17859_v21  ;;  %17862 = vst [vmem:[#allocation187_spill] sm:$0xff] %v11491_v18  ;;  %v11500_v21 = vpop.eup %7016  ;;  %7036 = vpow2.f32 %v4462_v11  ;;  %v17869_v30 = vsub.f32 %v17868_v57, %v10244_v59  ;;  %v17870_v18 = vld [vmem:[#allocation323_spill] sm:$0xff]  ;;  %v17876_v57 = vld [vmem:[#allocation373_spill] sm:$0xff] }
 0x581   : > { %v4526_v27 = vmul.f32 1.442695, %v17864_v36  ;;  %17867 = vst [vmem:[#allocation191_spill] sm:$0xff] %v11500_v21  ;;  %v11509_v36 = vpop.eup %7018  ;;  %7038 = vpow2.f32 %v4470_v29  ;;  %v4550_v21 = vmul.f32 1.442695, %v17882_v63  ;;  %v17886_v4 = vld [vmem:[#allocation381_spill] sm:$0xff] }
 0x582   : > { %v4534_v25 = vmul.f32 1.442695, %v17869_v30  ;;  %17872 = vst [vmem:[#allocation321_spill] sm:$0xff] %v11509_v36  ;;  %v11516_v54 = vpop.eup %7020  ;;  %7040 = vpow2.f32 %v4478_v10  ;;  %v17877_v30 = vsub.f32 %v17876_v57, %v10244_v59  ;;  %v17887_v12 = vsub.f32 %v17886_v4, %v10244_v59  ;;  %v17891_v57 = vld [vmem:[#allocation363_spill] sm:$0xff]  ;;  %v17894_v4 = vld [vmem:[#allocation385_spill] sm:$0xff] }
 0x583   : > { %17875 = vst [vmem:[#allocation325_spill] sm:$0xff] %v11516_v54  ;;  %v11525_v14 = vpop.eup %7022  ;;  %7042 = vpow2.f32 %v4486_v1  ;;  %v4763_v10 = vadd.f32 %v10838_v28, %v4762_v49  ;;  %v17899_v11 = vld [vmem:[#allocation389_spill] sm:$0xff] }
 0x584   : > { %v4542_v61 = vmul.f32 1.442695, %v17877_v30  ;;  %17880 = vst [vmem:[#allocation329_spill] sm:$0xff] %v11525_v14  ;;  %v11534_v30 = vpop.eup %7024  ;;  %7044 = vpow2.f32 %v4494_v2  ;;  %v4558_v36 = vmul.f32 1.442695, %v17887_v12  ;;  %v17888_v14 = vld [vmem:[#allocation355_spill] sm:$0xff]  ;;  %v17895_v12 = vsub.f32 %v17894_v4, %v10244_v59 }
 0x585   : > { %17885 = vst [vmem:[#allocation219_spill] sm:$0xff] %v11534_v30  ;;  %v11543_v63 = vpop.eup %7026  ;;  %7046 = vpow2.f32 %v4502_v46  ;;  %v17900_v28 = vsub.f32 %v17899_v11, %v10244_v59  ;;  %v17904_v29 = vld [vmem:[#allocation393_spill] sm:$0xff] }
 0x586   : > { %17890 = vst [vmem:[#allocation333_spill] sm:$0xff] %v11543_v63  ;;  %v11550_v54 = vpop.eup %7028  ;;  %7048 = vpow2.f32 %v4510_v44  ;;  %v4566_v1 = vmul.f32 1.442695, %v17895_v12  ;;  %v17905_v41 = vsub.f32 %v17904_v29, %v10244_v59  ;;  %v4764_v44 = vadd.f32 %v10843_v58, %v4763_v10  ;;  %v17912_v29 = vld [vmem:[#allocation397_spill] sm:$0xff] }
 0x587   : > { %17893 = vst [vmem:[#allocation227_spill] sm:$0xff] %v11550_v54  ;;  %v11559_v49 = vpop.eup %7030  ;;  %7050 = vpow2.f32 %v4518_v37  ;;  %v4574_v30 = vmul.f32 1.442695, %v17900_v28  ;;  %v17917_v2 = vld [vmem:[#allocation401_spill] sm:$0xff] }
 0x588   : > { %17898 = vst [vmem:[#allocation337_spill] sm:$0xff] %v11559_v49  ;;  %v11568_v12 = vpop.eup %7032  ;;  %7052 = vpow2.f32 %v4526_v27  ;;  %v4582_v63 = vmul.f32 1.442695, %v17905_v41  ;;  %v17913_v41 = vsub.f32 %v17912_v29, %v10244_v59  ;;  %v17918_v4 = vsub.f32 %v17917_v2, %v10244_v59  ;;  %v17922_v46 = vld [vmem:[#allocation405_spill] sm:$0xff] }
 0x589   : > { %17903 = vst [vmem:[#allocation341_spill] sm:$0xff] %v11568_v12  ;;  %v11577_v28 = vpop.eup %7034  ;;  %7054 = vpow2.f32 %v4534_v25  ;;  %v17923_v11 = vsub.f32 %v17922_v46, %v10244_v59  ;;  %v17930_v46 = vld [vmem:[#allocation409_spill] sm:$0xff] }
 0x58a   : > { %17908 = vst [vmem:[#allocation251_spill] sm:$0xff] %v11577_v28  ;;  %v11584_v54 = vpop.eup %7036  ;;  %7056 = vpow2.f32 %v4542_v61  ;;  %v4590_v37 = vmul.f32 1.442695, %v17913_v41  ;;  %v4598_v12 = vmul.f32 1.442695, %v17918_v4  ;;  %v4765_v61 = vadd.f32 %v10848_v52, %v4764_v44  ;;  %v17935_v27 = vld [vmem:[#allocation413_spill] sm:$0xff] }
 0x58b   : > { %17911 = vst [vmem:[#allocation345_spill] sm:$0xff] %v11584_v54  ;;  %v11593_v10 = vpop.eup %7038  ;;  %7058 = vpow2.f32 %v4550_v21  ;;  %v4606_v28 = vmul.f32 1.442695, %v17923_v11  ;;  %v17931_v11 = vsub.f32 %v17930_v46, %v10244_v59  ;;  %v17936_v29 = vsub.f32 %v17935_v27, %v10244_v59  ;;  %v17940_v25 = vld [vmem:[#allocation417_spill] sm:$0xff] }
 0x58c   : > { %17916 = vst [vmem:[#allocation259_spill] sm:$0xff] %v11593_v10  ;;  %v11602_v41 = vpop.eup %7040  ;;  %7060 = vpow2.f32 %v4558_v36  ;;  %v17941_v2 = vsub.f32 %v17940_v25, %v10244_v59  ;;  %v17948_v25 = vld [vmem:[#allocation421_spill] sm:$0xff] }
 0x58d   : > { %17921 = vst [vmem:[#allocation349_spill] sm:$0xff] %v11602_v41  ;;  %v11611_v4 = vpop.eup %7042  ;;  %7062 = vpow2.f32 %v4566_v1  ;;  %v4614_v21 = vmul.f32 1.442695, %v17931_v11  ;;  %v4622_v41 = vmul.f32 1.442695, %v17936_v29  ;;  %v17953_v36 = vld [vmem:[#allocation425_spill] sm:$0xff] }
 0x58e   : > { %17926 = vst [vmem:[#allocation353_spill] sm:$0xff] %v11611_v4  ;;  %v11618_v54 = vpop.eup %7044  ;;  %7064 = vpow2.f32 %v4574_v30  ;;  %v4630_v4 = vmul.f32 1.442695, %v17941_v2  ;;  %v4766_v30 = vadd.f32 %v10853_v7, %v4765_v61  ;;  %v17949_v2 = vsub.f32 %v17948_v25, %v10244_v59  ;;  %v17957_v1 = vld [vmem:[#allocation429_spill] sm:$0xff] }
 0x58f   : > { %17929 = vst [vmem:[#allocation283_spill] sm:$0xff] %v11618_v54  ;;  %v11627_v44 = vpop.eup %7046  ;;  %7066 = vpow2.f32 %v4582_v63  ;;  %v17954_v46 = vsub.f32 %v17953_v36, %v10244_v59  ;;  %v17958_v27 = vsub.f32 %v17957_v1, %v10244_v59  ;;  %v17963_v25 = vld [vmem:[#allocation437_spill] sm:$0xff] }
 0x590   : > { %17934 = vst [vmem:[#allocation357_spill] sm:$0xff] %v11627_v44  ;;  %v11636_v11 = vpop.eup %7048  ;;  %7068 = vpow2.f32 %v4590_v37  ;;  %v4638_v63 = vmul.f32 1.442695, %v17949_v2  ;;  %v17966_v1 = vld [vmem:[#allocation441_spill] sm:$0xff] }
 0x591   : > { %17939 = vst [vmem:[#allocation299_spill] sm:$0xff] %v11636_v11  ;;  %v11645_v29 = vpop.eup %7050  ;;  %7070 = vpow2.f32 %v4598_v12  ;;  %v4646_v11 = vmul.f32 1.442695, %v17954_v46 }
 0x592   : > { %17944 = vst [vmem:[#allocation361_spill] sm:$0xff] %v11645_v29  ;;  %v11652_v54 = vpop.eup %7052  ;;  %7072 = vpow2.f32 %v4606_v28  ;;  %v4654_v29 = vmul.f32 1.442695, %v17958_v27  ;;  %v17967_v27 = vsub.f32 %v17966_v1, %v10244_v59 }
 0x593   : > { %17947 = vst [vmem:[#allocation365_spill] sm:$0xff] %v11652_v54  ;;  %v11661_v61 = vpop.eup %7054  ;;  %7074 = vpow2.f32 %v4614_v21  ;;  %v17960_v21 = vld [vmem:[#allocation433_spill] sm:$0xff] }
 0x594   : > { %17952 = vst [vmem:[#allocation369_spill] sm:$0xff] %v11661_v61  ;;  %v11670_v2 = vpop.eup %7056  ;;  %7076 = vpow2.f32 %v4622_v41  ;;  %v17961_v36 = vsub.f32 %v17960_v21, %v10244_v59  ;;  %v4767_v61 = vadd.f32 %v10858_v16, %v4766_v30  ;;  %v17969_v21 = vld [vmem:[#allocation445_spill] sm:$0xff] }
 0x595   : > { %17956 = vst [vmem:[#allocation323_spill] sm:$0xff] %v11670_v2  ;;  %v11675_v12 = vpop.eup %7058  ;;  %7078 = vpow2.f32 %v4630_v4  ;;  %v17964_v2 = vsub.f32 %v17963_v25, %v10244_v59  ;;  %v4678_v4 = vmul.f32 1.442695, %v17967_v27  ;;  %v17970_v30 = vsub.f32 %v17969_v21, %v10244_v59  ;;  %v17973_v25 = vld [vmem:[#allocation449_spill] sm:$0xff] }
 0x596   : > { %17959 = vst [vmem:[#allocation331_spill] sm:$0xff] %v11675_v12  ;;  %v4662_v46 = vmul.f32 1.442695, %v17961_v36  ;;  %v11681_v28 = vpop.eup %7060  ;;  %7080 = vpow2.f32 %v4638_v63  ;;  %v17976_v27 = vld [vmem:[#allocation453_spill] sm:$0xff] }
 0x597   : > { %17962 = vst [vmem:[#allocation373_spill] sm:$0xff] %v11681_v28  ;;  %v4670_v41 = vmul.f32 1.442695, %v17964_v2  ;;  %v11686_v31 = vpop.eup %7062  ;;  %7082 = vpow2.f32 %v4646_v11  ;;  %v4686_v36 = vmul.f32 1.442695, %v17970_v30  ;;  %v11696_v28 = vpop.f32.mrb[255].mxu1  ;;  %v17974_v2 = vsub.f32 %v17973_v25, %v10244_v59 }
 0x598   : > { %17965 = vst [vmem:[#allocation377_spill] sm:$0xff] %v11686_v31  ;;  %v11691_v12 = vpop.eup %7064  ;;  %7084 = vpow2.f32 %v4654_v29  ;;  %17971 = vst [vmem:[#allocation355_spill] sm:$0xff] %v11696_v28  ;;  %v4768_v31 = vadd.f32 %v10863_v26, %v4767_v61  ;;  %v17977_v29 = vsub.f32 %v17976_v27, %v10244_v59  ;;  %v17979_v30 = vld [vmem:[#allocation457_spill] sm:$0xff] }
 0x599   : > { %17968 = vst [vmem:[#allocation381_spill] sm:$0xff] %v11691_v12  ;;  %v11698_v63 = vpop.eup %7066  ;;  %7086 = vpow2.f32 %v4662_v46  ;;  %v4694_v11 = vmul.f32 1.442695, %v17974_v2  ;;  %v17982_v25 = vld [vmem:[#allocation461_spill] sm:$0xff] }
 0x59a   : > { %17972 = vst [vmem:[#allocation363_spill] sm:$0xff] %v11698_v63  ;;  %v11704_v1 = vpop.eup %7068  ;;  %7088 = vpow2.f32 %v4670_v41  ;;  %v4702_v12 = vmul.f32 1.442695, %v17977_v29  ;;  %v17980_v63 = vsub.f32 %v17979_v30, %v10244_v59  ;;  %v17983_v61 = vsub.f32 %v17982_v25, %v10244_v59  ;;  %v17985_v41 = vld [vmem:[#allocation465_spill] sm:$0xff] }
 0x59b   : > { %17975 = vst [vmem:[#allocation385_spill] sm:$0xff] %v11704_v1  ;;  %v11709_v21 = vpop.eup %7070  ;;  %7090 = vpow2.f32 %v4678_v4  ;;  %v17986_v27 = vsub.f32 %v17985_v41, %v10244_v59  ;;  %v4769_v4 = vadd.f32 %v10868_v50, %v4768_v31  ;;  %v17991_v25 = vld [vmem:[#allocation473_spill] sm:$0xff]  ;;  %v17994_v31 = vsub.f32 %v17414_v35, %v10506_v13  ;;  %v18002_v35 = vld [vmem:[#allocation22_spill] sm:$0xff] }
 0x59c   : > { %17978 = vst [vmem:[#allocation389_spill] sm:$0xff] %v11709_v21  ;;  %v4710_v46 = vmul.f32 1.442695, %v17980_v63  ;;  %v11714_v54 = vpop.eup %7072  ;;  %7092 = vpow2.f32 %v4686_v36  ;;  %v4718_v2 = vmul.f32 1.442695, %v17983_v61  ;;  %v17988_v63 = vld [vmem:[#allocation469_spill] sm:$0xff]  ;;  %v17992_v61 = vsub.f32 %v17991_v25, %v10244_v59 }
 0x59d   : > { %17981 = vst [vmem:[#allocation393_spill] sm:$0xff] %v11714_v54  ;;  %v11719_v1 = vpop.eup %7074  ;;  %7094 = vpow2.f32 %v4694_v11  ;;  %v4726_v29 = vmul.f32 1.442695, %v17986_v27  ;;  %v17989_v30 = vsub.f32 %v17988_v63, %v10244_v59  ;;  %v3738_v41 = vmul.f32 1.442695, %v17994_v31  ;;  %v17996_v63 = vld [vmem:[#allocation16_spill] sm:$0xff] }
 0x59e   : > { %17984 = vst [vmem:[#allocation397_spill] sm:$0xff] %v11719_v1  ;;  %v11725_v21 = vpop.eup %7076  ;;  %7096 = vpow2.f32 %v4702_v12  ;;  %v4742_v11 = vmul.f32 1.442695, %v17992_v61  ;;  %v4770_v12 = vadd.f32 %v10873_v34, %v4769_v4  ;;  %v17999_v25 = vld [vmem:[#allocation19_spill] sm:$0xff]  ;;  %v18003_v31 = vsub.f32 %v18002_v35, %v10506_v13  ;;  %v18005_v4 = vld [vmem:[#allocation25_spill] sm:$0xff] }
 0x59f   : > { %17987 = vst [vmem:[#allocation401_spill] sm:$0xff] %v11725_v21  ;;  %v4734_v36 = vmul.f32 1.442695, %v17989_v30  ;;  %v11730_v54 = vpop.eup %7078  ;;  %7098 = vpow2.f32 %v4710_v46  ;;  %v17997_v30 = vsub.f32 %v17996_v63, %v10506_v13  ;;  %v18000_v61 = vsub.f32 %v17999_v25, %v10506_v13  ;;  %v18008_v25 = vld [vmem:[#allocation28_spill] sm:$0xff]  ;;  %v18011_v35 = vld [vmem:[#allocation31_spill] sm:$0xff] }
 0x5a0   : > { %17990 = vst [vmem:[#allocation405_spill] sm:$0xff] %v11730_v54  ;;  %v11735_v1 = vpop.eup %7080  ;;  %7100 = vpow2.f32 %v4718_v2  ;;  %v18006_v63 = vsub.f32 %v18005_v4, %v10506_v13  ;;  %v18014_v4 = vld [vmem:[#allocation34_spill] sm:$0xff] }
 0x5a1   : > { %17993 = vst [vmem:[#allocation409_spill] sm:$0xff] %v11735_v1  ;;  %v11740_v27 = vpop.eup %7082  ;;  %7102 = vpow2.f32 %v4726_v29  ;;  %v3746_v46 = vmul.f32 1.442695, %v17997_v30  ;;  %v3754_v2 = vmul.f32 1.442695, %v18000_v61  ;;  %v18009_v61 = vsub.f32 %v18008_v25, %v10506_v13 }
 0x5a2   : > { %17995 = vst [vmem:[#allocation413_spill] sm:$0xff] %v11740_v27  ;;  %v11746_v54 = vpop.eup %7084  ;;  %7104 = vpow2.f32 %v4734_v36  ;;  %v3762_v29 = vmul.f32 1.442695, %v18003_v31  ;;  %v3770_v30 = vmul.f32 1.442695, %v18006_v63  ;;  %v4771_v36 = vadd.f32 %v10878_v51, %v4770_v12 }
 0x5a3   : > { %17998 = vst [vmem:[#allocation417_spill] sm:$0xff] %v11746_v54  ;;  %v11751_v59 = vpop.eup %7086  ;;  %7106 = vpow2.f32 %v4742_v11  ;;  %v3778_v11 = vmul.f32 1.442695, %v18009_v61  ;;  %v18012_v31 = vsub.f32 %v18011_v35, %v10506_v13  ;;  %v18015_v63 = vsub.f32 %v18014_v4, %v10506_v13  ;;  %v18020_v35 = vld [vmem:[#allocation40_spill] sm:$0xff]  ;;  %v18023_v4 = vld [vmem:[#allocation43_spill] sm:$0xff] }
 0x5a4   : > { %18001 = vst [vmem:[#allocation421_spill] sm:$0xff] %v11751_v59  ;;  %v11756_v27 = vpop.eup %7088  ;;  %7108 = vpow2.f32 %v3738_v41 }
 0x5a5   : > { %18004 = vst [vmem:[#allocation425_spill] sm:$0xff] %v11756_v27  ;;  %v11761_v54 = vpop.eup %7090  ;;  %7110 = vpow2.f32 %v3746_v46  ;;  %v3786_v41 = vmul.f32 1.442695, %v18012_v31  ;;  %v18017_v46 = vld [vmem:[#allocation37_spill] sm:$0xff]  ;;  %v18021_v31 = vsub.f32 %v18020_v35, %v10506_v13 }
 0x5a6   : > { %18007 = vst [vmem:[#allocation429_spill] sm:$0xff] %v11761_v54  ;;  %v11767_v59 = vpop.eup %7092  ;;  %7112 = vpow2.f32 %v3754_v2  ;;  %v3794_v54 = vmul.f32 1.442695, %v18015_v63  ;;  %v18018_v25 = vsub.f32 %v18017_v46, %v10506_v13  ;;  %v4772_v2 = vadd.f32 %v10883_v0, %v4771_v36  ;;  %v18026_v46 = vld [vmem:[#allocation46_spill] sm:$0xff] }
 0x5a7   : > { %18010 = vst [vmem:[#allocation433_spill] sm:$0xff] %v11767_v59  ;;  %v11772_v27 = vpop.eup %7094  ;;  %7114 = vpow2.f32 %v3762_v29  ;;  %v3810_v29 = vmul.f32 1.442695, %v18021_v31  ;;  %v18024_v63 = vsub.f32 %v18023_v4, %v10506_v13  ;;  %v18032_v4 = vld [vmem:[#allocation52_spill] sm:$0xff] }
 0x5a8   : > { %18013 = vst [vmem:[#allocation437_spill] sm:$0xff] %v11772_v27  ;;  %v11777_v12 = vpop.eup %7096  ;;  %7116 = vpow2.f32 %v3770_v30  ;;  %v3802_v61 = vmul.f32 1.442695, %v18018_v25  ;;  %v18027_v25 = vsub.f32 %v18026_v46, %v10506_v13  ;;  %v18035_v46 = vld [vmem:[#allocation55_spill] sm:$0xff] }
 0x5a9   : > { %18016 = vst [vmem:[#allocation441_spill] sm:$0xff] %v11777_v12  ;;  %v11782_v59 = vpop.eup %7098  ;;  %7118 = vpow2.f32 %v3778_v11  ;;  %v3818_v30 = vmul.f32 1.442695, %v18024_v63  ;;  %v18029_v11 = vld [vmem:[#allocation49_spill] sm:$0xff]  ;;  %v18033_v63 = vsub.f32 %v18032_v4, %v10506_v13 }
 0x5aa   : > { %18019 = vst [vmem:[#allocation445_spill] sm:$0xff] %v11782_v59  ;;  %v11788_v27 = vpop.eup %7100  ;;  %7120 = vpow2.f32 %v3786_v41  ;;  %v3826_v59 = vmul.f32 1.442695, %v18027_v25  ;;  %v18030_v35 = vsub.f32 %v18029_v11, %v10506_v13  ;;  %v4773_v41 = vadd.f32 %v10888_v6, %v4772_v2  ;;  %v18038_v11 = vld [vmem:[#allocation58_spill] sm:$0xff] }
 0x5ab   : > { %18022 = vst [vmem:[#allocation449_spill] sm:$0xff] %v11788_v27  ;;  %v11793_v12 = vpop.eup %7102  ;;  %7122 = vpow2.f32 %v3794_v54  ;;  %v3842_v54 = vmul.f32 1.442695, %v18033_v63  ;;  %v18036_v25 = vsub.f32 %v18035_v46, %v10506_v13  ;;  %v18044_v46 = vld [vmem:[#allocation64_spill] sm:$0xff] }
 0x5ac   : > { %18025 = vst [vmem:[#allocation453_spill] sm:$0xff] %v11793_v12  ;;  %v11798_v36 = vpop.eup %7104  ;;  %7124 = vpow2.f32 %v3802_v61  ;;  %v3834_v31 = vmul.f32 1.442695, %v18030_v35  ;;  %v18039_v35 = vsub.f32 %v18038_v11, %v10506_v13  ;;  %v18047_v11 = vld [vmem:[#allocation67_spill] sm:$0xff] }
 0x5ad   : > { %18028 = vst [vmem:[#allocation457_spill] sm:$0xff] %v11798_v36  ;;  %v11803_v27 = vpop.eup %7106  ;;  %7126 = vpow2.f32 %v3810_v29  ;;  %v3850_v61 = vmul.f32 1.442695, %v18036_v25  ;;  %v18041_v29 = vld [vmem:[#allocation61_spill] sm:$0xff]  ;;  %v18045_v25 = vsub.f32 %v18044_v46, %v10506_v13 }
 0x5ae   : > { %18031 = vst [vmem:[#allocation461_spill] sm:$0xff] %v11803_v27  ;;  %v11809_v12 = vpop.eup %7108  ;;  %7128 = vpow2.f32 %v3818_v30  ;;  %v3858_v27 = vmul.f32 1.442695, %v18039_v35  ;;  %v18042_v4 = vsub.f32 %v18041_v29, %v10506_v13  ;;  %v4774_v30 = vadd.f32 %v10893_v15, %v4773_v41  ;;  %v18050_v29 = vld [vmem:[#allocation70_spill] sm:$0xff] }
 0x5af   : > { %18034 = vst [vmem:[#allocation465_spill] sm:$0xff] %v11809_v12  ;;  %v11814_v36 = vpop.eup %7110  ;;  %7130 = vpow2.f32 %v3826_v59  ;;  %v3874_v59 = vmul.f32 1.442695, %v18045_v25  ;;  %v18048_v35 = vsub.f32 %v18047_v11, %v10506_v13  ;;  %v18055_v11 = vld [vmem:[#allocation76_spill] sm:$0xff] }
 0x5b0   : > { %18037 = vst [vmem:[#allocation469_spill] sm:$0xff] %v11814_v36  ;;  %v11819_v2 = vpop.eup %7112  ;;  %7132 = vpow2.f32 %v3834_v31  ;;  %v3866_v63 = vmul.f32 1.442695, %v18042_v4  ;;  %v18051_v4 = vsub.f32 %v18050_v29, %v10506_v13  ;;  %v18057_v29 = vld [vmem:[#allocation79_spill] sm:$0xff] }
 0x5b1   : > { %18040 = vst [vmem:[#allocation473_spill] sm:$0xff] %v11819_v2  ;;  %v11824_v1 = vpop.eup %7114  ;;  %7134 = vpow2.f32 %v3842_v54  ;;  %v3882_v31 = vmul.f32 1.442695, %v18048_v35  ;;  %v18053_v54 = vld [vmem:[#allocation73_spill] sm:$0xff]  ;;  %v18056_v35 = vsub.f32 %v18055_v11, %v10506_v13 }
 0x5b2   : > { %18043 = vst [vmem:[#allocation16_spill] sm:$0xff] %v11824_v1  ;;  %v11830_v21 = vpop.eup %7116  ;;  %7136 = vpow2.f32 %v3850_v61  ;;  %v3890_v44 = vmul.f32 1.442695, %v18051_v4  ;;  %v18054_v46 = vsub.f32 %v18053_v54, %v10506_v13  ;;  %v4775_v61 = vadd.f32 %v10898_v23, %v4774_v30  ;;  %v18059_v54 = vld [vmem:[#allocation82_spill] sm:$0xff] }
 0x5b3   : > { %18046 = vst [vmem:[#allocation19_spill] sm:$0xff] %v11830_v21  ;;  %v11835_v37 = vpop.eup %7118  ;;  %7138 = vpow2.f32 %v3858_v27  ;;  %v3906_v27 = vmul.f32 1.442695, %v18056_v35  ;;  %v18058_v4 = vsub.f32 %v18057_v29, %v10506_v13  ;;  %v18063_v29 = vld [vmem:[#allocation88_spill] sm:$0xff] }
 0x5b4   : > { %18049 = vst [vmem:[#allocation22_spill] sm:$0xff] %v11835_v37  ;;  %v11840_v41 = vpop.eup %7120  ;;  %7140 = vpow2.f32 %v3866_v63  ;;  %v3898_v25 = vmul.f32 1.442695, %v18054_v46  ;;  %v18060_v46 = vsub.f32 %v18059_v54, %v10506_v13  ;;  %v18065_v54 = vld [vmem:[#allocation91_spill] sm:$0xff] }
 0x5b5   : > { %18052 = vst [vmem:[#allocation25_spill] sm:$0xff] %v11840_v41  ;;  %v11845_v10 = vpop.eup %7122  ;;  %7142 = vpow2.f32 %v3874_v59  ;;  %v3914_v63 = vmul.f32 1.442695, %v18058_v4  ;;  %v18061_v59 = vld [vmem:[#allocation85_spill] sm:$0xff]  ;;  %v18064_v4 = vsub.f32 %v18063_v29, %v10506_v13 }
 0x5b6   : > { %v11851_v49 = vpop.eup %7124  ;;  %7144 = vpow2.f32 %v3882_v31  ;;  %v3922_v6 = vmul.f32 1.442695, %v18060_v46  ;;  %v18062_v11 = vsub.f32 %v18061_v59, %v10506_v13  ;;  %v4776_v31 = vadd.f32 %v10903_v38, %v4775_v61  ;;  %v18068_v59 = vld [vmem:[#allocation94_spill] sm:$0xff] }
 0x5b7   : > { %v11856_v15 = vpop.eup %7126  ;;  %7146 = vpow2.f32 %v3890_v44  ;;  %v3938_v44 = vmul.f32 1.442695, %v18064_v4  ;;  %v18066_v46 = vsub.f32 %v18065_v54, %v10506_v13  ;;  %v18074_v54 = vld [vmem:[#allocation100_spill] sm:$0xff] }
 0x5b8   : > { %v11861_v30 = vpop.eup %7128  ;;  %7148 = vpow2.f32 %v3898_v25  ;;  %v3930_v35 = vmul.f32 1.442695, %v18062_v11  ;;  %v18069_v11 = vsub.f32 %v18068_v59, %v10506_v13  ;;  %v18077_v59 = vld [vmem:[#allocation103_spill] sm:$0xff] }
 0x5b9   : > { %v11866_v23 = vpop.eup %7130  ;;  %7150 = vpow2.f32 %v3906_v27  ;;  %v3946_v25 = vmul.f32 1.442695, %v18066_v46  ;;  %v18071_v27 = vld [vmem:[#allocation97_spill] sm:$0xff]  ;;  %v18075_v46 = vsub.f32 %v18074_v54, %v10506_v13 }
 0x5ba   : > { %v11872_v0 = vpop.eup %7132  ;;  %7152 = vpow2.f32 %v3914_v63  ;;  %v3954_v34 = vmul.f32 1.442695, %v18069_v11  ;;  %v18072_v29 = vsub.f32 %v18071_v27, %v10506_v13  ;;  %v4777_v63 = vadd.f32 %v10908_v53, %v4776_v31  ;;  %v18080_v27 = vld [vmem:[#allocation106_spill] sm:$0xff] }
 0x5bb   : > { %v11877_v51 = vpop.eup %7134  ;;  %7154 = vpow2.f32 %v3922_v6  ;;  %v3970_v6 = vmul.f32 1.442695, %v18075_v46  ;;  %v18078_v11 = vsub.f32 %v18077_v59, %v10506_v13  ;;  %v18086_v59 = vld [vmem:[#allocation112_spill] sm:$0xff] }
 0x5bc   : > { %18067 = vst [vmem:[#allocation28_spill] sm:$0xff] %v11877_v51  ;;  %v11882_v61 = vpop.eup %7136  ;;  %7156 = vpow2.f32 %v3930_v35  ;;  %v3962_v4 = vmul.f32 1.442695, %v18072_v29  ;;  %v18081_v29 = vsub.f32 %v18080_v27, %v10506_v13  ;;  %v18089_v27 = vsub.f32 %v17659_v39, %v11011_v42  ;;  %v18096_v39 = vld [vmem:[#allocation118_spill] sm:$0xff] }
 0x5bd   : > { %18070 = vst [vmem:[#allocation31_spill] sm:$0xff] %v11882_v61  ;;  %v11887_v38 = vpop.eup %7138  ;;  %7158 = vpow2.f32 %v3938_v44  ;;  %v3978_v35 = vmul.f32 1.442695, %v18078_v11  ;;  %v18083_v44 = vld [vmem:[#allocation109_spill] sm:$0xff]  ;;  %v18087_v11 = vsub.f32 %v18086_v59, %v10506_v13 }
 0x5be   : > { %18073 = vst [vmem:[#allocation34_spill] sm:$0xff] %v11887_v38  ;;  %v11893_v50 = vpop.eup %7140  ;;  %7160 = vpow2.f32 %v3946_v25  ;;  %v3986_v16 = vmul.f32 1.442695, %v18081_v29  ;;  %v18084_v54 = vsub.f32 %v18083_v44, %v10506_v13  ;;  %v4778_v25 = vadd.f32 %v10913_v8, %v4777_v63 }
 0x5bf   : > { %18076 = vst [vmem:[#allocation37_spill] sm:$0xff] %v11893_v50  ;;  %v11898_v26 = vpop.eup %7142  ;;  %7162 = vpow2.f32 %v3954_v34  ;;  %v4002_v34 = vmul.f32 1.442695, %v18087_v11  ;;  %v18091_v44 = vsub.f32 %v17660_v55, %v11011_v42  ;;  %v18099_v55 = vld [vmem:[#allocation121_spill] sm:$0xff] }
 0x5c0   : > { %18079 = vst [vmem:[#allocation40_spill] sm:$0xff] %v11898_v26  ;;  %v11903_v31 = vpop.eup %7144  ;;  %7164 = vpow2.f32 %v3962_v4  ;;  %v3994_v46 = vmul.f32 1.442695, %v18084_v54  ;;  %v3736_v4 = vmul.f32 1.442695, %v18089_v27  ;;  %v18097_v27 = vsub.f32 %v18096_v39, %v10506_v13  ;;  %v18104_v39 = vld [vmem:[#allocation124_spill] sm:$0xff] }
 0x5c1   : > { %18082 = vst [vmem:[#allocation43_spill] sm:$0xff] %v11903_v31  ;;  %v11908_v53 = vpop.eup %7146  ;;  %7166 = vpow2.f32 %v3970_v6  ;;  %v3744_v54 = vmul.f32 1.442695, %v18091_v44  ;;  %v18093_v6 = vld [vmem:[#allocation115_spill] sm:$0xff]  ;;  %v18100_v44 = vsub.f32 %v18099_v55, %v10506_v13 }
 0x5c2   : > { %18085 = vst [vmem:[#allocation46_spill] sm:$0xff] %v11908_v53  ;;  %v11914_v7 = vpop.eup %7148  ;;  %7168 = vpow2.f32 %v3978_v35  ;;  %v18094_v59 = vsub.f32 %v18093_v6, %v10506_v13  ;;  %v4779_v35 = vadd.f32 %v10918_v22, %v4778_v25  ;;  %v18102_v25 = vsub.f32 %v17664_v33, %v11011_v42  ;;  %v18109_v33 = vld [vmem:[#allocation127_spill] sm:$0xff] }
 0x5c3   : > { %18088 = vst [vmem:[#allocation49_spill] sm:$0xff] %v11914_v7  ;;  %v11919_v29 = vpop.eup %7150  ;;  %7170 = vpow2.f32 %v3986_v16  ;;  %v4018_v16 = vmul.f32 1.442695, %v18097_v27  ;;  %v4026_v58 = vmul.f32 1.442695, %v18100_v44  ;;  %v18105_v27 = vsub.f32 %v18104_v39, %v10506_v13 }
 0x5c4   : > { %18090 = vst [vmem:[#allocation52_spill] sm:$0xff] %v11919_v29  ;;  %v11924_v63 = vpop.eup %7152  ;;  %7172 = vpow2.f32 %v3994_v46  ;;  %v4010_v11 = vmul.f32 1.442695, %v18094_v59  ;;  %v5024_v46 = vadd.f32 %v11814_v36, %v11809_v12  ;;  %v4780_v44 = vadd.f32 %v10923_v19, %v4779_v35 }
 0x5c5   : > { %18092 = vst [vmem:[#allocation55_spill] sm:$0xff] %v11924_v63  ;;  %v11929_v8 = vpop.eup %7154  ;;  %7174 = vpow2.f32 %v4002_v34  ;;  %v3752_v34 = vmul.f32 1.442695, %v18102_v25  ;;  %v4034_v22 = vmul.f32 1.442695, %v18105_v27  ;;  %v18110_v25 = vsub.f32 %v18109_v33, %v10506_v13 }
 0x5c6   : > { %18095 = vst [vmem:[#allocation58_spill] sm:$0xff] %v11929_v8  ;;  %v11935_v52 = vpop.eup %7156  ;;  %7176 = vpow2.f32 %v3736_v4  ;;  %v18107_v4 = vsub.f32 %v17665_v5, %v11011_v42  ;;  %v18112_v35 = vsub.f32 %v17669_v48, %v11011_v42  ;;  %v18114_v5 = vld [vmem:[#allocation130_spill] sm:$0xff]  ;;  %v4781_v33 = vadd.f32 %v10930_v20, %v4780_v44  ;;  %v18119_v48 = vld [vmem:[#allocation133_spill] sm:$0xff] }
 0x5c7   : > { %18098 = vst [vmem:[#allocation61_spill] sm:$0xff] %v11935_v52  ;;  %v11942_v6 = vpop.eup %7158  ;;  %7178 = vpow2.f32 %v3744_v54  ;;  %v18122_v44 = vsub.f32 %v17674_v9, %v11011_v42  ;;  %v18130_v9 = vld [vmem:[#allocation139_spill] sm:$0xff] }
 0x5c8   : > { %18101 = vst [vmem:[#allocation64_spill] sm:$0xff] %v11942_v6  ;;  %v11947_v59 = vpop.eup %7160  ;;  %7180 = vpow2.f32 %v4010_v11  ;;  %v3760_v54 = vmul.f32 1.442695, %v18107_v4  ;;  %v4042_v11 = vmul.f32 1.442695, %v18110_v25  ;;  %v18115_v4 = vsub.f32 %v18114_v5, %v10506_v13 }
 0x5c9   : > { %18103 = vst [vmem:[#allocation67_spill] sm:$0xff] %v11947_v59  ;;  %v11952_v55 = vpop.eup %7162  ;;  %7182 = vpow2.f32 %v4018_v16  ;;  %v5025_v59 = vadd.f32 %v11819_v2, %v5024_v46  ;;  %v3768_v16 = vmul.f32 1.442695, %v18112_v35  ;;  %v18117_v46 = vsub.f32 %v17670_v3, %v11011_v42  ;;  %v18124_v3 = vld [vmem:[#allocation136_spill] sm:$0xff]  ;;  %v18184_v2 = vld [vmem:[#allocation86_spill] sm:$0xff] }
 0x5ca   : > { %18106 = vst [vmem:[#allocation70_spill] sm:$0xff] %v11952_v55  ;;  %v11958_v6 = vpop.eup %7164  ;;  %7184 = vpow2.f32 %v4026_v58  ;;  %v4050_v58 = vmul.f32 1.442695, %v18115_v4  ;;  %v18120_v35 = vsub.f32 %v18119_v48, %v10506_v13  ;;  %v4782_v48 = vadd.f32 %v10935_v32, %v4781_v33 }
 0x5cb   : > { %18108 = vst [vmem:[#allocation73_spill] sm:$0xff] %v11958_v6  ;;  %v11964_v39 = vpop.eup %7166  ;;  %7186 = vpow2.f32 %v3752_v34  ;;  %v3776_v34 = vmul.f32 1.442695, %v18117_v46  ;;  %v18125_v46 = vsub.f32 %v18124_v3, %v10506_v13 }
 0x5cc   : > { %18111 = vst [vmem:[#allocation76_spill] sm:$0xff] %v11964_v39  ;;  %v11969_v27 = vpop.eup %7168  ;;  %7188 = vpow2.f32 %v4034_v22  ;;  %v4058_v22 = vmul.f32 1.442695, %v18120_v35 }
 0x5cd   : > { %18113 = vst [vmem:[#allocation79_spill] sm:$0xff] %v11969_v27  ;;  %v11974_v19 = vpop.eup %7170  ;;  %7190 = vpow2.f32 %v3760_v54  ;;  %v5026_v27 = vadd.f32 %v11824_v1, %v5025_v59  ;;  %v3784_v54 = vmul.f32 1.442695, %v18122_v44  ;;  %v18127_v59 = vld [vmem:[#allocation35_spill] sm:$0xff]  ;;  %v18131_v44 = vsub.f32 %v18130_v9, %v10506_v13 }
 0x5ce   : > { %18116 = vst [vmem:[#allocation82_spill] sm:$0xff] %v11974_v19  ;;  %v11980_v25 = vpop.eup %7172  ;;  %7192 = vpow2.f32 %v4042_v11  ;;  %v4066_v11 = vmul.f32 1.442695, %v18125_v46  ;;  %v18128_v35 = vsub.f32 %v18127_v59, %v11011_v42  ;;  %v18133_v46 = vld [vmem:[#allocation38_spill] sm:$0xff]  ;;  %v18182_v1 = vld [vmem:[#allocation83_spill] sm:$0xff] }
 0x5cf   : > { %18118 = vst [vmem:[#allocation85_spill] sm:$0xff] %v11980_v25  ;;  %v11986_v5 = vpop.eup %7174  ;;  %7194 = vpow2.f32 %v3768_v16  ;;  %v5027_v25 = vadd.f32 %v11830_v21, %v5026_v27  ;;  %v18134_v33 = vsub.f32 %v18133_v46, %v11011_v42  ;;  %v18136_v59 = vld [vmem:[#allocation142_spill] sm:$0xff] }
 0x5d0   : > { %18121 = vst [vmem:[#allocation88_spill] sm:$0xff] %v11986_v5  ;;  %v11991_v4 = vpop.eup %7176  ;;  %7196 = vpow2.f32 %v4050_v58  ;;  %v3792_v16 = vmul.f32 1.442695, %v18128_v35  ;;  %v4074_v58 = vmul.f32 1.442695, %v18131_v44  ;;  %v18137_v35 = vsub.f32 %v18136_v59, %v10506_v13  ;;  %v18138_v44 = vld [vmem:[#allocation478_spill] sm:$0xff] }
 0x5d1   : > { %18123 = vst [vmem:[#allocation91_spill] sm:$0xff] %v11991_v4  ;;  %v11996_v20 = vpop.eup %7178  ;;  %7198 = vpow2.f32 %v3776_v34  ;;  %v3800_v34 = vmul.f32 1.442695, %v18134_v33  ;;  %v3215_v27 = vmax.f32 %v18138_v44, %v11696_v28  ;;  %v18141_v19 = vld [vmem:[#allocation146_spill] sm:$0xff]  ;;  %v5028_v39 = vadd.f32 %v11835_v37, %v5027_v25 }
 0x5d2   : > { %18126 = vst [vmem:[#allocation94_spill] sm:$0xff] %v11996_v20  ;;  %v12002_v5 = vpop.eup %7180  ;;  %7200 = vpow2.f32 %v4058_v22  ;;  %v4082_v22 = vmul.f32 1.442695, %v18137_v35  ;;  %v4891_v9 = vadd.f32 %v11996_v20, %v11991_v4  ;;  %v18142_v46 = vsub.f32 %v18141_v19, %v10506_v13  ;;  %v18165_v37 = vld [vmem:[#allocation62_spill] sm:$0xff]  ;;  %v18212_v20 = vld [vmem:[#allocation113_spill] sm:$0xff] }
 0x5d3   : > { %18129 = vst [vmem:[#allocation97_spill] sm:$0xff] %v12002_v5  ;;  %v12008_v3 = vpop.eup %7182  ;;  %7202 = vpow2.f32 %v3784_v54  ;;  %v18140_v54 = vld [vmem:[#allocation507_spill] sm:$0xff]  ;;  %v3216_v6 = vrot.slane %v3215_v27, 4  ;;  %v18213_v13 = vsub.f32 %v18212_v20, %v11011_v42  ;;  %v18219_v20 = vld [vmem:[#allocation116_spill] sm:$0xff] }
 0x5d4   : > { %18132 = vst [vmem:[#allocation100_spill] sm:$0xff] %v12008_v3  ;;  %v12013_v32 = vpop.eup %7184  ;;  %7204 = vpow2.f32 %v4066_v11  ;;  %v4783_v3 = vadd.f32 %v18140_v54, %v4782_v48  ;;  %v4090_v33 = vmul.f32 1.442695, %v18142_v46  ;;  %v18143_v11 = vld [vmem:[#allocation41_spill] sm:$0xff]  ;;  %v18147_v48 = vld [vmem:[#allocation44_spill] sm:$0xff] }
 0x5d5   : > { %18135 = vst [vmem:[#allocation103_spill] sm:$0xff] %v12013_v32  ;;  %v12022_v5 = vpop.eup %7186  ;;  %7206 = vpow2.f32 %v3792_v16  ;;  %v18144_v32 = vsub.f32 %v18143_v11, %v11011_v42  ;;  %v18148_v19 = vsub.f32 %v18147_v48, %v11011_v42  ;;  %v3217_v11 = vmax.f32 %v3215_v27, %v3216_v6  ;;  %v18156_v27 = vld [vmem:[#allocation50_spill] sm:$0xff] }
 0x5d6   : > { %18139 = vst [vmem:[#allocation106_spill] sm:$0xff] %v12022_v5  ;;  %v12031_v35 = vpop.eup %7188  ;;  %7208 = vpow2.f32 %v4074_v58  ;;  %v4892_v44 = vadd.f32 %v12022_v5, %v4891_v9  ;;  %v18151_v58 = vld [vmem:[#allocation508_spill] sm:$0xff]  ;;  %v18152_v9 = vld [vmem:[#allocation47_spill] sm:$0xff]  ;;  %v12054_v48 = vadd.f32 %v11840_v41, %v5028_v39 }
 0x5d7   : > { %v3808_v59 = vmul.f32 1.442695, %v18144_v32  ;;  %18145 = vst [vmem:[#allocation109_spill] sm:$0xff] %v12031_v35  ;;  %v12035_v55 = vpop.eup %7190  ;;  %7210 = vpow2.f32 %v3800_v34  ;;  %v3816_v46 = vmul.f32 1.442695, %v18148_v19  ;;  %v12046_v25 = vadd.f32 %v18151_v58, %v4783_v3  ;;  %v18158_v19 = vld [vmem:[#allocation53_spill] sm:$0xff] }
 0x5d8   : > { %18146 = vst [vmem:[#allocation112_spill] sm:$0xff] %v12035_v55  ;;  %v12040_v16 = vpop.eup %7192  ;;  %7212 = vpow2.f32 %v4082_v22  ;;  %v4893_v32 = vadd.f32 %v12035_v55, %v4892_v44  ;;  %v18153_v54 = vsub.f32 %v18152_v9, %v11011_v42  ;;  %v3218_v44 = vrot.slane %v3217_v11, 2  ;;  %v18163_v58 = vld [vmem:[#allocation59_spill] sm:$0xff] }
 0x5d9   : > { %18149 = vst [vmem:[#allocation115_spill] sm:$0xff] %v12040_v16  ;;  %v12043_v35 = vpop.eup %7194  ;;  %7214 = vpow2.f32 %v3808_v59  ;;  %v18157_v3 = vsub.f32 %v18156_v27, %v11011_v42  ;;  %v18159_v9 = vsub.f32 %v18158_v19, %v11011_v42  ;;  %v18160_v16 = vld [vmem:[#allocation56_spill] sm:$0xff]  ;;  %v18168_v19 = vld [vmem:[#allocation65_spill] sm:$0xff] }
 0x5da   : > { %18150 = vst [vmem:[#allocation118_spill] sm:$0xff] %v12043_v35  ;;  %v3824_v34 = vmul.f32 1.442695, %v18153_v54  ;;  %v12051_v52 = vpop.eup %7196  ;;  %7216 = vpow2.f32 %v4090_v33  ;;  %v4894_v22 = vadd.f32 %v12043_v35, %v4893_v32  ;;  %v18161_v33 = vsub.f32 %v18160_v16, %v11011_v42 }
 0x5db   : > { %18154 = vst [vmem:[#allocation121_spill] sm:$0xff] %v12051_v52  ;;  %v12057_v6 = vpop.eup %7198  ;;  %7218 = vpow2.f32 %v3816_v46  ;;  %v3832_v59 = vmul.f32 1.442695, %v18157_v3  ;;  %v3840_v54 = vmul.f32 1.442695, %v18159_v9  ;;  %v18164_v32 = vsub.f32 %v18163_v58, %v11011_v42  ;;  %v18172_v58 = vld [vmem:[#allocation71_spill] sm:$0xff] }
 0x5dc   : > { %18155 = vst [vmem:[#allocation124_spill] sm:$0xff] %v12057_v6  ;;  %v3848_v52 = vmul.f32 1.442695, %v18161_v33  ;;  %v12068_v39 = vpop.eup %7200  ;;  %v18166_v46 = vsub.f32 %v18165_v37, %v11011_v42  ;;  %v4895_v27 = vadd.f32 %v12057_v6, %v4894_v22  ;;  %v3219_v3 = vmax.f32 %v3217_v11, %v3218_v44  ;;  %v18170_v33 = vld [vmem:[#allocation68_spill] sm:$0xff]  ;;  %v18175_v11 = vld [vmem:[#allocation74_spill] sm:$0xff]  ;;  %v18177_v44 = vld [vmem:[#allocation77_spill] sm:$0xff] }
 0x5dd   : > { %18162 = vst [vmem:[#allocation127_spill] sm:$0xff] %v12068_v39  ;;  %v3856_v41 = vmul.f32 1.442695, %v18164_v32  ;;  %v12077_v8 = vpop.eup %7202  ;;  %7220 = vpow2.f32 %v3824_v34  ;;  %v18169_v16 = vsub.f32 %v18168_v19, %v11011_v42  ;;  %v18171_v39 = vsub.f32 %v18170_v33, %v11011_v42 }
 0x5de   : > { %v3864_v21 = vmul.f32 1.442695, %v18166_v46  ;;  %18167 = vst [vmem:[#allocation130_spill] sm:$0xff] %v12077_v8  ;;  %v18173_v32 = vsub.f32 %v18172_v58, %v11011_v42  ;;  %v12092_v46 = vpop.eup %7204  ;;  %v18176_v22 = vsub.f32 %v18175_v11, %v11011_v42  ;;  %v18178_v19 = vsub.f32 %v18177_v44, %v11011_v42  ;;  %v18180_v58 = vld [vmem:[#allocation80_spill] sm:$0xff] }
 0x5df   : > { %v3872_v9 = vmul.f32 1.442695, %v18169_v16  ;;  %v12085_v35 = vmul.f32 1.442695, %v18171_v39  ;;  %18174 = vst [vmem:[#allocation133_spill] sm:$0xff] %v12092_v46  ;;  %v4896_v39 = vadd.f32 %v12077_v8, %v4895_v27  ;;  %v3220_v33 = vrot.slane %v3219_v3, 1  ;;  %v12105_v6 = vpop.eup %7206 }
 0x5e0   : > { %v12090_v37 = vmul.f32 1.442695, %v18173_v32  ;;  %v12097_v34 = vmul.f32 1.442695, %v18176_v22  ;;  %v12102_v16 = vmul.f32 1.442695, %v18178_v19  ;;  %7222 = vpow2.f32 %v3832_v59  ;;  %v12122_v27 = vpop.eup %7208 }
 0x5e1   : > { %18179 = vst [vmem:[#allocation136_spill] sm:$0xff] %v12105_v6  ;;  %v18181_v32 = vsub.f32 %v18180_v58, %v11011_v42  ;;  %v18183_v11 = vsub.f32 %v18182_v1, %v11011_v42  ;;  %v18185_v44 = vsub.f32 %v18184_v2, %v11011_v42  ;;  %18186 = vst [vmem:[#allocation35_spill] sm:$0xff] %v12122_v27  ;;  %v18187_v8 = vld [vmem:[#allocation89_spill] sm:$0xff]  ;;  %v18189_v58 = vld [vmem:[#allocation92_spill] sm:$0xff]  ;;  %v12137_v5 = vpop.eup %7210  ;;  %7224 = vpow2.f32 %v3840_v54 }
 0x5e2   : > { %v18188_v59 = vsub.f32 %v18187_v8, %v11011_v42  ;;  %v4897_v1 = vadd.f32 %v12105_v6, %v4896_v39  ;;  %18192 = vst [vmem:[#allocation38_spill] sm:$0xff] %v12137_v5  ;;  %v18193_v2 = vld [vmem:[#allocation95_spill] sm:$0xff]  ;;  %v18195_v8 = vld [vmem:[#allocation98_spill] sm:$0xff]  ;;  %v18200_v39 = vld [vmem:[#allocation104_spill] sm:$0xff]  ;;  %7226 = vpow2.f32 %v3848_v52  ;;  %v12187_v52 = vmul.f32 1.442695, %v18213_v13 }
 0x5e3   : > { %v12110_v46 = vmul.f32 1.442695, %v18181_v32  ;;  %v12115_v22 = vmul.f32 1.442695, %v18183_v11  ;;  %v12120_v19 = vmul.f32 1.442695, %v18185_v44  ;;  %v18190_v32 = vsub.f32 %v18189_v58, %v11011_v42 }
 0x5e4   : > { %v12127_v63 = vmul.f32 1.442695, %v18188_v59  ;;  %v12135_v11 = vmax.f32 %v3219_v3, %v3220_v33  ;;  %v18194_v44 = vsub.f32 %v18193_v2, %v11011_v42  ;;  %v18196_v59 = vsub.f32 %v18195_v8, %v11011_v42  ;;  %v18197_v58 = vld [vmem:[#allocation101_spill] sm:$0xff]  ;;  %v12154_v3 = vpop.eup %7212  ;;  %v18202_v2 = vld [vmem:[#allocation107_spill] sm:$0xff] }
 0x5e5   : > { %v12132_v55 = vmul.f32 1.442695, %v18190_v32  ;;  %v18198_v32 = vsub.f32 %v18197_v58, %v11011_v42  ;;  %18199 = vst [vmem:[#allocation142_spill] sm:$0xff] %v12154_v3  ;;  %v18201_v54 = vsub.f32 %v18200_v39, %v11011_v42  ;;  %v4898_v8 = vadd.f32 %v12137_v5, %v4897_v1  ;;  %v12169_v58 = vpop.eup %7214 }
 0x5e6   : > { %18191 = vst [vmem:[#allocation139_spill] sm:$0xff] %v12135_v11  ;;  %v12142_v27 = vmul.f32 1.442695, %v18194_v44  ;;  %v12147_v36 = vmul.f32 1.442695, %v18196_v59  ;;  %v18203_v44 = vsub.f32 %v18202_v2, %v11011_v42  ;;  %18205 = vst [vmem:[#allocation478_spill] sm:$0xff] %v12169_v58  ;;  %v12177_v2 = vpop.eup %7216  ;;  %7228 = vpow2.f32 %v3856_v41 }
 0x5e7   : > { %v12152_v12 = vmul.f32 1.442695, %v18198_v32  ;;  %v12159_v33 = vmul.f32 1.442695, %v18201_v54  ;;  %18209 = vst [vmem:[#allocation146_spill] sm:$0xff] %v12177_v2  ;;  %v4899_v3 = vadd.f32 %v12169_v58, %v4898_v8  ;;  %v12192_v53 = vpop.eup %7218  ;;  %v18220_v13 = vsub.f32 %v18219_v20, %v11011_v42  ;;  %v18221_v8 = vld [vmem:[#allocation119_spill] sm:$0xff] }
 0x5e8   : > { %v12164_v6 = vmul.f32 1.442695, %v18203_v44  ;;  %v18210_v44 = vld [vmem:[#allocation110_spill] sm:$0xff]  ;;  %18215 = vst [vmem:[#allocation41_spill] sm:$0xff] %v12192_v53  ;;  %v18222_v54 = vsub.f32 %v18221_v8, %v11011_v42  ;;  %v12213_v38 = vpop.eup %7220  ;;  %7230 = vpow2.f32 %v3864_v21 }
 0x5e9   : > { %v18211_v1 = vsub.f32 %v18210_v44, %v11011_v42  ;;  %v12203_v50 = vmul.f32 1.442695, %v18220_v13  ;;  %v4900_v41 = vadd.f32 %v12192_v53, %v4899_v3  ;;  %18224 = vst [vmem:[#allocation44_spill] sm:$0xff] %v12213_v38  ;;  %v18228_v8 = vld [vmem:[#allocation122_spill] sm:$0xff]  ;;  %v18230_v3 = vld [vmem:[#allocation125_spill] sm:$0xff]  ;;  %7232 = vpow2.f32 %v3872_v9 }
 0x5ea   : > { %v12208_v58 = vmul.f32 1.442695, %v18222_v54  ;;  %v18229_v54 = vsub.f32 %v18228_v8, %v11011_v42  ;;  %v18231_v29 = vsub.f32 %v18230_v3, %v11011_v42  ;;  %v12234_v2 = vpop.eup %7222  ;;  %v18237_v3 = vld [vmem:[#allocation128_spill] sm:$0xff]  ;;  %7234 = vpow2.f32 %v12085_v35 }
 0x5eb   : > { %v12182_v5 = vmul.f32 1.442695, %v18211_v1  ;;  %v4901_v21 = vadd.f32 %v12213_v38, %v4900_v41  ;;  %18233 = vst [vmem:[#allocation47_spill] sm:$0xff] %v12234_v2  ;;  %v18239_v41 = vld [vmem:[#allocation131_spill] sm:$0xff]  ;;  %v12255_v1 = vpop.eup %7224  ;;  %7236 = vpow2.f32 %v12090_v37 }
 0x5ec   : > { %v12224_v7 = vmul.f32 1.442695, %v18229_v54  ;;  %v12229_v53 = vmul.f32 1.442695, %v18231_v29  ;;  %v18238_v29 = vsub.f32 %v18237_v3, %v11011_v42  ;;  %v18240_v26 = vsub.f32 %v18239_v41, %v11011_v42  ;;  %18242 = vst [vmem:[#allocation50_spill] sm:$0xff] %v12255_v1  ;;  %v12277_v39 = vpop.eup %7226 }
 0x5ed   : > { %v4902_v9 = vadd.f32 %v12234_v2, %v4901_v21  ;;  %v18248_v2 = vld [vmem:[#allocation137_spill] sm:$0xff]  ;;  %18251 = vst [vmem:[#allocation53_spill] sm:$0xff] %v12277_v39  ;;  %7238 = vpow2.f32 %v12097_v34 }
 0x5ee   : > { %v12245_v4 = vmul.f32 1.442695, %v18238_v29  ;;  %v12250_v38 = vmul.f32 1.442695, %v18240_v26  ;;  %v18246_v26 = vld [vmem:[#allocation134_spill] sm:$0xff]  ;;  %v18249_v44 = vsub.f32 %v18248_v2, %v11011_v42  ;;  %7240 = vpow2.f32 %v12102_v16 }
 0x5ef   : > { %v18247_v8 = vsub.f32 %v18246_v26, %v11011_v42  ;;  %v4903_v35 = vadd.f32 %v12255_v1, %v4902_v9  ;;  %v18257_v1 = vld [vmem:[#allocation143_spill] sm:$0xff]  ;;  %7242 = vpow2.f32 %v12110_v46 }
 0x5f0   : > { %v12272_v13 = vmul.f32 1.442695, %v18249_v44  ;;  %v18255_v44 = vld [vmem:[#allocation140_spill] sm:$0xff]  ;;  %v18258_v20 = vsub.f32 %v18257_v1, %v11011_v42  ;;  %v12299_v32 = vpop.eup %7228  ;;  %7244 = vpow2.f32 %v12115_v22 }
 0x5f1   : > { %v12267_v21 = vmul.f32 1.442695, %v18247_v8  ;;  %v18256_v3 = vsub.f32 %v18255_v44, %v11011_v42  ;;  %v4904_v37 = vadd.f32 %v12277_v39, %v4903_v35  ;;  %18260 = vst [vmem:[#allocation56_spill] sm:$0xff] %v12299_v32  ;;  %v18266_v39 = vld [vmem:[#allocation151_spill] sm:$0xff]  ;;  %7246 = vpow2.f32 %v12120_v19  ;;  %v18302_v19 = vld [vmem:[#allocation152_spill] sm:$0xff] }
 0x5f2   : > { %v12294_v54 = vmul.f32 1.442695, %v18258_v20  ;;  %v18264_v20 = vld [vmem:[#allocation147_spill] sm:$0xff]  ;;  %v18267_v41 = vsub.f32 %v18266_v39, %v11011_v42  ;;  %v12321_v61 = vpop.eup %7230  ;;  %7248 = vpow2.f32 %v12127_v63 }
 0x5f3   : > { %v12289_v9 = vmul.f32 1.442695, %v18256_v3  ;;  %v18265_v8 = vsub.f32 %v18264_v20, %v11011_v42  ;;  %v4905_v34 = vadd.f32 %v12299_v32, %v4904_v37  ;;  %18269 = vst [vmem:[#allocation59_spill] sm:$0xff] %v12321_v61  ;;  %v18275_v32 = vld [vmem:[#allocation159_spill] sm:$0xff]  ;;  %v12343_v59 = vpop.eup %7232  ;;  %7250 = vpow2.f32 %v12132_v55  ;;  %v18309_v55 = vld [vmem:[#allocation168_spill] sm:$0xff] }
 0x5f4   : > { %v12316_v29 = vmul.f32 1.442695, %v18267_v41  ;;  %v18273_v41 = vld [vmem:[#allocation155_spill] sm:$0xff]  ;;  %v18276_v2 = vsub.f32 %v18275_v32, %v11011_v42  ;;  %18278 = vst [vmem:[#allocation62_spill] sm:$0xff] %v12343_v59  ;;  %v12365_v51 = vpop.eup %7234  ;;  %v18288_v32 = vld [vmem:[#allocation126_spill] sm:$0xff]  ;;  %7252 = vpow2.f32 %v12142_v27 }
 0x5f5   : > { %v12311_v35 = vmul.f32 1.442695, %v18265_v8  ;;  %v18274_v3 = vsub.f32 %v18273_v41, %v11011_v42  ;;  %v4906_v16 = vadd.f32 %v12321_v61, %v4905_v34  ;;  %v18284_v61 = vld [vmem:[#allocation167_spill] sm:$0xff]  ;;  %18287 = vst [vmem:[#allocation65_spill] sm:$0xff] %v12365_v51  ;;  %7254 = vpow2.f32 %v12147_v36 }
 0x5f6   : > { %v12338_v26 = vmul.f32 1.442695, %v18276_v2  ;;  %v18282_v2 = vld [vmem:[#allocation163_spill] sm:$0xff]  ;;  %v18285_v1 = vsub.f32 %v18284_v61, %v11011_v42  ;;  %7256 = vpow2.f32 %v12152_v12 }
 0x5f7   : > { %v12333_v37 = vmul.f32 1.442695, %v18274_v3  ;;  %v18283_v8 = vsub.f32 %v18282_v2, %v11011_v42  ;;  %v4907_v46 = vadd.f32 %v12343_v59, %v4906_v16  ;;  %v12383_v3 = vpop.eup %7236  ;;  %v18295_v2 = vld [vmem:[#allocation138_spill] sm:$0xff]  ;;  %7258 = vpow2.f32 %v12159_v33 }
 0x5f8   : > { %v12360_v44 = vmul.f32 1.442695, %v18285_v1  ;;  %v18291_v1 = vld [vmem:[#allocation171_spill] sm:$0xff]  ;;  %18294 = vst [vmem:[#allocation68_spill] sm:$0xff] %v12383_v3  ;;  %7260 = vpow2.f32 %v12164_v6 }
 0x5f9   : > { %v12355_v34 = vmul.f32 1.442695, %v18283_v8  ;;  %v18292_v16 = vsub.f32 %v18291_v1, %v11011_v42  ;;  %v4908_v39 = vadd.f32 %v12365_v51, %v4907_v46  ;;  %v12401_v8 = vpop.eup %7238  ;;  %7262 = vpow2.f32 %v12182_v5 }
 0x5fa   : > { %18301 = vst [vmem:[#allocation71_spill] sm:$0xff] %v12401_v8  ;;  %v12419_v61 = vpop.eup %7240  ;;  %7264 = vpow2.f32 %v12187_v52 }
 0x5fb   : > { %v12378_v59 = vmul.f32 1.442695, %v18292_v16  ;;  %v18298_v16 = vld [vmem:[#allocation175_spill] sm:$0xff]  ;;  %v4909_v20 = vadd.f32 %v12383_v3, %v4908_v39  ;;  %18308 = vst [vmem:[#allocation74_spill] sm:$0xff] %v12419_v61  ;;  %v12437_v1 = vpop.eup %7242  ;;  %7266 = vpow2.f32 %v12203_v50 }
 0x5fc   : > { %v18299_v46 = vsub.f32 %v18298_v16, %v11011_v42  ;;  %18315 = vst [vmem:[#allocation77_spill] sm:$0xff] %v12437_v1  ;;  %v12455_v12 = vpop.eup %7244  ;;  %7268 = vpow2.f32 %v12208_v58 }
 0x5fd   : > { %v4910_v22 = vadd.f32 %v12401_v8, %v4909_v20  ;;  %18321 = vst [vmem:[#allocation80_spill] sm:$0xff] %v12455_v12  ;;  %7270 = vpow2.f32 %v12224_v7 }
 0x5fe   : > { %v12396_v51 = vmul.f32 1.442695, %v18299_v46  ;;  %v18305_v46 = vld [vmem:[#allocation179_spill] sm:$0xff]  ;;  %7272 = vpow2.f32 %v12229_v53 }
 0x5ff   : > { %v18306_v39 = vsub.f32 %v18305_v46, %v11011_v42  ;;  %v4911_v63 = vadd.f32 %v12419_v61, %v4910_v22  ;;  %v18319_v22 = vsub.f32 %v17793_v43, %v11011_v42  ;;  %7274 = vpow2.f32 %v12245_v4 }
 0x600   : > { %7276 = vpow2.f32 %v12250_v38 }
 0x601   : > { %v12414_v3 = vmul.f32 1.442695, %v18306_v39  ;;  %v18312_v39 = vld [vmem:[#allocation183_spill] sm:$0xff]  ;;  %v4912_v27 = vadd.f32 %v12437_v1, %v4911_v63  ;;  %v18326_v63 = vsub.f32 %v17794_v47, %v11011_v42 }
 0x602   : > { %v18313_v20 = vsub.f32 %v18312_v39, %v11011_v42 }
 0x603   : > { %v12470_v61 = vmul.f32 1.442695, %v18326_v63  ;;  %v4913_v52 = vadd.f32 %v12455_v12, %v4912_v27  ;;  %v18333_v27 = vld [vmem:[#allocation195_spill] sm:$0xff] }
 0x604   : > { %v12432_v8 = vmul.f32 1.442695, %v18313_v20  ;;  %v12450_v20 = vmul.f32 1.442695, %v18319_v22  ;;  %v12464_v22 = vpop.eup %7246  ;;  %v18334_v41 = vsub.f32 %v18333_v27, %v11011_v42  ;;  %7278 = vpow2.f32 %v12267_v21 }
 0x605   : > { %18325 = vst [vmem:[#allocation83_spill] sm:$0xff] %v12464_v22  ;;  %v12475_v33 = vpop.eup %7248  ;;  %v4914_v58 = vadd.f32 %v12464_v22, %v4913_v52  ;;  %v18341_v52 = vld [vmem:[#allocation199_spill] sm:$0xff]  ;;  %7280 = vpow2.f32 %v12272_v13 }
 0x606   : > { %18328 = vst [vmem:[#allocation86_spill] sm:$0xff] %v12475_v33  ;;  %v12484_v63 = vpop.eup %7250  ;;  %v12490_v12 = vmul.f32 1.442695, %v18334_v41  ;;  %v18342_v5 = vsub.f32 %v18341_v52, %v11011_v42  ;;  %7282 = vpow2.f32 %v12289_v9 }
 0x607   : > { %18332 = vst [vmem:[#allocation89_spill] sm:$0xff] %v12484_v63  ;;  %v12495_v43 = vpop.eup %7252  ;;  %v4915_v53 = vadd.f32 %v12475_v33, %v4914_v58  ;;  %v18349_v58 = vld [vmem:[#allocation203_spill] sm:$0xff]  ;;  %7284 = vpow2.f32 %v12294_v54 }
 0x608   : > { %18336 = vst [vmem:[#allocation92_spill] sm:$0xff] %v12495_v43  ;;  %v12504_v41 = vpop.eup %7254  ;;  %v12510_v22 = vmul.f32 1.442695, %v18342_v5  ;;  %v18350_v50 = vsub.f32 %v18349_v58, %v11011_v42  ;;  %7286 = vpow2.f32 %v12311_v35 }
 0x609   : > { %18340 = vst [vmem:[#allocation95_spill] sm:$0xff] %v12504_v41  ;;  %v12515_v47 = vpop.eup %7256  ;;  %v4916_v38 = vadd.f32 %v12484_v63, %v4915_v53  ;;  %v18357_v53 = vld [vmem:[#allocation207_spill] sm:$0xff]  ;;  %7288 = vpow2.f32 %v12316_v29 }
 0x60a   : > { %18344 = vst [vmem:[#allocation98_spill] sm:$0xff] %v12515_v47  ;;  %v12524_v5 = vpop.eup %7258  ;;  %v12530_v1 = vmul.f32 1.442695, %v18350_v50  ;;  %v18358_v7 = vsub.f32 %v18357_v53, %v11011_v42  ;;  %7290 = vpow2.f32 %v12333_v37 }
 0x60b   : > { %18348 = vst [vmem:[#allocation101_spill] sm:$0xff] %v12524_v5  ;;  %v12535_v27 = vpop.eup %7260  ;;  %v4917_v13 = vadd.f32 %v12495_v43, %v4916_v38  ;;  %v18365_v38 = vld [vmem:[#allocation211_spill] sm:$0xff]  ;;  %7292 = vpow2.f32 %v12338_v26 }
 0x60c   : > { %18352 = vst [vmem:[#allocation104_spill] sm:$0xff] %v12535_v27  ;;  %v12544_v50 = vpop.eup %7262  ;;  %v12550_v33 = vmul.f32 1.442695, %v18358_v7  ;;  %v18366_v4 = vsub.f32 %v18365_v38, %v11011_v42  ;;  %7294 = vpow2.f32 %v12355_v34 }
 0x60d   : > { %18356 = vst [vmem:[#allocation107_spill] sm:$0xff] %v12544_v50  ;;  %v12555_v52 = vpop.eup %7264  ;;  %v4918_v54 = vadd.f32 %v12504_v41, %v4917_v13  ;;  %v18373_v13 = vld [vmem:[#allocation215_spill] sm:$0xff]  ;;  %7296 = vpow2.f32 %v12360_v44 }
 0x60e   : > { %18360 = vst [vmem:[#allocation110_spill] sm:$0xff] %v12555_v52  ;;  %v12564_v7 = vpop.eup %7266  ;;  %v12570_v63 = vmul.f32 1.442695, %v18366_v4  ;;  %v18374_v21 = vsub.f32 %v18373_v13, %v11011_v42  ;;  %7298 = vpow2.f32 %v12378_v59 }
 0x60f   : > { %18364 = vst [vmem:[#allocation113_spill] sm:$0xff] %v12564_v7  ;;  %v12575_v58 = vpop.eup %7268  ;;  %v4919_v29 = vadd.f32 %v12515_v47, %v4918_v54  ;;  %v18381_v54 = vsub.f32 %v17811_v60, %v11011_v42  ;;  %7300 = vpow2.f32 %v12396_v51 }
 0x610   : > { %18368 = vst [vmem:[#allocation116_spill] sm:$0xff] %v12575_v58  ;;  %v12584_v4 = vpop.eup %7270  ;;  %v12590_v43 = vmul.f32 1.442695, %v18374_v21  ;;  %7302 = vpow2.f32 %v12414_v3 }
 0x611   : > { %18372 = vst [vmem:[#allocation119_spill] sm:$0xff] %v12584_v4  ;;  %v12595_v53 = vpop.eup %7272  ;;  %v12610_v9 = vmul.f32 1.442695, %v18381_v54  ;;  %v4920_v26 = vadd.f32 %v12524_v5, %v4919_v29  ;;  %v18388_v29 = vld [vmem:[#allocation223_spill] sm:$0xff]  ;;  %7304 = vpow2.f32 %v12432_v8 }
 0x612   : > { %18376 = vst [vmem:[#allocation122_spill] sm:$0xff] %v12595_v53  ;;  %v12604_v21 = vpop.eup %7274  ;;  %v18389_v35 = vsub.f32 %v18388_v29, %v11011_v42  ;;  %7306 = vpow2.f32 %v12450_v20 }
 0x613   : > { %18380 = vst [vmem:[#allocation125_spill] sm:$0xff] %v12604_v21  ;;  %v12615_v38 = vpop.eup %7276  ;;  %v4921_v44 = vadd.f32 %v12535_v27, %v4920_v26  ;;  %v18396_v26 = vsub.f32 %v17816_v17, %v11011_v42  ;;  %7308 = vpow2.f32 %v12470_v61 }
 0x614   : > { %18383 = vst [vmem:[#allocation128_spill] sm:$0xff] %v12615_v38  ;;  %v12624_v54 = vpop.eup %7278  ;;  %v12630_v41 = vmul.f32 1.442695, %v18389_v35  ;;  %7310 = vpow2.f32 %v12490_v12 }
 0x615   : > { %18387 = vst [vmem:[#allocation131_spill] sm:$0xff] %v12624_v54  ;;  %v12635_v13 = vpop.eup %7280  ;;  %v4248_v37 = vmul.f32 1.442695, %v18396_v26  ;;  %v4922_v5 = vadd.f32 %v12544_v50, %v4921_v44  ;;  %v18403_v44 = vld [vmem:[#allocation231_spill] sm:$0xff]  ;;  %7312 = vpow2.f32 %v12510_v22 }
 0x616   : > { %18391 = vst [vmem:[#allocation134_spill] sm:$0xff] %v12635_v13  ;;  %v12644_v35 = vpop.eup %7282  ;;  %v18404_v26 = vsub.f32 %v18403_v44, %v11011_v42  ;;  %7314 = vpow2.f32 %v12530_v1 }
 0x617   : > { %18395 = vst [vmem:[#allocation137_spill] sm:$0xff] %v12644_v35  ;;  %v12653_v34 = vpop.eup %7284  ;;  %v4923_v51 = vadd.f32 %v12555_v52, %v4922_v5  ;;  %v18411_v5 = vld [vmem:[#allocation235_spill] sm:$0xff]  ;;  %7316 = vpow2.f32 %v12550_v33 }
 0x618   : > { %18398 = vst [vmem:[#allocation140_spill] sm:$0xff] %v12653_v34  ;;  %v12662_v17 = vpop.eup %7286  ;;  %v4256_v27 = vmul.f32 1.442695, %v18404_v26  ;;  %v18412_v26 = vsub.f32 %v18411_v5, %v11011_v42  ;;  %7318 = vpow2.f32 %v12570_v63 }
 0x619   : > { %18402 = vst [vmem:[#allocation143_spill] sm:$0xff] %v12662_v17  ;;  %v12671_v29 = vpop.eup %7288  ;;  %v4924_v8 = vadd.f32 %v12564_v7, %v4923_v51  ;;  %v18419_v51 = vld [vmem:[#allocation239_spill] sm:$0xff]  ;;  %7320 = vpow2.f32 %v12590_v43 }
 0x61a   : > { %18406 = vst [vmem:[#allocation147_spill] sm:$0xff] %v12671_v29  ;;  %v12680_v44 = vpop.eup %7290  ;;  %v4264_v50 = vmul.f32 1.442695, %v18412_v26  ;;  %v18420_v26 = vsub.f32 %v18419_v51, %v11011_v42  ;;  %7322 = vpow2.f32 %v12610_v9  ;;  %v18460_v9 = vld [vmem:[#allocation263_spill] sm:$0xff] }
 0x61b   : > { %18410 = vst [vmem:[#allocation151_spill] sm:$0xff] %v12680_v44  ;;  %v12689_v60 = vpop.eup %7292  ;;  %v4925_v61 = vadd.f32 %v12575_v58, %v4924_v8  ;;  %v18427_v8 = vld [vmem:[#allocation243_spill] sm:$0xff]  ;;  %7324 = vpow2.f32 %v12630_v41 }
 0x61c   : > { %18414 = vst [vmem:[#allocation155_spill] sm:$0xff] %v12689_v60  ;;  %v12698_v5 = vpop.eup %7294  ;;  %v4272_v52 = vmul.f32 1.442695, %v18420_v26  ;;  %v18428_v26 = vsub.f32 %v18427_v8, %v11011_v42  ;;  %7326 = vpow2.f32 %v4248_v37  ;;  %v18461_v37 = vsub.f32 %v18460_v9, %v11011_v42 }
 0x61d   : > { %18418 = vst [vmem:[#allocation159_spill] sm:$0xff] %v12698_v5  ;;  %v12707_v59 = vpop.eup %7296  ;;  %v4926_v22 = vadd.f32 %v12584_v4, %v4925_v61  ;;  %v18435_v61 = vld [vmem:[#allocation247_spill] sm:$0xff]  ;;  %7328 = vpow2.f32 %v4256_v27  ;;  %v5030_v27 = vadd.f32 %v11845_v10, %v12054_v48 }
 0x61e   : > { %18422 = vst [vmem:[#allocation163_spill] sm:$0xff] %v12707_v59  ;;  %v12716_v51 = vpop.eup %7298  ;;  %v4280_v7 = vmul.f32 1.442695, %v18428_v26  ;;  %v18436_v26 = vsub.f32 %v18435_v61, %v11011_v42  ;;  %7330 = vpow2.f32 %v4264_v50  ;;  %v4320_v63 = vmul.f32 1.442695, %v18461_v37  ;;  %v18473_v48 = vld [vmem:[#allocation279_spill] sm:$0xff] }
 0x61f   : > { %18426 = vst [vmem:[#allocation167_spill] sm:$0xff] %v12716_v51  ;;  %v12725_v31 = vpop.eup %7300  ;;  %v4927_v33 = vadd.f32 %v12595_v53, %v4926_v22  ;;  %v18443_v22 = vsub.f32 %v17829_v40, %v11011_v42  ;;  %v18450_v40 = vld [vmem:[#allocation255_spill] sm:$0xff]  ;;  %7332 = vpow2.f32 %v4272_v52  ;;  %v18459_v52 = vld [vmem:[#allocation509_spill] sm:$0xff] }
 0x620   : > { %18430 = vst [vmem:[#allocation126_spill] sm:$0xff] %v12725_v31  ;;  %v12734_v8 = vpop.eup %7302  ;;  %v4288_v58 = vmul.f32 1.442695, %v18436_v26  ;;  %7334 = vpow2.f32 %v4280_v7  ;;  %v4785_v3 = vadd.f32 %v18459_v52, %v12046_v25  ;;  %v18463_v7 = vld [vmem:[#allocation267_spill] sm:$0xff] }
 0x621   : > { %18434 = vst [vmem:[#allocation171_spill] sm:$0xff] %v12734_v8  ;;  %v12743_v39 = vpop.eup %7304  ;;  %v4296_v26 = vmul.f32 1.442695, %v18443_v22  ;;  %v4928_v4 = vadd.f32 %v12604_v21, %v4927_v33  ;;  %v18451_v33 = vsub.f32 %v18450_v40, %v11011_v42  ;;  %v18464_v28 = vsub.f32 %v18463_v7, %v11011_v42  ;;  %v18466_v25 = vld [vmem:[#allocation271_spill] sm:$0xff] }
 0x622   : > { %18438 = vst [vmem:[#allocation138_spill] sm:$0xff] %v12743_v39  ;;  %v12752_v61 = vpop.eup %7306  ;;  %7336 = vpow2.f32 %v4288_v58  ;;  %v18467_v58 = vsub.f32 %v18466_v25, %v11011_v42 }
 0x623   : > { %18442 = vst [vmem:[#allocation175_spill] sm:$0xff] %v12752_v61  ;;  %v12760_v53 = vpop.eup %7308  ;;  %v4304_v22 = vmul.f32 1.442695, %v18451_v33  ;;  %v4929_v43 = vadd.f32 %v12615_v38, %v4928_v4  ;;  %v18457_v4 = vsub.f32 %v17834_v24, %v11011_v42  ;;  %7338 = vpow2.f32 %v4296_v26  ;;  %v18469_v26 = vld [vmem:[#allocation275_spill] sm:$0xff] }
 0x624   : > { %18445 = vst [vmem:[#allocation152_spill] sm:$0xff] %v12760_v53  ;;  %v12768_v12 = vpop.eup %7310  ;;  %v4328_v24 = vmul.f32 1.442695, %v18464_v28  ;;  %v4336_v9 = vmul.f32 1.442695, %v18467_v58  ;;  %v18470_v1 = vsub.f32 %v18469_v26, %v11011_v42 }
 0x625   : > { %18449 = vst [vmem:[#allocation179_spill] sm:$0xff] %v12768_v12  ;;  %v12776_v21 = vpop.eup %7312  ;;  %v4312_v40 = vmul.f32 1.442695, %v18457_v4  ;;  %v4930_v33 = vadd.f32 %v12624_v54, %v4929_v43  ;;  %7340 = vpow2.f32 %v4304_v22  ;;  %v18474_v22 = vsub.f32 %v18473_v48, %v11011_v42 }
 0x626   : > { %18453 = vst [vmem:[#allocation168_spill] sm:$0xff] %v12776_v21  ;;  %v12784_v20 = vpop.eup %7314  ;;  %v4344_v7 = vmul.f32 1.442695, %v18470_v1 }
 0x627   : > { %18456 = vst [vmem:[#allocation183_spill] sm:$0xff] %v12784_v20  ;;  %v12790_v41 = vpop.eup %7316  ;;  %v4931_v4 = vadd.f32 %v12635_v13, %v4930_v33  ;;  %7342 = vpow2.f32 %v4312_v40  ;;  %v18472_v13 = vld [vmem:[#allocation510_spill] sm:$0xff]  ;;  %v4352_v38 = vmul.f32 1.442695, %v18474_v22  ;;  %v18476_v40 = vsub.f32 %v17847_v56, %v11011_v42  ;;  %v18481_v22 = vld [vmem:[#allocation291_spill] sm:$0xff] }
 0x628   : > { %18458 = vst [vmem:[#allocation195_spill] sm:$0xff] %v12790_v41  ;;  %v12797_v50 = vpop.eup %7318  ;;  %v4786_v54 = vadd.f32 %v18472_v13, %v4785_v3  ;;  %7344 = vpow2.f32 %v4320_v63  ;;  %v18478_v3 = vld [vmem:[#allocation287_spill] sm:$0xff] }
 0x629   : > { %18462 = vst [vmem:[#allocation199_spill] sm:$0xff] %v12797_v50  ;;  %v12803_v43 = vpop.eup %7320  ;;  %v4932_v28 = vadd.f32 %v12644_v35, %v4931_v4  ;;  %7346 = vpow2.f32 %v4328_v24  ;;  %v4360_v58 = vmul.f32 1.442695, %v18476_v40  ;;  %v5031_v4 = vadd.f32 %v11851_v49, %v5030_v27  ;;  %v18485_v27 = vld [vmem:[#allocation295_spill] sm:$0xff] }
 0x62a   : > { %18465 = vst [vmem:[#allocation203_spill] sm:$0xff] %v12803_v43  ;;  %v12810_v37 = vpop.eup %7322  ;;  %7348 = vpow2.f32 %v4336_v9  ;;  %v18479_v63 = vsub.f32 %v18478_v3, %v11011_v42  ;;  %v18482_v24 = vsub.f32 %v18481_v22, %v11011_v42  ;;  %v18486_v9 = vsub.f32 %v18485_v27, %v11011_v42 }
 0x62b   : > { %18468 = vst [vmem:[#allocation207_spill] sm:$0xff] %v12810_v37  ;;  %v12816_v33 = vpop.eup %7324  ;;  %v4933_v1 = vadd.f32 %v12653_v34, %v4932_v28  ;;  %7350 = vpow2.f32 %v4344_v7  ;;  %v18484_v28 = vld [vmem:[#allocation511_spill] sm:$0xff]  ;;  %v18488_v7 = vsub.f32 %v17855_v62, %v11011_v42 }
 0x62c   : > { %18471 = vst [vmem:[#allocation211_spill] sm:$0xff] %v12816_v33  ;;  %v12822_v25 = vpop.eup %7326  ;;  %v4368_v35 = vmul.f32 1.442695, %v18479_v63  ;;  %v4376_v13 = vmul.f32 1.442695, %v18482_v24  ;;  %v4787_v34 = vadd.f32 %v18484_v28, %v4786_v54  ;;  %7352 = vpow2.f32 %v4352_v38  ;;  %v18490_v54 = vld [vmem:[#allocation303_spill] sm:$0xff] }
 0x62d   : > { %18475 = vst [vmem:[#allocation215_spill] sm:$0xff] %v12822_v25  ;;  %v12828_v26 = vpop.eup %7328  ;;  %v4934_v56 = vadd.f32 %v12662_v17, %v4933_v1  ;;  %v4384_v52 = vmul.f32 1.442695, %v18486_v9  ;;  %7354 = vpow2.f32 %v4360_v58  ;;  %v4392_v63 = vmul.f32 1.442695, %v18488_v7  ;;  %v18493_v9 = vld [vmem:[#allocation307_spill] sm:$0xff] }
 0x62e   : > { %18477 = vst [vmem:[#allocation223_spill] sm:$0xff] %v12828_v26  ;;  %v12834_v48 = vpop.eup %7330  ;;  %v5032_v1 = vadd.f32 %v11856_v15, %v5031_v4  ;;  %7356 = vpow2.f32 %v4368_v35  ;;  %v18491_v38 = vsub.f32 %v18490_v54, %v11011_v42  ;;  %v18494_v58 = vsub.f32 %v18493_v9, %v11011_v42  ;;  %v18497_v4 = vld [vmem:[#allocation311_spill] sm:$0xff] }
 0x62f   : > { %18480 = vst [vmem:[#allocation231_spill] sm:$0xff] %v12834_v48  ;;  %v12840_v40 = vpop.eup %7332  ;;  %v4935_v22 = vadd.f32 %v12671_v29, %v4934_v56  ;;  %7358 = vpow2.f32 %v4376_v13  ;;  %v18496_v56 = vld [vmem:[#allocation145_spill] sm:$0xff]  ;;  %v18498_v35 = vsub.f32 %v18497_v4, %v11011_v42 }
 0x630   : > { %18483 = vst [vmem:[#allocation235_spill] sm:$0xff] %v12840_v40  ;;  %v12846_v3 = vpop.eup %7334  ;;  %v4400_v17 = vmul.f32 1.442695, %v18491_v38  ;;  %v4408_v28 = vmul.f32 1.442695, %v18494_v58  ;;  %v4788_v29 = vadd.f32 %v18496_v56, %v4787_v34  ;;  %7360 = vpow2.f32 %v4384_v52  ;;  %v18500_v38 = vld [vmem:[#allocation315_spill] sm:$0xff] }
 0x631   : > { %18487 = vst [vmem:[#allocation239_spill] sm:$0xff] %v12846_v3  ;;  %v12852_v24 = vpop.eup %7336  ;;  %v4936_v62 = vadd.f32 %v12680_v44, %v4935_v22  ;;  %v4416_v47 = vmul.f32 1.442695, %v18498_v35  ;;  %7362 = vpow2.f32 %v4392_v63  ;;  %v18501_v13 = vsub.f32 %v18500_v38, %v11011_v42  ;;  %v18503_v34 = vld [vmem:[#allocation319_spill] sm:$0xff] }
 0x632   : > { %18489 = vst [vmem:[#allocation243_spill] sm:$0xff] %v12852_v24  ;;  %v12858_v27 = vpop.eup %7338  ;;  %v5033_v22 = vadd.f32 %v11861_v30, %v5032_v1  ;;  %7364 = vpow2.f32 %v4400_v17  ;;  %v18504_v52 = vsub.f32 %v18503_v34, %v11011_v42  ;;  %v18506_v63 = vsub.f32 %v17870_v18, %v11011_v42  ;;  %v18509_v1 = vld [vmem:[#allocation327_spill] sm:$0xff] }
 0x633   : > { %18492 = vst [vmem:[#allocation247_spill] sm:$0xff] %v12858_v27  ;;  %v12864_v7 = vpop.eup %7340  ;;  %v4424_v6 = vmul.f32 1.442695, %v18501_v13  ;;  %v4937_v9 = vadd.f32 %v12689_v60, %v4936_v62  ;;  %7366 = vpow2.f32 %v4408_v28  ;;  %v18508_v62 = vld [vmem:[#allocation149_spill] sm:$0xff]  ;;  %v18510_v17 = vsub.f32 %v18509_v1, %v11011_v42 }
 0x634   : > { %18495 = vst [vmem:[#allocation255_spill] sm:$0xff] %v12864_v7  ;;  %v12870_v54 = vpop.eup %7342  ;;  %v4432_v44 = vmul.f32 1.442695, %v18504_v52  ;;  %v4440_v35 = vmul.f32 1.442695, %v18506_v63  ;;  %v4789_v60 = vadd.f32 %v18508_v62, %v4788_v29  ;;  %7368 = vpow2.f32 %v4416_v47  ;;  %v18514_v29 = vld [vmem:[#allocation335_spill] sm:$0xff] }
 0x635   : > { %18499 = vst [vmem:[#allocation263_spill] sm:$0xff] %v12870_v54  ;;  %v12876_v58 = vpop.eup %7344  ;;  %v4938_v38 = vadd.f32 %v12698_v5, %v4937_v9  ;;  %v4448_v56 = vmul.f32 1.442695, %v18510_v17  ;;  %7370 = vpow2.f32 %v4424_v6  ;;  %v18512_v28 = vsub.f32 %v17873_v45, %v11011_v42  ;;  %v18517_v17 = vld [vmem:[#allocation339_spill] sm:$0xff] }
 0x636   : > { %18502 = vst [vmem:[#allocation267_spill] sm:$0xff] %v12876_v58  ;;  %v12882_v4 = vpop.eup %7346  ;;  %v5034_v9 = vadd.f32 %v11866_v23, %v5033_v22  ;;  %7372 = vpow2.f32 %v4432_v44  ;;  %v18515_v47 = vsub.f32 %v18514_v29, %v11011_v42  ;;  %v18518_v6 = vsub.f32 %v18517_v17, %v11011_v42  ;;  %v18521_v22 = vld [vmem:[#allocation343_spill] sm:$0xff] }
 0x637   : > { %18505 = vst [vmem:[#allocation271_spill] sm:$0xff] %v12882_v4  ;;  %v12888_v13 = vpop.eup %7348  ;;  %v4456_v52 = vmul.f32 1.442695, %v18512_v28  ;;  %v4939_v18 = vadd.f32 %v12707_v59, %v4938_v38  ;;  %7374 = vpow2.f32 %v4440_v35  ;;  %v18520_v38 = vld [vmem:[#allocation153_spill] sm:$0xff]  ;;  %v18522_v44 = vsub.f32 %v18521_v22, %v11011_v42 }
 0x638   : > { %18507 = vst [vmem:[#allocation275_spill] sm:$0xff] %v12888_v13  ;;  %v12894_v34 = vpop.eup %7350  ;;  %v4464_v5 = vmul.f32 1.442695, %v18515_v47  ;;  %v4472_v62 = vmul.f32 1.442695, %v18518_v6  ;;  %v4790_v59 = vadd.f32 %v18520_v38, %v4789_v60  ;;  %7376 = vpow2.f32 %v4448_v56  ;;  %v18524_v47 = vld [vmem:[#allocation347_spill] sm:$0xff] }
 0x639   : > { %18511 = vst [vmem:[#allocation279_spill] sm:$0xff] %v12894_v34  ;;  %v12900_v63 = vpop.eup %7352  ;;  %v4940_v45 = vadd.f32 %v12716_v51, %v4939_v18  ;;  %v4480_v46 = vmul.f32 1.442695, %v18522_v44  ;;  %7378 = vpow2.f32 %v4456_v52  ;;  %v18525_v35 = vsub.f32 %v18524_v47, %v11011_v42  ;;  %v18527_v60 = vld [vmem:[#allocation351_spill] sm:$0xff] }
 0x63a   : > { %18513 = vst [vmem:[#allocation287_spill] sm:$0xff] %v12900_v63  ;;  %v12906_v1 = vpop.eup %7354  ;;  %v5035_v18 = vadd.f32 %v11872_v0, %v5034_v9  ;;  %7380 = vpow2.f32 %v4464_v5  ;;  %v18528_v56 = vsub.f32 %v18527_v60, %v11011_v42  ;;  %v18530_v52 = vsub.f32 %v17888_v14, %v11011_v42  ;;  %v18533_v9 = vld [vmem:[#allocation359_spill] sm:$0xff] }
 0x63b   : > { %18516 = vst [vmem:[#allocation291_spill] sm:$0xff] %v12906_v1  ;;  %v12912_v28 = vpop.eup %7356  ;;  %v4488_v36 = vmul.f32 1.442695, %v18525_v35  ;;  %v4941_v17 = vadd.f32 %v12725_v31, %v4940_v45  ;;  %7382 = vpow2.f32 %v4472_v62  ;;  %v18532_v45 = vld [vmem:[#allocation157_spill] sm:$0xff]  ;;  %v18534_v5 = vsub.f32 %v18533_v9, %v11011_v42 }
 0x63c   : > { %18519 = vst [vmem:[#allocation295_spill] sm:$0xff] %v12912_v28  ;;  %v12918_v29 = vpop.eup %7358  ;;  %v4496_v51 = vmul.f32 1.442695, %v18528_v56  ;;  %v4504_v44 = vmul.f32 1.442695, %v18530_v52  ;;  %v4791_v31 = vadd.f32 %v18532_v45, %v4790_v59  ;;  %7384 = vpow2.f32 %v4480_v46  ;;  %v18539_v59 = vld [vmem:[#allocation367_spill] sm:$0xff] }
 0x63d   : > { %18523 = vst [vmem:[#allocation303_spill] sm:$0xff] %v12918_v29  ;;  %v12924_v6 = vpop.eup %7360  ;;  %v4942_v47 = vadd.f32 %v12734_v8, %v4941_v17  ;;  %v4512_v38 = vmul.f32 1.442695, %v18534_v5  ;;  %7386 = vpow2.f32 %v4488_v36  ;;  %v18536_v62 = vsub.f32 %v17891_v57, %v11011_v42  ;;  %v18538_v17 = vld [vmem:[#allocation28_spill] sm:$0xff]  ;;  %v18542_v5 = vld [vmem:[#allocation371_spill] sm:$0xff] }
 0x63e   : > { %18526 = vst [vmem:[#allocation307_spill] sm:$0xff] %v12924_v6  ;;  %v12930_v22 = vpop.eup %7362  ;;  %v5036_v8 = vadd.f32 %v18538_v17, %v5035_v18  ;;  %7388 = vpow2.f32 %v4496_v51  ;;  %v18540_v46 = vsub.f32 %v18539_v59, %v11011_v42  ;;  %v18543_v36 = vsub.f32 %v18542_v5, %v11011_v42  ;;  %v18546_v18 = vld [vmem:[#allocation375_spill] sm:$0xff] }
 0x63f   : > { %18529 = vst [vmem:[#allocation311_spill] sm:$0xff] %v12930_v22  ;;  %v12936_v35 = vpop.eup %7364  ;;  %v4520_v56 = vmul.f32 1.442695, %v18536_v62  ;;  %v4943_v14 = vadd.f32 %v12743_v39, %v4942_v47  ;;  %7390 = vpow2.f32 %v4504_v44  ;;  %v18545_v47 = vld [vmem:[#allocation161_spill] sm:$0xff]  ;;  %v18547_v51 = vsub.f32 %v18546_v18, %v11011_v42 }
 0x640   : > { %18531 = vst [vmem:[#allocation315_spill] sm:$0xff] %v12936_v35  ;;  %v12942_v60 = vpop.eup %7366  ;;  %v4528_v45 = vmul.f32 1.442695, %v18540_v46  ;;  %v4536_v16 = vmul.f32 1.442695, %v18543_v36  ;;  %v4792_v39 = vadd.f32 %v18545_v47, %v4791_v31  ;;  %7392 = vpow2.f32 %v4512_v38  ;;  %v18549_v46 = vld [vmem:[#allocation15_spill] sm:$0xff] }
 0x641   : > { %18535 = vst [vmem:[#allocation319_spill] sm:$0xff] %v12942_v60  ;;  %v12948_v52 = vpop.eup %7368  ;;  %v4944_v57 = vadd.f32 %v12752_v61, %v4943_v14  ;;  %7394 = vpow2.f32 %v4520_v56  ;;  %v18550_v5 = vsub.f32 %v18549_v46, %v12135_v11  ;;  %v18552_v14 = vld [vmem:[#allocation31_spill] sm:$0xff]  ;;  %v18553_v31 = vld [vmem:[#allocation18_spill] sm:$0xff] }
 0x642   : > { %18537 = vst [vmem:[#allocation327_spill] sm:$0xff] %v12948_v52  ;;  %v12954_v9 = vpop.eup %7370  ;;  %v4544_v52 = vmul.f32 1.442695, %v18547_v51  ;;  %v5037_v61 = vadd.f32 %v18552_v14, %v5036_v8  ;;  %7396 = vpow2.f32 %v4528_v45  ;;  %v18554_v38 = vsub.f32 %v18553_v31, %v12135_v11  ;;  %v18556_v51 = vld [vmem:[#allocation21_spill] sm:$0xff]  ;;  %v18560_v8 = vld [vmem:[#allocation24_spill] sm:$0xff] }
 0x643   : > { %18541 = vst [vmem:[#allocation335_spill] sm:$0xff] %v12954_v9  ;;  %v12960_v62 = vpop.eup %7372  ;;  %v4945_v44 = vadd.f32 %v12760_v53, %v4944_v57  ;;  %v3740_v36 = vmul.f32 1.442695, %v18550_v5  ;;  %7398 = vpow2.f32 %v4536_v16  ;;  %v18557_v57 = vsub.f32 %v18556_v51, %v12135_v11  ;;  %v18559_v5 = vld [vmem:[#allocation169_spill] sm:$0xff]  ;;  %v18563_v16 = vld [vmem:[#allocation27_spill] sm:$0xff] }
 0x644   : > { %18544 = vst [vmem:[#allocation339_spill] sm:$0xff] %v12960_v62  ;;  %v12966_v59 = vpop.eup %7374  ;;  %v3748_v47 = vmul.f32 1.442695, %v18554_v38  ;;  %v4793_v42 = vadd.f32 %v18559_v5, %v4792_v39  ;;  %7400 = vpow2.f32 %v4544_v52  ;;  %v18561_v45 = vsub.f32 %v18560_v8, %v12135_v11  ;;  %v18567_v39 = vld [vmem:[#allocation30_spill] sm:$0xff]  ;;  %v18634_v62 = vld [vmem:[#allocation225_spill] sm:$0xff] }
 0x645   : > { %18548 = vst [vmem:[#allocation343_spill] sm:$0xff] %v12966_v59  ;;  %v12972_v9 = vpop.eup %7376  ;;  %v4946_v56 = vadd.f32 %v12768_v12, %v4945_v44  ;;  %v3756_v53 = vmul.f32 1.442695, %v18557_v57  ;;  %7402 = vpow2.f32 %v3740_v36  ;;  %v18564_v44 = vsub.f32 %v18563_v16, %v12135_v11  ;;  %v18566_v57 = vld [vmem:[#allocation34_spill] sm:$0xff]  ;;  %v18655_v14 = vld [vmem:[#allocation469_spill] sm:$0xff] }
 0x646   : > { %18551 = vst [vmem:[#allocation347_spill] sm:$0xff] %v12972_v9  ;;  %v12978_v18 = vpop.eup %7378  ;;  %v3764_v9 = vmul.f32 1.442695, %v18561_v45  ;;  %7404 = vpow2.f32 %v3748_v47  ;;  %v18568_v52 = vsub.f32 %v18567_v39, %v12135_v11 }
 0x647   : > { %18555 = vst [vmem:[#allocation351_spill] sm:$0xff] %v12978_v18  ;;  %v12984_v46 = vpop.eup %7380  ;;  %v4947_v38 = vadd.f32 %v12776_v21, %v4946_v56  ;;  %v3772_v12 = vmul.f32 1.442695, %v18564_v44  ;;  %7406 = vpow2.f32 %v3756_v53  ;;  %v18570_v56 = vld [vmem:[#allocation33_spill] sm:$0xff] }
 0x648   : > { %18558 = vst [vmem:[#allocation359_spill] sm:$0xff] %v12984_v46  ;;  %v12990_v31 = vpop.eup %7382  ;;  %v5038_v46 = vadd.f32 %v18566_v57, %v5037_v61  ;;  %v3780_v5 = vmul.f32 1.442695, %v18568_v52  ;;  %v18571_v36 = vsub.f32 %v18570_v56, %v12135_v11  ;;  %v18573_v44 = vld [vmem:[#allocation173_spill] sm:$0xff]  ;;  %7408 = vpow2.f32 %v3764_v9  ;;  %v18574_v61 = vld [vmem:[#allocation36_spill] sm:$0xff] }
 0x649   : > { %18562 = vst [vmem:[#allocation28_spill] sm:$0xff] %v12990_v31  ;;  %v12996_v51 = vpop.eup %7384  ;;  %v4948_v45 = vadd.f32 %v12784_v20, %v4947_v38  ;;  %v18575_v47 = vsub.f32 %v18574_v61, %v12135_v11  ;;  %7410 = vpow2.f32 %v3772_v12  ;;  %v18577_v38 = vld [vmem:[#allocation39_spill] sm:$0xff] }
 0x64a   : > { %18565 = vst [vmem:[#allocation367_spill] sm:$0xff] %v12996_v51  ;;  %v13002_v8 = vpop.eup %7386  ;;  %v3788_v21 = vmul.f32 1.442695, %v18571_v36  ;;  %v4794_v51 = vadd.f32 %v18573_v44, %v4793_v42  ;;  %v18578_v53 = vsub.f32 %v18577_v38, %v12135_v11  ;;  %v18580_v36 = vld [vmem:[#allocation37_spill] sm:$0xff]  ;;  %7412 = vpow2.f32 %v3780_v5  ;;  %v18581_v42 = vld [vmem:[#allocation42_spill] sm:$0xff] }
 0x64b   : > { %18569 = vst [vmem:[#allocation371_spill] sm:$0xff] %v13002_v8  ;;  %v13008_v16 = vpop.eup %7388  ;;  %v3796_v31 = vmul.f32 1.442695, %v18575_v47  ;;  %v4949_v52 = vadd.f32 %v12790_v41, %v4948_v45  ;;  %v18582_v9 = vsub.f32 %v18581_v42, %v12135_v11  ;;  %v18584_v45 = vld [vmem:[#allocation45_spill] sm:$0xff] }
 0x64c   : > { %18572 = vst [vmem:[#allocation375_spill] sm:$0xff] %v13008_v16  ;;  %v13014_v39 = vpop.eup %7390  ;;  %v3804_v20 = vmul.f32 1.442695, %v18578_v53  ;;  %v5039_v16 = vadd.f32 %v18580_v36, %v5038_v46  ;;  %7414 = vpow2.f32 %v3788_v21  ;;  %v18585_v12 = vsub.f32 %v18584_v45, %v12135_v11  ;;  %v18587_v53 = vld [vmem:[#allocation177_spill] sm:$0xff]  ;;  %v18588_v46 = vld [vmem:[#allocation48_spill] sm:$0xff] }
 0x64d   : > { %18576 = vst [vmem:[#allocation15_spill] sm:$0xff] %v13014_v39  ;;  %v13020_v56 = vpop.eup %7392  ;;  %v3812_v44 = vmul.f32 1.442695, %v18582_v9  ;;  %v4950_v47 = vadd.f32 %v12797_v50, %v4949_v52  ;;  %7416 = vpow2.f32 %v3796_v31  ;;  %v18589_v5 = vsub.f32 %v18588_v46, %v12135_v11  ;;  %v18591_v52 = vld [vmem:[#allocation51_spill] sm:$0xff] }
 0x64e   : > { %18579 = vst [vmem:[#allocation18_spill] sm:$0xff] %v13020_v56  ;;  %v13026_v61 = vpop.eup %7394  ;;  %v3820_v41 = vmul.f32 1.442695, %v18585_v12  ;;  %v4795_v56 = vadd.f32 %v18587_v53, %v4794_v51  ;;  %7418 = vpow2.f32 %v3804_v20  ;;  %v18592_v21 = vsub.f32 %v18591_v52, %v12135_v11  ;;  %v18594_v12 = vld [vmem:[#allocation40_spill] sm:$0xff]  ;;  %v18595_v51 = vld [vmem:[#allocation54_spill] sm:$0xff] }
 0x64f   : > { %18583 = vst [vmem:[#allocation21_spill] sm:$0xff] %v13026_v61  ;;  %v13032_v38 = vpop.eup %7396  ;;  %v3828_v39 = vmul.f32 1.442695, %v18589_v5  ;;  %v4951_v9 = vadd.f32 %v12803_v43, %v4950_v47  ;;  %7420 = vpow2.f32 %v3812_v44  ;;  %v18596_v31 = vsub.f32 %v18595_v51, %v12135_v11  ;;  %v18597_v47 = vld [vmem:[#allocation57_spill] sm:$0xff] }
 0x650   : > { %18586 = vst [vmem:[#allocation24_spill] sm:$0xff] %v13032_v38  ;;  %v13038_v42 = vpop.eup %7398  ;;  %v3836_v50 = vmul.f32 1.442695, %v18592_v21  ;;  %v5040_v38 = vadd.f32 %v18594_v12, %v5039_v16  ;;  %7422 = vpow2.f32 %v3820_v41  ;;  %v18598_v20 = vsub.f32 %v18597_v47, %v12135_v11  ;;  %v18599_v21 = vld [vmem:[#allocation181_spill] sm:$0xff]  ;;  %v18600_v16 = vld [vmem:[#allocation60_spill] sm:$0xff] }
 0x651   : > { %18590 = vst [vmem:[#allocation27_spill] sm:$0xff] %v13038_v42  ;;  %v13044_v45 = vpop.eup %7400  ;;  %v3844_v53 = vmul.f32 1.442695, %v18596_v31  ;;  %v4952_v5 = vadd.f32 %v12810_v37, %v4951_v9  ;;  %7424 = vpow2.f32 %v3828_v39  ;;  %v18601_v44 = vsub.f32 %v18600_v16, %v12135_v11  ;;  %v18602_v9 = vld [vmem:[#allocation63_spill] sm:$0xff] }
 0x652   : > { %18593 = vst [vmem:[#allocation30_spill] sm:$0xff] %v13044_v45  ;;  %v13050_v46 = vpop.eup %7402  ;;  %v3852_v43 = vmul.f32 1.442695, %v18598_v20  ;;  %v4796_v45 = vadd.f32 %v18599_v21, %v4795_v56  ;;  %7426 = vpow2.f32 %v3836_v50  ;;  %v18603_v41 = vsub.f32 %v18602_v9, %v12135_v11  ;;  %v18604_v20 = vld [vmem:[#allocation43_spill] sm:$0xff]  ;;  %v18605_v56 = vld [vmem:[#allocation66_spill] sm:$0xff] }
 0x653   : > { %v13056_v52 = vpop.eup %7404  ;;  %v3860_v42 = vmul.f32 1.442695, %v18601_v44  ;;  %v4953_v31 = vadd.f32 %v12816_v33, %v4952_v5  ;;  %v5041_v61 = vadd.f32 %v18604_v20, %v5040_v38  ;;  %7428 = vpow2.f32 %v3844_v53  ;;  %v18607_v5 = vld [vmem:[#allocation69_spill] sm:$0xff]  ;;  %v18610_v38 = vld [vmem:[#allocation72_spill] sm:$0xff] }
 0x654   : > { %v13062_v51 = vpop.eup %7406  ;;  %v3868_v37 = vmul.f32 1.442695, %v18603_v41  ;;  %v18606_v39 = vsub.f32 %v18605_v56, %v12135_v11  ;;  %7430 = vpow2.f32 %v3852_v43  ;;  %v18608_v50 = vsub.f32 %v18607_v5, %v12135_v11  ;;  %v18609_v41 = vld [vmem:[#allocation185_spill] sm:$0xff] }
 0x655   : > { %v13068_v47 = vpop.eup %7408  ;;  %v4954_v44 = vadd.f32 %v12822_v25, %v4953_v31  ;;  %v4797_v8 = vadd.f32 %v18609_v41, %v4796_v45  ;;  %7432 = vpow2.f32 %v3860_v42  ;;  %v18611_v53 = vsub.f32 %v18610_v38, %v12135_v11  ;;  %v18612_v31 = vld [vmem:[#allocation75_spill] sm:$0xff]  ;;  %v18615_v45 = vld [vmem:[#allocation78_spill] sm:$0xff] }
 0x656   : > { %v3876_v21 = vmul.f32 1.442695, %v18606_v39  ;;  %v13074_v16 = vpop.eup %7410  ;;  %v3884_v33 = vmul.f32 1.442695, %v18608_v50  ;;  %7434 = vpow2.f32 %v3868_v37  ;;  %v18613_v43 = vsub.f32 %v18612_v31, %v12135_v11  ;;  %v18614_v50 = vld [vmem:[#allocation46_spill] sm:$0xff] }
 0x657   : > { %v13080_v9 = vpop.eup %7412  ;;  %v3892_v18 = vmul.f32 1.442695, %v18611_v53  ;;  %v4955_v39 = vadd.f32 %v12828_v26, %v4954_v44  ;;  %v5042_v20 = vadd.f32 %v18614_v50, %v5041_v61  ;;  %v18616_v42 = vsub.f32 %v18615_v45, %v12135_v11  ;;  %v18617_v44 = vld [vmem:[#allocation81_spill] sm:$0xff]  ;;  %v18620_v61 = vld [vmem:[#allocation84_spill] sm:$0xff] }
 0x658   : > { %v13086_v56 = vpop.eup %7414  ;;  %v3900_v25 = vmul.f32 1.442695, %v18613_v43  ;;  %7436 = vpow2.f32 %v3876_v21  ;;  %v18618_v37 = vsub.f32 %v18617_v44, %v12135_v11  ;;  %v18619_v43 = vld [vmem:[#allocation189_spill] sm:$0xff]  ;;  %v18621_v21 = vsub.f32 %v18620_v61, %v12135_v11 }
 0x659   : > { %v13092_v5 = vpop.eup %7416  ;;  %v3908_v41 = vmul.f32 1.442695, %v18616_v42  ;;  %v4956_v53 = vadd.f32 %v12834_v48, %v4955_v39  ;;  %7438 = vpow2.f32 %v3884_v33  ;;  %v4798_v59 = vadd.f32 %v18619_v43, %v4797_v8  ;;  %v18622_v39 = vld [vmem:[#allocation87_spill] sm:$0xff]  ;;  %v18625_v8 = vld [vmem:[#allocation90_spill] sm:$0xff] }
 0x65a   : > { %v13098_v38 = vpop.eup %7418  ;;  %v3916_v26 = vmul.f32 1.442695, %v18618_v37  ;;  %7440 = vpow2.f32 %v3892_v18  ;;  %v3924_v50 = vmul.f32 1.442695, %v18621_v21  ;;  %v18623_v33 = vsub.f32 %v18622_v39, %v12135_v11  ;;  %v18624_v37 = vld [vmem:[#allocation49_spill] sm:$0xff] }
 0x65b   : > { %v13104_v31 = vpop.eup %7420  ;;  %v4957_v42 = vadd.f32 %v12840_v40, %v4956_v53  ;;  %7442 = vpow2.f32 %v3900_v25  ;;  %v5043_v12 = vadd.f32 %v18624_v37, %v5042_v20  ;;  %v18626_v18 = vsub.f32 %v18625_v8, %v12135_v11  ;;  %v18627_v53 = vld [vmem:[#allocation93_spill] sm:$0xff]  ;;  %v18631_v20 = vld [vmem:[#allocation96_spill] sm:$0xff]  ;;  %v18633_v37 = vld [vmem:[#allocation150_spill] sm:$0xff] }
 0x65c   : > { %v13110_v45 = vpop.eup %7422  ;;  %v3932_v48 = vmul.f32 1.442695, %v18623_v33  ;;  %7444 = vpow2.f32 %v3908_v41  ;;  %v18628_v25 = vsub.f32 %v18627_v53, %v12135_v11  ;;  %v18629_v33 = vld [vmem:[#allocation193_spill] sm:$0xff]  ;;  %v18632_v41 = vsub.f32 %v18631_v20, %v12135_v11 }
 0x65d   : > { %v13116_v44 = vpop.eup %7424  ;;  %v3940_v43 = vmul.f32 1.442695, %v18626_v18  ;;  %v4958_v21 = vadd.f32 %v12846_v3, %v4957_v42  ;;  %7446 = vpow2.f32 %v3916_v26  ;;  %v13131_v36 = vadd.f32 %v18629_v33, %v4798_v59  ;;  %v18637_v3 = vld [vmem:[#allocation154_spill] sm:$0xff] }
 0x65e   : > { %v13122_v61 = vpop.eup %7426  ;;  %v3948_v40 = vmul.f32 1.442695, %v18628_v25  ;;  %7448 = vpow2.f32 %v3924_v50  ;;  %v3956_v8 = vmul.f32 1.442695, %v18632_v41  ;;  %v18635_v42 = vsub.f32 %v18633_v37, %v18634_v62  ;;  %v18640_v33 = vld [vmem:[#allocation158_spill] sm:$0xff]  ;;  %v18644_v37 = vld [vmem:[#allocation99_spill] sm:$0xff] }
 0x65f   : > { %v13128_v39 = vpop.eup %7428  ;;  %18630 = vst [vmem:[#allocation33_spill] sm:$0xff] %v13131_v36  ;;  %v18638_v53 = vsub.f32 %v18637_v3, %v18634_v62  ;;  %v4959_v59 = vadd.f32 %v12852_v24, %v4958_v21  ;;  %7450 = vpow2.f32 %v3932_v48  ;;  %v18641_v20 = vsub.f32 %v18640_v33, %v18634_v62  ;;  %v18643_v36 = vld [vmem:[#allocation52_spill] sm:$0xff]  ;;  %v18646_v48 = vld [vmem:[#allocation102_spill] sm:$0xff] }
 0x660   : > { %v13136_v18 = vpop.eup %7430  ;;  %v13141_v26 = vmul.f32 1.442695, %v18635_v42  ;;  %v5044_v57 = vadd.f32 %v18643_v36, %v5043_v12  ;;  %7452 = vpow2.f32 %v3940_v43  ;;  %v18645_v42 = vsub.f32 %v18644_v37, %v12135_v11  ;;  %v18648_v12 = vld [vmem:[#allocation105_spill] sm:$0xff]  ;;  %v18653_v62 = vld [vmem:[#allocation482_spill] sm:$0xff] }
 0x661   : > { %v13146_v25 = vmul.f32 1.442695, %v18638_v53  ;;  %v13149_v50 = vpop.eup %7432  ;;  %v13154_v41 = vmul.f32 1.442695, %v18641_v20  ;;  %v4960_v53 = vadd.f32 %v12858_v27, %v4959_v59  ;;  %7454 = vpow2.f32 %v3948_v40  ;;  %v18652_v27 = vld [vmem:[#allocation13_spill] sm:$0xff] }
 0x662   : > { %18636 = vst [vmem:[#allocation36_spill] sm:$0xff] %v13141_v26  ;;  %v3964_v26 = vmul.f32 1.442695, %v18645_v42  ;;  %v13160_v3 = vpop.eup %7434  ;;  %v18647_v21 = vsub.f32 %v18646_v48, %v12135_v11  ;;  %v5157_v33 = vadd.f32 %v13056_v52, %v13050_v46  ;;  %7456 = vpow2.f32 %v3956_v8  ;;  %v18650_v42 = vld [vmem:[#allocation91_spill] sm:$0xff]  ;;  %v18654_v8 = vld [vmem:[#allocation465_spill] sm:$0xff] }
 0x663   : > { %18639 = vst [vmem:[#allocation39_spill] sm:$0xff] %v13146_v25  ;;  %18642 = vst [vmem:[#allocation42_spill] sm:$0xff] %v13154_v41  ;;  %v13168_v20 = vpop.eup %7436  ;;  %v18649_v43 = vsub.f32 %v18648_v12, %v12135_v11  ;;  %v18651_v41 = vld [vmem:[#allocation94_spill] sm:$0xff]  ;;  %v5309_v40 = vpack.c.bf16 %v13056_v52, %v13050_v46  ;;  %v4961_v48 = vadd.f32 %v12864_v7, %v4960_v53  ;;  %v18659_v52 = vld [vmem:[#allocation112_spill] sm:$0xff] }
 0x664   : > { %v3972_v24 = vmul.f32 1.442695, %v18647_v21  ;;  %v5307_v25 = vpack.c.bf16 %v18651_v41, %v18650_v42  ;;  %v13177_v59 = vpop.eup %7438  ;;  %v5158_v21 = vadd.f32 %v13062_v51, %v5157_v33  ;;  %v5306_v36 = vpack.c.bf16 %v18653_v62, %v18652_v27  ;;  %v18658_v46 = vld [vmem:[#allocation106_spill] sm:$0xff]  ;;  %v18660_v62 = vld [vmem:[#allocation111_spill] sm:$0xff] }
 0x665   : > { %v3980_v37 = vmul.f32 1.442695, %v18649_v43  ;;  %v5308_v60 = vpack.c.bf16 %v18655_v14, %v18654_v8  ;;  %v13185_v12 = vpop.eup %7440  ;;  %7458 = vpow2.f32 %v3964_v26  ;;  %v18656_v43 = vld [vmem:[#allocation108_spill] sm:$0xff]  ;;  %5774 = vmatprep.subr.bf16.mxu1 %v5309_v40  ;;  %v5311_v53 = vpack.c.bf16 %v18659_v52, %v18658_v46  ;;  %v18662_v40 = vld [vmem:[#allocation55_spill] sm:$0xff] }
 0x666   : > { %v18657_v41 = vsub.f32 %v18656_v43, %v12135_v11  ;;  %5562 = vmatprep.subr.bf16.mxu0 %v5307_v25  ;;  %v5313_v33 = vpack.c.bf16 %v13068_v47, %v13062_v51  ;;  %v13194_v7 = vpop.eup %7442  ;;  %v4962_v27 = vadd.f32 %v12870_v54, %v4961_v48  ;;  %7460 = vpow2.f32 %v3972_v24  ;;  %v18672_v54 = vld [vmem:[#allocation124_spill] sm:$0xff] }
 0x667   : > { %v18661_v14 = vsub.f32 %v18660_v62, %v12135_v11  ;;  %v5159_v8 = vadd.f32 %v13068_v47, %v5158_v21  ;;  %5563 = vmatpush1.bf16.msra.mxu0 %v5306_v36  ;;  %5775 = vmatpush1.bf16.msra.mxu1 %v5308_v60  ;;  %v13201_v25 = vpop.eup %7444  ;;  %v5045_v43 = vadd.f32 %v18662_v40, %v5044_v57  ;;  %7462 = vpow2.f32 %v3980_v37  ;;  %v18665_v36 = vld [vmem:[#allocation483_spill] sm:$0xff]  ;;  %v18666_v21 = vld [vmem:[#allocation484_spill] sm:$0xff]  ;;  %v18667_v57 = vld [vmem:[#allocation473_spill] sm:$0xff] }
 0x668   : > { %v3988_v42 = vmul.f32 1.442695, %v18657_v41  ;;  %v18663_v41 = vld [vmem:[#allocation114_spill] sm:$0xff]  ;;  %5564 = vmatprep.subr.bf16.mxu0 %v5311_v53  ;;  %5776 = vmatprep.subr.bf16.mxu1 %v5313_v33  ;;  %v5317_v24 = vpack.c.bf16 %v13080_v9, %v13074_v16  ;;  %v13209_v48 = vpop.eup %7446  ;;  %v4963_v47 = vadd.f32 %v12876_v58, %v4962_v27  ;;  %v5310_v52 = vpack.c.bf16 %v18666_v21, %v18665_v36  ;;  %v18668_v37 = vld [vmem:[#allocation16_spill] sm:$0xff]  ;;  %v18669_v53 = vld [vmem:[#allocation117_spill] sm:$0xff] }
 0x669   : > { %v3996_v26 = vmul.f32 1.442695, %v18661_v14  ;;  %v18664_v51 = vsub.f32 %v18663_v41, %v12135_v11  ;;  %v5160_v60 = vadd.f32 %v13074_v16, %v5159_v8  ;;  %v5312_v62 = vpack.c.bf16 %v18668_v37, %v18667_v57  ;;  %v13217_v14 = vpop.eup %7448  ;;  %v18673_v36 = vld [vmem:[#allocation120_spill] sm:$0xff] }
 0x66a   : > { %7464 = vpow2.f32 %v3988_v42  ;;  %v18670_v33 = vsub.f32 %v18669_v53, %v12135_v11  ;;  %v5321_v27 = vpack.c.bf16 %v13092_v5, %v13086_v56  ;;  %v13226_v16 = vpop.eup %7450  ;;  %v4964_v8 = vadd.f32 %v12882_v4, %v4963_v47  ;;  %v18675_v53 = vld [vmem:[#allocation58_spill] sm:$0xff] }
 0x66b   : > { %v4004_v46 = vmul.f32 1.442695, %v18664_v51  ;;  %v18671_v51 = vld [vmem:[#allocation118_spill] sm:$0xff]  ;;  %7466 = vpow2.f32 %v3996_v26  ;;  %v18674_v21 = vsub.f32 %v18673_v36, %v12135_v11  ;;  %v5161_v42 = vadd.f32 %v13080_v9, %v5160_v60  ;;  %5565 = vmatpush1.bf16.msra.mxu0 %v5310_v52  ;;  %5777 = vmatpush1.bf16.msra.mxu1 %v5312_v62  ;;  %v13233_v37 = vpop.eup %7452  ;;  %v18678_v52 = vld [vmem:[#allocation485_spill] sm:$0xff] }
 0x66c   : > { %v4012_v41 = vmul.f32 1.442695, %v18670_v33  ;;  %v5315_v40 = vpack.c.bf16 %v18672_v54, %v18671_v51  ;;  %v5046_v54 = vadd.f32 %v18675_v53, %v5045_v43  ;;  %v18676_v33 = vld [vmem:[#allocation123_spill] sm:$0xff]  ;;  %5778 = vmatprep.subr.bf16.mxu1 %v5317_v24  ;;  %v5325_v26 = vpack.c.bf16 %v13104_v31, %v13098_v38  ;;  %v13241_v47 = vpop.eup %7454  ;;  %v18679_v62 = vld [vmem:[#allocation486_spill] sm:$0xff] }
 0x66d   : > { %v4020_v57 = vmul.f32 1.442695, %v18674_v21  ;;  %7468 = vpow2.f32 %v4004_v46  ;;  %v18677_v51 = vsub.f32 %v18676_v33, %v12135_v11  ;;  %v4965_v9 = vadd.f32 %v12888_v13, %v4964_v8  ;;  %v18680_v43 = vld [vmem:[#allocation19_spill] sm:$0xff]  ;;  %v18681_v46 = vld [vmem:[#allocation22_spill] sm:$0xff]  ;;  %v13249_v4 = vpop.eup %7456  ;;  %v18762_v13 = vld [vmem:[#allocation68_spill] sm:$0xff] }
 0x66e   : > { %5566 = vmatprep.subr.bf16.mxu0 %v5315_v40  ;;  %v5162_v60 = vadd.f32 %v13086_v56, %v5161_v42  ;;  %v5314_v36 = vpack.c.bf16 %v18679_v62, %v18678_v52  ;;  %v5316_v21 = vpack.c.bf16 %v18681_v46, %v18680_v43  ;;  %7470 = vpow2.f32 %v4012_v41  ;;  %v18683_v33 = vld [vmem:[#allocation130_spill] sm:$0xff]  ;;  %v18685_v42 = vld [vmem:[#allocation129_spill] sm:$0xff] }
 0x66f   : > { %v4028_v58 = vmul.f32 1.442695, %v18677_v51  ;;  %v18682_v40 = vsub.f32 %v18288_v32, %v12135_v11  ;;  %v18684_v51 = vld [vmem:[#allocation136_spill] sm:$0xff]  ;;  %v5329_v8 = vpack.c.bf16 %v13116_v44, %v13110_v45  ;;  %v4966_v56 = vadd.f32 %v12894_v34, %v4965_v9  ;;  %v13263_v41 = vpop.eup %7458  ;;  %v18687_v32 = vld [vmem:[#allocation61_spill] sm:$0xff] }
 0x670   : > { %v5319_v53 = vpack.c.bf16 %v18684_v51, %v18683_v33  ;;  %7472 = vpow2.f32 %v4020_v57  ;;  %v18686_v52 = vsub.f32 %v18685_v42, %v12135_v11  ;;  %v5163_v43 = vadd.f32 %v13092_v5, %v5162_v60  ;;  %5567 = vmatpush1.bf16.msra.mxu0 %v5314_v36  ;;  %5779 = vmatpush1.bf16.msra.mxu1 %v5316_v21  ;;  %v13271_v9 = vpop.eup %7460  ;;  %v18690_v36 = vld [vmem:[#allocation487_spill] sm:$0xff]  ;;  %v18691_v21 = vld [vmem:[#allocation488_spill] sm:$0xff]  ;;  %v18696_v57 = vld [vmem:[#allocation478_spill] sm:$0xff] }
 0x671   : > { %v4036_v24 = vmul.f32 1.442695, %v18682_v40  ;;  %v5047_v46 = vadd.f32 %v18687_v32, %v5046_v54  ;;  %7474 = vpow2.f32 %v4028_v58  ;;  %v18688_v40 = vld [vmem:[#allocation132_spill] sm:$0xff]  ;;  %5780 = vmatprep.subr.bf16.mxu1 %v5321_v27  ;;  %v4967_v5 = vadd.f32 %v12900_v63, %v4966_v56  ;;  %v18692_v54 = vld [vmem:[#allocation25_spill] sm:$0xff] }
 0x672   : > { %v4044_v62 = vmul.f32 1.442695, %v18686_v52  ;;  %v18689_v33 = vsub.f32 %v18688_v40, %v12135_v11  ;;  %5568 = vmatprep.subr.bf16.mxu0 %v5319_v53  ;;  %v5164_v60 = vadd.f32 %v13098_v38, %v5163_v43  ;;  %v5318_v42 = vpack.c.bf16 %v18691_v21, %v18690_v36  ;;  %v13279_v52 = vpop.eup %7462  ;;  %v18693_v53 = vld [vmem:[#allocation135_spill] sm:$0xff]  ;;  %v18698_v21 = vld [vmem:[#allocation64_spill] sm:$0xff]  ;;  %v18756_v63 = vld [vmem:[#allocation37_spill] sm:$0xff] }
 0x673   : > { %v5320_v58 = vpack.c.bf16 %v11845_v10, %v18692_v54  ;;  %7476 = vpow2.f32 %v4036_v24  ;;  %v18694_v27 = vsub.f32 %v18693_v53, %v12135_v11  ;;  %v5337_v56 = vpack.c.bf16 %v13149_v50, %v13136_v18 }
 0x674   : > { %v4052_v51 = vmul.f32 1.442695, %v18689_v33  ;;  %v18695_v33 = vld [vmem:[#allocation38_spill] sm:$0xff]  ;;  %v4968_v38 = vadd.f32 %v12906_v1, %v4967_v5  ;;  %7478 = vpow2.f32 %v4044_v62  ;;  %v18697_v43 = vsub.f32 %v18295_v2, %v12135_v11  ;;  %5569 = vmatpush1.bf16.msra.mxu0 %v5318_v42  ;;  %v13293_v24 = vpop.eup %7464 }
 0x675   : > { %v4060_v40 = vmul.f32 1.442695, %v18694_v27  ;;  %v5323_v34 = vpack.c.bf16 %v18696_v57, %v18695_v33  ;;  %v5165_v36 = vadd.f32 %v13104_v31, %v5164_v60  ;;  %5781 = vmatpush1.bf16.msra.mxu1 %v5320_v58  ;;  %v5048_v54 = vadd.f32 %v18698_v21, %v5047_v46  ;;  %v18699_v57 = vld [vmem:[#allocation141_spill] sm:$0xff]  ;;  %v13301_v2 = vpop.eup %7466  ;;  %v18702_v42 = vld [vmem:[#allocation490_spill] sm:$0xff] }
 0x676   : > { %v4068_v10 = vmul.f32 1.442695, %v18697_v43  ;;  %7480 = vpow2.f32 %v4052_v51  ;;  %v18700_v53 = vsub.f32 %v18699_v57, %v12135_v11  ;;  %5782 = vmatprep.subr.bf16.mxu1 %v5325_v26  ;;  %v4969_v31 = vadd.f32 %v12912_v28, %v4968_v38  ;;  %v18701_v60 = vld [vmem:[#allocation489_spill] sm:$0xff]  ;;  %v18706_v57 = vld [vmem:[#allocation44_spill] sm:$0xff] }
 0x677   : > { %5570 = vmatprep.subr.bf16.mxu0 %v5323_v34  ;;  %v5166_v5 = vadd.f32 %v13110_v45, %v5165_v36  ;;  %v5322_v58 = vpack.c.bf16 %v18702_v42, %v18701_v60  ;;  %v5324_v46 = vpack.c.bf16 %v11856_v15, %v11851_v49  ;;  %v13309_v51 = vpop.eup %7468  ;;  %7482 = vpow2.f32 %v4060_v40  ;;  %v18703_v34 = vld [vmem:[#allocation144_spill] sm:$0xff]  ;;  %v18705_v43 = vld [vmem:[#allocation41_spill] sm:$0xff]  ;;  %v18709_v42 = vld [vmem:[#allocation67_spill] sm:$0xff] }
 0x678   : > { %v4076_v27 = vmul.f32 1.442695, %v18700_v53  ;;  %v18704_v26 = vsub.f32 %v18703_v34, %v12135_v11  ;;  %v5327_v53 = vpack.c.bf16 %v18706_v57, %v18705_v43  ;;  %v4970_v45 = vadd.f32 %v12918_v29, %v4969_v31  ;;  %v18707_v36 = vld [vmem:[#allocation148_spill] sm:$0xff]  ;;  %v13323_v40 = vpop.eup %7470  ;;  %v5299_v29 = vld [vmem:[#allocation3 + $0x48] sm:$0xff] }
 0x679   : > { %7484 = vpow2.f32 %v4068_v10  ;;  %v18708_v60 = vsub.f32 %v18707_v36, %v12135_v11  ;;  %v5167_v49 = vadd.f32 %v13116_v44, %v5166_v5  ;;  %5571 = vmatpush1.bf16.msra.mxu0 %v5322_v58  ;;  %5783 = vmatpush1.bf16.msra.mxu1 %v5324_v46  ;;  %v5049_v34 = vadd.f32 %v18709_v42, %v5048_v54  ;;  %v18711_v58 = vld [vmem:[#allocation491_spill] sm:$0xff]  ;;  %v18712_v46 = vld [vmem:[#allocation492_spill] sm:$0xff]  ;;  %v18743_v10 = vld [vmem:[#allocation62_spill] sm:$0xff] }
 0x67a   : > { %v4084_v33 = vmul.f32 1.442695, %v18704_v26  ;;  %7486 = vpow2.f32 %v4076_v27  ;;  %v18710_v26 = vsub.f32 %v18302_v19, %v12135_v11  ;;  %5572 = vmatprep.subr.bf16.mxu0 %v5327_v53  ;;  %5784 = vmatprep.subr.bf16.mxu1 %v5329_v8  ;;  %v13331_v31 = vpop.eup %7472  ;;  %v4971_v44 = vadd.f32 %v12924_v6, %v4970_v45  ;;  %v18713_v19 = vld [vmem:[#allocation156_spill] sm:$0xff]  ;;  %v18715_v36 = vld [vmem:[#allocation47_spill] sm:$0xff] }
 0x67b   : > { %v4092_v15 = vmul.f32 1.442695, %v18708_v60  ;;  %v5168_v5 = vadd.f32 %v13122_v61, %v5167_v49  ;;  %v5326_v57 = vpack.c.bf16 %v18712_v46, %v18711_v58  ;;  %v5328_v54 = vpack.c.bf16 %v11866_v23, %v11861_v30  ;;  %v13339_v27 = vpop.eup %7474  ;;  %v18716_v60 = vld [vmem:[#allocation50_spill] sm:$0xff]  ;;  %v18717_v58 = vld [vmem:[#allocation160_spill] sm:$0xff] }
 0x67c   : > { %v4100_v43 = vmul.f32 1.442695, %v18710_v26  ;;  %7488 = vpow2.f32 %v4084_v33  ;;  %v18714_v8 = vsub.f32 %v18713_v19, %v12135_v11  ;;  %v5331_v26 = vpack.c.bf16 %v18716_v60, %v18715_v36  ;;  %v18719_v19 = vld [vmem:[#allocation70_spill] sm:$0xff]  ;;  %v18720_v36 = vld [vmem:[#allocation164_spill] sm:$0xff] }
 0x67d   : > { %v4972_v49 = vadd.f32 %v12930_v22, %v4971_v44  ;;  %7490 = vpow2.f32 %v4092_v15  ;;  %v18718_v46 = vsub.f32 %v18717_v58, %v12135_v11  ;;  %v5169_v30 = vadd.f32 %v13128_v39, %v5168_v5  ;;  %5573 = vmatpush1.bf16.msra.mxu0 %v5326_v57  ;;  %5785 = vmatpush1.bf16.msra.mxu1 %v5328_v54  ;;  %v13353_v33 = vpop.eup %7476 }
 0x67e   : > { %v4108_v53 = vmul.f32 1.442695, %v18714_v8  ;;  %v5050_v8 = vadd.f32 %v18719_v19, %v5049_v34  ;;  %7492 = vpow2.f32 %v4100_v43  ;;  %v18721_v60 = vsub.f32 %v18720_v36, %v12135_v11  ;;  %5574 = vmatprep.subr.bf16.mxu0 %v5331_v26  ;;  %v13364_v5 = vpop.eup %7478  ;;  %v18723_v34 = vld [vmem:[#allocation493_spill] sm:$0xff]  ;;  %v18724_v43 = vld [vmem:[#allocation494_spill] sm:$0xff] }
 0x67f   : > { %v4116_v23 = vmul.f32 1.442695, %v18718_v46  ;;  %v18722_v15 = vpack.c.bf16 %v13128_v39, %v13122_v61  ;;  %v4973_v57 = vadd.f32 %v12936_v35, %v4972_v49  ;;  %v5170_v54 = vadd.f32 %v13136_v18, %v5169_v30  ;;  %v5291_v26 = vld [vmem:[#allocation3 + $0x8] sm:$0xff]  ;;  %v18728_v30 = vld [vmem:[#allocation319_spill] sm:$0xff]  ;;  %v18740_v18 = vld [vmem:[#allocation180_spill] sm:$0xff] }
 0x680   : > { %v4124_v45 = vmul.f32 1.442695, %v18721_v60  ;;  %v5330_v58 = vpack.c.bf16 %v18724_v43, %v18723_v34  ;;  %v5332_v46 = vpack.c.bf16 %v18538_v17, %v11872_v0  ;;  %v13372_v36 = vpop.eup %7480  ;;  %7494 = vpow2.f32 %v4108_v53  ;;  %v18726_v60 = vld [vmem:[#allocation53_spill] sm:$0xff]  ;;  %5594 = vmatprep.mubr.bf16.mxu0 %v5291_v26  ;;  %5806 = vmatprep.mubr.bf16.mxu1 %v5291_v26  ;;  %v18729_v0 = vld [vmem:[#allocation172_spill] sm:$0xff] }
 0x681   : > { %5786 = vmatprep.subr.bf16.mxu1 %v18722_v15  ;;  %v18725_v61 = vsub.f32 %v18309_v55, %v12135_v11  ;;  %v18727_v15 = vld [vmem:[#allocation56_spill] sm:$0xff]  ;;  %v4974_v34 = vadd.f32 %v18728_v30, %v4973_v57  ;;  %7496 = vpow2.f32 %v4116_v23  ;;  %v18730_v17 = vsub.f32 %v18729_v0, %v12135_v11  ;;  %v13386_v55 = vpop.eup %7482  ;;  %v18742_v23 = vld [vmem:[#allocation59_spill] sm:$0xff] }
 0x682   : > { %v5335_v44 = vpack.c.bf16 %v18727_v15, %v18726_v60  ;;  %v5171_v53 = vadd.f32 %v13149_v50, %v5170_v54  ;;  %5575 = vmatpush1.bf16.msra.mxu0 %v5330_v58  ;;  %5787 = vmatpush1.bf16.msra.mxu1 %v5332_v46  ;;  %7498 = vpow2.f32 %v4124_v45  ;;  %v18732_v15 = vld [vmem:[#allocation176_spill] sm:$0xff]  ;;  %v18734_v54 = vld [vmem:[#allocation327_spill] sm:$0xff]  ;;  %v18741_v50 = vsub.f32 %v18740_v18, %v12135_v11 }
 0x683   : > { %v4132_v39 = vmul.f32 1.442695, %v18725_v61  ;;  %v4140_v43 = vmul.f32 1.442695, %v18730_v17  ;;  %v18731_v61 = vld [vmem:[#allocation73_spill] sm:$0xff]  ;;  %v18733_v49 = vsub.f32 %v18732_v15, %v12135_v11  ;;  %5788 = vmatprep.subr.bf16.mxu1 %v5337_v56  ;;  %v13397_v57 = vpop.eup %7484  ;;  %v4975_v58 = vadd.f32 %v18734_v54, %v4974_v34  ;;  %v18736_v45 = vld [vmem:[#allocation496_spill] sm:$0xff] }
 0x684   : > { %v5051_v60 = vadd.f32 %v18731_v61, %v5050_v8  ;;  %5576 = vmatprep.subr.bf16.mxu0 %v5335_v44  ;;  %v5172_v46 = vadd.f32 %v13160_v3, %v5171_v53  ;;  %v18735_v8 = vld [vmem:[#allocation495_spill] sm:$0xff]  ;;  %v18738_v15 = vld [vmem:[#allocation34_spill] sm:$0xff]  ;;  %v13405_v44 = vpop.eup %7486  ;;  %v4156_v56 = vmul.f32 1.442695, %v18741_v50  ;;  %v5339_v38 = vpack.c.bf16 %v18743_v10, %v18742_v23  ;;  %v18748_v18 = vld [vmem:[#allocation76_spill] sm:$0xff] }
 0x685   : > { %v4148_v26 = vmul.f32 1.442695, %v18733_v49  ;;  %v5334_v0 = vpack.c.bf16 %v18736_v45, %v18735_v8  ;;  %v18737_v17 = vld [vmem:[#allocation31_spill] sm:$0xff]  ;;  %18739 = vst [vmem:[#allocation45_spill] sm:$0xff] %v13405_v44  ;;  %7500 = vpow2.f32 %v4132_v39  ;;  %v18745_v8 = vld [vmem:[#allocation184_spill] sm:$0xff]  ;;  %v18778_v54 = vld [vmem:[#allocation74_spill] sm:$0xff] }
 0x686   : > { %v5336_v49 = vpack.c.bf16 %v18738_v15, %v18737_v17  ;;  %v18744_v53 = vld [vmem:[#allocation335_spill] sm:$0xff]  ;;  %7502 = vpow2.f32 %v4140_v43  ;;  %v18746_v45 = vsub.f32 %v18745_v8, %v12135_v11  ;;  %v5173_v15 = vadd.f32 %v13168_v20, %v5172_v46  ;;  %v13419_v39 = vpop.eup %7488  ;;  %v18749_v10 = vld [vmem:[#allocation188_spill] sm:$0xff] }
 0x687   : > { %v4976_v62 = vadd.f32 %v18744_v53, %v4975_v58  ;;  %5577 = vmatpush1.bf16.msra.mxu0 %v5334_v0  ;;  %18747 = vst [vmem:[#allocation48_spill] sm:$0xff] %v13419_v39  ;;  %v5052_v50 = vadd.f32 %v18748_v18, %v5051_v60  ;;  %7504 = vpow2.f32 %v4148_v26  ;;  %v18750_v23 = vsub.f32 %v18749_v10, %v12135_v11  ;;  %v13430_v46 = vpop.eup %7490  ;;  %v18753_v0 = vld [vmem:[#allocation339_spill] sm:$0xff]  ;;  %v18754_v60 = vld [vmem:[#allocation497_spill] sm:$0xff]  ;;  %v18755_v26 = vld [vmem:[#allocation498_spill] sm:$0xff] }
 0x688   : > { %v4164_v17 = vmul.f32 1.442695, %v18746_v45  ;;  %5789 = vmatpush1.bf16.msra.mxu1 %v5336_v49  ;;  %5578 = vmatprep.subr.bf16.mxu0 %v5339_v38  ;;  %v18751_v43 = vpack.c.bf16 %v13168_v20, %v13160_v3  ;;  %18752 = vst [vmem:[#allocation51_spill] sm:$0xff] %v13430_v46  ;;  %v5174_v8 = vadd.f32 %v13177_v59, %v5173_v15  ;;  %v18757_v10 = vld [vmem:[#allocation40_spill] sm:$0xff]  ;;  %v13438_v38 = vpop.eup %7492  ;;  %7506 = vpow2.f32 %v4156_v56  ;;  %v18761_v58 = vld [vmem:[#allocation65_spill] sm:$0xff]  ;;  %v18763_v15 = vld [vmem:[#allocation343_spill] sm:$0xff] }
 0x689   : > { %v4172_v34 = vmul.f32 1.442695, %v18750_v23  ;;  %v4977_v49 = vadd.f32 %v18753_v0, %v4976_v62  ;;  %v5338_v45 = vpack.c.bf16 %v18755_v26, %v18754_v60  ;;  %v5340_v23 = vpack.c.bf16 %v18757_v10, %v18756_v63  ;;  %18758 = vst [vmem:[#allocation54_spill] sm:$0xff] %v13438_v38  ;;  %v18759_v3 = vld [vmem:[#allocation192_spill] sm:$0xff]  ;;  %v18814_v38 = vld [vmem:[#allocation86_spill] sm:$0xff]  ;;  %v18820_v39 = vld [vmem:[#allocation379_spill] sm:$0xff] }
 0x68a   : > { %5790 = vmatprep.subr.bf16.mxu1 %v18751_v43  ;;  %v18760_v20 = vsub.f32 %v18759_v3, %v12135_v11  ;;  %v5343_v53 = vpack.c.bf16 %v18762_v13, %v18761_v58  ;;  %7508 = vpow2.f32 %v4164_v17  ;;  %v18764_v60 = vld [vmem:[#allocation196_spill] sm:$0xff]  ;;  %v5175_v10 = vadd.f32 %v13185_v12, %v5174_v8  ;;  %v13452_v56 = vpop.eup %7494  ;;  %v18766_v3 = vld [vmem:[#allocation79_spill] sm:$0xff] }
 0x68b   : > { %v4978_v0 = vadd.f32 %v18763_v15, %v4977_v49  ;;  %v18765_v26 = vsub.f32 %v18764_v60, %v12135_v11  ;;  %5579 = vmatpush1.bf16.msra.mxu0 %v5338_v45  ;;  %7510 = vpow2.f32 %v4172_v34  ;;  %v18767_v13 = vld [vmem:[#allocation200_spill] sm:$0xff]  ;;  %v18769_v17 = vpack.c.bf16 %v13185_v12, %v13177_v59  ;;  %v13463_v8 = vpop.eup %7496  ;;  %v18770_v45 = vld [vmem:[#allocation347_spill] sm:$0xff] }
 0x68c   : > { %v4180_v43 = vmul.f32 1.442695, %v18760_v20  ;;  %5791 = vmatpush1.bf16.msra.mxu1 %v5340_v23  ;;  %v5053_v20 = vadd.f32 %v18766_v3, %v5052_v50  ;;  %v18768_v58 = vsub.f32 %v18767_v13, %v12135_v11  ;;  %5580 = vmatprep.subr.bf16.mxu0 %v5343_v53  ;;  %v5176_v60 = vadd.f32 %v13194_v7, %v5175_v10  ;;  %v18771_v50 = vld [vmem:[#allocation499_spill] sm:$0xff]  ;;  %v18772_v34 = vld [vmem:[#allocation500_spill] sm:$0xff]  ;;  %v18774_v13 = vld [vmem:[#allocation46_spill] sm:$0xff]  ;;  %v13471_v53 = vpop.eup %7498 }
 0x68d   : > { %v4188_v63 = vmul.f32 1.442695, %v18765_v26  ;;  %5792 = vmatprep.subr.bf16.mxu1 %v18769_v17  ;;  %v4979_v23 = vadd.f32 %v18770_v45, %v4978_v0  ;;  %v5342_v26 = vpack.c.bf16 %v18772_v34, %v18771_v50  ;;  %v18773_v15 = vld [vmem:[#allocation43_spill] sm:$0xff]  ;;  %v18775_v59 = vld [vmem:[#allocation204_spill] sm:$0xff] }
 0x68e   : > { %v4196_v62 = vmul.f32 1.442695, %v18768_v58  ;;  %v5344_v58 = vpack.c.bf16 %v18774_v13, %v18773_v15  ;;  %7512 = vpow2.f32 %v4180_v43  ;;  %v18776_v12 = vsub.f32 %v18775_v59, %v12135_v11  ;;  %v18777_v49 = vld [vmem:[#allocation71_spill] sm:$0xff]  ;;  %v18780_v50 = vld [vmem:[#allocation208_spill] sm:$0xff]  ;;  %v18783_v59 = vld [vmem:[#allocation82_spill] sm:$0xff] }
 0x68f   : > { %v5347_v30 = vpack.c.bf16 %v18778_v54, %v18777_v49  ;;  %v18779_v10 = vld [vmem:[#allocation351_spill] sm:$0xff]  ;;  %7514 = vpow2.f32 %v4188_v63  ;;  %v18781_v34 = vsub.f32 %v18780_v50, %v12135_v11  ;;  %v5177_v13 = vadd.f32 %v13201_v25, %v5176_v60  ;;  %5581 = vmatpush1.bf16.msra.mxu0 %v5342_v26  ;;  %v13485_v43 = vpop.eup %7500  ;;  %v18784_v54 = vld [vmem:[#allocation212_spill] sm:$0xff] }
 0x690   : > { %v4204_v17 = vmul.f32 1.442695, %v18776_v12  ;;  %v4980_v45 = vadd.f32 %v18779_v10, %v4979_v23  ;;  %5793 = vmatpush1.bf16.msra.mxu1 %v5344_v58  ;;  %18782 = vst [vmem:[#allocation57_spill] sm:$0xff] %v13485_v43  ;;  %v5054_v12 = vadd.f32 %v18783_v59, %v5053_v20  ;;  %7516 = vpow2.f32 %v4196_v62  ;;  %v13496_v60 = vpop.eup %7502  ;;  %v18787_v26 = vld [vmem:[#allocation359_spill] sm:$0xff]  ;;  %v18788_v20 = vld [vmem:[#allocation501_spill] sm:$0xff]  ;;  %v18789_v62 = vld [vmem:[#allocation502_spill] sm:$0xff] }
 0x691   : > { %v4212_v15 = vmul.f32 1.442695, %v18781_v34  ;;  %v18785_v49 = vsub.f32 %v18784_v54, %v12135_v11  ;;  %5582 = vmatprep.subr.bf16.mxu0 %v5347_v30  ;;  %v18786_v63 = vpack.c.bf16 %v13201_v25, %v13194_v7  ;;  %v5178_v50 = vadd.f32 %v13209_v48, %v5177_v13  ;;  %v18790_v10 = vld [vmem:[#allocation49_spill] sm:$0xff]  ;;  %v18791_v54 = vld [vmem:[#allocation52_spill] sm:$0xff]  ;;  %v13504_v30 = vpop.eup %7504 }
 0x692   : > { %v4981_v58 = vadd.f32 %v18787_v26, %v4980_v45  ;;  %v5346_v34 = vpack.c.bf16 %v18789_v62, %v18788_v20  ;;  %7518 = vpow2.f32 %v4204_v17  ;;  %v18792_v7 = vld [vmem:[#allocation216_spill] sm:$0xff]  ;;  %v18794_v23 = vld [vmem:[#allocation77_spill] sm:$0xff]  ;;  %v13518_v17 = vpop.eup %7506 }
 0x693   : > { %v4220_v0 = vmul.f32 1.442695, %v18785_v49  ;;  %5794 = vmatprep.subr.bf16.mxu1 %v18786_v63  ;;  %v5348_v49 = vpack.c.bf16 %v18791_v54, %v18790_v10  ;;  %v18793_v25 = vsub.f32 %v18792_v7, %v12135_v11  ;;  %v18795_v35 = vld [vmem:[#allocation80_spill] sm:$0xff]  ;;  %7520 = vpow2.f32 %v4212_v15  ;;  %18799 = vst [vmem:[#allocation60_spill] sm:$0xff] %v13518_v17  ;;  %v18800_v7 = vld [vmem:[#allocation85_spill] sm:$0xff]  ;;  %v18852_v17 = vld [vmem:[#allocation166_spill] sm:$0xff] }
 0x694   : > { %v5351_v22 = vpack.c.bf16 %v18795_v35, %v18794_v23  ;;  %v18796_v13 = vld [vmem:[#allocation28_spill] sm:$0xff]  ;;  %v5179_v54 = vadd.f32 %v13217_v14, %v5178_v50  ;;  %5583 = vmatpush1.bf16.msra.mxu0 %v5346_v34  ;;  %v18803_v15 = vpack.c.bf16 %v13217_v14, %v13209_v48  ;;  %v13529_v50 = vpop.eup %7508  ;;  %v18805_v34 = vld [vmem:[#allocation367_spill] sm:$0xff] }
 0x695   : > { %v4228_v63 = vmul.f32 1.442695, %v18793_v25  ;;  %v4982_v26 = vadd.f32 %v18796_v13, %v4981_v58  ;;  %v18797_v20 = vld [vmem:[#allocation220_spill] sm:$0xff]  ;;  %5795 = vmatpush1.bf16.msra.mxu1 %v5348_v49  ;;  %v5055_v25 = vadd.f32 %v18800_v7, %v5054_v12  ;;  %7522 = vpow2.f32 %v4220_v0  ;;  %18804 = vst [vmem:[#allocation63_spill] sm:$0xff] %v13529_v50  ;;  %v18806_v12 = vld [vmem:[#allocation503_spill] sm:$0xff] }
 0x696   : > { %v18798_v62 = vsub.f32 %v18797_v20, %v12135_v11  ;;  %v18801_v35 = vld [vmem:[#allocation224_spill] sm:$0xff]  ;;  %5584 = vmatprep.subr.bf16.mxu0 %v5351_v22  ;;  %5796 = vmatprep.subr.bf16.mxu1 %v18803_v15  ;;  %v5180_v20 = vadd.f32 %v13226_v16, %v5179_v54  ;;  %v18808_v13 = vld [vmem:[#allocation55_spill] sm:$0xff]  ;;  %v13537_v22 = vpop.eup %7510 }
 0x697   : > { %v18802_v23 = vsub.f32 %v18801_v35, %v12135_v11  ;;  %v4983_v49 = vadd.f32 %v18805_v34, %v4982_v26  ;;  %v18807_v0 = vld [vmem:[#allocation504_spill] sm:$0xff]  ;;  %v18809_v35 = vld [vmem:[#allocation58_spill] sm:$0xff]  ;;  %18810 = vst [vmem:[#allocation66_spill] sm:$0xff] %v13537_v22  ;;  %7524 = vpow2.f32 %v4228_v63  ;;  %v18813_v58 = vld [vmem:[#allocation83_spill] sm:$0xff] }
 0x698   : > { %v4236_v10 = vmul.f32 1.442695, %v18798_v62  ;;  %v5350_v62 = vpack.c.bf16 %v18807_v0, %v18806_v12  ;;  %v18811_v48 = vld [vmem:[#allocation228_spill] sm:$0xff]  ;;  %v5355_v46 = vpack.c.bf16 %v18814_v38, %v18813_v58  ;;  %v18815_v54 = vld [vmem:[#allocation371_spill] sm:$0xff]  ;;  %v13551_v63 = vpop.eup %7512  ;;  %v18821_v38 = vld [vmem:[#allocation165_spill] sm:$0xff] }
 0x699   : > { %v4244_v45 = vmul.f32 1.442695, %v18802_v23  ;;  %v5352_v23 = vpack.c.bf16 %v18809_v35, %v18808_v13  ;;  %v18812_v14 = vsub.f32 %v18811_v48, %v12135_v11  ;;  %v4984_v34 = vadd.f32 %v18815_v54, %v4983_v49  ;;  %v18816_v12 = vld [vmem:[#allocation232_spill] sm:$0xff]  ;;  %18818 = vst [vmem:[#allocation69_spill] sm:$0xff] %v13551_v63  ;;  %v19020_v54 = vld [vmem:[#allocation210_spill] sm:$0xff] }
 0x69a   : > { %7526 = vpow2.f32 %v4236_v10  ;;  %v18817_v0 = vsub.f32 %v18816_v12, %v12135_v11  ;;  %v5181_v35 = vadd.f32 %v13233_v37, %v5180_v20  ;;  %5585 = vmatpush1.bf16.msra.mxu0 %v5350_v62  ;;  %v18819_v48 = vld [vmem:[#allocation88_spill] sm:$0xff]  ;;  %v18822_v58 = vsub.f32 %v18820_v39, %v18821_v38  ;;  %v13562_v20 = vpop.eup %7514  ;;  %v18825_v62 = vld [vmem:[#allocation375_spill] sm:$0xff]  ;;  %v18834_v11 = vld [vmem:[#allocation225_spill] sm:$0xff] }
 0x69b   : > { %v4252_v15 = vmul.f32 1.442695, %v18812_v14  ;;  %5797 = vmatpush1.bf16.msra.mxu1 %v5352_v23  ;;  %v5056_v14 = vadd.f32 %v18819_v48, %v5055_v25  ;;  %7528 = vpow2.f32 %v4244_v45  ;;  %5586 = vmatprep.subr.bf16.mxu0 %v5355_v46  ;;  %v18823_v10 = vpack.c.bf16 %v13233_v37, %v13226_v16  ;;  %18824 = vst [vmem:[#allocation72_spill] sm:$0xff] %v13562_v20  ;;  %v18826_v25 = vld [vmem:[#allocation505_spill] sm:$0xff]  ;;  %v13570_v46 = vpop.eup %7516  ;;  %v18829_v45 = vld [vmem:[#allocation383_spill] sm:$0xff] }
 0x69c   : > { %v4260_v13 = vmul.f32 1.442695, %v18817_v0  ;;  %v4552_v44 = vmul.f32 1.442695, %v18822_v58  ;;  %v4985_v23 = vadd.f32 %v18825_v62, %v4984_v34  ;;  %v5182_v12 = vadd.f32 %v13241_v47, %v5181_v35  ;;  %v18827_v0 = vld [vmem:[#allocation506_spill] sm:$0xff]  ;;  %18828 = vst [vmem:[#allocation75_spill] sm:$0xff] %v13570_v46 }
 0x69d   : > { %5798 = vmatprep.subr.bf16.mxu1 %v18823_v10  ;;  %v5354_v26 = vpack.c.bf16 %v18827_v0, %v18826_v25  ;;  %v5356_v39 = vpack.c.bf16 %v18698_v21, %v18687_v32  ;;  %v18830_v16 = vsub.f32 %v18829_v45, %v18821_v38  ;;  %7530 = vpow2.f32 %v4252_v15  ;;  %v18831_v58 = vld [vmem:[#allocation89_spill] sm:$0xff]  ;;  %v18832_v10 = vld [vmem:[#allocation92_spill] sm:$0xff]  ;;  %v18833_v35 = vld [vmem:[#allocation162_spill] sm:$0xff]  ;;  %v13586_v45 = vpop.eup %7518 }
 0x69e   : > { %v5359_v49 = vpack.c.bf16 %v18832_v10, %v18831_v58  ;;  %v18835_v43 = vsub.f32 %v18833_v35, %v18834_v11  ;;  %v18836_v0 = vld [vmem:[#allocation15_spill] sm:$0xff]  ;;  %7532 = vpow2.f32 %v4260_v13  ;;  %v5183_v21 = vadd.f32 %v13249_v4, %v5182_v12  ;;  %18837 = vst [vmem:[#allocation78_spill] sm:$0xff] %v13586_v45  ;;  %v18838_v15 = vld [vmem:[#allocation97_spill] sm:$0xff]  ;;  %v18850_v13 = vld [vmem:[#allocation98_spill] sm:$0xff] }
 0x69f   : > { %v4560_v37 = vmul.f32 1.442695, %v18830_v16  ;;  %v4986_v32 = vadd.f32 %v18836_v0, %v4985_v23  ;;  %5587 = vmatpush1.bf16.msra.mxu0 %v5354_v26  ;;  %5799 = vmatpush1.bf16.msra.mxu1 %v5356_v39  ;;  %v5057_v16 = vadd.f32 %v18838_v15, %v5056_v14  ;;  %7534 = vpow2.f32 %v4552_v44  ;;  %v18839_v58 = vld [vmem:[#allocation387_spill] sm:$0xff]  ;;  %v13597_v23 = vpop.eup %7520  ;;  %v18843_v26 = vld [vmem:[#allocation18_spill] sm:$0xff]  ;;  %v18845_v44 = vld [vmem:[#allocation508_spill] sm:$0xff] }
 0x6a0   : > { %v13582_v25 = vmul.f32 1.442695, %v18835_v43  ;;  %v18840_v10 = vsub.f32 %v18839_v58, %v18821_v38  ;;  %5588 = vmatprep.subr.bf16.mxu0 %v5359_v49  ;;  %v18841_v43 = vpack.c.bf16 %v13249_v4, %v13241_v47  ;;  %18842 = vst [vmem:[#allocation81_spill] sm:$0xff] %v13597_v23  ;;  %v5184_v39 = vadd.f32 %v13263_v41, %v5183_v21  ;;  %v18844_v14 = vld [vmem:[#allocation507_spill] sm:$0xff]  ;;  %v13605_v49 = vpop.eup %7522  ;;  %v18851_v21 = vld [vmem:[#allocation36_spill] sm:$0xff]  ;;  %v18870_v20 = vld [vmem:[#allocation197_spill] sm:$0xff] }
 0x6a1   : > { %v4987_v12 = vadd.f32 %v18843_v26, %v4986_v32  ;;  %v5358_v35 = vpack.c.bf16 %v18845_v44, %v18844_v14  ;;  %v5360_v58 = vpack.c.bf16 %v18719_v19, %v18709_v42  ;;  %18846 = vst [vmem:[#allocation84_spill] sm:$0xff] %v13605_v49  ;;  %7536 = vpow2.f32 %v4560_v37  ;;  %v18847_v4 = vld [vmem:[#allocation391_spill] sm:$0xff]  ;;  %v18854_v42 = vld [vmem:[#allocation21_spill] sm:$0xff]  ;;  %v18888_v49 = vld [vmem:[#allocation170_spill] sm:$0xff] }
 0x6a2   : > { %v4568_v34 = vmul.f32 1.442695, %v18840_v10  ;;  %5800 = vmatprep.subr.bf16.mxu1 %v18841_v43  ;;  %v18848_v47 = vsub.f32 %v18847_v4, %v18821_v38  ;;  %v18849_v43 = vld [vmem:[#allocation95_spill] sm:$0xff]  ;;  %7538 = vpow2.f32 %v18851_v21  ;;  %v18853_v14 = vsub.f32 %v18852_v17, %v18834_v11  ;;  %v13622_v4 = vpop.eup %7524  ;;  %v19022_v26 = vld [vmem:[#allocation57_spill] sm:$0xff] }
 0x6a3   : > { %v5363_v50 = vpack.c.bf16 %v18850_v13, %v18849_v43  ;;  %v4988_v19 = vadd.f32 %v18854_v42, %v4987_v12  ;;  %v5185_v37 = vadd.f32 %v13271_v9, %v5184_v39  ;;  %5589 = vmatpush1.bf16.msra.mxu0 %v5358_v35  ;;  %5801 = vmatpush1.bf16.msra.mxu1 %v5360_v58  ;;  %v18857_v43 = vld [vmem:[#allocation395_spill] sm:$0xff]  ;;  %v18861_v35 = vld [vmem:[#allocation24_spill] sm:$0xff] }
 0x6a4   : > { %v4576_v10 = vmul.f32 1.442695, %v18848_v47  ;;  %v13618_v44 = vmul.f32 1.442695, %v18853_v14  ;;  %18855 = vst [vmem:[#allocation87_spill] sm:$0xff] %v13622_v4  ;;  %v18856_v47 = vld [vmem:[#allocation100_spill] sm:$0xff]  ;;  %7540 = vpow2.f32 %v4568_v34  ;;  %v18858_v32 = vsub.f32 %v18857_v43, %v18821_v38  ;;  %v13633_v39 = vpop.eup %7526 }
 0x6a5   : > { %v5058_v13 = vadd.f32 %v18856_v47, %v5057_v16  ;;  %5590 = vmatprep.subr.bf16.mxu0 %v5363_v50  ;;  %v18859_v17 = vpack.c.bf16 %v13271_v9, %v13263_v41  ;;  %18860 = vst [vmem:[#allocation90_spill] sm:$0xff] %v13633_v39  ;;  %v4989_v58 = vadd.f32 %v18861_v35, %v4988_v19  ;;  %v18862_v16 = vld [vmem:[#allocation509_spill] sm:$0xff]  ;;  %v18863_v34 = vld [vmem:[#allocation510_spill] sm:$0xff]  ;;  %v13641_v50 = vpop.eup %7528  ;;  %v18865_v41 = vld [vmem:[#allocation399_spill] sm:$0xff] }
 0x6a6   : > { %v4584_v21 = vmul.f32 1.442695, %v18858_v32  ;;  %v5186_v14 = vadd.f32 %v13279_v52, %v5185_v37  ;;  %v5362_v63 = vpack.c.bf16 %v18863_v34, %v18862_v16  ;;  %v5364_v32 = vpack.c.bf16 %v18748_v18, %v18731_v61  ;;  %18864 = vst [vmem:[#allocation93_spill] sm:$0xff] %v13641_v50  ;;  %v18868_v12 = vld [vmem:[#allocation104_spill] sm:$0xff]  ;;  %v18869_v37 = vld [vmem:[#allocation33_spill] sm:$0xff]  ;;  %v18871_v16 = vld [vmem:[#allocation39_spill] sm:$0xff] }
 0x6a7   : > { %5802 = vmatprep.subr.bf16.mxu1 %v18859_v17  ;;  %7542 = vpow2.f32 %v4576_v10  ;;  %v18866_v9 = vsub.f32 %v18865_v41, %v18821_v38  ;;  %v18867_v17 = vld [vmem:[#allocation101_spill] sm:$0xff]  ;;  %v13652_v22 = vadd.f32 %v18870_v20, %v18869_v37  ;;  %v18872_v61 = vld [vmem:[#allocation27_spill] sm:$0xff]  ;;  %v13657_v34 = vpop.eup %7530  ;;  %v18877_v37 = vpack.c.bf16 %v13293_v24, %v13279_v52 }
 0x6a8   : > { %v5367_v46 = vpack.c.bf16 %v18868_v12, %v18867_v17  ;;  %7544 = vpow2.f32 %v18871_v16  ;;  %v4990_v18 = vadd.f32 %v18872_v61, %v4989_v58  ;;  %v5187_v10 = vadd.f32 %v13293_v24, %v5186_v14  ;;  %5591 = vmatpush1.bf16.msra.mxu0 %v5362_v63  ;;  %5803 = vmatpush1.bf16.msra.mxu1 %v5364_v32  ;;  %v18874_v41 = vld [vmem:[#allocation103_spill] sm:$0xff]  ;;  %v13668_v14 = vpop.eup %7532  ;;  %v18879_v63 = vld [vmem:[#allocation30_spill] sm:$0xff] }
 0x6a9   : > { %v4592_v43 = vmul.f32 1.442695, %v18866_v9  ;;  %18873 = vst [vmem:[#allocation96_spill] sm:$0xff] %v13657_v34  ;;  %v5059_v9 = vadd.f32 %v18874_v41, %v5058_v13  ;;  %7546 = vpow2.f32 %v4584_v21  ;;  %v18875_v12 = vld [vmem:[#allocation403_spill] sm:$0xff]  ;;  %5804 = vmatprep.subr.bf16.mxu1 %v18877_v37  ;;  %18878 = vst [vmem:[#allocation150_spill] sm:$0xff] %v13668_v14  ;;  %v18881_v21 = vld [vmem:[#allocation145_spill] sm:$0xff] }
 0x6aa   : > { %v18876_v17 = vsub.f32 %v18875_v12, %v18821_v38  ;;  %5592 = vmatprep.subr.bf16.mxu0 %v5367_v46  ;;  %v4991_v32 = vadd.f32 %v18879_v63, %v4990_v18  ;;  %v5188_v16 = vadd.f32 %v13301_v2, %v5187_v10  ;;  %v18880_v13 = vld [vmem:[#allocation511_spill] sm:$0xff]  ;;  %v5368_v12 = vpack.c.bf16 %v18783_v59, %v18766_v3  ;;  %v13676_v46 = vpop.eup %7534  ;;  %v18886_v58 = vld [vmem:[#allocation110_spill] sm:$0xff]  ;;  %v18903_v14 = vld [vmem:[#allocation116_spill] sm:$0xff] }
 0x6ab   : > { %v5366_v23 = vpack.c.bf16 %v18881_v21, %v18880_v13  ;;  %18882 = vst [vmem:[#allocation154_spill] sm:$0xff] %v13676_v46  ;;  %7548 = vpow2.f32 %v4592_v43  ;;  %v18883_v52 = vld [vmem:[#allocation407_spill] sm:$0xff]  ;;  %v18887_v10 = vld [vmem:[#allocation42_spill] sm:$0xff]  ;;  %v18889_v13 = vsub.f32 %v18888_v49, %v18834_v11  ;;  %v5290_v43 = vld [vmem:[#allocation3] sm:$0xff]  ;;  %v18894_v49 = vpack.c.bf16 %v13309_v51, %v13301_v2 }
 0x6ac   : > { %v4600_v19 = vmul.f32 1.442695, %v18876_v17  ;;  %v18884_v24 = vsub.f32 %v18883_v52, %v18821_v38  ;;  %v18885_v37 = vld [vmem:[#allocation107_spill] sm:$0xff]  ;;  %7550 = vpow2.f32 %v18887_v10  ;;  %v4992_v3 = vadd.f32 %v13676_v46, %v4991_v32  ;;  %5805 = vmatpush1.bf16.msra.mxu1 %v5368_v12  ;;  %v13693_v52 = vpop.eup %7536 }
 0x6ad   : > { %v5371_v4 = vpack.c.bf16 %v18886_v58, %v18885_v37  ;;  %v13689_v21 = vmul.f32 1.442695, %v18889_v13  ;;  %v5189_v59 = vadd.f32 %v13309_v51, %v5188_v16  ;;  %5593 = vmatpush1.bf16.msra.mxu0 %v5366_v23  ;;  %18890 = vst [vmem:[#allocation158_spill] sm:$0xff] %v13693_v52  ;;  %v18891_v58 = vld [vmem:[#allocation109_spill] sm:$0xff]  ;;  %v18892_v37 = vld [vmem:[#allocation411_spill] sm:$0xff]  ;;  %5827 = vmatprep.subr.bf16.mxu1 %v18894_v49  ;;  %v13704_v23 = vpop.eup %7538 }
 0x6ae   : > { %v4608_v17 = vmul.f32 1.442695, %v18884_v24  ;;  %v5060_v24 = vadd.f32 %v18891_v58, %v5059_v9  ;;  %7552 = vpow2.f32 %v4600_v19  ;;  %v18893_v10 = vsub.f32 %v18892_v37, %v18821_v38  ;;  %v18895_v9 = vld [vmem:[#allocation149_spill] sm:$0xff]  ;;  %v18900_v49 = vld [vmem:[#allocation415_spill] sm:$0xff] }
 0x6af   : > { %5615 = vmatprep.subr.bf16.mxu0 %v5371_v4  ;;  %v4993_v16 = vadd.f32 %v13693_v52, %v4992_v3  ;;  %v5190_v12 = vadd.f32 %v13323_v40, %v5189_v59  ;;  %v18896_v19 = vld [vmem:[#allocation153_spill] sm:$0xff]  ;;  %v5372_v37 = vpack.c.bf16 %v18819_v48, %v18800_v7  ;;  %v13712_v4 = vpop.eup %7540  ;;  %v18901_v32 = vsub.f32 %v18900_v49, %v18821_v38  ;;  %v18904_v7 = vld [vmem:[#allocation178_spill] sm:$0xff] }
 0x6b0   : > { %v4616_v18 = vmul.f32 1.442695, %v18893_v10  ;;  %v5370_v13 = vpack.c.bf16 %v18896_v19, %v18895_v9  ;;  %18897 = vst [vmem:[#allocation99_spill] sm:$0xff] %v13712_v4  ;;  %v18898_v10 = vld [vmem:[#allocation174_spill] sm:$0xff]  ;;  %7554 = vpow2.f32 %v4608_v17  ;;  %5595 = vmatmul.mubr.bf16.vlgmr.msra.gmra.mrb[0].mxu0 %v5290_v43  ;;  %5807 = vmatmul.mubr.bf16.vlgmr.msra.gmra.mrb[0].mxu1 %v5290_v43  ;;  %v18902_v59 = vld [vmem:[#allocation113_spill] sm:$0xff]  ;;  %v18905_v48 = vsub.f32 %v18904_v7, %v18834_v11 }
 0x6b1   : > { %v18899_v2 = vsub.f32 %v18898_v10, %v18834_v11  ;;  %v4624_v3 = vmul.f32 1.442695, %v18901_v32  ;;  %v5375_v9 = vpack.c.bf16 %v18903_v14, %v18902_v59  ;;  %7556 = vpow2.f32 %v13582_v25  ;;  %5828 = vmatpush1.bf16.msra.mxu1 %v5372_v37  ;;  %v18907_v32 = vld [vmem:[#allocation182_spill] sm:$0xff]  ;;  %v18909_v14 = vld [vmem:[#allocation115_spill] sm:$0xff]  ;;  %5604 = vmatprep.mubr.bf16.mxu0 %v5299_v29 }
 0x6b2   : > { %v13728_v19 = vmul.f32 1.442695, %v18905_v48  ;;  %v4994_v10 = vadd.f32 %v13712_v4, %v4993_v16  ;;  %v5191_v17 = vadd.f32 %v13331_v31, %v5190_v12  ;;  %5616 = vmatpush1.bf16.msra.mxu0 %v5370_v13  ;;  %v18908_v43 = vsub.f32 %v18907_v32, %v18834_v11  ;;  %v18910_v59 = vld [vmem:[#allocation419_spill] sm:$0xff]  ;;  %v18913_v32 = vld [vmem:[#allocation157_spill] sm:$0xff]  ;;  %5816 = vmatprep.mubr.bf16.mxu1 %v5299_v29 }
 0x6b3   : > { %v13717_v51 = vmul.f32 1.442695, %v18899_v2  ;;  %v13732_v2 = vpop.eup %7542  ;;  %v5061_v25 = vadd.f32 %v18909_v14, %v5060_v24  ;;  %7558 = vpow2.f32 %v4616_v18  ;;  %v18911_v7 = vsub.f32 %v18910_v59, %v18821_v38  ;;  %5617 = vmatprep.subr.bf16.mxu0 %v5375_v9  ;;  %v18916_v59 = vld [vmem:[#allocation186_spill] sm:$0xff] }
 0x6b4   : > { %18906 = vst [vmem:[#allocation102_spill] sm:$0xff] %v13732_v2  ;;  %v13737_v49 = vmul.f32 1.442695, %v18908_v43  ;;  %v18912_v16 = vpack.c.bf16 %v13331_v31, %v13323_v40  ;;  %v13746_v12 = vpop.eup %7544  ;;  %v4995_v13 = vadd.f32 %v13732_v2, %v4994_v10  ;;  %v5192_v37 = vadd.f32 %v13339_v27, %v5191_v17  ;;  %v18914_v43 = vld [vmem:[#allocation161_spill] sm:$0xff]  ;;  %v18918_v40 = vld [vmem:[#allocation423_spill] sm:$0xff]  ;;  %v18921_v17 = vld [vmem:[#allocation122_spill] sm:$0xff] }
 0x6b5   : > { %v4632_v48 = vmul.f32 1.442695, %v18911_v7  ;;  %v5374_v34 = vpack.c.bf16 %v18914_v43, %v18913_v32  ;;  %v5376_v18 = vpack.c.bf16 %v18856_v47, %v18838_v15  ;;  %v13754_v24 = vpop.eup %7546  ;;  %v18917_v9 = vsub.f32 %v18916_v59, %v18834_v11  ;;  %v18922_v32 = vld [vmem:[#allocation201_spill] sm:$0xff]  ;;  %v18924_v59 = vld [vmem:[#allocation190_spill] sm:$0xff] }
 0x6b6   : > { %5829 = vmatprep.subr.bf16.mxu1 %v18912_v16  ;;  %18915 = vst [vmem:[#allocation105_spill] sm:$0xff] %v13754_v24  ;;  %7560 = vpow2.f32 %v4624_v3  ;;  %v18919_v31 = vsub.f32 %v18918_v40, %v18821_v38  ;;  %v18920_v16 = vld [vmem:[#allocation119_spill] sm:$0xff]  ;;  %v13768_v43 = vadd.f32 %v18922_v32, %v13652_v22  ;;  %v4996_v15 = vadd.f32 %v13754_v24, %v4995_v13  ;;  %v13773_v3 = vpop.eup %7548 }
 0x6b7   : > { %v13759_v7 = vmul.f32 1.442695, %v18917_v9  ;;  %v5379_v50 = vpack.c.bf16 %v18921_v17, %v18920_v16  ;;  %7562 = vpow2.f32 %v13618_v44  ;;  %v5193_v47 = vadd.f32 %v13353_v33, %v5192_v37  ;;  %5618 = vmatpush1.bf16.msra.mxu0 %v5374_v34  ;;  %5830 = vmatpush1.bf16.msra.mxu1 %v5376_v18  ;;  %18923 = vst [vmem:[#allocation91_spill] sm:$0xff] %v13773_v3  ;;  %v18927_v22 = vld [vmem:[#allocation427_spill] sm:$0xff]  ;;  %v13787_v34 = vpop.eup %7550 }
 0x6b8   : > { %v4640_v10 = vmul.f32 1.442695, %v18919_v31  ;;  %v18925_v9 = vsub.f32 %v18924_v59, %v18834_v11  ;;  %v18926_v31 = vld [vmem:[#allocation121_spill] sm:$0xff]  ;;  %7564 = vpow2.f32 %v4632_v48  ;;  %v18928_v17 = vsub.f32 %v18927_v22, %v18821_v38  ;;  %v13795_v48 = vpop.eup %7552  ;;  %v18933_v22 = vld [vmem:[#allocation194_spill] sm:$0xff] }
 0x6b9   : > { %v5062_v16 = vadd.f32 %v18926_v31, %v5061_v25  ;;  %5619 = vmatprep.subr.bf16.mxu0 %v5379_v50  ;;  %v18929_v13 = vpack.c.bf16 %v13353_v33, %v13339_v27  ;;  %v4997_v37 = vadd.f32 %v13773_v3, %v4996_v15  ;;  %v5194_v18 = vadd.f32 %v13364_v5, %v5193_v47  ;;  %v18930_v59 = vld [vmem:[#allocation169_spill] sm:$0xff]  ;;  %v18935_v27 = vld [vmem:[#allocation431_spill] sm:$0xff]  ;;  %v18938_v47 = vld [vmem:[#allocation128_spill] sm:$0xff] }
 0x6ba   : > { %v13778_v40 = vmul.f32 1.442695, %v18925_v9  ;;  %v4648_v44 = vmul.f32 1.442695, %v18928_v17  ;;  %v18931_v9 = vld [vmem:[#allocation173_spill] sm:$0xff]  ;;  %v5380_v25 = vpack.c.bf16 %v18891_v58, %v18874_v41  ;;  %18932 = vst [vmem:[#allocation94_spill] sm:$0xff] %v13795_v48  ;;  %v18934_v50 = vsub.f32 %v18933_v22, %v18834_v11 }
 0x6bb   : > { %5831 = vmatprep.subr.bf16.mxu1 %v18929_v13  ;;  %v5378_v39 = vpack.c.bf16 %v18931_v9, %v18930_v59  ;;  %7566 = vpow2.f32 %v4640_v10  ;;  %v18936_v33 = vsub.f32 %v18935_v27, %v18821_v38  ;;  %v18937_v13 = vld [vmem:[#allocation125_spill] sm:$0xff]  ;;  %v18939_v59 = vld [vmem:[#allocation198_spill] sm:$0xff]  ;;  %v4998_v9 = vadd.f32 %v13795_v48, %v4997_v37  ;;  %v13815_v10 = vpop.eup %7554 }
 0x6bc   : > { %v13800_v17 = vmul.f32 1.442695, %v18934_v50  ;;  %v5383_v45 = vpack.c.bf16 %v18938_v47, %v18937_v13  ;;  %7568 = vpow2.f32 %v13689_v21  ;;  %v18940_v41 = vsub.f32 %v18939_v59, %v18834_v11  ;;  %5832 = vmatpush1.bf16.msra.mxu1 %v5380_v25  ;;  %18941 = vst [vmem:[#allocation13_spill] sm:$0xff] %v13815_v10  ;;  %v18942_v50 = vld [vmem:[#allocation202_spill] sm:$0xff]  ;;  %v18945_v13 = vld [vmem:[#allocation127_spill] sm:$0xff] }
 0x6bd   : > { %v4656_v15 = vmul.f32 1.442695, %v18936_v33  ;;  %v5195_v22 = vadd.f32 %v13372_v36, %v5194_v18  ;;  %5620 = vmatpush1.bf16.msra.mxu0 %v5378_v39  ;;  %v18943_v27 = vsub.f32 %v18942_v50, %v18834_v11  ;;  %v5063_v21 = vadd.f32 %v18945_v13, %v5062_v16  ;;  %v18946_v47 = vld [vmem:[#allocation435_spill] sm:$0xff]  ;;  %v13829_v39 = vpop.eup %7556  ;;  %v18949_v50 = vld [vmem:[#allocation177_spill] sm:$0xff] }
 0x6be   : > { %v13811_v58 = vmul.f32 1.442695, %v18940_v41  ;;  %7570 = vpow2.f32 %v4648_v44  ;;  %v18947_v59 = vsub.f32 %v18946_v47, %v18821_v38  ;;  %5621 = vmatprep.subr.bf16.mxu0 %v5383_v45  ;;  %v18948_v37 = vpack.c.bf16 %v13372_v36, %v13364_v5  ;;  %v13837_v44 = vpop.eup %7558  ;;  %v18952_v45 = vld [vmem:[#allocation439_spill] sm:$0xff] }
 0x6bf   : > { %v13820_v33 = vmul.f32 1.442695, %v18943_v27  ;;  %v4999_v18 = vadd.f32 %v13815_v10, %v4998_v9  ;;  %v5196_v25 = vadd.f32 %v13386_v55, %v5195_v22  ;;  %v18950_v27 = vld [vmem:[#allocation181_spill] sm:$0xff]  ;;  %v5384_v16 = vpack.c.bf16 %v18926_v31, %v18909_v14  ;;  %18951 = vst [vmem:[#allocation465_spill] sm:$0xff] %v13837_v44  ;;  %v18954_v36 = vld [vmem:[#allocation131_spill] sm:$0xff] }
 0x6c0   : > { %v4664_v41 = vmul.f32 1.442695, %v18947_v59  ;;  %5833 = vmatprep.subr.bf16.mxu1 %v18948_v37  ;;  %7572 = vpow2.f32 %v4656_v15  ;;  %v18953_v47 = vsub.f32 %v18952_v45, %v18821_v38  ;;  %v18955_v59 = vld [vmem:[#allocation134_spill] sm:$0xff]  ;;  %v13851_v31 = vpop.eup %7560  ;;  %v19064_v10 = vld [vmem:[#allocation69_spill] sm:$0xff] }
 0x6c1   : > { %18944 = vst [vmem:[#allocation482_spill] sm:$0xff] %v13820_v33  ;;  %v5382_v33 = vpack.c.bf16 %v18950_v27, %v18949_v50  ;;  %v5387_v37 = vpack.c.bf16 %v18955_v59, %v18954_v36  ;;  %7574 = vpow2.f32 %v13717_v51  ;;  %v5000_v22 = vadd.f32 %v13837_v44, %v4999_v18  ;;  %5834 = vmatpush1.bf16.msra.mxu1 %v5384_v16  ;;  %v18957_v15 = vld [vmem:[#allocation206_spill] sm:$0xff]  ;;  %v18962_v18 = vld [vmem:[#allocation185_spill] sm:$0xff]  ;;  %v13866_v59 = vpop.eup %7562 }
 0x6c2   : > { %v4672_v5 = vmul.f32 1.442695, %v18953_v47  ;;  %v5197_v50 = vadd.f32 %v13397_v57, %v5196_v25  ;;  %18956 = vst [vmem:[#allocation469_spill] sm:$0xff] %v13851_v31  ;;  %v18958_v27 = vsub.f32 %v18957_v15, %v18834_v11  ;;  %7576 = vpow2.f32 %v4664_v41  ;;  %v18959_v47 = vld [vmem:[#allocation443_spill] sm:$0xff]  ;;  %v18963_v25 = vld [vmem:[#allocation189_spill] sm:$0xff]  ;;  %v13874_v6 = vpop.eup %7564 }
 0x6c3   : > { %5622 = vmatpush1.bf16.msra.mxu0 %v5382_v33  ;;  %v18960_v51 = vsub.f32 %v18959_v47, %v18821_v38  ;;  %v18961_v33 = vpack.c.bf16 %v13397_v57, %v13386_v55  ;;  %v5386_v16 = vpack.c.bf16 %v18963_v25, %v18962_v18  ;;  %v5001_v14 = vadd.f32 %v13851_v31, %v5000_v22  ;;  %v18964_v15 = vld [vmem:[#allocation45_spill] sm:$0xff]  ;;  %v18969_v55 = vld [vmem:[#allocation447_spill] sm:$0xff]  ;;  %v18972_v25 = vld [vmem:[#allocation140_spill] sm:$0xff] }
 0x6c4   : > { %v13856_v45 = vmul.f32 1.442695, %v18958_v27  ;;  %5623 = vmatprep.subr.bf16.mxu0 %v5387_v37  ;;  %v5198_v27 = vadd.f32 %v18964_v15, %v5197_v50  ;;  %v18965_v41 = vld [vmem:[#allocation133_spill] sm:$0xff]  ;;  %18968 = vst [vmem:[#allocation108_spill] sm:$0xff] %v13874_v6  ;;  %7578 = vpow2.f32 %v4672_v5  ;;  %v18970_v57 = vsub.f32 %v18969_v55, %v18821_v38  ;;  %v18975_v5 = vld [vmem:[#allocation48_spill] sm:$0xff] }
 0x6c5   : > { %v4680_v36 = vmul.f32 1.442695, %v18960_v51  ;;  %5835 = vmatprep.subr.bf16.mxu1 %v18961_v33  ;;  %v5388_v9 = vpack.c.bf16 %v18965_v41, %v18945_v13  ;;  %v18971_v18 = vld [vmem:[#allocation137_spill] sm:$0xff]  ;;  %7580 = vpow2.f32 %v13728_v19  ;;  %v5064_v37 = vadd.f32 %v18965_v41, %v5063_v21  ;;  %v13887_v55 = vpop.eup %7566  ;;  %v18992_v41 = vld [vmem:[#allocation347_spill] sm:$0xff] }
 0x6c6   : > { %v4688_v33 = vmul.f32 1.442695, %v18970_v57  ;;  %v5391_v1 = vpack.c.bf16 %v18972_v25, %v18971_v18  ;;  %v5298_v22 = vld [vmem:[#allocation3 + $0x40] sm:$0xff]  ;;  %v5002_v47 = vadd.f32 %v13874_v6, %v5001_v14  ;;  %v5199_v51 = vadd.f32 %v18975_v5, %v5198_v27  ;;  %18976 = vst [vmem:[#allocation106_spill] sm:$0xff] %v13887_v55  ;;  %v18977_v57 = vld [vmem:[#allocation451_spill] sm:$0xff] }
 0x6c7   : > { %5624 = vmatpush1.bf16.msra.mxu0 %v5386_v16  ;;  %5836 = vmatpush1.bf16.msra.mxu1 %v5388_v9  ;;  %7582 = vpow2.f32 %v4680_v36  ;;  %v18978_v29 = vsub.f32 %v18977_v57, %v18821_v38  ;;  %v18979_v25 = vpack.c.bf16 %v18975_v5, %v18964_v15  ;;  %v18980_v19 = vld [vmem:[#allocation193_spill] sm:$0xff]  ;;  %v13899_v16 = vpop.eup %7568  ;;  %v18983_v36 = vld [vmem:[#allocation51_spill] sm:$0xff] }
 0x6c8   : > { %5625 = vmatprep.subr.bf16.mxu0 %v5391_v1  ;;  %v5390_v21 = vpack.c.bf16 %v18870_v20, %v18980_v19  ;;  %7584 = vpow2.f32 %v13737_v49  ;;  %v5003_v9 = vadd.f32 %v13887_v55, %v5002_v47  ;;  %v5200_v57 = vadd.f32 %v18983_v36, %v5199_v51  ;;  %v18985_v1 = vld [vmem:[#allocation142_spill] sm:$0xff]  ;;  %5605 = vmatmul.mubr.bf16.gmra.mrb[4].mxu0 %v5298_v22  ;;  %v13906_v15 = vpop.eup %7570  ;;  %v18987_v20 = vld [vmem:[#allocation455_spill] sm:$0xff] }
 0x6c9   : > { %v4696_v18 = vmul.f32 1.442695, %v18978_v29  ;;  %5837 = vmatprep.subr.bf16.mxu1 %v18979_v25  ;;  %v18984_v29 = vld [vmem:[#allocation35_spill] sm:$0xff]  ;;  %5817 = vmatmul.mubr.bf16.gmra.mrb[4].mxu1 %v5298_v22  ;;  %18986 = vst [vmem:[#allocation112_spill] sm:$0xff] %v13906_v15  ;;  %7586 = vpow2.f32 %v4688_v33  ;;  %v18988_v5 = vsub.f32 %v18987_v20, %v18821_v38  ;;  %v18993_v22 = vld [vmem:[#allocation54_spill] sm:$0xff]  ;;  %v18995_v20 = vld [vmem:[#allocation205_spill] sm:$0xff] }
 0x6ca   : > { %v5392_v13 = vpack.c.bf16 %v18985_v1, %v18984_v29  ;;  %v18989_v19 = vld [vmem:[#allocation143_spill] sm:$0xff]  ;;  %7588 = vpow2.f32 %v13759_v7  ;;  %v5065_v51 = vadd.f32 %v18984_v29, %v5064_v37  ;;  %v5004_v50 = vadd.f32 %v13906_v15, %v5003_v9  ;;  %v13919_v33 = vpop.eup %7572  ;;  %v19001_v29 = vld [vmem:[#allocation146_spill] sm:$0xff] }
 0x6cb   : > { %v4704_v25 = vmul.f32 1.442695, %v18988_v5  ;;  %v18990_v27 = vld [vmem:[#allocation147_spill] sm:$0xff]  ;;  %v5201_v28 = vadd.f32 %v18993_v22, %v5200_v57  ;;  %5626 = vmatpush1.bf16.msra.mxu0 %v5390_v21  ;;  %18994 = vst [vmem:[#allocation111_spill] sm:$0xff] %v13919_v33  ;;  %v13923_v5 = vadd.f32 %v18995_v20, %v13768_v43  ;;  %7590 = vpow2.f32 %v4696_v18 }
 0x6cc   : > { %v5395_v14 = vpack.c.bf16 %v18990_v27, %v18989_v19  ;;  %5838 = vmatpush1.bf16.msra.mxu1 %v5392_v13  ;;  %v18996_v27 = vld [vmem:[#allocation459_spill] sm:$0xff]  ;;  %v18998_v7 = vpack.c.bf16 %v18993_v22, %v18983_v36  ;;  %v13933_v13 = vpop.eup %7574  ;;  %v5005_v57 = vadd.f32 %v13919_v33, %v5004_v50  ;;  %v5394_v18 = vpack.c.bf16 %v18995_v20, %v18922_v32 }
 0x6cd   : > { %v18997_v19 = vsub.f32 %v18996_v27, %v18821_v38  ;;  %v5202_v43 = vadd.f32 %v13452_v56, %v5201_v28  ;;  %v5396_v27 = vpack.c.bf16 %v13704_v23, %v19001_v29  ;;  %7592 = vpow2.f32 %v4704_v25  ;;  %v19003_v36 = vld [vmem:[#allocation463_spill] sm:$0xff]  ;;  %v19007_v28 = vld [vmem:[#allocation28_spill] sm:$0xff] }
 0x6ce   : > { %5627 = vmatprep.subr.bf16.mxu0 %v5395_v14  ;;  %5839 = vmatprep.subr.bf16.mxu1 %v18998_v7  ;;  %v5293_v14 = vld [vmem:[#allocation3 + $0x18] sm:$0xff]  ;;  %v19004_v22 = vsub.f32 %v19003_v36, %v18821_v38  ;;  %v19005_v21 = vld [vmem:[#allocation151_spill] sm:$0xff]  ;;  %7594 = vpow2.f32 %v13778_v40  ;;  %v5066_v32 = vadd.f32 %v18985_v1, %v5065_v51  ;;  %v19013_v40 = vld [vmem:[#allocation209_spill] sm:$0xff] }
 0x6cf   : > { %v4712_v47 = vmul.f32 1.442695, %v18997_v19  ;;  %v13941_v19 = vpop.eup %7576  ;;  %v19006_v37 = vld [vmem:[#allocation155_spill] sm:$0xff]  ;;  %5647 = vmatprep.mubr.bf16.mxu0 %v5293_v14  ;;  %5859 = vmatprep.mubr.bf16.mxu1 %v5293_v14  ;;  %v5203_v25 = vadd.f32 %v13463_v8, %v5202_v43  ;;  %v19012_v14 = vpack.c.bf16 %v13463_v8, %v13452_v56  ;;  %v19014_v1 = vld [vmem:[#allocation14_spill] sm:$0xff] }
 0x6d0   : > { %19002 = vst [vmem:[#allocation114_spill] sm:$0xff] %v13941_v19  ;;  %v4720_v7 = vmul.f32 1.442695, %v19004_v22  ;;  %v5399_v9 = vpack.c.bf16 %v19006_v37, %v19005_v21  ;;  %v19008_v50 = vld [vmem:[#allocation367_spill] sm:$0xff]  ;;  %v5006_v20 = vadd.f32 %v13941_v19, %v5005_v57  ;;  %5628 = vmatpush1.bf16.msra.mxu0 %v5394_v18  ;;  %5840 = vmatpush1.bf16.msra.mxu1 %v5396_v27  ;;  %v13954_v36 = vpop.eup %7578 }
 0x6d1   : > { %19009 = vst [vmem:[#allocation483_spill] sm:$0xff] %v13954_v36  ;;  %7596 = vpow2.f32 %v4712_v47  ;;  %v19010_v22 = vld [vmem:[#allocation467_spill] sm:$0xff]  ;;  %5841 = vmatprep.subr.bf16.mxu1 %v19012_v14  ;;  %v5398_v51 = vpack.c.bf16 %v19014_v1, %v19013_v40  ;;  %v13966_v43 = vpop.eup %7580  ;;  %v5204_v47 = vadd.f32 %v13471_v53, %v5203_v25  ;;  %v5400_v27 = vpack.c.bf16 %v13787_v34, %v13746_v12 }
 0x6d2   : > { %v19011_v37 = vsub.f32 %v19010_v22, %v18821_v38  ;;  %5629 = vmatprep.subr.bf16.mxu0 %v5399_v9  ;;  %v5007_v18 = vadd.f32 %v13954_v36, %v5006_v20  ;;  %v13974_v56 = vpop.eup %7582  ;;  %7598 = vpow2.f32 %v4720_v7  ;;  %v19016_v8 = vld [vmem:[#allocation471_spill] sm:$0xff]  ;;  %v19021_v9 = vsub.f32 %v19020_v54, %v18834_v11  ;;  %v19136_v36 = vld [vmem:[#allocation150_spill] sm:$0xff] }
 0x6d3   : > { %19015 = vst [vmem:[#allocation484_spill] sm:$0xff] %v13974_v56  ;;  %v19017_v22 = vsub.f32 %v19016_v8, %v18821_v38  ;;  %v19018_v14 = vld [vmem:[#allocation159_spill] sm:$0xff]  ;;  %v13983_v25 = vpop.eup %7584  ;;  %7600 = vpow2.f32 %v13800_v17  ;;  %v5205_v8 = vadd.f32 %v19022_v26, %v5204_v47  ;;  %v19026_v54 = vpack.c.bf16 %v19022_v26, %v13471_v53 }
 0x6d4   : > { %v4728_v21 = vmul.f32 1.442695, %v19011_v37  ;;  %v19019_v57 = vld [vmem:[#allocation163_spill] sm:$0xff]  ;;  %v13989_v0 = vmul.f32 1.442695, %v19021_v9  ;;  %v5008_v7 = vadd.f32 %v13974_v56, %v5007_v18  ;;  %5630 = vmatpush1.bf16.msra.mxu0 %v5398_v51  ;;  %5842 = vmatpush1.bf16.msra.mxu1 %v5400_v27  ;;  %v5404_v9 = vpack.c.bf16 %v13866_v59, %v13829_v39  ;;  %v19134_v56 = vld [vmem:[#allocation266_spill] sm:$0xff] }
 0x6d5   : > { %v4736_v37 = vmul.f32 1.442695, %v19017_v22  ;;  %v5403_v49 = vpack.c.bf16 %v19019_v57, %v19018_v14  ;;  %v13993_v22 = vpop.eup %7586  ;;  %v5067_v57 = vadd.f32 %v19001_v29, %v5066_v32  ;;  %v19024_v14 = vld [vmem:[#allocation476_spill] sm:$0xff]  ;;  %5843 = vmatprep.subr.bf16.mxu1 %v19026_v54  ;;  %v5206_v27 = vadd.f32 %v13496_v60, %v5205_v8  ;;  %v19027_v29 = vld [vmem:[#allocation17_spill] sm:$0xff]  ;;  %v19030_v53 = vld [vmem:[#allocation475_spill] sm:$0xff] }
 0x6d6   : > { %19023 = vst [vmem:[#allocation473_spill] sm:$0xff] %v13993_v22  ;;  %7602 = vpow2.f32 %v4728_v21  ;;  %v19025_v20 = vsub.f32 %v19024_v14, %v18821_v38  ;;  %v14004_v47 = vpop.eup %7588  ;;  %v5009_v51 = vadd.f32 %v13993_v22, %v5008_v7  ;;  %v19028_v32 = vld [vmem:[#allocation213_spill] sm:$0xff]  ;;  %v19031_v26 = vsub.f32 %v19030_v53, %v18821_v38  ;;  %v19032_v14 = vld [vmem:[#allocation167_spill] sm:$0xff]  ;;  %v19033_v54 = vld [vmem:[#allocation126_spill] sm:$0xff] }
 0x6d7   : > { %5631 = vmatprep.subr.bf16.mxu0 %v5403_v49  ;;  %v5402_v21 = vpack.c.bf16 %v19028_v32, %v19027_v29  ;;  %v14012_v49 = vpop.eup %7590  ;;  %7604 = vpow2.f32 %v4736_v37  ;;  %v5407_v18 = vpack.c.bf16 %v19033_v54, %v19032_v14  ;;  %v19034_v8 = vld [vmem:[#allocation214_spill] sm:$0xff]  ;;  %v5207_v37 = vadd.f32 %v13504_v30, %v5206_v27  ;;  %v19040_v54 = vld [vmem:[#allocation20_spill] sm:$0xff]  ;;  %v19076_v15 = vld [vmem:[#allocation75_spill] sm:$0xff] }
 0x6d8   : > { %v4744_v17 = vmul.f32 1.442695, %v19025_v20  ;;  %19029 = vst [vmem:[#allocation16_spill] sm:$0xff] %v14012_v49  ;;  %v4752_v20 = vmul.f32 1.442695, %v19031_v26  ;;  %7606 = vpow2.f32 %v13811_v58  ;;  %v19035_v61 = vsub.f32 %v19034_v8, %v18834_v11  ;;  %5844 = vmatpush1.bf16.msra.mxu1 %v5404_v9  ;;  %v14027_v38 = vpop.eup %7592  ;;  %v19037_v53 = vld [vmem:[#allocation218_spill] sm:$0xff] }
 0x6d9   : > { %v5010_v42 = vadd.f32 %v14012_v49, %v5009_v51  ;;  %5632 = vmatpush1.bf16.msra.mxu0 %v5402_v21  ;;  %19036 = vst [vmem:[#allocation117_spill] sm:$0xff] %v14027_v38  ;;  %v19038_v26 = vsub.f32 %v19037_v53, %v18834_v11  ;;  %v19039_v58 = vpack.c.bf16 %v13504_v30, %v13496_v60  ;;  %v14039_v27 = vpop.eup %7594  ;;  %v19042_v9 = vld [vmem:[#allocation60_spill] sm:$0xff]  ;;  %v19044_v53 = vld [vmem:[#allocation171_spill] sm:$0xff] }
 0x6da   : > { %v4226_v63 = vmul.f32 1.442695, %v19035_v61  ;;  %7608 = vpow2.f32 %v4744_v17  ;;  %5633 = vmatprep.subr.bf16.mxu0 %v5407_v18  ;;  %v19041_v61 = vld [vmem:[#allocation23_spill] sm:$0xff]  ;;  %v5208_v7 = vadd.f32 %v19042_v9, %v5207_v37  ;;  %v5408_v17 = vpack.c.bf16 %v13933_v13, %v13899_v16  ;;  %v19047_v37 = vld [vmem:[#allocation222_spill] sm:$0xff] }
 0x6db   : > { %v4234_v14 = vmul.f32 1.442695, %v19038_v26  ;;  %5845 = vmatprep.subr.bf16.mxu1 %v19039_v58  ;;  %v5406_v8 = vpack.c.bf16 %v19041_v61, %v19040_v54  ;;  %v5011_v21 = vadd.f32 %v14027_v38, %v5010_v42  ;;  %v14047_v60 = vpop.eup %7596  ;;  %v5068_v30 = vadd.f32 %v13704_v23, %v5067_v57  ;;  %v19045_v26 = vld [vmem:[#allocation138_spill] sm:$0xff]  ;;  %v19049_v18 = vld [vmem:[#allocation63_spill] sm:$0xff] }
 0x6dc   : > { %19043 = vst [vmem:[#allocation118_spill] sm:$0xff] %v14047_v60  ;;  %7610 = vpow2.f32 %v4752_v20  ;;  %v5411_v58 = vpack.c.bf16 %v19045_v26, %v19044_v53  ;;  %v19046_v42 = vld [vmem:[#allocation482_spill] sm:$0xff]  ;;  %v19048_v4 = vsub.f32 %v19047_v37, %v18834_v11  ;;  %v5209_v24 = vadd.f32 %v19049_v18, %v5208_v7  ;;  %5846 = vmatpush1.bf16.msra.mxu1 %v5408_v17  ;;  %v14060_v23 = vpop.eup %7598  ;;  %v19061_v7 = vld [vmem:[#allocation152_spill] sm:$0xff] }
 0x6dd   : > { %7612 = vpow2.f32 %v19046_v42  ;;  %v5012_v46 = vadd.f32 %v14047_v60, %v5011_v21  ;;  %5634 = vmatpush1.bf16.msra.mxu0 %v5406_v8  ;;  %19050 = vst [vmem:[#allocation124_spill] sm:$0xff] %v14060_v23  ;;  %v4803_v57 = vadd.f32 %v19013_v40, %v13923_v5  ;;  %v19051_v20 = vld [vmem:[#allocation226_spill] sm:$0xff]  ;;  %v14073_v8 = vpop.eup %7600  ;;  %v19055_v40 = vld [vmem:[#allocation217_spill] sm:$0xff]  ;;  %v5412_v37 = vpack.c.bf16 %v13983_v25, %v13966_v43 }
 0x6de   : > { %v4242_v2 = vmul.f32 1.442695, %v19048_v4  ;;  %7614 = vpow2.f32 %v13856_v45  ;;  %v19052_v53 = vsub.f32 %v19051_v20, %v18834_v11  ;;  %5635 = vmatprep.subr.bf16.mxu0 %v5411_v58  ;;  %v19053_v4 = vpack.c.bf16 %v19049_v18, %v19042_v9  ;;  %v19054_v17 = vld [vmem:[#allocation66_spill] sm:$0xff] }
 0x6df   : > { %v5013_v21 = vadd.f32 %v14060_v23, %v5012_v46  ;;  %v5210_v5 = vadd.f32 %v19054_v17, %v5209_v24  ;;  %v19056_v45 = vld [vmem:[#allocation26_spill] sm:$0xff]  ;;  %7616 = vpow2.f32 %v13989_v0  ;;  %v19067_v0 = vld [vmem:[#allocation29_spill] sm:$0xff]  ;;  %v19104_v23 = vld [vmem:[#allocation87_spill] sm:$0xff]  ;;  %v19135_v22 = vsub.f32 %v19134_v56, %v18834_v11 }
 0x6e0   : > { %v4250_v26 = vmul.f32 1.442695, %v19052_v53  ;;  %5847 = vmatprep.subr.bf16.mxu1 %v19053_v4  ;;  %v5410_v42 = vpack.c.bf16 %v19056_v45, %v19055_v40  ;;  %v14081_v58 = vpop.eup %7602  ;;  %v19058_v20 = vld [vmem:[#allocation230_spill] sm:$0xff]  ;;  %v5069_v53 = vadd.f32 %v13746_v12, %v5068_v30  ;;  %v19060_v4 = vld [vmem:[#allocation175_spill] sm:$0xff]  ;;  %v4804_v12 = vadd.f32 %v19014_v1, %v4803_v57 }
 0x6e1   : > { %19057 = vst [vmem:[#allocation120_spill] sm:$0xff] %v14081_v58  ;;  %v19059_v9 = vsub.f32 %v19058_v20, %v18834_v11  ;;  %v5415_v51 = vpack.c.bf16 %v19061_v7, %v19060_v4  ;;  %v19062_v24 = vld [vmem:[#allocation234_spill] sm:$0xff]  ;;  %v5014_v48 = vadd.f32 %v14081_v58, %v5013_v21  ;;  %v5211_v3 = vadd.f32 %v19064_v10, %v5210_v5  ;;  %v14097_v20 = vpop.eup %7604  ;;  %v19068_v7 = vld [vmem:[#allocation221_spill] sm:$0xff]  ;;  %v19071_v57 = vld [vmem:[#allocation179_spill] sm:$0xff] }
 0x6e2   : > { %v19063_v44 = vsub.f32 %v19062_v24, %v18834_v11  ;;  %5636 = vmatpush1.bf16.msra.mxu0 %v5410_v42  ;;  %5848 = vmatpush1.bf16.msra.mxu1 %v5412_v37  ;;  %19065 = vst [vmem:[#allocation123_spill] sm:$0xff] %v14097_v20  ;;  %7618 = vpow2.f32 %v4226_v63  ;;  %v19066_v30 = vpack.c.bf16 %v19064_v10, %v19054_v17  ;;  %v14107_v21 = vpop.eup %7606  ;;  %v19069_v42 = vld [vmem:[#allocation72_spill] sm:$0xff]  ;;  %v19089_v24 = vld [vmem:[#allocation81_spill] sm:$0xff]  ;;  %v4330_v19 = vmul.f32 1.442695, %v19135_v22 }
 0x6e3   : > { %v4258_v18 = vmul.f32 1.442695, %v19059_v9  ;;  %5637 = vmatprep.subr.bf16.mxu0 %v5415_v51  ;;  %v5414_v9 = vpack.c.bf16 %v19068_v7, %v19067_v0  ;;  %v5015_v5 = vadd.f32 %v14097_v20, %v5014_v48  ;;  %v5212_v37 = vadd.f32 %v19069_v42, %v5211_v3  ;;  %v19072_v17 = vld [vmem:[#allocation168_spill] sm:$0xff] }
 0x6e4   : > { %v4266_v31 = vmul.f32 1.442695, %v19063_v44  ;;  %5849 = vmatprep.subr.bf16.mxu1 %v19066_v30  ;;  %v5416_v63 = vpack.c.bf16 %v14039_v27, %v14004_v47  ;;  %v14115_v10 = vpop.eup %7608  ;;  %7620 = vpow2.f32 %v4234_v14  ;;  %v5070_v51 = vadd.f32 %v13787_v34, %v5069_v53  ;;  %v19073_v48 = vld [vmem:[#allocation236_spill] sm:$0xff]  ;;  %v19074_v30 = vld [vmem:[#allocation139_spill] sm:$0xff] }
 0x6e5   : > { %19070 = vst [vmem:[#allocation485_spill] sm:$0xff] %v14115_v10  ;;  %v5419_v4 = vpack.c.bf16 %v19072_v17, %v19071_v57  ;;  %7622 = vpow2.f32 %v4242_v2  ;;  %v5016_v3 = vadd.f32 %v14115_v10, %v5015_v5  ;;  %v19075_v44 = vsub.f32 %v19073_v48, %v19074_v30  ;;  %v19078_v53 = vld [vmem:[#allocation240_spill] sm:$0xff]  ;;  %v19119_v10 = vld [vmem:[#allocation93_spill] sm:$0xff] }
 0x6e6   : > { %v5213_v1 = vadd.f32 %v19076_v15, %v5212_v37  ;;  %5638 = vmatpush1.bf16.msra.mxu0 %v5414_v9  ;;  %5850 = vmatpush1.bf16.msra.mxu1 %v5416_v63  ;;  %v14127_v14 = vpop.eup %7610  ;;  %v4805_v34 = vadd.f32 %v19027_v29, %v4804_v12  ;;  %7624 = vpow2.f32 %v4250_v26  ;;  %v19079_v57 = vsub.f32 %v19078_v53, %v19074_v30  ;;  %v19082_v37 = vld [vmem:[#allocation78_spill] sm:$0xff]  ;;  %v19083_v26 = vld [vmem:[#allocation32_spill] sm:$0xff]  ;;  %v19084_v12 = vld [vmem:[#allocation229_spill] sm:$0xff] }
 0x6e7   : > { %v4268_v46 = vmul.f32 1.442695, %v19075_v44  ;;  %19077 = vst [vmem:[#allocation486_spill] sm:$0xff] %v14127_v14  ;;  %5639 = vmatprep.subr.bf16.mxu0 %v5419_v4  ;;  %v19080_v2 = vpack.c.bf16 %v19076_v15, %v19069_v42  ;;  %v14138_v5 = vpop.eup %7612  ;;  %v14141_v9 = vadd.f32 %v14127_v14, %v5016_v3  ;;  %v5418_v63 = vpack.c.bf16 %v19084_v12, %v19083_v26  ;;  %v19085_v42 = vld [vmem:[#allocation183_spill] sm:$0xff]  ;;  %v19092_v3 = vld [vmem:[#allocation248_spill] sm:$0xff] }
 0x6e8   : > { %v4276_v17 = vmul.f32 1.442695, %v19079_v57  ;;  %v5214_v29 = vadd.f32 %v19082_v37, %v5213_v1  ;;  %v5420_v4 = vpack.c.bf16 %v14107_v21, %v14073_v8  ;;  %v14148_v48 = vpop.eup %7614  ;;  %7626 = vpow2.f32 %v4258_v18  ;;  %v19086_v53 = vld [vmem:[#allocation195_spill] sm:$0xff]  ;;  %v19102_v18 = vld [vmem:[#allocation246_spill] sm:$0xff] }
 0x6e9   : > { %5851 = vmatprep.subr.bf16.mxu1 %v19080_v2  ;;  %19081 = vst [vmem:[#allocation19_spill] sm:$0xff] %v14141_v9  ;;  %v5071_v15 = vadd.f32 %v13829_v39, %v5070_v51  ;;  %v5423_v57 = vpack.c.bf16 %v19086_v53, %v19085_v42  ;;  %v19087_v2 = vld [vmem:[#allocation238_spill] sm:$0xff]  ;;  %7628 = vpow2.f32 %v4268_v46  ;;  %v4806_v39 = vadd.f32 %v19028_v32, %v4805_v34  ;;  %v19090_v51 = vld [vmem:[#allocation244_spill] sm:$0xff]  ;;  %v19097_v32 = vld [vmem:[#allocation237_spill] sm:$0xff] }
 0x6ea   : > { %v19088_v1 = vsub.f32 %v19087_v2, %v18834_v11  ;;  %v5215_v9 = vadd.f32 %v19089_v24, %v5214_v29  ;;  %5640 = vmatpush1.bf16.msra.mxu0 %v5418_v63  ;;  %5852 = vmatpush1.bf16.msra.mxu1 %v5420_v4  ;;  %7630 = vpow2.f32 %v4276_v17  ;;  %v19091_v42 = vsub.f32 %v19090_v51, %v19074_v30  ;;  %v14171_v29 = vpop.eup %7616  ;;  %v19095_v63 = vld [vmem:[#allocation84_spill] sm:$0xff] }
 0x6eb   : > { %v19093_v60 = vsub.f32 %v19092_v3, %v19074_v30  ;;  %5641 = vmatprep.subr.bf16.mxu0 %v5423_v57  ;;  %v19094_v46 = vpack.c.bf16 %v19089_v24, %v19082_v37  ;;  %v5424_v17 = vpack.c.bf16 %v14148_v48, %v14138_v5  ;;  %7632 = vpow2.f32 %v4266_v31 }
 0x6ec   : > { %v4274_v44 = vmul.f32 1.442695, %v19088_v1  ;;  %v4284_v53 = vmul.f32 1.442695, %v19091_v42  ;;  %v5216_v4 = vadd.f32 %v19095_v63, %v5215_v9  ;;  %v19096_v1 = vld [vmem:[#allocation233_spill] sm:$0xff]  ;;  %v14180_v3 = vpop.eup %7618  ;;  %v5072_v57 = vadd.f32 %v13866_v59, %v5071_v15  ;;  %v19100_v42 = vld [vmem:[#allocation199_spill] sm:$0xff] }
 0x6ed   : > { %v4292_v2 = vmul.f32 1.442695, %v19093_v60  ;;  %5853 = vmatprep.subr.bf16.mxu1 %v19094_v46  ;;  %v5422_v34 = vpack.c.bf16 %v19097_v32, %v19096_v1  ;;  %v19098_v60 = vld [vmem:[#allocation242_spill] sm:$0xff]  ;;  %v19101_v9 = vld [vmem:[#allocation203_spill] sm:$0xff]  ;;  %v19103_v58 = vsub.f32 %v19102_v18, %v18834_v11  ;;  %v4807_v31 = vadd.f32 %v19040_v54, %v4806_v39  ;;  %v19111_v54 = vld [vmem:[#allocation241_spill] sm:$0xff] }
 0x6ee   : > { %v19099_v24 = vsub.f32 %v19098_v60, %v18834_v11  ;;  %v5427_v46 = vpack.c.bf16 %v19101_v9, %v19100_v42  ;;  %7634 = vpow2.f32 %v4274_v44  ;;  %v5217_v49 = vadd.f32 %v19104_v23, %v5216_v4  ;;  %5854 = vmatpush1.bf16.msra.mxu1 %v5424_v17  ;;  %v14192_v51 = vpop.eup %7620  ;;  %v19105_v60 = vld [vmem:[#allocation252_spill] sm:$0xff]  ;;  %v19110_v4 = vld [vmem:[#allocation90_spill] sm:$0xff]  ;;  %v19112_v39 = vld [vmem:[#allocation245_spill] sm:$0xff] }
 0x6ef   : > { %v4290_v20 = vmul.f32 1.442695, %v19103_v58  ;;  %5642 = vmatpush1.bf16.msra.mxu0 %v5422_v34  ;;  %7636 = vpow2.f32 %v4284_v53  ;;  %v19106_v59 = vsub.f32 %v19105_v60, %v19074_v30  ;;  %v19109_v58 = vpack.c.bf16 %v19104_v23, %v19095_v63  ;;  %v14204_v18 = vpop.eup %7622  ;;  %v19113_v60 = vld [vmem:[#allocation250_spill] sm:$0xff]  ;;  %v19115_v63 = vld [vmem:[#allocation207_spill] sm:$0xff] }
 0x6f0   : > { %v4282_v37 = vmul.f32 1.442695, %v19099_v24  ;;  %v19107_v24 = vld [vmem:[#allocation256_spill] sm:$0xff]  ;;  %5643 = vmatprep.subr.bf16.mxu0 %v5427_v46  ;;  %7638 = vpow2.f32 %v4292_v2  ;;  %v5218_v34 = vadd.f32 %v19110_v4, %v5217_v49  ;;  %v5426_v53 = vpack.c.bf16 %v19112_v39, %v19111_v54  ;;  %v14211_v9 = vpop.eup %7624  ;;  %v19117_v49 = vld [vmem:[#allocation254_spill] sm:$0xff] }
 0x6f1   : > { %v4300_v15 = vmul.f32 1.442695, %v19106_v59  ;;  %v19108_v44 = vsub.f32 %v19107_v24, %v19074_v30  ;;  %5855 = vmatprep.subr.bf16.mxu1 %v19109_v58  ;;  %v5428_v17 = vpack.c.bf16 %v14180_v3, %v14171_v29  ;;  %v19114_v46 = vsub.f32 %v19113_v60, %v18834_v11  ;;  %v19116_v24 = vld [vmem:[#allocation211_spill] sm:$0xff]  ;;  %v19120_v60 = vld [vmem:[#allocation260_spill] sm:$0xff] }
 0x6f2   : > { %7640 = vpow2.f32 %v4282_v37  ;;  %v5073_v23 = vadd.f32 %v13899_v16, %v5072_v57  ;;  %v5431_v2 = vpack.c.bf16 %v19116_v24, %v19115_v63  ;;  %v5219_v14 = vadd.f32 %v19119_v10, %v5218_v34  ;;  %v14223_v38 = vpop.eup %7626 }
 0x6f3   : > { %v4308_v42 = vmul.f32 1.442695, %v19108_v44  ;;  %v4298_v59 = vmul.f32 1.442695, %v19114_v46  ;;  %7642 = vpow2.f32 %v4290_v20  ;;  %v19118_v44 = vsub.f32 %v19117_v49, %v18834_v11  ;;  %5644 = vmatpush1.bf16.msra.mxu0 %v5426_v53  ;;  %5856 = vmatpush1.bf16.msra.mxu1 %v5428_v17  ;;  %v19122_v46 = vld [vmem:[#allocation264_spill] sm:$0xff]  ;;  %v7629_v34 = vpop.eup %7628  ;;  %v19126_v49 = vld [vmem:[#allocation249_spill] sm:$0xff] }
 0x6f4   : > { %v4808_v37 = vadd.f32 %v19041_v61, %v4807_v31  ;;  %7644 = vpow2.f32 %v4300_v15  ;;  %v19121_v16 = vsub.f32 %v19120_v60, %v19074_v30  ;;  %v19123_v20 = vsub.f32 %v19122_v46, %v19074_v30  ;;  %5645 = vmatprep.subr.bf16.mxu0 %v5431_v2  ;;  %v19125_v53 = vld [vmem:[#allocation96_spill] sm:$0xff]  ;;  %v19127_v61 = vld [vmem:[#allocation253_spill] sm:$0xff]  ;;  %v19128_v60 = vld [vmem:[#allocation258_spill] sm:$0xff] }
 0x6f5   : > { %v4306_v58 = vmul.f32 1.442695, %v19118_v44  ;;  %v19124_v24 = vpack.c.bf16 %v19119_v10, %v19110_v4  ;;  %7646 = vpow2.f32 %v4308_v42  ;;  %v5220_v17 = vadd.f32 %v19125_v53, %v5219_v14  ;;  %v14240_v44 = vpop.eup %7630  ;;  %v19130_v4 = vld [vmem:[#allocation215_spill] sm:$0xff]  ;;  %v19132_v14 = vld [vmem:[#allocation262_spill] sm:$0xff] }
 0x6f6   : > { %v4316_v57 = vmul.f32 1.442695, %v19121_v16  ;;  %v4324_v63 = vmul.f32 1.442695, %v19123_v20  ;;  %v5430_v31 = vpack.c.bf16 %v19127_v61, %v19126_v49  ;;  %v5432_v15 = vpack.c.bf16 %v14204_v18, %v14192_v51  ;;  %v19131_v46 = vld [vmem:[#allocation223_spill] sm:$0xff] }
 0x6f7   : > { %5857 = vmatprep.subr.bf16.mxu1 %v19124_v24  ;;  %7648 = vpow2.f32 %v4298_v59  ;;  %v19129_v2 = vsub.f32 %v19128_v60, %v18834_v11  ;;  %v5074_v10 = vadd.f32 %v13933_v13, %v5073_v23  ;;  %v5435_v42 = vpack.c.bf16 %v19131_v46, %v19130_v4  ;;  %v5292_v60 = vld [vmem:[#allocation3 + $0x10] sm:$0xff]  ;;  %v19137_v23 = vld [vmem:[#allocation268_spill] sm:$0xff] }
 0x6f8   : > { %7650 = vpow2.f32 %v4306_v58  ;;  %v19133_v20 = vsub.f32 %v19132_v14, %v18834_v11  ;;  %v5221_v59 = vadd.f32 %v19136_v36, %v5220_v17  ;;  %5646 = vmatpush1.bf16.msra.mxu0 %v5430_v31  ;;  %5858 = vmatpush1.bf16.msra.mxu1 %v5432_v15  ;;  %v4809_v13 = vadd.f32 %v19055_v40, %v4808_v37  ;;  %v19139_v46 = vld [vmem:[#allocation272_spill] sm:$0xff]  ;;  %v19142_v40 = vld [vmem:[#allocation257_spill] sm:$0xff] }
 0x6f9   : > { %v4314_v16 = vmul.f32 1.442695, %v19129_v2  ;;  %v14255_v2 = vpop.eup %7632  ;;  %7652 = vpow2.f32 %v4316_v57  ;;  %v19138_v58 = vsub.f32 %v19137_v23, %v19074_v30  ;;  %v19140_v14 = vsub.f32 %v19139_v46, %v19074_v30  ;;  %5668 = vmatprep.subr.bf16.mxu0 %v5435_v42  ;;  %v19143_v37 = vld [vmem:[#allocation261_spill] sm:$0xff] }
 0x6fa   : > { %v4322_v24 = vmul.f32 1.442695, %v19133_v20  ;;  %v19141_v56 = vpack.c.bf16 %v19136_v36, %v19125_v53  ;;  %v14267_v22 = vpop.eup %7634  ;;  %7654 = vpow2.f32 %v4324_v63  ;;  %v14269_v17 = vadd.f32 %v7629_v34, %v5221_v59  ;;  %v19145_v36 = vld [vmem:[#allocation231_spill] sm:$0xff] }
 0x6fb   : > { %v4332_v4 = vmul.f32 1.442695, %v19138_v58  ;;  %v4340_v20 = vmul.f32 1.442695, %v19140_v14  ;;  %v5434_v57 = vpack.c.bf16 %v19143_v37, %v19142_v40  ;;  %v5436_v31 = vpack.c.bf16 %v14223_v38, %v14211_v9  ;;  %v14275_v15 = vpop.eup %7636  ;;  %5648 = vmatmul.mubr.bf16.vlgmr.msra.gmra.mrb[0].mxu0 %v5292_v60  ;;  %5860 = vmatmul.mubr.bf16.vlgmr.msra.gmra.mrb[0].mxu1 %v5292_v60  ;;  %v19146_v53 = vld [vmem:[#allocation235_spill] sm:$0xff]  ;;  %v19148_v58 = vld [vmem:[#allocation270_spill] sm:$0xff] }
 0x6fc   : > { %5880 = vmatprep.subr.bf16.mxu1 %v19141_v56  ;;  %19144 = vst [vmem:[#allocation22_spill] sm:$0xff] %v14275_v15  ;;  %7656 = vpow2.f32 %v4314_v16  ;;  %v5075_v42 = vadd.f32 %v13966_v43, %v5074_v10  ;;  %v5439_v23 = vpack.c.bf16 %v19146_v53, %v19145_v36  ;;  %v5441_v63 = vpack.c.bf16 %v14240_v44, %v7629_v34  ;;  %v14281_v59 = vpop.eup %7638  ;;  %v19150_v16 = vld [vmem:[#allocation274_spill] sm:$0xff]  ;;  %v19152_v36 = vld [vmem:[#allocation276_spill] sm:$0xff] }
 0x6fd   : > { %19147 = vst [vmem:[#allocation130_spill] sm:$0xff] %v14281_v59  ;;  %7658 = vpow2.f32 %v4322_v24  ;;  %v19149_v46 = vsub.f32 %v19148_v58, %v18834_v11  ;;  %5669 = vmatpush1.bf16.msra.mxu0 %v5434_v57  ;;  %5881 = vmatpush1.bf16.msra.mxu1 %v5436_v31  ;;  %v14286_v56 = vpop.eup %7640  ;;  %v4810_v43 = vadd.f32 %v19056_v45, %v4809_v13  ;;  %v19155_v57 = vld [vmem:[#allocation280_spill] sm:$0xff]  ;;  %v19158_v45 = vld [vmem:[#allocation269_spill] sm:$0xff] }
 0x6fe   : > { %v19151_v10 = vsub.f32 %v19150_v16, %v18834_v11  ;;  %7660 = vpow2.f32 %v4332_v4  ;;  %v19153_v34 = vsub.f32 %v19152_v36, %v19074_v30  ;;  %5670 = vmatprep.subr.bf16.mxu0 %v5439_v23  ;;  %5882 = vmatprep.subr.bf16.mxu1 %v5441_v63  ;;  %v14295_v24 = vpop.eup %7642  ;;  %v19156_v31 = vsub.f32 %v19155_v57, %v19074_v30  ;;  %v19160_v23 = vld [vmem:[#allocation239_spill] sm:$0xff]  ;;  %v19163_v57 = vld [vmem:[#allocation278_spill] sm:$0xff] }
 0x6ff   : > { %v4338_v14 = vmul.f32 1.442695, %v19149_v46  ;;  %19154 = vst [vmem:[#allocation136_spill] sm:$0xff] %v14295_v24  ;;  %7662 = vpow2.f32 %v4340_v20  ;;  %v19157_v46 = vld [vmem:[#allocation265_spill] sm:$0xff]  ;;  %v5440_v16 = vpack.c.bf16 %v14267_v22, %v14255_v2  ;;  %v14304_v4 = vpop.eup %7644  ;;  %v19161_v63 = vld [vmem:[#allocation243_spill] sm:$0xff]  ;;  %v5445_v20 = vpack.c.bf16 %v14281_v59, %v14275_v15  ;;  %v19177_v59 = vld [vmem:[#allocation286_spill] sm:$0xff] }
 0x700   : > { %v4346_v60 = vmul.f32 1.442695, %v19151_v10  ;;  %v4348_v53 = vmul.f32 1.442695, %v19153_v34  ;;  %v4356_v58 = vmul.f32 1.442695, %v19156_v31  ;;  %v5438_v13 = vpack.c.bf16 %v19158_v45, %v19157_v46  ;;  %v14311_v34 = vpop.eup %7646 }
 0x701   : > { %19159 = vst [vmem:[#allocation129_spill] sm:$0xff] %v14304_v4  ;;  %7664 = vpow2.f32 %v4330_v19  ;;  %v5076_v10 = vadd.f32 %v13983_v25, %v5075_v42  ;;  %v5443_v36 = vpack.c.bf16 %v19161_v63, %v19160_v23  ;;  %19162 = vst [vmem:[#allocation61_spill] sm:$0xff] %v14311_v34  ;;  %v19164_v31 = vsub.f32 %v19163_v57, %v18834_v11  ;;  %v14316_v6 = vpop.eup %7648  ;;  %v19165_v25 = vld [vmem:[#allocation282_spill] sm:$0xff]  ;;  %v19167_v63 = vld [vmem:[#allocation284_spill] sm:$0xff] }
 0x702   : > { %7666 = vpow2.f32 %v4338_v14  ;;  %5671 = vmatpush1.bf16.msra.mxu0 %v5438_v13  ;;  %5883 = vmatpush1.bf16.msra.mxu1 %v5440_v16  ;;  %v4811_v19 = vadd.f32 %v19067_v0, %v4810_v43  ;;  %v19166_v42 = vsub.f32 %v19165_v25, %v18834_v11  ;;  %v19168_v55 = vsub.f32 %v19167_v63, %v19074_v30  ;;  %v14325_v14 = vpop.eup %7650  ;;  %v19169_v13 = vld [vmem:[#allocation288_spill] sm:$0xff]  ;;  %v19172_v0 = vld [vmem:[#allocation277_spill] sm:$0xff] }
 0x703   : > { %v4354_v33 = vmul.f32 1.442695, %v19164_v31  ;;  %7668 = vpow2.f32 %v4348_v53  ;;  %5672 = vmatprep.subr.bf16.mxu0 %v5443_v36  ;;  %5884 = vmatprep.subr.bf16.mxu1 %v5445_v20  ;;  %v19170_v16 = vsub.f32 %v19169_v13, %v19074_v30  ;;  %v19171_v31 = vld [vmem:[#allocation273_spill] sm:$0xff]  ;;  %v5444_v25 = vpack.c.bf16 %v14295_v24, %v14286_v56  ;;  %v5301_v53 = vld [vmem:[#allocation3 + $0x58] sm:$0xff]  ;;  %v19174_v36 = vld [vmem:[#allocation247_spill] sm:$0xff] }
 0x704   : > { %v4362_v23 = vmul.f32 1.442695, %v19166_v42  ;;  %v4364_v52 = vmul.f32 1.442695, %v19168_v55  ;;  %7670 = vpow2.f32 %v4356_v58  ;;  %v5442_v43 = vpack.c.bf16 %v19172_v0, %v19171_v31  ;;  %v14334_v42 = vpop.eup %7652  ;;  %v19175_v20 = vld [vmem:[#allocation255_spill] sm:$0xff]  ;;  %5657 = vmatprep.mubr.bf16.mxu0 %v5301_v53  ;;  %5869 = vmatprep.mubr.bf16.mxu1 %v5301_v53  ;;  %v19181_v53 = vld [vmem:[#allocation292_spill] sm:$0xff] }
 0x705   : > { %v4372_v57 = vmul.f32 1.442695, %v19170_v16  ;;  %19173 = vst [vmem:[#allocation132_spill] sm:$0xff] %v14334_v42  ;;  %7672 = vpow2.f32 %v4346_v60  ;;  %v5077_v55 = vadd.f32 %v14004_v47, %v5076_v10  ;;  %v5447_v63 = vpack.c.bf16 %v19175_v20, %v19174_v36  ;;  %v5300_v13 = vld [vmem:[#allocation3 + $0x50] sm:$0xff]  ;;  %v14341_v16 = vpop.eup %7654  ;;  %v5295_v60 = vld [vmem:[#allocation3 + $0x28] sm:$0xff]  ;;  %v19186_v15 = vld [vmem:[#allocation281_spill] sm:$0xff] }
 0x706   : > { %v5449_v58 = vpack.c.bf16 %v14311_v34, %v14304_v4  ;;  %19176 = vst [vmem:[#allocation487_spill] sm:$0xff] %v14341_v16  ;;  %7674 = vpow2.f32 %v4354_v33  ;;  %v19178_v24 = vsub.f32 %v19177_v59, %v18834_v11  ;;  %5673 = vmatpush1.bf16.msra.mxu0 %v5442_v43  ;;  %5885 = vmatpush1.bf16.msra.mxu1 %v5444_v25  ;;  %v14346_v47 = vpop.eup %7656  ;;  %v19179_v36 = vld [vmem:[#allocation290_spill] sm:$0xff] }
 0x707   : > { %v4812_v10 = vadd.f32 %v19068_v7, %v4811_v19  ;;  %v19180_v20 = vsub.f32 %v19179_v36, %v18834_v11  ;;  %7676 = vpow2.f32 %v4364_v52  ;;  %v19182_v4 = vsub.f32 %v19181_v53, %v19074_v30  ;;  %5674 = vmatprep.subr.bf16.mxu0 %v5447_v63  ;;  %v14355_v59 = vpop.eup %7658  ;;  %v19187_v7 = vld [vmem:[#allocation285_spill] sm:$0xff]  ;;  %5658 = vmatmul.mubr.bf16.gmra.mrb[4].mxu0 %v5300_v13  ;;  %v19189_v63 = vld [vmem:[#allocation263_spill] sm:$0xff] }
 0x708   : > { %v4370_v35 = vmul.f32 1.442695, %v19178_v24  ;;  %5886 = vmatprep.subr.bf16.mxu1 %v5449_v58  ;;  %19183 = vst [vmem:[#allocation488_spill] sm:$0xff] %v14355_v59  ;;  %7678 = vpow2.f32 %v4372_v57  ;;  %v19184_v24 = vld [vmem:[#allocation296_spill] sm:$0xff]  ;;  %v5446_v19 = vpack.c.bf16 %v19187_v7, %v19186_v15  ;;  %v5448_v36 = vpack.c.bf16 %v14325_v14, %v14316_v6  ;;  %5870 = vmatmul.mubr.bf16.gmra.mrb[4].mxu1 %v5300_v13  ;;  %v14364_v52 = vpop.eup %7660  ;;  %v19190_v58 = vld [vmem:[#allocation267_spill] sm:$0xff] }
 0x709   : > { %v4378_v34 = vmul.f32 1.442695, %v19180_v20  ;;  %v4380_v33 = vmul.f32 1.442695, %v19182_v4  ;;  %v19185_v43 = vsub.f32 %v19184_v24, %v19074_v30  ;;  %19188 = vst [vmem:[#allocation25_spill] sm:$0xff] %v14364_v52  ;;  %7680 = vpow2.f32 %v4362_v23  ;;  %5700 = vmatprep.mubr.bf16.mxu0 %v5295_v60  ;;  %5912 = vmatprep.mubr.bf16.mxu1 %v5295_v60  ;;  %v14371_v53 = vpop.eup %7662  ;;  %v19192_v24 = vld [vmem:[#allocation294_spill] sm:$0xff] }
 0x70a   : > { %v5078_v4 = vadd.f32 %v14039_v27, %v5077_v55  ;;  %v5451_v57 = vpack.c.bf16 %v19190_v58, %v19189_v63  ;;  %v5453_v20 = vpack.c.bf16 %v14341_v16, %v14334_v42  ;;  %19191 = vst [vmem:[#allocation135_spill] sm:$0xff] %v14371_v53  ;;  %7682 = vpow2.f32 %v4370_v35  ;;  %5675 = vmatpush1.bf16.msra.mxu0 %v5446_v19  ;;  %v19194_v55 = vld [vmem:[#allocation298_spill] sm:$0xff]  ;;  %v19196_v16 = vld [vmem:[#allocation300_spill] sm:$0xff] }
 0x70b   : > { %v4388_v25 = vmul.f32 1.442695, %v19185_v43  ;;  %v19193_v43 = vsub.f32 %v19192_v24, %v18834_v11  ;;  %5887 = vmatpush1.bf16.msra.mxu1 %v5448_v36  ;;  %v14376_v23 = vpop.eup %7664  ;;  %v4813_v27 = vadd.f32 %v19083_v26, %v4812_v10  ;;  %v19195_v63 = vsub.f32 %v19194_v55, %v18834_v11  ;;  %v19199_v19 = vld [vmem:[#allocation304_spill] sm:$0xff]  ;;  %v19202_v26 = vld [vmem:[#allocation293_spill] sm:$0xff] }
 0x70c   : > { %7684 = vpow2.f32 %v4380_v33  ;;  %v19197_v60 = vsub.f32 %v19196_v16, %v19074_v30  ;;  %5676 = vmatprep.subr.bf16.mxu0 %v5451_v57  ;;  %5888 = vmatprep.subr.bf16.mxu1 %v5453_v20  ;;  %v14385_v35 = vpop.eup %7666  ;;  %v19200_v36 = vsub.f32 %v19199_v19, %v19074_v30  ;;  %v5452_v55 = vpack.c.bf16 %v14355_v59, %v14346_v47  ;;  %v19204_v57 = vld [vmem:[#allocation271_spill] sm:$0xff]  ;;  %v19207_v19 = vld [vmem:[#allocation302_spill] sm:$0xff] }
 0x70d   : > { %v4386_v13 = vmul.f32 1.442695, %v19193_v43  ;;  %v4394_v58 = vmul.f32 1.442695, %v19195_v63  ;;  %19198 = vst [vmem:[#allocation38_spill] sm:$0xff] %v14385_v35  ;;  %7686 = vpow2.f32 %v4388_v25  ;;  %v19201_v43 = vld [vmem:[#allocation289_spill] sm:$0xff]  ;;  %v14394_v33 = vpop.eup %7668  ;;  %v5079_v16 = vadd.f32 %v14073_v8, %v5078_v4 }
 0x70e   : > { %v4396_v42 = vmul.f32 1.442695, %v19197_v60  ;;  %v4404_v24 = vmul.f32 1.442695, %v19200_v36  ;;  %v5450_v10 = vpack.c.bf16 %v19202_v26, %v19201_v43  ;;  %19203 = vst [vmem:[#allocation478_spill] sm:$0xff] %v14394_v33  ;;  %7688 = vpow2.f32 %v4378_v34  ;;  %v19205_v20 = vld [vmem:[#allocation275_spill] sm:$0xff]  ;;  %v14401_v60 = vpop.eup %7670 }
 0x70f   : > { %v5455_v63 = vpack.c.bf16 %v19205_v20, %v19204_v57  ;;  %v5457_v25 = vpack.c.bf16 %v14371_v53, %v14364_v52  ;;  %19206 = vst [vmem:[#allocation64_spill] sm:$0xff] %v14401_v60  ;;  %7690 = vpow2.f32 %v4386_v13  ;;  %v19208_v36 = vsub.f32 %v19207_v19, %v18834_v11  ;;  %5889 = vmatpush1.bf16.msra.mxu1 %v5452_v55  ;;  %v14406_v59 = vpop.eup %7672  ;;  %v19209_v8 = vld [vmem:[#allocation306_spill] sm:$0xff]  ;;  %v19211_v20 = vld [vmem:[#allocation308_spill] sm:$0xff] }
 0x710   : > { %5677 = vmatpush1.bf16.msra.mxu0 %v5450_v10  ;;  %v4814_v34 = vadd.f32 %v19084_v12, %v4813_v27  ;;  %v19210_v4 = vsub.f32 %v19209_v8, %v18834_v11  ;;  %7692 = vpow2.f32 %v4396_v42  ;;  %v19212_v53 = vsub.f32 %v19211_v20, %v19074_v30  ;;  %v14415_v13 = vpop.eup %7674  ;;  %v19214_v10 = vld [vmem:[#allocation312_spill] sm:$0xff]  ;;  %v19217_v12 = vld [vmem:[#allocation301_spill] sm:$0xff] }
 0x711   : > { %v4402_v26 = vmul.f32 1.442695, %v19208_v36  ;;  %5678 = vmatprep.subr.bf16.mxu0 %v5455_v63  ;;  %5890 = vmatprep.subr.bf16.mxu1 %v5457_v25  ;;  %19213 = vst [vmem:[#allocation141_spill] sm:$0xff] %v14415_v13  ;;  %7694 = vpow2.f32 %v4404_v24  ;;  %v19215_v55 = vsub.f32 %v19214_v10, %v19074_v30  ;;  %v19216_v36 = vld [vmem:[#allocation297_spill] sm:$0xff]  ;;  %v5456_v8 = vpack.c.bf16 %v14385_v35, %v14376_v23  ;;  %v14424_v42 = vpop.eup %7676  ;;  %v19219_v63 = vld [vmem:[#allocation279_spill] sm:$0xff]  ;;  %v19222_v10 = vld [vmem:[#allocation310_spill] sm:$0xff] }
 0x712   : > { %v4410_v57 = vmul.f32 1.442695, %v19210_v4  ;;  %v4412_v52 = vmul.f32 1.442695, %v19212_v53  ;;  %v5454_v27 = vpack.c.bf16 %v19217_v12, %v19216_v36  ;;  %19218 = vst [vmem:[#allocation489_spill] sm:$0xff] %v14424_v42  ;;  %7696 = vpow2.f32 %v4394_v58  ;;  %v19220_v25 = vld [vmem:[#allocation287_spill] sm:$0xff]  ;;  %v14431_v20 = vpop.eup %7678 }
 0x713   : > { %v4420_v19 = vmul.f32 1.442695, %v19215_v55  ;;  %v5080_v53 = vadd.f32 %v14107_v21, %v5079_v16  ;;  %v5459_v4 = vpack.c.bf16 %v19220_v25, %v19219_v63  ;;  %v5461_v24 = vpack.c.bf16 %v14401_v60, %v14394_v33  ;;  %19221 = vst [vmem:[#allocation490_spill] sm:$0xff] %v14431_v20  ;;  %5891 = vmatpush1.bf16.msra.mxu1 %v5456_v8  ;;  %v14436_v35 = vpop.eup %7680  ;;  %v19224_v21 = vld [vmem:[#allocation316_spill] sm:$0xff]  ;;  %v19230_v8 = vld [vmem:[#allocation309_spill] sm:$0xff] }
 0x714   : > { %7698 = vpow2.f32 %v4402_v26  ;;  %v19223_v55 = vsub.f32 %v19222_v10, %v18834_v11  ;;  %5679 = vmatpush1.bf16.msra.mxu0 %v5454_v27  ;;  %v4815_v58 = vadd.f32 %v19096_v1, %v4814_v34  ;;  %v19225_v16 = vsub.f32 %v19224_v21, %v19074_v30  ;;  %v14442_v25 = vpop.eup %7682  ;;  %v19227_v26 = vld [vmem:[#allocation320_spill] sm:$0xff]  ;;  %v19229_v27 = vld [vmem:[#allocation305_spill] sm:$0xff]  ;;  %v19232_v34 = vld [vmem:[#allocation314_spill] sm:$0xff] }
 0x715   : > { %7700 = vpow2.f32 %v4412_v52  ;;  %5680 = vmatprep.subr.bf16.mxu0 %v5459_v4  ;;  %5892 = vmatprep.subr.bf16.mxu1 %v5461_v24  ;;  %19226 = vst [vmem:[#allocation144_spill] sm:$0xff] %v14442_v25  ;;  %v19228_v10 = vsub.f32 %v19227_v26, %v19074_v30  ;;  %v5458_v60 = vpack.c.bf16 %v19230_v8, %v19229_v27  ;;  %v19235_v26 = vld [vmem:[#allocation318_spill] sm:$0xff]  ;;  %v19246_v8 = vld [vmem:[#allocation317_spill] sm:$0xff] }
 0x716   : > { %v4418_v12 = vmul.f32 1.442695, %v19223_v55  ;;  %v4428_v63 = vmul.f32 1.442695, %v19225_v16  ;;  %7702 = vpow2.f32 %v4420_v19  ;;  %v5460_v1 = vpack.c.bf16 %v14415_v13, %v14406_v59  ;;  %v14451_v52 = vpop.eup %7684 }
 0x717   : > { %v4436_v55 = vmul.f32 1.442695, %v19228_v10  ;;  %19231 = vst [vmem:[#allocation41_spill] sm:$0xff] %v14451_v52  ;;  %7704 = vpow2.f32 %v4410_v57  ;;  %v19233_v4 = vsub.f32 %v19232_v34, %v18834_v11  ;;  %v5081_v21 = vadd.f32 %v14138_v5, %v5080_v53  ;;  %v14459_v16 = vpop.eup %7686  ;;  %v19237_v34 = vld [vmem:[#allocation324_spill] sm:$0xff] }
 0x718   : > { %v5465_v19 = vpack.c.bf16 %v14431_v20, %v14424_v42  ;;  %19234 = vst [vmem:[#allocation44_spill] sm:$0xff] %v14459_v16  ;;  %7706 = vpow2.f32 %v4418_v12  ;;  %v19236_v10 = vsub.f32 %v19235_v26, %v18834_v11  ;;  %5681 = vmatpush1.bf16.msra.mxu0 %v5458_v60  ;;  %5893 = vmatpush1.bf16.msra.mxu1 %v5460_v1  ;;  %v14464_v13 = vpop.eup %7688  ;;  %v19240_v20 = vld [vmem:[#allocation291_spill] sm:$0xff]  ;;  %v19243_v26 = vld [vmem:[#allocation328_spill] sm:$0xff] }
 0x719   : > { %v4426_v24 = vmul.f32 1.442695, %v19233_v4  ;;  %v4816_v57 = vadd.f32 %v19097_v32, %v4815_v58  ;;  %7708 = vpow2.f32 %v4428_v63  ;;  %v19238_v5 = vsub.f32 %v19237_v34, %v19074_v30  ;;  %v19239_v4 = vld [vmem:[#allocation295_spill] sm:$0xff]  ;;  %v14473_v12 = vpop.eup %7690  ;;  %v19248_v34 = vld [vmem:[#allocation322_spill] sm:$0xff] }
 0x71a   : > { %v4434_v33 = vmul.f32 1.442695, %v19236_v10  ;;  %v19241_v42 = vpack.c.bf16 %v19239_v4, %v19240_v20  ;;  %5894 = vmatprep.subr.bf16.mxu1 %v5465_v19  ;;  %19242 = vst [vmem:[#allocation148_spill] sm:$0xff] %v14473_v12  ;;  %7710 = vpow2.f32 %v4436_v55  ;;  %v19244_v60 = vsub.f32 %v19243_v26, %v19074_v30  ;;  %v19245_v10 = vld [vmem:[#allocation313_spill] sm:$0xff]  ;;  %v14482_v63 = vpop.eup %7692  ;;  %v19251_v4 = vld [vmem:[#allocation326_spill] sm:$0xff] }
 0x71b   : > { %v4444_v53 = vmul.f32 1.442695, %v19238_v5  ;;  %v5462_v32 = vpack.c.bf16 %v19246_v8, %v19245_v10  ;;  %v5464_v58 = vpack.c.bf16 %v14442_v25, %v14436_v35  ;;  %19247 = vst [vmem:[#allocation67_spill] sm:$0xff] %v14482_v63  ;;  %7712 = vpow2.f32 %v4426_v24  ;;  %v14490_v5 = vpop.eup %7694  ;;  %v19262_v8 = vld [vmem:[#allocation191_spill] sm:$0xff] }
 0x71c   : > { %5682 = vmatprep.subr.bf16.mxu0 %v19241_v42  ;;  %v4452_v1 = vmul.f32 1.442695, %v19244_v60  ;;  %v19249_v42 = vsub.f32 %v19248_v34, %v18834_v11  ;;  %v5082_v19 = vadd.f32 %v14148_v48, %v5081_v21  ;;  %v5469_v55 = vpack.c.bf16 %v14459_v16, %v14451_v52  ;;  %19250 = vst [vmem:[#allocation491_spill] sm:$0xff] %v14490_v5  ;;  %v14495_v25 = vpop.eup %7696  ;;  %v19253_v34 = vld [vmem:[#allocation332_spill] sm:$0xff]  ;;  %v19256_v16 = vld [vmem:[#allocation303_spill] sm:$0xff] }
 0x71d   : > { %7714 = vpow2.f32 %v4434_v33  ;;  %v19252_v26 = vsub.f32 %v19251_v4, %v18834_v11  ;;  %5683 = vmatpush1.bf16.msra.mxu0 %v5462_v32  ;;  %5895 = vmatpush1.bf16.msra.mxu1 %v5464_v58  ;;  %v4817_v24 = vadd.f32 %v19111_v54, %v4816_v57  ;;  %v19254_v48 = vsub.f32 %v19253_v34, %v19074_v30  ;;  %v19259_v4 = vld [vmem:[#allocation336_spill] sm:$0xff]  ;;  %v19264_v34 = vld [vmem:[#allocation330_spill] sm:$0xff] }
 0x71e   : > { %v4442_v20 = vmul.f32 1.442695, %v19249_v42  ;;  %7716 = vpow2.f32 %v4444_v53  ;;  %v19255_v42 = vld [vmem:[#allocation307_spill] sm:$0xff]  ;;  %5896 = vmatprep.subr.bf16.mxu1 %v5469_v55  ;;  %v14504_v33 = vpop.eup %7698  ;;  %v19260_v32 = vsub.f32 %v19259_v4, %v19074_v30  ;;  %v5468_v57 = vpack.c.bf16 %v14473_v12, %v14464_v13 }
 0x71f   : > { %v4450_v60 = vmul.f32 1.442695, %v19252_v26  ;;  %v4460_v21 = vmul.f32 1.442695, %v19254_v48  ;;  %v19257_v52 = vpack.c.bf16 %v19255_v42, %v19256_v16  ;;  %19258 = vst [vmem:[#allocation492_spill] sm:$0xff] %v14504_v33  ;;  %7718 = vpow2.f32 %v4452_v1  ;;  %v19261_v26 = vld [vmem:[#allocation187_spill] sm:$0xff]  ;;  %v14513_v53 = vpop.eup %7700 }
 0x720   : > { %v4468_v58 = vmul.f32 1.442695, %v19260_v32  ;;  %v5466_v54 = vpack.c.bf16 %v19262_v8, %v19261_v26  ;;  %19263 = vst [vmem:[#allocation156_spill] sm:$0xff] %v14513_v53  ;;  %7720 = vpow2.f32 %v4442_v20  ;;  %v5083_v55 = vadd.f32 %v14171_v29, %v5082_v19  ;;  %v14521_v48 = vpop.eup %7702  ;;  %v19267_v42 = vld [vmem:[#allocation334_spill] sm:$0xff]  ;;  %v19278_v8 = vld [vmem:[#allocation325_spill] sm:$0xff] }
 0x721   : > { %5684 = vmatprep.subr.bf16.mxu0 %v19257_v52  ;;  %v19265_v52 = vsub.f32 %v19264_v34, %v18834_v11  ;;  %v5473_v1 = vpack.c.bf16 %v14490_v5, %v14482_v63  ;;  %19266 = vst [vmem:[#allocation47_spill] sm:$0xff] %v14521_v48  ;;  %7722 = vpow2.f32 %v4450_v60  ;;  %v19268_v4 = vsub.f32 %v19267_v42, %v18834_v11  ;;  %v14526_v12 = vpop.eup %7704  ;;  %v19269_v34 = vld [vmem:[#allocation340_spill] sm:$0xff]  ;;  %v19272_v5 = vld [vmem:[#allocation311_spill] sm:$0xff] }
 0x722   : > { %5685 = vmatpush1.bf16.msra.mxu0 %v5466_v54  ;;  %5897 = vmatpush1.bf16.msra.mxu1 %v5468_v57  ;;  %v4818_v20 = vadd.f32 %v19112_v39, %v4817_v24  ;;  %7724 = vpow2.f32 %v4460_v21  ;;  %v19270_v29 = vsub.f32 %v19269_v34, %v19074_v30  ;;  %v14535_v60 = vpop.eup %7706  ;;  %v19275_v42 = vld [vmem:[#allocation344_spill] sm:$0xff]  ;;  %v5472_v24 = vpack.c.bf16 %v14504_v33, %v14495_v25  ;;  %v19280_v34 = vld [vmem:[#allocation338_spill] sm:$0xff] }
 0x723   : > { %v4458_v16 = vmul.f32 1.442695, %v19265_v52  ;;  %v4466_v32 = vmul.f32 1.442695, %v19268_v4  ;;  %v19271_v52 = vld [vmem:[#allocation315_spill] sm:$0xff]  ;;  %5898 = vmatprep.subr.bf16.mxu1 %v5473_v1  ;;  %19274 = vst [vmem:[#allocation50_spill] sm:$0xff] %v14535_v60  ;;  %7726 = vpow2.f32 %v4468_v58  ;;  %v19276_v54 = vsub.f32 %v19275_v42, %v19074_v30  ;;  %v14544_v21 = vpop.eup %7708 }
 0x724   : > { %v4476_v19 = vmul.f32 1.442695, %v19270_v29  ;;  %v19273_v63 = vpack.c.bf16 %v19271_v52, %v19272_v5  ;;  %v19277_v4 = vld [vmem:[#allocation321_spill] sm:$0xff]  ;;  %19279 = vst [vmem:[#allocation160_spill] sm:$0xff] %v14544_v21  ;;  %v5084_v1 = vadd.f32 %v14180_v3, %v5083_v55  ;;  %v5477_v58 = vpack.c.bf16 %v14521_v48, %v14513_v53  ;;  %v14552_v29 = vpop.eup %7710  ;;  %v19283_v52 = vld [vmem:[#allocation342_spill] sm:$0xff]  ;;  %v19288_v48 = vld [vmem:[#allocation319_spill] sm:$0xff] }
 0x725   : > { %v4484_v57 = vmul.f32 1.442695, %v19276_v54  ;;  %v5470_v39 = vpack.c.bf16 %v19278_v8, %v19277_v4  ;;  %7728 = vpow2.f32 %v4458_v16  ;;  %19282 = vst [vmem:[#allocation70_spill] sm:$0xff] %v14552_v29  ;;  %v19284_v42 = vsub.f32 %v19283_v52, %v18834_v11  ;;  %v14557_v33 = vpop.eup %7712  ;;  %v19291_v52 = vld [vmem:[#allocation352_spill] sm:$0xff]  ;;  %v19294_v8 = vld [vmem:[#allocation219_spill] sm:$0xff] }
 0x726   : > { %5686 = vmatprep.subr.bf16.mxu0 %v19273_v63  ;;  %v19281_v63 = vsub.f32 %v19280_v34, %v18834_v11  ;;  %7730 = vpow2.f32 %v4466_v32  ;;  %5899 = vmatpush1.bf16.msra.mxu1 %v5472_v24  ;;  %v4819_v16 = vadd.f32 %v19126_v49, %v4818_v20  ;;  %v19285_v34 = vld [vmem:[#allocation348_spill] sm:$0xff]  ;;  %v5476_v20 = vpack.c.bf16 %v14535_v60, %v14526_v12 }
 0x727   : > { %v4482_v54 = vmul.f32 1.442695, %v19284_v42  ;;  %5687 = vmatpush1.bf16.msra.mxu0 %v5470_v39  ;;  %7732 = vpow2.f32 %v4476_v19  ;;  %v19286_v3 = vsub.f32 %v19285_v34, %v19074_v30  ;;  %5900 = vmatprep.subr.bf16.mxu1 %v5477_v58  ;;  %v14566_v32 = vpop.eup %7714  ;;  %v19292_v39 = vsub.f32 %v19291_v52, %v19074_v30  ;;  %v19293_v42 = vld [vmem:[#allocation329_spill] sm:$0xff]  ;;  %v19296_v34 = vld [vmem:[#allocation346_spill] sm:$0xff] }
 0x728   : > { %v4474_v5 = vmul.f32 1.442695, %v19281_v63  ;;  %v19287_v63 = vld [vmem:[#allocation327_spill] sm:$0xff]  ;;  %19290 = vst [vmem:[#allocation164_spill] sm:$0xff] %v14566_v32  ;;  %7734 = vpow2.f32 %v4484_v57  ;;  %v5474_v49 = vpack.c.bf16 %v19294_v8, %v19293_v42  ;;  %v14575_v19 = vpop.eup %7716  ;;  %v5085_v58 = vadd.f32 %v14192_v51, %v5084_v1 }
 0x729   : > { %v4492_v55 = vmul.f32 1.442695, %v19286_v3  ;;  %v19289_v53 = vpack.c.bf16 %v19287_v63, %v19288_v48  ;;  %v4500_v24 = vmul.f32 1.442695, %v19292_v39  ;;  %19295 = vst [vmem:[#allocation493_spill] sm:$0xff] %v14575_v19  ;;  %v5481_v57 = vpack.c.bf16 %v14552_v29, %v14544_v21  ;;  %v14583_v3 = vpop.eup %7718  ;;  %v19299_v63 = vld [vmem:[#allocation350_spill] sm:$0xff] }
 0x72a   : > { %7736 = vpow2.f32 %v4474_v5  ;;  %19298 = vst [vmem:[#allocation494_spill] sm:$0xff] %v14583_v3  ;;  %v19300_v52 = vsub.f32 %v19299_v63, %v18834_v11  ;;  %5901 = vmatpush1.bf16.msra.mxu1 %v5476_v20  ;;  %v14588_v60 = vpop.eup %7720  ;;  %v4820_v5 = vadd.f32 %v19127_v61, %v4819_v16  ;;  %v19304_v29 = vld [vmem:[#allocation335_spill] sm:$0xff]  ;;  %v19307_v63 = vld [vmem:[#allocation360_spill] sm:$0xff]  ;;  %v5480_v16 = vpack.c.bf16 %v14566_v32, %v14557_v33 }
 0x72b   : > { %5688 = vmatprep.subr.bf16.mxu0 %v19289_v53  ;;  %v19297_v53 = vsub.f32 %v19296_v34, %v18834_v11  ;;  %7738 = vpow2.f32 %v4482_v54  ;;  %v19301_v34 = vld [vmem:[#allocation356_spill] sm:$0xff]  ;;  %5902 = vmatprep.subr.bf16.mxu1 %v5481_v57  ;;  %v14597_v54 = vpop.eup %7722  ;;  %v19310_v8 = vld [vmem:[#allocation227_spill] sm:$0xff]  ;;  %v5086_v57 = vadd.f32 %v14204_v18, %v5085_v58 }
 0x72c   : > { %v4498_v39 = vmul.f32 1.442695, %v19300_v52  ;;  %5689 = vmatpush1.bf16.msra.mxu0 %v5474_v49  ;;  %7740 = vpow2.f32 %v4492_v55  ;;  %v19302_v51 = vsub.f32 %v19301_v34, %v19074_v30  ;;  %19306 = vst [vmem:[#allocation53_spill] sm:$0xff] %v14597_v54  ;;  %v19308_v49 = vsub.f32 %v19307_v63, %v19074_v30  ;;  %v19309_v52 = vld [vmem:[#allocation333_spill] sm:$0xff]  ;;  %v14606_v55 = vpop.eup %7724  ;;  %v19312_v34 = vld [vmem:[#allocation354_spill] sm:$0xff] }
 0x72d   : > { %v4490_v48 = vmul.f32 1.442695, %v19297_v53  ;;  %v19303_v53 = vld [vmem:[#allocation339_spill] sm:$0xff]  ;;  %7742 = vpow2.f32 %v4500_v24  ;;  %v5478_v61 = vpack.c.bf16 %v19310_v8, %v19309_v52  ;;  %19311 = vst [vmem:[#allocation56_spill] sm:$0xff] %v14606_v55  ;;  %v5485_v24 = vpack.c.bf16 %v14583_v3, %v14575_v19  ;;  %v19325_v19 = vld [vmem:[#allocation341_spill] sm:$0xff] }
 0x72e   : > { %v4508_v1 = vmul.f32 1.442695, %v19302_v51  ;;  %v19305_v21 = vpack.c.bf16 %v19303_v53, %v19304_v29  ;;  %v4516_v20 = vmul.f32 1.442695, %v19308_v49  ;;  %v14614_v51 = vpop.eup %7726  ;;  %v19315_v53 = vld [vmem:[#allocation358_spill] sm:$0xff]  ;;  %5903 = vmatpush1.bf16.msra.mxu1 %v5480_v16 }
 0x72f   : > { %7744 = vpow2.f32 %v4490_v48  ;;  %19314 = vst [vmem:[#allocation172_spill] sm:$0xff] %v14614_v51  ;;  %v19316_v63 = vsub.f32 %v19315_v53, %v18834_v11  ;;  %v14619_v32 = vpop.eup %7728  ;;  %v4821_v48 = vadd.f32 %v19142_v40, %v4820_v5  ;;  %5904 = vmatprep.subr.bf16.mxu1 %v5485_v24  ;;  %v19322_v53 = vld [vmem:[#allocation368_spill] sm:$0xff]  ;;  %v5484_v5 = vpack.c.bf16 %v14597_v54, %v14588_v60 }
 0x730   : > { %5690 = vmatprep.subr.bf16.mxu0 %v19305_v21  ;;  %v19313_v21 = vsub.f32 %v19312_v34, %v18834_v11  ;;  %7746 = vpow2.f32 %v4498_v39  ;;  %v19317_v34 = vld [vmem:[#allocation364_spill] sm:$0xff]  ;;  %v14628_v39 = vpop.eup %7730  ;;  %v5087_v24 = vadd.f32 %v14211_v9, %v5086_v57 }
 0x731   : > { %v4514_v49 = vmul.f32 1.442695, %v19316_v63  ;;  %5691 = vmatpush1.bf16.msra.mxu0 %v5478_v61  ;;  %7748 = vpow2.f32 %v4508_v1  ;;  %v19318_v18 = vsub.f32 %v19317_v34, %v19074_v30  ;;  %19321 = vst [vmem:[#allocation73_spill] sm:$0xff] %v14628_v39  ;;  %v19323_v61 = vsub.f32 %v19322_v53, %v19074_v30  ;;  %v19324_v63 = vld [vmem:[#allocation337_spill] sm:$0xff]  ;;  %v14637_v1 = vpop.eup %7732  ;;  %v19326_v34 = vld [vmem:[#allocation362_spill] sm:$0xff] }
 0x732   : > { %v4506_v29 = vmul.f32 1.442695, %v19313_v21  ;;  %v19319_v21 = vld [vmem:[#allocation343_spill] sm:$0xff]  ;;  %7750 = vpow2.f32 %v4516_v20  ;;  %v5482_v40 = vpack.c.bf16 %v19325_v19, %v19324_v63  ;;  %v5489_v20 = vpack.c.bf16 %v14614_v51, %v14606_v55  ;;  %5905 = vmatpush1.bf16.msra.mxu1 %v5484_v5  ;;  %v19340_v19 = vld [vmem:[#allocation345_spill] sm:$0xff] }
 0x733   : > { %v4524_v58 = vmul.f32 1.442695, %v19318_v18  ;;  %v19320_v3 = vpack.c.bf16 %v18992_v41, %v19319_v21  ;;  %v4532_v16 = vmul.f32 1.442695, %v19323_v61  ;;  %v19327_v41 = vsub.f32 %v19326_v34, %v18834_v11  ;;  %v14645_v18 = vpop.eup %7734  ;;  %v19329_v21 = vld [vmem:[#allocation366_spill] sm:$0xff]  ;;  %v19331_v34 = vld [vmem:[#allocation372_spill] sm:$0xff] }
 0x734   : > { %7752 = vpow2.f32 %v4506_v29  ;;  %19328 = vst [vmem:[#allocation176_spill] sm:$0xff] %v14645_v18  ;;  %v19330_v53 = vsub.f32 %v19329_v21, %v18834_v11  ;;  %v14650_v54 = vpop.eup %7736  ;;  %v4822_v29 = vadd.f32 %v19143_v37, %v4821_v48  ;;  %v19332_v9 = vsub.f32 %v19331_v34, %v19074_v30  ;;  %v19334_v51 = vld [vmem:[#allocation351_spill] sm:$0xff]  ;;  %5906 = vmatprep.subr.bf16.mxu1 %v5489_v20  ;;  %v19337_v21 = vld [vmem:[#allocation376_spill] sm:$0xff]  ;;  %v19342_v34 = vld [vmem:[#allocation370_spill] sm:$0xff] }
 0x735   : > { %5692 = vmatprep.subr.bf16.mxu0 %v19320_v3  ;;  %v4522_v3 = vmul.f32 1.442695, %v19327_v41  ;;  %7754 = vpow2.f32 %v4514_v49  ;;  %v19333_v41 = vld [vmem:[#allocation359_spill] sm:$0xff]  ;;  %v14659_v49 = vpop.eup %7738  ;;  %v5488_v48 = vpack.c.bf16 %v14628_v39, %v14619_v32  ;;  %v5088_v20 = vadd.f32 %v14223_v38, %v5087_v24 }
 0x736   : > { %v4530_v61 = vmul.f32 1.442695, %v19330_v53  ;;  %5693 = vmatpush1.bf16.msra.mxu0 %v5482_v40  ;;  %7756 = vpow2.f32 %v4524_v58  ;;  %v4540_v57 = vmul.f32 1.442695, %v19332_v9  ;;  %v19335_v55 = vpack.c.bf16 %v19333_v41, %v19334_v51  ;;  %19336 = vst [vmem:[#allocation495_spill] sm:$0xff] %v14659_v49  ;;  %v19339_v53 = vld [vmem:[#allocation251_spill] sm:$0xff]  ;;  %v14668_v58 = vpop.eup %7740 }
 0x737   : > { %7758 = vpow2.f32 %v4532_v16  ;;  %v19338_v40 = vsub.f32 %v19337_v21, %v19074_v30  ;;  %v5486_v37 = vpack.c.bf16 %v19340_v19, %v19339_v53  ;;  %19341 = vst [vmem:[#allocation496_spill] sm:$0xff] %v14668_v58  ;;  %v5493_v16 = vpack.c.bf16 %v14645_v18, %v14637_v1  ;;  %v14676_v9 = vpop.eup %7742  ;;  %v19345_v41 = vld [vmem:[#allocation374_spill] sm:$0xff]  ;;  %5907 = vmatpush1.bf16.msra.mxu1 %v5488_v48  ;;  %v19354_v18 = vld [vmem:[#allocation349_spill] sm:$0xff] }
 0x738   : > { %5694 = vmatprep.subr.bf16.mxu0 %v19335_v55  ;;  %7760 = vpow2.f32 %v4522_v3  ;;  %v19343_v55 = vsub.f32 %v19342_v34, %v18834_v11  ;;  %19344 = vst [vmem:[#allocation31_spill] sm:$0xff] %v14676_v9  ;;  %v19346_v21 = vsub.f32 %v19345_v41, %v18834_v11  ;;  %v4823_v3 = vadd.f32 %v19157_v46, %v4822_v29  ;;  %v19347_v34 = vld [vmem:[#allocation380_spill] sm:$0xff] }
 0x739   : > { %v4548_v5 = vmul.f32 1.442695, %v19338_v40  ;;  %7762 = vpow2.f32 %v4530_v61  ;;  %v14681_v39 = vpop.eup %7744  ;;  %v19348_v38 = vsub.f32 %v19347_v34, %v19074_v30  ;;  %5908 = vmatprep.subr.bf16.mxu1 %v5493_v16  ;;  %v19351_v41 = vld [vmem:[#allocation384_spill] sm:$0xff]  ;;  %v5492_v29 = vpack.c.bf16 %v14659_v49, %v14650_v54  ;;  %v19356_v34 = vld [vmem:[#allocation378_spill] sm:$0xff] }
 0x73a   : > { %v4538_v51 = vmul.f32 1.442695, %v19343_v55  ;;  %v4546_v40 = vmul.f32 1.442695, %v19346_v21  ;;  %5695 = vmatpush1.bf16.msra.mxu0 %v5486_v37  ;;  %7764 = vpow2.f32 %v4540_v57  ;;  %v19349_v55 = vpack.c.bf16 %v19008_v50, %v19007_v28  ;;  %v14690_v61 = vpop.eup %7746  ;;  %v19353_v21 = vld [vmem:[#allocation259_spill] sm:$0xff] }
 0x73b   : > { %v4556_v24 = vmul.f32 1.442695, %v19348_v38  ;;  %19350 = vst [vmem:[#allocation34_spill] sm:$0xff] %v14690_v61  ;;  %7766 = vpow2.f32 %v4548_v5  ;;  %v19352_v37 = vsub.f32 %v19351_v41, %v19074_v30  ;;  %v5490_v46 = vpack.c.bf16 %v19354_v18, %v19353_v21  ;;  %v14699_v57 = vpop.eup %7748  ;;  %5909 = vmatpush1.bf16.msra.mxu1 %v5492_v29 }
 0x73c   : > { %5696 = vmatprep.subr.bf16.mxu0 %v19349_v55  ;;  %19355 = vst [vmem:[#allocation180_spill] sm:$0xff] %v14699_v57  ;;  %7768 = vpow2.f32 %v4538_v51  ;;  %v19357_v28 = vsub.f32 %v19356_v34, %v18834_v11  ;;  %v5089_v16 = vadd.f32 %v14255_v2, %v5088_v20  ;;  %v5497_v5 = vpack.c.bf16 %v14676_v9, %v14668_v58  ;;  %v14707_v38 = vpop.eup %7750  ;;  %v19359_v55 = vld [vmem:[#allocation382_spill] sm:$0xff]  ;;  %v19361_v34 = vld [vmem:[#allocation388_spill] sm:$0xff]  ;;  %v19369_v58 = vld [vmem:[#allocation283_spill] sm:$0xff] }
 0x73d   : > { %v4564_v48 = vmul.f32 1.442695, %v19352_v37  ;;  %19358 = vst [vmem:[#allocation59_spill] sm:$0xff] %v14707_v38  ;;  %7770 = vpow2.f32 %v4546_v40  ;;  %v19360_v41 = vsub.f32 %v19359_v55, %v18834_v11  ;;  %v4824_v51 = vadd.f32 %v19158_v45, %v4823_v3  ;;  %v19366_v55 = vld [vmem:[#allocation392_spill] sm:$0xff] }
 0x73e   : > { %v4554_v50 = vmul.f32 1.442695, %v19357_v28  ;;  %5697 = vmatpush1.bf16.msra.mxu0 %v5490_v46  ;;  %v14712_v49 = vpop.eup %7752  ;;  %7772 = vpow2.f32 %v4556_v24  ;;  %v19362_v2 = vsub.f32 %v19361_v34, %v19074_v30  ;;  %v19363_v28 = vld [vmem:[#allocation371_spill] sm:$0xff]  ;;  %5910 = vmatprep.subr.bf16.mxu1 %v5497_v5  ;;  %v19367_v46 = vsub.f32 %v19366_v55, %v19074_v30  ;;  %v19371_v34 = vld [vmem:[#allocation386_spill] sm:$0xff] }
 0x73f   : > { %v4562_v37 = vmul.f32 1.442695, %v19360_v41  ;;  %v19364_v9 = vpack.c.bf16 %v18825_v62, %v19363_v28  ;;  %v14721_v40 = vpop.eup %7754  ;;  %7774 = vpow2.f32 %v4564_v48  ;;  %v19368_v41 = vld [vmem:[#allocation353_spill] sm:$0xff]  ;;  %v5496_v3 = vpack.c.bf16 %v14690_v61, %v14681_v39  ;;  %v19374_v28 = vld [vmem:[#allocation390_spill] sm:$0xff] }
 0x740   : > { %v4572_v20 = vmul.f32 1.442695, %v19362_v2  ;;  %19365 = vst [vmem:[#allocation62_spill] sm:$0xff] %v14721_v40  ;;  %v4580_v29 = vmul.f32 1.442695, %v19367_v46  ;;  %v5494_v45 = vpack.c.bf16 %v19369_v58, %v19368_v41  ;;  %v14730_v24 = vpop.eup %7756  ;;  %7776 = vpow2.f32 %v4554_v50  ;;  %v5294_v61 = vld [vmem:[#allocation3 + $0x20] sm:$0xff] }
 0x741   : > { %5698 = vmatprep.subr.bf16.mxu0 %v19364_v9  ;;  %19370 = vst [vmem:[#allocation184_spill] sm:$0xff] %v14730_v24  ;;  %v19372_v62 = vsub.f32 %v19371_v34, %v18834_v11  ;;  %v5090_v5 = vadd.f32 %v14267_v22, %v5089_v16  ;;  %v5501_v48 = vpack.c.bf16 %v14707_v38, %v14699_v57  ;;  %v14738_v2 = vpop.eup %7758  ;;  %7778 = vpow2.f32 %v4562_v37  ;;  %v19379_v37 = vld [vmem:[#allocation18_spill] sm:$0xff]  ;;  %v19380_v57 = vld [vmem:[#allocation15_spill] sm:$0xff] }
 0x742   : > { %19373 = vst [vmem:[#allocation76_spill] sm:$0xff] %v14738_v2  ;;  %v19375_v55 = vsub.f32 %v19374_v28, %v18834_v11  ;;  %5699 = vmatpush1.bf16.msra.mxu0 %v5494_v45  ;;  %5911 = vmatpush1.bf16.msra.mxu1 %v5496_v3  ;;  %v14743_v50 = vpop.eup %7760  ;;  %v4825_v34 = vadd.f32 %v19171_v31, %v4824_v51  ;;  %7780 = vpow2.f32 %v4572_v20  ;;  %v19383_v3 = vld [vmem:[#allocation400_spill] sm:$0xff]  ;;  %v19385_v51 = vld [vmem:[#allocation357_spill] sm:$0xff]  ;;  %v19386_v20 = vld [vmem:[#allocation299_spill] sm:$0xff] }
 0x743   : > { %v4570_v9 = vmul.f32 1.442695, %v19372_v62  ;;  %19376 = vst [vmem:[#allocation188_spill] sm:$0xff] %v14743_v50  ;;  %v19377_v62 = vld [vmem:[#allocation396_spill] sm:$0xff]  ;;  %v5223_v38 = vadd.f32 %v14240_v44, %v14269_v17  ;;  %v19381_v58 = vpack.c.bf16 %v19379_v37, %v19380_v57  ;;  %5933 = vmatprep.subr.bf16.mxu1 %v5501_v48  ;;  %v14754_v45 = vpop.eup %7762  ;;  %7782 = vpow2.f32 %v4580_v29  ;;  %v19388_v44 = vld [vmem:[#allocation394_spill] sm:$0xff] }
 0x744   : > { %v4578_v46 = vmul.f32 1.442695, %v19375_v55  ;;  %v19378_v22 = vsub.f32 %v19377_v62, %v19074_v30  ;;  %19382 = vst [vmem:[#allocation497_spill] sm:$0xff] %v14754_v45  ;;  %v19384_v28 = vsub.f32 %v19383_v3, %v19074_v30  ;;  %v5498_v55 = vpack.c.bf16 %v19386_v20, %v19385_v51  ;;  %v5303_v48 = vld [vmem:[#allocation3 + $0x68] sm:$0xff]  ;;  %v19397_v20 = vld [vmem:[#allocation21_spill] sm:$0xff] }
 0x745   : > { %5721 = vmatprep.subr.bf16.mxu0 %v19381_v58  ;;  %v5500_v62 = vpack.c.bf16 %v14721_v40, %v14712_v49  ;;  %7784 = vpow2.f32 %v4570_v9  ;;  %v19389_v17 = vsub.f32 %v19388_v44, %v18834_v11  ;;  %v5091_v57 = vadd.f32 %v14286_v56, %v5090_v5  ;;  %5701 = vmatmul.mubr.bf16.vlgmr.msra.gmra.mrb[0].mxu0 %v5294_v61  ;;  %v19391_v3 = vld [vmem:[#allocation398_spill] sm:$0xff]  ;;  %v19393_v56 = vld [vmem:[#allocation404_spill] sm:$0xff] }
 0x746   : > { %v4588_v16 = vmul.f32 1.442695, %v19378_v22  ;;  %v4596_v31 = vmul.f32 1.442695, %v19384_v28  ;;  %v14763_v22 = vpop.eup %7764  ;;  %5913 = vmatmul.mubr.bf16.vlgmr.msra.gmra.mrb[0].mxu1 %v5294_v61  ;;  %v5505_v29 = vpack.c.bf16 %v14738_v2, %v14730_v24  ;;  %7786 = vpow2.f32 %v4578_v46  ;;  %5722 = vmatpush1.bf16.msra.mxu0 %v5498_v55  ;;  %v19396_v24 = vld [vmem:[#allocation24_spill] sm:$0xff] }
 0x747   : > { %19387 = vst [vmem:[#allocation498_spill] sm:$0xff] %v14763_v22  ;;  %v4586_v58 = vmul.f32 1.442695, %v19389_v17  ;;  %v14771_v37 = vpop.eup %7766  ;;  %v19392_v28 = vsub.f32 %v19391_v3, %v18834_v11  ;;  %5934 = vmatpush1.bf16.msra.mxu1 %v5500_v62  ;;  %v4826_v44 = vadd.f32 %v19172_v0, %v4825_v34  ;;  %v19394_v61 = vsub.f32 %v19393_v56, %v19074_v30  ;;  %v19395_v17 = vld [vmem:[#allocation22_spill] sm:$0xff]  ;;  %v19400_v55 = vld [vmem:[#allocation408_spill] sm:$0xff]  ;;  %v19402_v0 = vld [vmem:[#allocation361_spill] sm:$0xff] }
 0x748   : > { %19390 = vst [vmem:[#allocation37_spill] sm:$0xff] %v14771_v37  ;;  %v14776_v9 = vpop.eup %7768  ;;  %7788 = vpow2.f32 %v4588_v16  ;;  %v5224_v2 = vadd.f32 %v19395_v17, %v5223_v38  ;;  %v19398_v46 = vpack.c.bf16 %v19396_v24, %v19397_v20  ;;  %5935 = vmatprep.subr.bf16.mxu1 %v5505_v29  ;;  %v19401_v62 = vsub.f32 %v19400_v55, %v19074_v30  ;;  %v19403_v34 = vld [vmem:[#allocation365_spill] sm:$0xff]  ;;  %v19405_v24 = vld [vmem:[#allocation402_spill] sm:$0xff] }
 0x749   : > { %v4594_v40 = vmul.f32 1.442695, %v19392_v28  ;;  %v4604_v5 = vmul.f32 1.442695, %v19394_v61  ;;  %v14786_v3 = vpop.eup %7770  ;;  %7790 = vpow2.f32 %v4596_v31  ;;  %v5502_v16 = vpack.c.bf16 %v19403_v34, %v19402_v0  ;;  %5710 = vmatprep.mubr.bf16.mxu0 %v5303_v48  ;;  %5922 = vmatprep.mubr.bf16.mxu1 %v5303_v48  ;;  %v19407_v31 = vld [vmem:[#allocation136_spill] sm:$0xff]  ;;  %v19409_v55 = vld [vmem:[#allocation406_spill] sm:$0xff] }
 0x74a   : > { %5723 = vmatprep.subr.bf16.mxu0 %v19398_v46  ;;  %19399 = vst [vmem:[#allocation40_spill] sm:$0xff] %v14786_v3  ;;  %v4612_v28 = vmul.f32 1.442695, %v19401_v62  ;;  %v5504_v56 = vpack.c.bf16 %v14754_v45, %v14743_v50  ;;  %v14795_v38 = vpop.eup %7772  ;;  %7792 = vpow2.f32 %v4586_v58  ;;  %v19406_v20 = vsub.f32 %v19405_v24, %v18834_v11  ;;  %v5302_v48 = vld [vmem:[#allocation3 + $0x60] sm:$0xff]  ;;  %v19414_v34 = vld [vmem:[#allocation30_spill] sm:$0xff] }
 0x74b   : > { %19404 = vst [vmem:[#allocation192_spill] sm:$0xff] %v14795_v38  ;;  %v5092_v61 = vadd.f32 %v19407_v31, %v5091_v57  ;;  %v5509_v17 = vpack.c.bf16 %v14771_v37, %v14763_v22  ;;  %v14803_v46 = vpop.eup %7774  ;;  %7794 = vpow2.f32 %v4594_v40  ;;  %v19410_v62 = vsub.f32 %v19409_v55, %v18834_v11  ;;  %5724 = vmatpush1.bf16.msra.mxu0 %v5502_v16  ;;  %v19413_v37 = vld [vmem:[#allocation130_spill] sm:$0xff]  ;;  %v19415_v40 = vld [vmem:[#allocation27_spill] sm:$0xff]  ;;  %v19418_v16 = vld [vmem:[#allocation416_spill] sm:$0xff] }
 0x74c   : > { %v4602_v29 = vmul.f32 1.442695, %v19406_v20  ;;  %19408 = vst [vmem:[#allocation65_spill] sm:$0xff] %v14803_v46  ;;  %5936 = vmatpush1.bf16.msra.mxu1 %v5504_v56  ;;  %v14808_v58 = vpop.eup %7776  ;;  %v4827_v24 = vadd.f32 %v19186_v15, %v4826_v44  ;;  %7796 = vpow2.f32 %v4604_v5  ;;  %v19411_v20 = vld [vmem:[#allocation412_spill] sm:$0xff]  ;;  %v5225_v22 = vadd.f32 %v19413_v37, %v5224_v2  ;;  %v19420_v15 = vld [vmem:[#allocation369_spill] sm:$0xff]  ;;  %v19421_v44 = vld [vmem:[#allocation323_spill] sm:$0xff] }
 0x74d   : > { %v4610_v45 = vmul.f32 1.442695, %v19410_v62  ;;  %v19412_v57 = vsub.f32 %v19411_v20, %v19074_v30  ;;  %v19416_v50 = vpack.c.bf16 %v19414_v34, %v19415_v40  ;;  %5937 = vmatprep.subr.bf16.mxu1 %v5509_v17  ;;  %v14818_v55 = vpop.eup %7778  ;;  %7798 = vpow2.f32 %v4612_v28  ;;  %v19423_v2 = vld [vmem:[#allocation410_spill] sm:$0xff]  ;;  %5711 = vmatmul.mubr.bf16.gmra.mrb[4].mxu0 %v5302_v48  ;;  %v5297_v17 = vld [vmem:[#allocation3 + $0x38] sm:$0xff] }
 0x74e   : > { %19417 = vst [vmem:[#allocation68_spill] sm:$0xff] %v14818_v55  ;;  %v19419_v56 = vsub.f32 %v19418_v16, %v19074_v30  ;;  %v5506_v5 = vpack.c.bf16 %v19421_v44, %v19420_v15  ;;  %v5508_v20 = vpack.c.bf16 %v14786_v3, %v14776_v9  ;;  %7800 = vpow2.f32 %v4602_v29  ;;  %5923 = vmatmul.mubr.bf16.gmra.mrb[4].mxu1 %v5302_v48  ;;  %v19426_v16 = vld [vmem:[#allocation414_spill] sm:$0xff]  ;;  %v19431_v48 = vld [vmem:[#allocation129_spill] sm:$0xff] }
 0x74f   : > { %v4620_v31 = vmul.f32 1.442695, %v19412_v57  ;;  %5725 = vmatprep.subr.bf16.mxu0 %v19416_v50  ;;  %v14827_v57 = vpop.eup %7780  ;;  %v19424_v50 = vsub.f32 %v19423_v2, %v18834_v11  ;;  %v5093_v34 = vadd.f32 %v14316_v6, %v5092_v61  ;;  %v5513_v28 = vpack.c.bf16 %v14803_v46, %v14795_v38  ;;  %v19429_v6 = vld [vmem:[#allocation420_spill] sm:$0xff]  ;;  %v19432_v38 = vld [vmem:[#allocation158_spill] sm:$0xff]  ;;  %5753 = vmatprep.mubr.bf16.mxu0 %v5297_v17 }
 0x750   : > { %v4628_v62 = vmul.f32 1.442695, %v19419_v56  ;;  %19422 = vst [vmem:[#allocation196_spill] sm:$0xff] %v14827_v57  ;;  %v14835_v40 = vpop.eup %7782  ;;  %7802 = vpow2.f32 %v4610_v45  ;;  %v19427_v56 = vsub.f32 %v19426_v16, %v18834_v11  ;;  %5726 = vmatpush1.bf16.msra.mxu0 %v5506_v5  ;;  %5938 = vmatpush1.bf16.msra.mxu1 %v5508_v20  ;;  %v4828_v2 = vadd.f32 %v19187_v7, %v4827_v24  ;;  %v19433_v44 = vld [vmem:[#allocation154_spill] sm:$0xff]  ;;  %v19436_v5 = vld [vmem:[#allocation424_spill] sm:$0xff]  ;;  %v19438_v7 = vld [vmem:[#allocation331_spill] sm:$0xff] }
 0x751   : > { %v4618_v37 = vmul.f32 1.442695, %v19424_v50  ;;  %19425 = vst [vmem:[#allocation79_spill] sm:$0xff] %v14835_v40  ;;  %v14840_v29 = vpop.eup %7784  ;;  %7804 = vpow2.f32 %v4620_v31  ;;  %v19430_v61 = vsub.f32 %v19429_v6, %v19074_v30  ;;  %v5226_v46 = vadd.f32 %v19431_v48, %v5225_v22  ;;  %5939 = vmatprep.subr.bf16.mxu1 %v5513_v28  ;;  %v19439_v24 = vld [vmem:[#allocation373_spill] sm:$0xff]  ;;  %5965 = vmatprep.mubr.bf16.mxu1 %v5297_v17 }
 0x752   : > { %v4626_v3 = vmul.f32 1.442695, %v19427_v56  ;;  %19428 = vst [vmem:[#allocation200_spill] sm:$0xff] %v14840_v29  ;;  %v19434_v45 = vpack.c.bf16 %v19432_v38, %v19433_v44  ;;  %v14850_v16 = vpop.eup %7786  ;;  %7806 = vpow2.f32 %v4628_v62  ;;  %v19437_v20 = vsub.f32 %v19436_v5, %v19074_v30  ;;  %v19441_v38 = vld [vmem:[#allocation418_spill] sm:$0xff] }
 0x753   : > { %v4636_v50 = vmul.f32 1.442695, %v19430_v61  ;;  %19435 = vst [vmem:[#allocation499_spill] sm:$0xff] %v14850_v16  ;;  %v5510_v31 = vpack.c.bf16 %v19439_v24, %v19438_v7  ;;  %v5512_v6 = vpack.c.bf16 %v14818_v55, %v14808_v58  ;;  %v14859_v22 = vpop.eup %7788  ;;  %7808 = vpow2.f32 %v4618_v37  ;;  %v19451_v55 = vld [vmem:[#allocation99_spill] sm:$0xff] }
 0x754   : > { %5727 = vmatprep.subr.bf16.mxu0 %v19434_v45  ;;  %v4644_v56 = vmul.f32 1.442695, %v19437_v20  ;;  %19440 = vst [vmem:[#allocation500_spill] sm:$0xff] %v14859_v22  ;;  %v19442_v44 = vsub.f32 %v19441_v38, %v18834_v11  ;;  %v5094_v62 = vadd.f32 %v14325_v14, %v5093_v34  ;;  %v5517_v61 = vpack.c.bf16 %v14835_v40, %v14827_v57  ;;  %v14867_v48 = vpop.eup %7790  ;;  %v19444_v45 = vld [vmem:[#allocation422_spill] sm:$0xff]  ;;  %v19447_v38 = vld [vmem:[#allocation428_spill] sm:$0xff] }
 0x755   : > { %19443 = vst [vmem:[#allocation43_spill] sm:$0xff] %v14867_v48  ;;  %7810 = vpow2.f32 %v4626_v3  ;;  %v19445_v5 = vsub.f32 %v19444_v45, %v18834_v11  ;;  %5728 = vmatpush1.bf16.msra.mxu0 %v5510_v31  ;;  %5940 = vmatpush1.bf16.msra.mxu1 %v5512_v6  ;;  %v14872_v17 = vpop.eup %7792  ;;  %v4829_v37 = vadd.f32 %v19201_v43, %v4828_v2  ;;  %v19450_v57 = vld [vmem:[#allocation102_spill] sm:$0xff]  ;;  %v19454_v31 = vld [vmem:[#allocation432_spill] sm:$0xff]  ;;  %v19456_v43 = vld [vmem:[#allocation377_spill] sm:$0xff] }
 0x756   : > { %v4634_v28 = vmul.f32 1.442695, %v19442_v44  ;;  %19446 = vst [vmem:[#allocation46_spill] sm:$0xff] %v14872_v17  ;;  %7812 = vpow2.f32 %v4636_v50  ;;  %v19448_v14 = vsub.f32 %v19447_v38, %v19074_v30  ;;  %v19449_v44 = vld [vmem:[#allocation61_spill] sm:$0xff]  ;;  %v19452_v3 = vpack.c.bf16 %v19450_v57, %v19451_v55  ;;  %5941 = vmatprep.subr.bf16.mxu1 %v5517_v61  ;;  %v14882_v45 = vpop.eup %7794 }
 0x757   : > { %v4642_v20 = vmul.f32 1.442695, %v19445_v5  ;;  %v5227_v40 = vadd.f32 %v19449_v44, %v5226_v46  ;;  %19453 = vst [vmem:[#allocation204_spill] sm:$0xff] %v14882_v45  ;;  %7814 = vpow2.f32 %v4644_v56  ;;  %v19455_v6 = vsub.f32 %v19454_v31, %v19074_v30  ;;  %v19457_v2 = vld [vmem:[#allocation381_spill] sm:$0xff]  ;;  %v19459_v46 = vld [vmem:[#allocation426_spill] sm:$0xff] }
 0x758   : > { %v4652_v34 = vmul.f32 1.442695, %v19448_v14  ;;  %5729 = vmatprep.subr.bf16.mxu0 %v19452_v3  ;;  %v5514_v50 = vpack.c.bf16 %v19457_v2, %v19456_v43  ;;  %v5516_v38 = vpack.c.bf16 %v14850_v16, %v14840_v29  ;;  %v14891_v14 = vpop.eup %7796  ;;  %7816 = vpow2.f32 %v4634_v28  ;;  %v19462_v3 = vld [vmem:[#allocation430_spill] sm:$0xff]  ;;  %v19465_v28 = vld [vmem:[#allocation293_spill] sm:$0xff] }
 0x759   : > { %v4660_v5 = vmul.f32 1.442695, %v19455_v6  ;;  %19458 = vst [vmem:[#allocation71_spill] sm:$0xff] %v14891_v14  ;;  %v19460_v55 = vsub.f32 %v19459_v46, %v18834_v11  ;;  %v5095_v61 = vadd.f32 %v14346_v47, %v5094_v62  ;;  %v5521_v56 = vpack.c.bf16 %v14867_v48, %v14859_v22  ;;  %v14899_v44 = vpop.eup %7798  ;;  %v19466_v46 = vld [vmem:[#allocation436_spill] sm:$0xff]  ;;  %v19469_v22 = vld [vmem:[#allocation91_spill] sm:$0xff]  ;;  %v19470_v29 = vld [vmem:[#allocation105_spill] sm:$0xff] }
 0x75a   : > { %19461 = vst [vmem:[#allocation74_spill] sm:$0xff] %v14899_v44  ;;  %7818 = vpow2.f32 %v4642_v20  ;;  %v19463_v31 = vsub.f32 %v19462_v3, %v18834_v11  ;;  %5730 = vmatpush1.bf16.msra.mxu0 %v5514_v50  ;;  %5942 = vmatpush1.bf16.msra.mxu1 %v5516_v38  ;;  %v14904_v16 = vpop.eup %7800  ;;  %v4830_v2 = vadd.f32 %v19465_v28, %v4829_v37  ;;  %v19473_v50 = vld [vmem:[#allocation440_spill] sm:$0xff]  ;;  %v19475_v37 = vld [vmem:[#allocation363_spill] sm:$0xff] }
 0x75b   : > { %v4650_v57 = vmul.f32 1.442695, %v19460_v55  ;;  %19464 = vst [vmem:[#allocation208_spill] sm:$0xff] %v14904_v16  ;;  %7820 = vpow2.f32 %v4652_v34  ;;  %v19467_v47 = vsub.f32 %v19466_v46, %v19074_v30  ;;  %v19468_v55 = vld [vmem:[#allocation132_spill] sm:$0xff]  ;;  %v19471_v20 = vpack.c.bf16 %v19469_v22, %v19470_v29  ;;  %5943 = vmatprep.subr.bf16.mxu1 %v5521_v56  ;;  %v14914_v3 = vpop.eup %7802  ;;  %v19476_v34 = vld [vmem:[#allocation385_spill] sm:$0xff] }
 0x75c   : > { %v4658_v6 = vmul.f32 1.442695, %v19463_v31  ;;  %v5228_v48 = vadd.f32 %v19468_v55, %v5227_v40  ;;  %19472 = vst [vmem:[#allocation82_spill] sm:$0xff] %v14914_v3  ;;  %7822 = vpow2.f32 %v4660_v5  ;;  %v19474_v38 = vsub.f32 %v19473_v50, %v19074_v30  ;;  %v19478_v40 = vld [vmem:[#allocation434_spill] sm:$0xff]  ;;  %v19480_v56 = vld [vmem:[#allocation488_spill] sm:$0xff] }
 0x75d   : > { %v4668_v62 = vmul.f32 1.442695, %v19467_v47  ;;  %5731 = vmatprep.subr.bf16.mxu0 %v19471_v20  ;;  %v5518_v28 = vpack.c.bf16 %v19476_v34, %v19475_v37  ;;  %v5520_v46 = vpack.c.bf16 %v14882_v45, %v14872_v17  ;;  %v14923_v47 = vpop.eup %7804  ;;  %7824 = vpow2.f32 %v4650_v57  ;;  %v19482_v50 = vld [vmem:[#allocation438_spill] sm:$0xff] }
 0x75e   : > { %v4676_v31 = vmul.f32 1.442695, %v19474_v38  ;;  %19477 = vst [vmem:[#allocation212_spill] sm:$0xff] %v14923_v47  ;;  %v19479_v29 = vsub.f32 %v19478_v40, %v18834_v11  ;;  %v5096_v55 = vadd.f32 %v19480_v56, %v5095_v61  ;;  %v5525_v5 = vpack.c.bf16 %v14899_v44, %v14891_v14  ;;  %v14931_v20 = vpop.eup %7806  ;;  %v19485_v40 = vld [vmem:[#allocation444_spill] sm:$0xff]  ;;  %v19487_v56 = vld [vmem:[#allocation487_spill] sm:$0xff]  ;;  %v19488_v14 = vld [vmem:[#allocation13_spill] sm:$0xff] }
 0x75f   : > { %19481 = vst [vmem:[#allocation501_spill] sm:$0xff] %v14931_v20  ;;  %7826 = vpow2.f32 %v4658_v6  ;;  %v19483_v38 = vsub.f32 %v19482_v50, %v18834_v11  ;;  %5732 = vmatpush1.bf16.msra.mxu0 %v5518_v28  ;;  %5944 = vmatpush1.bf16.msra.mxu1 %v5520_v46  ;;  %v14936_v45 = vpop.eup %7808  ;;  %v4831_v57 = vadd.f32 %v19216_v36, %v4830_v2  ;;  %v19489_v17 = vld [vmem:[#allocation94_spill] sm:$0xff]  ;;  %v19492_v28 = vld [vmem:[#allocation448_spill] sm:$0xff]  ;;  %v19494_v36 = vld [vmem:[#allocation389_spill] sm:$0xff] }
 0x760   : > { %v4666_v22 = vmul.f32 1.442695, %v19479_v29  ;;  %19484 = vst [vmem:[#allocation502_spill] sm:$0xff] %v14936_v45  ;;  %7828 = vpow2.f32 %v4668_v62  ;;  %v19486_v61 = vsub.f32 %v19485_v40, %v19074_v30  ;;  %v5229_v44 = vadd.f32 %v19487_v56, %v5228_v48  ;;  %5945 = vmatprep.subr.bf16.mxu1 %v5525_v5  ;;  %v14946_v50 = vpop.eup %7810  ;;  %v19495_v2 = vld [vmem:[#allocation393_spill] sm:$0xff]  ;;  %v19497_v48 = vld [vmem:[#allocation442_spill] sm:$0xff] }
 0x761   : > { %v4674_v34 = vmul.f32 1.442695, %v19483_v38  ;;  %v19490_v6 = vpack.c.bf16 %v19488_v14, %v19489_v17  ;;  %19491 = vst [vmem:[#allocation49_spill] sm:$0xff] %v14946_v50  ;;  %7830 = vpow2.f32 %v4676_v31  ;;  %v19493_v46 = vsub.f32 %v19492_v28, %v19074_v30 }
 0x762   : > { %v4684_v29 = vmul.f32 1.442695, %v19486_v61  ;;  %v5522_v62 = vpack.c.bf16 %v19495_v2, %v19494_v36  ;;  %v5524_v40 = vpack.c.bf16 %v14914_v3, %v14904_v16  ;;  %v14955_v61 = vpop.eup %7812  ;;  %7832 = vpow2.f32 %v4666_v22  ;;  %v19503_v22 = vld [vmem:[#allocation301_spill] sm:$0xff] }
 0x763   : > { %5733 = vmatprep.subr.bf16.mxu0 %v19490_v6  ;;  %v4692_v38 = vmul.f32 1.442695, %v19493_v46  ;;  %19496 = vst [vmem:[#allocation52_spill] sm:$0xff] %v14955_v61  ;;  %v19498_v17 = vsub.f32 %v19497_v48, %v18834_v11  ;;  %v5097_v5 = vadd.f32 %v14376_v23, %v5096_v55  ;;  %v5529_v31 = vpack.c.bf16 %v14931_v20, %v14923_v47  ;;  %v14963_v56 = vpop.eup %7814  ;;  %v19500_v6 = vld [vmem:[#allocation446_spill] sm:$0xff]  ;;  %v19504_v48 = vld [vmem:[#allocation452_spill] sm:$0xff]  ;;  %v19507_v47 = vld [vmem:[#allocation469_spill] sm:$0xff] }
 0x764   : > { %19499 = vst [vmem:[#allocation216_spill] sm:$0xff] %v14963_v56  ;;  %7834 = vpow2.f32 %v4674_v34  ;;  %v19501_v28 = vsub.f32 %v19500_v6, %v18834_v11  ;;  %5734 = vmatpush1.bf16.msra.mxu0 %v5522_v62  ;;  %5946 = vmatpush1.bf16.msra.mxu1 %v5524_v40  ;;  %v14968_v3 = vpop.eup %7816  ;;  %v4832_v2 = vadd.f32 %v19503_v22, %v4831_v57  ;;  %v19508_v16 = vld [vmem:[#allocation465_spill] sm:$0xff]  ;;  %v19511_v62 = vld [vmem:[#allocation456_spill] sm:$0xff] }
 0x765   : > { %v4682_v14 = vmul.f32 1.442695, %v19498_v17  ;;  %19502 = vst [vmem:[#allocation77_spill] sm:$0xff] %v14968_v3  ;;  %7836 = vpow2.f32 %v4684_v29  ;;  %v19505_v23 = vsub.f32 %v19504_v48, %v19074_v30  ;;  %v19506_v17 = vld [vmem:[#allocation25_spill] sm:$0xff]  ;;  %v19509_v34 = vpack.c.bf16 %v19507_v47, %v19508_v16  ;;  %5947 = vmatprep.subr.bf16.mxu1 %v5529_v31  ;;  %v14978_v6 = vpop.eup %7818  ;;  %v19518_v31 = vld [vmem:[#allocation38_spill] sm:$0xff] }
 0x766   : > { %v4690_v46 = vmul.f32 1.442695, %v19501_v28  ;;  %v5230_v20 = vadd.f32 %v19506_v17, %v5229_v44  ;;  %19510 = vst [vmem:[#allocation80_spill] sm:$0xff] %v14978_v6  ;;  %7838 = vpow2.f32 %v4692_v38  ;;  %v19512_v40 = vsub.f32 %v19511_v62, %v19074_v30  ;;  %v19513_v57 = vld [vmem:[#allocation397_spill] sm:$0xff]  ;;  %v19516_v44 = vld [vmem:[#allocation450_spill] sm:$0xff] }
 0x767   : > { %v4700_v55 = vmul.f32 1.442695, %v19505_v23  ;;  %5735 = vmatprep.subr.bf16.mxu0 %v19509_v34  ;;  %v19514_v29 = vld [vmem:[#allocation401_spill] sm:$0xff]  ;;  %v5528_v48 = vpack.c.bf16 %v14946_v50, %v14936_v45  ;;  %v14987_v23 = vpop.eup %7820  ;;  %7840 = vpow2.f32 %v4682_v14  ;;  %v19517_v16 = vsub.f32 %v19516_v44, %v18834_v11  ;;  %v19520_v62 = vld [vmem:[#allocation454_spill] sm:$0xff]  ;;  %v19523_v44 = vld [vmem:[#allocation460_spill] sm:$0xff] }
 0x768   : > { %v4708_v28 = vmul.f32 1.442695, %v19512_v40  ;;  %v5526_v22 = vpack.c.bf16 %v19514_v29, %v19513_v57  ;;  %19515 = vst [vmem:[#allocation220_spill] sm:$0xff] %v14987_v23  ;;  %v5098_v17 = vadd.f32 %v19518_v31, %v5097_v5  ;;  %v5533_v38 = vpack.c.bf16 %v14963_v56, %v14955_v61  ;;  %v14995_v34 = vpop.eup %7822  ;;  %v19525_v31 = vld [vmem:[#allocation135_spill] sm:$0xff]  ;;  %v19526_v61 = vld [vmem:[#allocation106_spill] sm:$0xff]  ;;  %v19527_v45 = vld [vmem:[#allocation108_spill] sm:$0xff] }
 0x769   : > { %v4698_v47 = vmul.f32 1.442695, %v19517_v16  ;;  %19519 = vst [vmem:[#allocation85_spill] sm:$0xff] %v14995_v34  ;;  %7842 = vpow2.f32 %v4690_v46  ;;  %v19521_v40 = vsub.f32 %v19520_v62, %v18834_v11  ;;  %5948 = vmatpush1.bf16.msra.mxu1 %v5528_v48  ;;  %v15000_v50 = vpop.eup %7824  ;;  %v4833_v14 = vadd.f32 %v19229_v27, %v4832_v2  ;;  %v19532_v27 = vld [vmem:[#allocation405_spill] sm:$0xff] }
 0x76a   : > { %5736 = vmatpush1.bf16.msra.mxu0 %v5526_v22  ;;  %19522 = vst [vmem:[#allocation224_spill] sm:$0xff] %v15000_v50  ;;  %7844 = vpow2.f32 %v4700_v55  ;;  %v19524_v5 = vsub.f32 %v19523_v44, %v19074_v30  ;;  %v5231_v56 = vadd.f32 %v19525_v31, %v5230_v20  ;;  %v19528_v46 = vpack.c.bf16 %v19526_v61, %v19527_v45  ;;  %v15010_v62 = vpop.eup %7826  ;;  %v19530_v22 = vld [vmem:[#allocation464_spill] sm:$0xff]  ;;  %v19533_v2 = vld [vmem:[#allocation409_spill] sm:$0xff]  ;;  %v19535_v20 = vld [vmem:[#allocation458_spill] sm:$0xff] }
 0x76b   : > { %v4706_v29 = vmul.f32 1.442695, %v19521_v40  ;;  %5949 = vmatprep.subr.bf16.mxu1 %v5533_v38  ;;  %19529 = vst [vmem:[#allocation503_spill] sm:$0xff] %v15010_v62  ;;  %7846 = vpow2.f32 %v4708_v28  ;;  %v19531_v48 = vsub.f32 %v19530_v22, %v19074_v30  ;;  %v5530_v55 = vpack.c.bf16 %v19533_v2, %v19532_v27 }
 0x76c   : > { %v4716_v16 = vmul.f32 1.442695, %v19524_v5  ;;  %5737 = vmatprep.subr.bf16.mxu0 %v19528_v46  ;;  %v5532_v44 = vpack.c.bf16 %v14978_v6, %v14968_v3  ;;  %v15019_v5 = vpop.eup %7828  ;;  %7848 = vpow2.f32 %v4698_v47  ;;  %v19536_v45 = vsub.f32 %v19535_v20, %v18834_v11  ;;  %v19538_v46 = vld [vmem:[#allocation462_spill] sm:$0xff]  ;;  %v19540_v47 = vld [vmem:[#allocation309_spill] sm:$0xff]  ;;  %v19541_v20 = vld [vmem:[#allocation468_spill] sm:$0xff] }
 0x76d   : > { %v4724_v40 = vmul.f32 1.442695, %v19531_v48  ;;  %19534 = vst [vmem:[#allocation504_spill] sm:$0xff] %v15019_v5  ;;  %v5099_v38 = vadd.f32 %v14406_v59, %v5098_v17  ;;  %v5537_v28 = vpack.c.bf16 %v14995_v34, %v14987_v23  ;;  %v15027_v31 = vpop.eup %7830  ;;  %7850 = vpow2.f32 %v4706_v29  ;;  %v19544_v23 = vld [vmem:[#allocation111_spill] sm:$0xff]  ;;  %v19545_v3 = vld [vmem:[#allocation112_spill] sm:$0xff] }
 0x76e   : > { %v4714_v61 = vmul.f32 1.442695, %v19536_v45  ;;  %19537 = vst [vmem:[#allocation55_spill] sm:$0xff] %v15027_v31  ;;  %v19539_v22 = vsub.f32 %v19538_v46, %v18834_v11  ;;  %5738 = vmatpush1.bf16.msra.mxu0 %v5530_v55  ;;  %5950 = vmatpush1.bf16.msra.mxu1 %v5532_v44  ;;  %v15032_v6 = vpop.eup %7832  ;;  %v4834_v2 = vadd.f32 %v19540_v47, %v4833_v14  ;;  %7852 = vpow2.f32 %v4716_v16  ;;  %v19543_v45 = vld [vmem:[#allocation478_spill] sm:$0xff]  ;;  %v19548_v55 = vld [vmem:[#allocation472_spill] sm:$0xff]  ;;  %v19550_v14 = vld [vmem:[#allocation413_spill] sm:$0xff] }
 0x76f   : > { %v19542_v59 = vsub.f32 %v19541_v20, %v19074_v30  ;;  %v5232_v34 = vadd.f32 %v19543_v45, %v5231_v56  ;;  %v19546_v29 = vpack.c.bf16 %v19544_v23, %v19545_v3  ;;  %5951 = vmatprep.subr.bf16.mxu1 %v5537_v28  ;;  %v15042_v46 = vpop.eup %7834  ;;  %7854 = vpow2.f32 %v4724_v40  ;;  %v19551_v16 = vld [vmem:[#allocation417_spill] sm:$0xff]  ;;  %v19553_v56 = vld [vmem:[#allocation466_spill] sm:$0xff] }
 0x770   : > { %v4722_v48 = vmul.f32 1.442695, %v19539_v22  ;;  %19547 = vst [vmem:[#allocation58_spill] sm:$0xff] %v15042_v46  ;;  %v19549_v44 = vsub.f32 %v19548_v55, %v19074_v30  ;;  %v5534_v47 = vpack.c.bf16 %v19551_v16, %v19550_v14  ;;  %v5536_v20 = vpack.c.bf16 %v15010_v62, %v15000_v50  ;;  %v19555_v28 = vld [vmem:[#allocation141_spill] sm:$0xff]  ;;  %v19557_v55 = vld [vmem:[#allocation470_spill] sm:$0xff] }
 0x771   : > { %v4732_v17 = vmul.f32 1.442695, %v19542_v59  ;;  %5739 = vmatprep.subr.bf16.mxu0 %v19546_v29  ;;  %v15051_v59 = vpop.eup %7836  ;;  %7856 = vpow2.f32 %v4714_v61  ;;  %v19554_v3 = vsub.f32 %v19553_v56, %v18834_v11  ;;  %v5100_v45 = vadd.f32 %v19555_v28, %v5099_v38  ;;  %v19559_v56 = vld [vmem:[#allocation477_spill] sm:$0xff]  ;;  %v19561_v28 = vld [vmem:[#allocation64_spill] sm:$0xff]  ;;  %v19563_v50 = vld [vmem:[#allocation114_spill] sm:$0xff] }
 0x772   : > { %v4740_v22 = vmul.f32 1.442695, %v19549_v44  ;;  %19552 = vst [vmem:[#allocation228_spill] sm:$0xff] %v15051_v59  ;;  %v5541_v40 = vpack.c.bf16 %v15027_v31, %v15019_v5  ;;  %v15059_v29 = vpop.eup %7838  ;;  %7858 = vpow2.f32 %v4722_v48  ;;  %v19558_v44 = vsub.f32 %v19557_v55, %v18834_v11  ;;  %5740 = vmatpush1.bf16.msra.mxu0 %v5534_v47  ;;  %5952 = vmatpush1.bf16.msra.mxu1 %v5536_v20  ;;  %v19562_v5 = vld [vmem:[#allocation483_spill] sm:$0xff] }
 0x773   : > { %v4730_v23 = vmul.f32 1.442695, %v19554_v3  ;;  %19556 = vst [vmem:[#allocation83_spill] sm:$0xff] %v15059_v29  ;;  %v15064_v62 = vpop.eup %7840  ;;  %v4835_v61 = vadd.f32 %v19245_v10, %v4834_v2  ;;  %7860 = vpow2.f32 %v4732_v17  ;;  %v19560_v38 = vsub.f32 %v19559_v56, %v19074_v30  ;;  %v19565_v47 = vld [vmem:[#allocation355_spill] sm:$0xff]  ;;  %v19567_v10 = vld [vmem:[#allocation421_spill] sm:$0xff] }
 0x774   : > { %v4738_v16 = vmul.f32 1.442695, %v19558_v44  ;;  %v5233_v31 = vadd.f32 %v19561_v28, %v5232_v34  ;;  %v19564_v48 = vpack.c.bf16 %v19562_v5, %v19563_v50  ;;  %5953 = vmatprep.subr.bf16.mxu1 %v5541_v40  ;;  %v15074_v55 = vpop.eup %7842  ;;  %7862 = vpow2.f32 %v4740_v22  ;;  %v19568_v2 = vld [vmem:[#allocation425_spill] sm:$0xff]  ;;  %v19570_v34 = vld [vmem:[#allocation479_spill] sm:$0xff]  ;;  %v19571_v28 = vld [vmem:[#allocation480_spill] sm:$0xff] }
 0x775   : > { %v4748_v3 = vmul.f32 1.442695, %v19560_v38  ;;  %v19566_v20 = vsub.f32 %v19565_v47, %v19074_v30  ;;  %v5538_v17 = vpack.c.bf16 %v19568_v2, %v19567_v10  ;;  %v5540_v56 = vpack.c.bf16 %v15042_v46, %v15032_v6  ;;  %v15083_v38 = vpop.eup %7844  ;;  %v19576_v2 = vld [vmem:[#allocation481_spill] sm:$0xff] }
 0x776   : > { %5741 = vmatprep.subr.bf16.mxu0 %v19564_v48  ;;  %19569 = vst [vmem:[#allocation86_spill] sm:$0xff] %v15083_v38  ;;  %v19572_v50 = vsub.f32 %v19570_v34, %v19571_v28  ;;  %7864 = vpow2.f32 %v4730_v23  ;;  %v5101_v40 = vadd.f32 %v14436_v35, %v5100_v45  ;;  %v5545_v22 = vpack.c.bf16 %v15059_v29, %v15051_v59  ;;  %v15091_v30 = vpop.eup %7846  ;;  %v19574_v48 = vld [vmem:[#allocation474_spill] sm:$0xff]  ;;  %v19578_v35 = vld [vmem:[#allocation489_spill] sm:$0xff] }
 0x777   : > { %v4756_v44 = vmul.f32 1.442695, %v19566_v20  ;;  %19573 = vst [vmem:[#allocation232_spill] sm:$0xff] %v15091_v30  ;;  %7866 = vpow2.f32 %v4738_v16  ;;  %v19575_v47 = vsub.f32 %v19574_v48, %v18834_v11  ;;  %5742 = vmatpush1.bf16.msra.mxu0 %v5538_v17  ;;  %5954 = vmatpush1.bf16.msra.mxu1 %v5540_v56  ;;  %v15096_v46 = vpop.eup %7848  ;;  %v19577_v34 = vsub.f32 %v19576_v2, %v18834_v11  ;;  %v19579_v28 = vld [vmem:[#allocation473_spill] sm:$0xff] }
 0x778   : > { %v4750_v5 = vmul.f32 1.442695, %v19572_v50  ;;  %7868 = vpow2.f32 %v4748_v3  ;;  %v5234_v45 = vadd.f32 %v19578_v35, %v5233_v31  ;;  %v19580_v50 = vld [vmem:[#allocation484_spill] sm:$0xff]  ;;  %5955 = vmatprep.subr.bf16.mxu1 %v5545_v22  ;;  %v15105_v16 = vpop.eup %7850  ;;  %v19583_v48 = vld [vmem:[#allocation317_spill] sm:$0xff]  ;;  %v5544_v11 = vpack.c.bf16 %v15074_v55, %v15064_v62 }
 0x779   : > { %v4746_v20 = vmul.f32 1.442695, %v19575_v47  ;;  %v4754_v23 = vmul.f32 1.442695, %v19577_v34  ;;  %v19581_v29 = vpack.c.bf16 %v19579_v28, %v19580_v50  ;;  %19582 = vst [vmem:[#allocation88_spill] sm:$0xff] %v15105_v16  ;;  %v4836_v47 = vadd.f32 %v19583_v48, %v4835_v61  ;;  %v19584_v17 = vld [vmem:[#allocation429_spill] sm:$0xff]  ;;  %v15112_v2 = vpop.eup %7852 }
 0x77a   : > { %7870 = vpow2.f32 %v4756_v44  ;;  %v19585_v56 = vld [vmem:[#allocation433_spill] sm:$0xff]  ;;  %19586 = vst [vmem:[#allocation379_spill] sm:$0xff] %v15112_v2  ;;  %v19587_v31 = vld [vmem:[#allocation144_spill] sm:$0xff]  ;;  %v15117_v22 = vpop.eup %7854  ;;  %v19589_v44 = vld [vmem:[#allocation490_spill] sm:$0xff] }
 0x77b   : > { %5743 = vmatprep.subr.bf16.mxu0 %v19581_v29  ;;  %v5542_v59 = vpack.c.bf16 %v19585_v56, %v19584_v17  ;;  %7872 = vpow2.f32 %v4750_v5  ;;  %v5102_v3 = vadd.f32 %v19587_v31, %v5101_v40  ;;  %v5549_v29 = vpack.c.bf16 %v15091_v30, %v15083_v38  ;;  %19588 = vst [vmem:[#allocation165_spill] sm:$0xff] %v15117_v22  ;;  %v15119_v61 = vpop.eup %7856  ;;  %v19590_v35 = vld [vmem:[#allocation117_spill] sm:$0xff]  ;;  %v19591_v28 = vld [vmem:[#allocation16_spill] sm:$0xff] }
 0x77c   : > { %7874 = vpow2.f32 %v4746_v20  ;;  %5956 = vmatpush1.bf16.msra.mxu1 %v5544_v11  ;;  %v5235_v34 = vadd.f32 %v19589_v44, %v5234_v45  ;;  %v19592_v50 = vpack.c.bf16 %v19590_v35, %v19591_v28  ;;  %v15125_v5 = vpop.eup %7858  ;;  %v4837_v40 = vadd.f32 %v19261_v26, %v4836_v47  ;;  %v19594_v48 = vld [vmem:[#allocation437_spill] sm:$0xff]  ;;  %v19600_v44 = vld [vmem:[#allocation124_spill] sm:$0xff]  ;;  %v19601_v35 = vld [vmem:[#allocation118_spill] sm:$0xff] }
 0x77d   : > { %5744 = vmatpush1.bf16.msra.mxu0 %v5542_v59  ;;  %7876 = vpow2.f32 %v4754_v23  ;;  %5957 = vmatprep.subr.bf16.mxu1 %v5549_v29  ;;  %19593 = vst [vmem:[#allocation375_spill] sm:$0xff] %v15125_v5  ;;  %v19595_v31 = vld [vmem:[#allocation441_spill] sm:$0xff]  ;;  %v5548_v59 = vpack.c.bf16 %v15105_v16, %v15096_v46  ;;  %v15132_v20 = vpop.eup %7860  ;;  %v5103_v23 = vadd.f32 %v14464_v13, %v5102_v3  ;;  %v19604_v16 = vld [vmem:[#allocation191_spill] sm:$0xff] }
 0x77e   : > { %5745 = vmatprep.subr.bf16.mxu0 %v19592_v50  ;;  %v5546_v30 = vpack.c.bf16 %v19595_v31, %v19594_v48  ;;  %19596 = vst [vmem:[#allocation505_spill] sm:$0xff] %v15132_v20  ;;  %v5553_v45 = vpack.c.bf16 %v15117_v22, %v15112_v2  ;;  %v15137_v11 = vpop.eup %7862  ;;  %v19599_v26 = vld [vmem:[#allocation41_spill] sm:$0xff]  ;;  %v19602_v28 = vpack.c.bf16 %v19600_v44, %v19601_v35  ;;  %v19607_v2 = vld [vmem:[#allocation148_spill] sm:$0xff]  ;;  %v19610_v44 = vld [vmem:[#allocation123_spill] sm:$0xff] }
 0x77f   : > { %19597 = vst [vmem:[#allocation506_spill] sm:$0xff] %v15137_v11  ;;  %v5236_v47 = vadd.f32 %v19599_v26, %v5235_v34  ;;  %v4838_v13 = vadd.f32 %v19604_v16, %v4837_v40  ;;  %v19605_v3 = vld [vmem:[#allocation445_spill] sm:$0xff]  ;;  %v5104_v38 = vadd.f32 %v19607_v2, %v5103_v23  ;;  %v5557_v34 = vpack.c.bf16 %v15137_v11, %v15132_v20  ;;  %v19609_v16 = vld [vmem:[#allocation44_spill] sm:$0xff] }
 0x780   : > { %5958 = vmatpush1.bf16.msra.mxu1 %v5548_v59  ;;  %v15139_v29 = vpop.eup %7864  ;;  %v19606_v31 = vld [vmem:[#allocation449_spill] sm:$0xff]  ;;  %v19611_v35 = vld [vmem:[#allocation120_spill] sm:$0xff] }
 0x781   : > { %5746 = vmatpush1.bf16.msra.mxu0 %v5546_v30  ;;  %19598 = vst [vmem:[#allocation383_spill] sm:$0xff] %v15139_v29  ;;  %5959 = vmatprep.subr.bf16.mxu1 %v5553_v45  ;;  %v15145_v50 = vpop.eup %7866  ;;  %v5550_v22 = vpack.c.bf16 %v19606_v31, %v19605_v3  ;;  %v5552_v30 = vpack.c.bf16 %v15125_v5, %v15119_v61  ;;  %v19613_v23 = vld [vmem:[#allocation453_spill] sm:$0xff] }
 0x782   : > { %5747 = vmatprep.subr.bf16.mxu0 %v19602_v28  ;;  %19603 = vst [vmem:[#allocation89_spill] sm:$0xff] %v15145_v50  ;;  %v15152_v59 = vpop.eup %7868  ;;  %v5237_v40 = vadd.f32 %v19609_v16, %v5236_v47  ;;  %v19612_v28 = vpack.c.bf16 %v19610_v44, %v19611_v35  ;;  %v4839_v2 = vadd.f32 %v19277_v4, %v4838_v13  ;;  %v19614_v31 = vld [vmem:[#allocation457_spill] sm:$0xff]  ;;  %v19616_v44 = vld [vmem:[#allocation486_spill] sm:$0xff] }
 0x783   : > { %v5554_v11 = vpack.c.bf16 %v19614_v31, %v19613_v23  ;;  %v5105_v20 = vadd.f32 %v14495_v25, %v5104_v38  ;;  %v19617_v35 = vld [vmem:[#allocation485_spill] sm:$0xff]  ;;  %v19621_v38 = vld [vmem:[#allocation492_spill] sm:$0xff] }
 0x784   : > { %v15157_v26 = vpop.eup %7870  ;;  %5960 = vmatpush1.bf16.msra.mxu1 %v5552_v30  ;;  %v19618_v4 = vpack.c.bf16 %v19616_v44, %v19617_v35  ;;  %v19619_v13 = vld [vmem:[#allocation325_spill] sm:$0xff] }
 0x785   : > { %19608 = vst [vmem:[#allocation92_spill] sm:$0xff] %v15157_v26  ;;  %5748 = vmatpush1.bf16.msra.mxu0 %v5550_v22  ;;  %v15159_v45 = vpop.eup %7872  ;;  %5961 = vmatprep.subr.bf16.mxu1 %v5557_v34  ;;  %v5556_v22 = vpack.c.bf16 %v15145_v50, %v15139_v29  ;;  %v5561_v47 = vpack.c.bf16 %v15157_v26, %v15152_v59  ;;  %v19615_v34 = vld [vmem:[#allocation67_spill] sm:$0xff]  ;;  %v19620_v31 = vld [vmem:[#allocation461_spill] sm:$0xff]  ;;  %v19625_v26 = vld [vmem:[#allocation50_spill] sm:$0xff] }
 0x786   : > { %5749 = vmatprep.subr.bf16.mxu0 %v19612_v28  ;;  %v15165_v5 = vpop.eup %7874  ;;  %v5238_v16 = vadd.f32 %v19615_v34, %v5237_v40  ;;  %v4840_v28 = vadd.f32 %v19619_v13, %v4839_v2  ;;  %v5558_v50 = vpack.c.bf16 %v15159_v45, %v19620_v31  ;;  %v5106_v29 = vadd.f32 %v19621_v38, %v5105_v20  ;;  %v5305_v34 = vld [vmem:[#allocation3 + $0x78] sm:$0xff] }
 0x787   : > { %v15172_v30 = vpop.eup %7876  ;;  %v19623_v2 = vld [vmem:[#allocation156_spill] sm:$0xff] }
 0x788   : > { %5962 = vmatpush1.bf16.msra.mxu1 %v5556_v22  ;;  %v5560_v25 = vpack.c.bf16 %v15172_v30, %v15165_v5  ;;  %v19622_v22 = vld [vmem:[#allocation491_spill] sm:$0xff]  ;;  %v4841_v44 = vadd.f32 %v19293_v42, %v4840_v28  ;;  %v19628_v28 = vld [vmem:[#allocation164_spill] sm:$0xff] }
 0x789   : > { %5750 = vmatpush1.bf16.msra.mxu0 %v5554_v11  ;;  %5963 = vmatprep.subr.bf16.mxu1 %v5561_v47  ;;  %v5296_v11 = vld [vmem:[#allocation3 + $0x30] sm:$0xff]  ;;  %v5239_v40 = vadd.f32 %v19622_v22, %v5238_v16  ;;  %v5107_v47 = vadd.f32 %v14526_v12, %v5106_v29  ;;  %v19627_v12 = vld [vmem:[#allocation160_spill] sm:$0xff] }
 0x78a   : > { %5751 = vmatprep.subr.bf16.mxu0 %v19618_v4  ;;  %v19624_v4 = vld [vmem:[#allocation219_spill] sm:$0xff] }
 0x78b   : > { %v5240_v35 = vadd.f32 %v19623_v2, %v5239_v40  ;;  %v4842_v13 = vadd.f32 %v19624_v4, %v4841_v44  ;;  %v5108_v20 = vadd.f32 %v19625_v26, %v5107_v47  ;;  %v19629_v40 = vld [vmem:[#allocation70_spill] sm:$0xff]  ;;  %v19630_v47 = vld [vmem:[#allocation493_spill] sm:$0xff] }
 0x78c   : > { %5964 = vmatpush1.bf16.msra.mxu1 %v5560_v25  ;;  %v19626_v25 = vld [vmem:[#allocation47_spill] sm:$0xff]  ;;  %v19632_v4 = vld [vmem:[#allocation53_spill] sm:$0xff] }
 0x78d   : > { %5752 = vmatpush1.bf16.msra.mxu0 %v5558_v50  ;;  %v5304_v50 = vld [vmem:[#allocation3 + $0x70] sm:$0xff]  ;;  %v5241_v38 = vadd.f32 %v19626_v25, %v5240_v35  ;;  %v4843_v16 = vadd.f32 %v19309_v52, %v4842_v13  ;;  %v5109_v22 = vadd.f32 %v14557_v33, %v5108_v20  ;;  %v19631_v35 = vld [vmem:[#allocation341_spill] sm:$0xff]  ;;  %v19633_v13 = vld [vmem:[#allocation494_spill] sm:$0xff] }
 0x78e   : > { %v19634_v25 = vld [vmem:[#allocation56_spill] sm:$0xff] }
 0x78f   : > { %5966 = vmatmul.mubr.bf16.vlgmr.msra.gmra.mrb[0].mxu1 %v5296_v11  ;;  %v5242_v42 = vadd.f32 %v19627_v12, %v5241_v38  ;;  %v4844_v29 = vadd.f32 %v19310_v8, %v4843_v16  ;;  %v19636_v12 = vld [vmem:[#allocation172_spill] sm:$0xff] }
 0x790   : > { %5754 = vmatmul.mubr.bf16.vlgmr.msra.gmra.mrb[0].mxu0 %v5296_v11  ;;  %5975 = vmatprep.mubr.bf16.mxu1 %v5305_v34  ;;  %v5110_v11 = vadd.f32 %v19628_v28, %v5109_v22  ;;  %v19635_v22 = vld [vmem:[#allocation73_spill] sm:$0xff] }
 0x791   : > { %5763 = vmatprep.mubr.bf16.mxu0 %v5305_v34  ;;  %v5243_v34 = vadd.f32 %v19629_v40, %v5242_v42  ;;  %v4845_v44 = vadd.f32 %v19324_v63, %v4844_v29  ;;  %v19637_v40 = vld [vmem:[#allocation495_spill] sm:$0xff] }
 0x792   : > { %v5111_v26 = vadd.f32 %v14588_v60, %v5110_v11 }
 0x793   : > { %v5244_v2 = vadd.f32 %v19630_v47, %v5243_v34  ;;  %v4846_v52 = vadd.f32 %v19631_v35, %v4845_v44  ;;  %v19638_v34 = vld [vmem:[#allocation176_spill] sm:$0xff] }
 0x794   : > { %v5112_v33 = vadd.f32 %v19632_v4, %v5111_v26  ;;  %v19639_v26 = vld [vmem:[#allocation496_spill] sm:$0xff]  ;;  %v19642_v4 = vld [vmem:[#allocation31_spill] sm:$0xff] }
 0x795   : > { %v5245_v20 = vadd.f32 %v19633_v13, %v5244_v2  ;;  %v19640_v2 = vld [vmem:[#allocation283_spill] sm:$0xff] }
 0x796   : > { %v5113_v8 = vadd.f32 %v14619_v32, %v5112_v33  ;;  %v19643_v33 = vld [vmem:[#allocation180_spill] sm:$0xff] }
 0x797   : > { %5976 = vmatmul.mubr.bf16.gmra.mrb[4].mxu1 %v5304_v50  ;;  %v5246_v38 = vadd.f32 %v19634_v25, %v5245_v20  ;;  %v19644_v20 = vld [vmem:[#allocation299_spill] sm:$0xff] }
 0x798   : > { %5764 = vmatmul.mubr.bf16.gmra.mrb[4].mxu0 %v5304_v50  ;;  %v4847_v50 = vadd.f32 %v19339_v53, %v4846_v52  ;;  %v5114_v63 = vadd.f32 %v19635_v22, %v5113_v8  ;;  %v19641_v52 = vld [vmem:[#allocation34_spill] sm:$0xff]  ;;  %v19646_v25 = vld [vmem:[#allocation59_spill] sm:$0xff] }
 0x799   : > { %v5247_v60 = vadd.f32 %v19636_v12, %v5246_v38  ;;  %v19645_v8 = vld [vmem:[#allocation62_spill] sm:$0xff] }
 0x79a   : > { %v4848_v16 = vadd.f32 %v19340_v19, %v4847_v50  ;;  %v5115_v29 = vadd.f32 %v14650_v54, %v5114_v63  ;;  %v19648_v63 = vld [vmem:[#allocation184_spill] sm:$0xff] }
 0x79b   : > { %v5248_v28 = vadd.f32 %v14637_v1, %v5247_v60  ;;  %v19649_v60 = vld [vmem:[#allocation365_spill] sm:$0xff] }
 0x79c   : > { %v4849_v42 = vadd.f32 %v19353_v21, %v4848_v16  ;;  %v5116_v53 = vadd.f32 %v19637_v40, %v5115_v29  ;;  %v19647_v16 = vld [vmem:[#allocation188_spill] sm:$0xff]  ;;  %v19650_v29 = vld [vmem:[#allocation497_spill] sm:$0xff] }
 0x79d   : > { %v5249_v32 = vadd.f32 %v19638_v34, %v5248_v28  ;;  %v19651_v28 = vld [vmem:[#allocation76_spill] sm:$0xff] }
 0x79e   : > { %v4850_v11 = vadd.f32 %v19354_v18, %v4849_v42  ;;  %v5117_v19 = vadd.f32 %v14681_v39, %v5116_v53  ;;  %v19652_v53 = vld [vmem:[#allocation498_spill] sm:$0xff] }
 0x79f   : > { %v5250_v47 = vadd.f32 %v19639_v26, %v5249_v32  ;;  %v19653_v32 = vld [vmem:[#allocation323_spill] sm:$0xff]  ;;  %v19655_v26 = vld [vmem:[#allocation37_spill] sm:$0xff] }
 0x7a0   : > { %v4851_v44 = vadd.f32 %v19368_v41, %v4850_v11  ;;  %v5118_v21 = vadd.f32 %v19641_v52, %v5117_v19  ;;  %v19654_v19 = vld [vmem:[#allocation40_spill] sm:$0xff] }
 0x7a1   : > { %v5251_v54 = vadd.f32 %v19642_v4, %v5250_v47  ;;  %v19656_v52 = vld [vmem:[#allocation192_spill] sm:$0xff] }
 0x7a2   : > { %v4852_v35 = vadd.f32 %v19640_v2, %v4851_v44  ;;  %v5119_v18 = vadd.f32 %v14712_v49, %v5118_v21 }
 0x7a3   : > { %v5252_v13 = vadd.f32 %v19643_v33, %v5251_v54  ;;  %v19657_v54 = vld [vmem:[#allocation68_spill] sm:$0xff] }
 0x7a4   : > { %v4853_v1 = vadd.f32 %v19385_v51, %v4852_v35  ;;  %v5120_v41 = vadd.f32 %v19645_v8, %v5119_v18  ;;  %v19659_v33 = vld [vmem:[#allocation200_spill] sm:$0xff]  ;;  %v19661_v8 = vld [vmem:[#allocation381_spill] sm:$0xff] }
 0x7a5   : > { %v5253_v39 = vadd.f32 %v19646_v25, %v5252_v13  ;;  %v19662_v25 = vld [vmem:[#allocation499_spill] sm:$0xff] }
 0x7a6   : > { %v4854_v50 = vadd.f32 %v19644_v20, %v4853_v1  ;;  %v5121_v22 = vadd.f32 %v19647_v16, %v5120_v41  ;;  %v19658_v1 = vld [vmem:[#allocation65_spill] sm:$0xff]  ;;  %v19660_v20 = vld [vmem:[#allocation196_spill] sm:$0xff]  ;;  %v19664_v16 = vld [vmem:[#allocation46_spill] sm:$0xff] }
 0x7a7   : > { %v5254_v12 = vadd.f32 %v19648_v63, %v5253_v39  ;;  %v19663_v39 = vld [vmem:[#allocation79_spill] sm:$0xff] }
 0x7a8   : > { %v4855_v38 = vadd.f32 %v19402_v0, %v4854_v50  ;;  %v5122_v51 = vadd.f32 %v19650_v29, %v5121_v22  ;;  %v19665_v22 = vld [vmem:[#allocation500_spill] sm:$0xff]  ;;  %v19668_v29 = vld [vmem:[#allocation43_spill] sm:$0xff] }
 0x7a9   : > { %v5255_v49 = vadd.f32 %v19651_v28, %v5254_v12  ;;  %v19666_v12 = vld [vmem:[#allocation385_spill] sm:$0xff] }
 0x7aa   : > { %v4856_v42 = vadd.f32 %v19649_v60, %v4855_v38  ;;  %v5123_v40 = vadd.f32 %v14776_v9, %v5122_v51 }
 0x7ab   : > { %v5256_v34 = vadd.f32 %v19652_v53, %v5255_v49  ;;  %v19669_v49 = vld [vmem:[#allocation208_spill] sm:$0xff] }
 0x7ac   : > { %v4857_v11 = vadd.f32 %v19420_v15, %v4856_v42  ;;  %v5124_v0 = vadd.f32 %v19654_v19, %v5123_v40  ;;  %v19667_v42 = vld [vmem:[#allocation204_spill] sm:$0xff]  ;;  %v19670_v40 = vld [vmem:[#allocation71_spill] sm:$0xff]  ;;  %v19673_v19 = vld [vmem:[#allocation74_spill] sm:$0xff] }
 0x7ad   : > { %v5257_v47 = vadd.f32 %v19655_v26, %v5256_v34  ;;  %v19671_v34 = vld [vmem:[#allocation393_spill] sm:$0xff] }
 0x7ae   : > { %v4858_v44 = vadd.f32 %v19653_v32, %v4857_v11  ;;  %v5125_v35 = vadd.f32 %v14808_v58, %v5124_v0 }
 0x7af   : > { %v5258_v21 = vadd.f32 %v19656_v52, %v5257_v47  ;;  %v19674_v47 = vld [vmem:[#allocation502_spill] sm:$0xff] }
 0x7b0   : > { %v4859_v2 = vadd.f32 %v19438_v7, %v4858_v44  ;;  %v5126_v15 = vadd.f32 %v19657_v54, %v5125_v35  ;;  %v19672_v44 = vld [vmem:[#allocation82_spill] sm:$0xff]  ;;  %v19675_v35 = vld [vmem:[#allocation212_spill] sm:$0xff]  ;;  %v19677_v54 = vld [vmem:[#allocation49_spill] sm:$0xff] }
 0x7b1   : > { %v5259_v9 = vadd.f32 %v19658_v1, %v5258_v21  ;;  %v19676_v21 = vld [vmem:[#allocation401_spill] sm:$0xff] }
 0x7b2   : > { %v4860_v4 = vadd.f32 %v19439_v24, %v4859_v2  ;;  %v5127_v13 = vadd.f32 %v19659_v33, %v5126_v15  ;;  %v19678_v15 = vld [vmem:[#allocation501_spill] sm:$0xff] }
 0x7b3   : > { %v5260_v50 = vadd.f32 %v19660_v20, %v5259_v9 }
 0x7b4   : > { %v4861_v18 = vadd.f32 %v19456_v43, %v4860_v4  ;;  %v5128_v7 = vadd.f32 %v19662_v25, %v5127_v13  ;;  %v19680_v13 = vld [vmem:[#allocation52_spill] sm:$0xff] }
 0x7b5   : > { %v5261_v58 = vadd.f32 %v19663_v39, %v5260_v50  ;;  %v19681_v50 = vld [vmem:[#allocation409_spill] sm:$0xff]  ;;  %v19683_v25 = vld [vmem:[#allocation216_spill] sm:$0xff] }
 0x7b6   : > { %v4862_v41 = vadd.f32 %v19661_v8, %v4861_v18  ;;  %v5129_v24 = vadd.f32 %v19664_v16, %v5128_v7  ;;  %v19679_v18 = vld [vmem:[#allocation77_spill] sm:$0xff]  ;;  %v19685_v16 = vld [vmem:[#allocation220_spill] sm:$0xff] }
 0x7b7   : > { %v5262_v63 = vadd.f32 %v19665_v22, %v5261_v58  ;;  %v19684_v58 = vld [vmem:[#allocation224_spill] sm:$0xff]  ;;  %v19686_v22 = vld [vmem:[#allocation417_spill] sm:$0xff] }
 0x7b8   : > { %v4863_v38 = vadd.f32 %v19475_v37, %v4862_v41  ;;  %v5130_v43 = vadd.f32 %v19667_v42, %v5129_v24  ;;  %v19682_v41 = vld [vmem:[#allocation80_spill] sm:$0xff] }
 0x7b9   : > { %v5263_v51 = vadd.f32 %v19668_v29, %v5262_v63 }
 0x7ba   : > { %v4864_v60 = vadd.f32 %v19666_v12, %v4863_v38  ;;  %v5131_v11 = vadd.f32 %v19669_v49, %v5130_v43  ;;  %v19687_v12 = vld [vmem:[#allocation503_spill] sm:$0xff]  ;;  %v19690_v49 = vld [vmem:[#allocation425_spill] sm:$0xff] }
 0x7bb   : > { %v5264_v53 = vadd.f32 %v19670_v40, %v5263_v51  ;;  %v19689_v51 = vld [vmem:[#allocation504_spill] sm:$0xff]  ;;  %v19691_v40 = vld [vmem:[#allocation58_spill] sm:$0xff] }
 0x7bc   : > { %v4865_v28 = vadd.f32 %v19494_v36, %v4864_v60  ;;  %v5132_v37 = vadd.f32 %v19672_v44, %v5131_v11  ;;  %v19688_v60 = vld [vmem:[#allocation85_spill] sm:$0xff] }
 0x7bd   : > { %v5265_v0 = vadd.f32 %v19673_v19, %v5264_v53  ;;  %v19692_v53 = vld [vmem:[#allocation55_spill] sm:$0xff] }
 0x7be   : > { %v4866_v32 = vadd.f32 %v19671_v34, %v4865_v28  ;;  %v5133_v2 = vadd.f32 %v19674_v47, %v5132_v37  ;;  %v19693_v37 = vld [vmem:[#allocation228_spill] sm:$0xff] }
 0x7bf   : > { %v5266_v52 = vadd.f32 %v19675_v35, %v5265_v0  ;;  %v19695_v35 = vld [vmem:[#allocation86_spill] sm:$0xff] }
 0x7c0   : > { %v4867_v26 = vadd.f32 %v19513_v57, %v4866_v32  ;;  %v5134_v36 = vadd.f32 %v19677_v54, %v5133_v2  ;;  %v19697_v54 = vld [vmem:[#allocation88_spill] sm:$0xff] }
 0x7c1   : > { %v5267_v1 = vadd.f32 %v19678_v15, %v5266_v52 }
 0x7c2   : > { %v4868_v4 = vadd.f32 %v19676_v21, %v4867_v26  ;;  %v5135_v33 = vadd.f32 %v19679_v18, %v5134_v36  ;;  %v19694_v26 = vld [vmem:[#allocation83_spill] sm:$0xff]  ;;  %v19696_v21 = vld [vmem:[#allocation441_spill] sm:$0xff]  ;;  %v19698_v36 = vld [vmem:[#allocation232_spill] sm:$0xff] }
 0x7c3   : > { %v5268_v20 = vadd.f32 %v19680_v13, %v5267_v1  ;;  %v19699_v1 = vld [vmem:[#allocation379_spill] sm:$0xff]  ;;  %v19702_v13 = vld [vmem:[#allocation165_spill] sm:$0xff] }
 0x7c4   : > { %v4869_v9 = vadd.f32 %v19532_v27, %v4868_v4  ;;  %v5136_v57 = vadd.f32 %v19682_v41, %v5135_v33  ;;  %v19701_v33 = vld [vmem:[#allocation375_spill] sm:$0xff]  ;;  %v19704_v41 = vld [vmem:[#allocation505_spill] sm:$0xff] }
 0x7c5   : > { %v5269_v7 = vadd.f32 %v19683_v25, %v5268_v20  ;;  %v19705_v25 = vld [vmem:[#allocation457_spill] sm:$0xff] }
 0x7c6   : > { %v4870_v8 = vadd.f32 %v19681_v50, %v4869_v9  ;;  %v5137_v38 = vadd.f32 %v19684_v58, %v5136_v57  ;;  %v19700_v9 = vld [vmem:[#allocation449_spill] sm:$0xff]  ;;  %v19703_v50 = vld [vmem:[#allocation383_spill] sm:$0xff]  ;;  %v19707_v58 = vld [vmem:[#allocation506_spill] sm:$0xff] }
 0x7c7   : > { %v5270_v24 = vadd.f32 %v19685_v16, %v5269_v7 }
 0x7c8   : > { %v4871_v39 = vadd.f32 %v19550_v14, %v4870_v8  ;;  %v5138_v27 = vadd.f32 %v19687_v12, %v5137_v38 }
 0x7c9   : > { %v5271_v42 = vadd.f32 %v19688_v60, %v5270_v24 }
 0x7ca   : > { %v4872_v63 = vadd.f32 %v19686_v22, %v4871_v39  ;;  %v5139_v29 = vadd.f32 %v15032_v6, %v5138_v27  ;;  %v19706_v39 = vld [vmem:[#allocation89_spill] sm:$0xff] }
 0x7cb   : > { %v5272_v28 = vadd.f32 %v19689_v51, %v5271_v42  ;;  %v19709_v42 = vld [vmem:[#allocation19_spill] sm:$0xff] }
 0x7cc   : > { %v4873_v43 = vadd.f32 %v19567_v10, %v4872_v63  ;;  %v5140_v14 = vadd.f32 %v19691_v40, %v5139_v29  ;;  %v19708_v63 = vld [vmem:[#allocation92_spill] sm:$0xff] }
 0x7cd   : > { %v5273_v34 = vadd.f32 %v19692_v53, %v5272_v28 }
 0x7ce   : > { %v4874_v11 = vadd.f32 %v19690_v49, %v4873_v43  ;;  %v5141_v44 = vadd.f32 %v15064_v62, %v5140_v14  ;;  %v5018_v43 = vrot.slane %v19709_v42, 4 }
 0x7cf   : > { %v5274_v19 = vadd.f32 %v19693_v37, %v5273_v34 }
 0x7d0   : > { %v4875_v32 = vadd.f32 %v19584_v17, %v4874_v11  ;;  %v5142_v10 = vadd.f32 %v15074_v55, %v5141_v44  ;;  %v5019_v49 = vadd.f32 %v5018_v43, %v19709_v42 }
 0x7d1   : > { %v5275_v6 = vadd.f32 %v19694_v26, %v5274_v19 }
 0x7d2   : > { %v4876_v0 = vadd.f32 %v19585_v56, %v4875_v32  ;;  %v5143_v2 = vadd.f32 %v15096_v46, %v5142_v10  ;;  %v5020_v40 = vrot.slane %v5019_v49, 2 }
 0x7d3   : > { %v5276_v52 = vadd.f32 %v19695_v35, %v5275_v6 }
 0x7d4   : > { %v4877_v47 = vadd.f32 %v19594_v48, %v4876_v0  ;;  %v5144_v17 = vadd.f32 %v19697_v54, %v5143_v2 }
 0x7d5   : > { %v5277_v62 = vadd.f32 %v19698_v36, %v5276_v52  ;;  %v15332_v52 = vstv %s6024_s6  ;;  %s7916_s6 = scalar_lea.vmem %s15398_s24, 2048 }
 0x7d6   : > { %v4878_v4 = vadd.f32 %v19696_v21, %v4877_v47  ;;  %v5145_v56 = vadd.f32 %v15119_v61, %v5144_v17  ;;  %p7917_p7 = scmp.ne.s32.totalorder %s15398_s24, %s7916_s6 }
 0x7d7   : > { %v5278_v55 = vadd.f32 %v19699_v1, %v5277_v62 }
 0x7d8   : > { %v4879_v15 = vadd.f32 %v19605_v3, %v4878_v4  ;;  %v5146_v48 = vadd.f32 %v19701_v33, %v5145_v56  ;;  %v6010_v56 = vld [vmem:[%s15328_s16 + $0x10] sm:$0xff]  ;;  %p7918_p4 = pnand %p7917_p7, %p19710_p2 }
 0x7d9   : > { %v5279_v46 = vadd.f32 %v19702_v13, %v5278_v55  ;;  %v6009_v13 = vld [vmem:[%s15328_s16 + $0x8] sm:$0xff] }
 0x7da   : > { %v4880_v18 = vadd.f32 %v19700_v9, %v4879_v15  ;;  %v5147_v8 = vadd.f32 %v19703_v50, %v5146_v48  ;;  %v6008_v15 = vld [vmem:[%s15328_s16] sm:$0xff]  ;;  %p7919_p0 = pneg %p7918_p4 }
 0x7db   : > { %v5280_v57 = vadd.f32 %v19704_v41, %v5279_v46  ;;  %v6011_v46 = vld [vmem:[%s15328_s16 + $0x18] sm:$0xff] }
 0x7dc   : > { %v4881_v20 = vadd.f32 %v19613_v23, %v4880_v18  ;;  %v5148_v3 = vadd.f32 %v19706_v39, %v5147_v8  ;;  %v6014_v39 = vld [vmem:[%s15328_s16 + $0x50] sm:$0xff] }
 0x7dd   : > { %v5281_v61 = vadd.f32 %v19707_v58, %v5280_v57 }
 0x7de   : > { %v4882_v7 = vadd.f32 %v19705_v25, %v4881_v20  ;;  %v5149_v16 = vadd.f32 %v15165_v5, %v5148_v3 }
 0x7df   : > { %v5282_v24 = vadd.f32 %v15152_v59, %v5281_v61 }
 0x7e0   : > { %v4883_v38 = vadd.f32 %v19620_v31, %v4882_v7  ;;  %v5150_v23 = vadd.f32 %v15172_v30, %v5149_v16  ;;  %v5021_v30 = vadd.f32 %v5020_v40, %v5019_v49  ;;  %v6012_v7 = vld [vmem:[%s15328_s16 + $0x40] sm:$0xff] }
 0x7e1   : > { %v5283_v12 = vadd.f32 %v19708_v63, %v5282_v24 }
 0x7e2   : > { %v4884_v22 = vadd.f32 %v15159_v45, %v4883_v38  ;;  %v5151_v60 = vrot.slane %v5150_v23, 4  ;;  %v5022_v44 = vrot.slane %v5021_v30, 1 }
 0x7e3   : > { %v5284_v29 = vrot.slane %v5283_v12, 4 }
 0x7e4   : > { %v4885_v27 = vrot.slane %v4884_v22, 4  ;;  %v5152_v28 = vadd.f32 %v5151_v60, %v5150_v23  ;;  %v5023_v10 = vadd.f32 %v5022_v44, %v5021_v30  ;;  %v6015_v23 = vld [vmem:[%s15328_s16 + $0x58] sm:$0xff] }
 0x7e5   : > { %v5285_v31 = vadd.f32 %v5284_v29, %v5283_v12 }
 0x7e6   : > { %v4886_v51 = vadd.f32 %v4885_v27, %v4884_v22  ;;  %v5153_v5 = vrot.slane %v5152_v28, 2  ;;  %v6013_v22 = vld [vmem:[%s15328_s16 + $0x48] sm:$0xff] }
 0x7e7   : > { %v5286_v59 = vrot.slane %v5285_v31, 2 }
 0x7e8   : > { %v4887_v11 = vrot.slane %v4886_v51, 2  ;;  %v5154_v45 = vadd.f32 %v5153_v5, %v5152_v28 }
 0x7e9   : > { %v5287_v53 = vadd.f32 %v5286_v59, %v5285_v31  ;;  %v6016_v59 = vld [vmem:[%s15328_s16 + $0x80] sm:$0xff] }
 0x7ea   : > { %v4888_v14 = vadd.f32 %v4887_v11, %v4886_v51  ;;  %v5155_v32 = vrot.slane %v5154_v45, 1 }
 0x7eb   : > { %v5288_v37 = vrot.slane %v5287_v53, 1 }
 0x7ec   : > { %v4889_v34 = vrot.slane %v4888_v14, 1  ;;  %v5156_v0 = vadd.f32 %v5155_v32, %v5154_v45 }
 0x7ed   : > { %v5289_v26 = vadd.f32 %v5288_v37, %v5287_v53  ;;  %v6017_v37 = vld [vmem:[%s15328_s16 + $0x88] sm:$0xff] }
 0x7ee   : > { %v4890_v19 = vadd.f32 %v4889_v34, %v4888_v14  ;;  %v6018_v14 = vld [vmem:[%s15328_s16 + $0x90] sm:$0xff] }
 0x7f0   : > { %7878 = vrcp.f32 %v4890_v19  ;;  %v6019_v19 = vld [vmem:[%s15328_s16 + $0x98] sm:$0xff] }
 0x7f1   : > { %7880 = vrcp.f32 %v5156_v0 }
 0x7f2   : > { %7882 = vrcp.f32 %v5023_v10 }
 0x7f3   : > { %7884 = vrcp.f32 %v5289_v26 }
 0x7fa   : > { %v15323_v6 = vpop.eup %7878 }
 0x7fb   : > { %v15325_v47 = vpop.eup %7880 }
 0x7fc   : > { %v15330_v2 = vpop.eup %7882 }
 0x7fd   : > { %v15334_v4 = vpop.eup %7884 }
 0x862   : > { %v5967_v21 = vpop.f32.mrb[0].mxu1 }
 0x863   : > { %v5755_v35 = vpop.f32.mrb[0].mxu0  ;;  %v5992_v17 = vmul.f32 %v15325_v47, %v5967_v21  ;;  %v5969_v62 = vpop.f32.mrb[1].mxu1 }
 0x864   : > { %v5990_v54 = vmul.f32 %v15323_v6, %v5755_v35  ;;  %v5757_v36 = vpop.f32.mrb[1].mxu0  ;;  %v5993_v55 = vmul.f32 %v15334_v4, %v5969_v62  ;;  %v5971_v18 = vpop.f32.mrb[2].mxu1 }
 0x865   : > { %v5991_v1 = vmul.f32 %v15330_v2, %v5757_v36  ;;  %v5759_v9 = vpop.f32.mrb[2].mxu0  ;;  %v6028_v48 = vmul.f32 %v15332_v52, %v5992_v17  ;;  %v5996_v50 = vmul.f32 %v15325_v47, %v5971_v18  ;;  %v5973_v41 = vpop.f32.mrb[3].mxu1  ;;  %v6020_v17 = vld [vmem:[%s15328_s16 + $0xc0] sm:$0xff]  ;;  %v6022_v36 = vld [vmem:[%s15328_s16 + $0xd0] sm:$0xff] }
 0x866   : > { %v6026_v33 = vmul.f32 %v15332_v52, %v5990_v54  ;;  %v5994_v20 = vmul.f32 %v15323_v6, %v5759_v9  ;;  %v5761_v8 = vpop.f32.mrb[3].mxu0  ;;  %v6029_v25 = vmul.f32 %v15332_v52, %v5993_v55  ;;  %v5997_v58 = vmul.f32 %v15334_v4, %v5973_v41  ;;  %v6021_v55 = vld [vmem:[%s15328_s16 + $0xc8] sm:$0xff]  ;;  %v6023_v9 = vld [vmem:[%s15328_s16 + $0xd8] sm:$0xff]  ;;  %s7920_s16 = sshll.u32 %s8045_s5, 4  ;;  %s7921_s16 = int_to_ptr.vmem [resolvable:$false] %s7920_s16 }
 0x867   : > { %v6027_v57 = vmul.f32 %v15332_v52, %v5991_v1  ;;  %v5995_v3 = vmul.f32 %v15330_v2, %v5761_v8  ;;  %v6044_v38 = vadd.f32 %v6028_v48, %v6010_v56  ;;  %v6032_v24 = vmul.f32 %v15332_v52, %v5996_v50  ;;  %s7922_s7 = scalar_lea.vmem %s7921_s16, 4096  ;;  %p7923_p1 = scmp.lt.s32.totalorder %s15398_s24, %s7921_s16 }
 0x868   : > { %v6042_v61 = vadd.f32 %v6026_v33, %v6008_v15  ;;  %v6030_v16 = vmul.f32 %v15332_v52, %v5994_v20  ;;  %v6045_v12 = vadd.f32 %v6029_v25, %v6011_v46  ;;  %v6033_v60 = vmul.f32 %v15332_v52, %v5997_v58  ;;  %p7924_p6 = scmp.lt.s32.totalorder %s7922_s7, %s7916_s6 }
 0x869   : > { %v6043_v63 = vadd.f32 %v6027_v57, %v6009_v13  ;;  %v6031_v27 = vmul.f32 %v15332_v52, %v5995_v3  ;;  %6060 = vst [vmem:[%s8233_s11 + $0x10] sm:$0xff] %v6044_v38  ;;  %v6048_v43 = vadd.f32 %v6032_v24, %v6014_v39 }
 0x86a   : > { %6058 = vst [vmem:[%s8233_s11] sm:$0xff] %v6042_v61  ;;  %v6046_v42 = vadd.f32 %v6030_v16, %v6012_v7  ;;  %6061 = vst [vmem:[%s8233_s11 + $0x18] sm:$0xff] %v6045_v12  ;;  %v6049_v51 = vadd.f32 %v6033_v60, %v6015_v23  ;;  %v5977_v49 = vpop.f32.mrb[4].mxu1  ;;  %p7925_p9 = por %p7924_p6, %p7923_p1 }
 0x86b   : > { %6059 = vst [vmem:[%s8233_s11 + $0x8] sm:$0xff] %v6043_v63  ;;  %v6047_v29 = vadd.f32 %v6031_v27, %v6013_v22  ;;  %v5765_v28 = vpop.f32.mrb[4].mxu0  ;;  %6064 = vst [vmem:[%s8233_s11 + $0x30] sm:$0xff] %v6048_v43  ;;  %v6000_v11 = vmul.f32 %v15325_v47, %v5977_v49  ;;  %v5979_v40 = vpop.f32.mrb[5].mxu1 }
 0x86c   : > { %6062 = vst [vmem:[%s8233_s11 + $0x20] sm:$0xff] %v6046_v42  ;;  %v5998_v31 = vmul.f32 %v15323_v6, %v5765_v28  ;;  %v5767_v5 = vpop.f32.mrb[5].mxu0  ;;  %6065 = vst [vmem:[%s8233_s11 + $0x38] sm:$0xff] %v6049_v51  ;;  %v6001_v30 = vmul.f32 %v15334_v4, %v5979_v40  ;;  %v5981_v34 = vpop.f32.mrb[6].mxu1  ;;  %p7926_p3 = pnand %p7925_p9, %p7919_p0 }
 0x86d   : > { %6063 = vst [vmem:[%s8233_s11 + $0x28] sm:$0xff] %v6047_v29  ;;  %v5999_v45 = vmul.f32 %v15330_v2, %v5767_v5  ;;  %v5769_v53 = vpop.f32.mrb[6].mxu0  ;;  %v6036_v44 = vmul.f32 %v15332_v52, %v6000_v11  ;;  %v6004_v10 = vmul.f32 %v15325_v47, %v5981_v34  ;;  %v5983_v35 = vpop.f32.mrb[7].mxu1 }
 0x86e   : > { %v6034_v32 = vmul.f32 %v15332_v52, %v5998_v31  ;;  %v6002_v0 = vmul.f32 %v15323_v6, %v5769_v53  ;;  %v5771_v26 = vpop.f32.mrb[7].mxu0  ;;  %v6037_v54 = vmul.f32 %v15332_v52, %v6001_v30  ;;  %v6005_v15 = vmul.f32 %v15334_v4, %v5983_v35 }
 0x86f   : > { %v6035_v21 = vmul.f32 %v15332_v52, %v5999_v45  ;;  %v6003_v62 = vmul.f32 %v15330_v2, %v5771_v26  ;;  %v6052_v47 = vadd.f32 %v6036_v44, %v6018_v14  ;;  %v6040_v1 = vmul.f32 %v15332_v52, %v6004_v10 }
 0x870   : > { %v6050_v6 = vadd.f32 %v6034_v32, %v6016_v59  ;;  %v6038_v56 = vmul.f32 %v15332_v52, %v6002_v0  ;;  %v6053_v33 = vadd.f32 %v6037_v54, %v6019_v19  ;;  %v6041_v4 = vmul.f32 %v15332_v52, %v6005_v15 }
 0x871   : > { %v6051_v18 = vadd.f32 %v6035_v21, %v6017_v37  ;;  %v6039_v2 = vmul.f32 %v15332_v52, %v6003_v62  ;;  %6068 = vst [vmem:[%s8233_s11 + $0x50] sm:$0xff] %v6052_v47  ;;  %v6056_v13 = vadd.f32 %v6040_v1, %v6022_v36 }
 0x872   : > { %6066 = vst [vmem:[%s8233_s11 + $0x40] sm:$0xff] %v6050_v6  ;;  %v6054_v48 = vadd.f32 %v6038_v56, %v6020_v17  ;;  %6069 = vst [vmem:[%s8233_s11 + $0x58] sm:$0xff] %v6053_v33  ;;  %v6057_v20 = vadd.f32 %v6041_v4, %v6023_v9 }
 0x873   : > { %6067 = vst [vmem:[%s8233_s11 + $0x48] sm:$0xff] %v6051_v18  ;;  %v6055_v46 = vadd.f32 %v6039_v2, %v6021_v55  ;;  %6072 = vst [vmem:[%s8233_s11 + $0x70] sm:$0xff] %v6056_v13 }
 0x874   : > { %6070 = vst [vmem:[%s8233_s11 + $0x60] sm:$0xff] %v6054_v48  ;;  %6073 = vst [vmem:[%s8233_s11 + $0x78] sm:$0xff] %v6057_v20 }
 0x875   : > { %6071 = vst [vmem:[%s8233_s11 + $0x68] sm:$0xff] %v6055_v46 }
 0x876   : > { %7929 = shalt.err (!%p7926_p3)
}
 0x877   : > { %s7930_s28 = scalar_lea.hbm %s15405_s10, 2048  ;;  %s7934_s23 = scalar_lea.hbm %s15480_s4, 8192 }
 0x878   : > { %p7931_p11 = scmp.ne.s32.totalorder %s15405_s10, %s7930_s28  ;;  %p7935_p8 = scmp.lt.u32.totalorder %s15405_s10, %s15480_s4 }
 0x879   : > { %p7936_p10 = scmp.lt.u32.totalorder %s7934_s23, %s7930_s28  ;;  %p7938_p7 = scmp.lt.u32.totalorder %s7930_s28, %s15405_s10 }
 0x87a   : > { %p7932_p13 = pnand %p7931_p11, %p19710_p2 }
 0x87b   : > { %p7937_p12 = por %p7936_p10, %p7935_p8 }
 0x87c   : > { %p7933_p5 = pneg %p7932_p13 }
 0x87d   : > { %p7939_p4 = por %p7938_p7, %p7937_p12 }
 0x87f   : > { %p7940_p0 = pnand %p7939_p4, %p7933_p5 }
 0x881   : > { %7943 = shalt.err (!%p7940_p0)
}
 0x882   : > { %s8046_s8 = smov 512   ;;  %s8047_s6 = smov 1024  }
 0x883   : > { %s8048_s5 = smov 32  }
 0x884   : > { %6409 = dma.vmem_to_hbm [thread:$0]  (%p19710_p2), %s15398_s24, 2048, %s15405_s10, %s15415_s27, %s8046_s8, %s8047_s6, %s8048_s5  }
 0x885 PF: > { %p6420_p1 = scmp.ge.s32.totalorder %s8038_s26, 2  ;;  %s6105_s16 = sand.u32 1, %s7998_s17  }
 0x886   : > { %p19711_p6 = scmp.ne.s32.totalorder %s16860_s15, 0  ;;  %s6106_s7 = scalar_lea.sflag [#allocation8], %s6105_s16 }
 0x888   : > { %p6416_p9 = pnand %p6420_p1, %p19711_p6 }
 0x88a   : > { %7993 = dma.done.wait (!%p6416_p9), %s6106_s7, 2048  }
 0x88b   : > { %7995 = vsyncadd (!%p6416_p9), %s6106_s7, 4294965248  ;;  %s21_s26 = sadd.s32 1, %s8038_s26   ;;  %s19712_s12 = sld [smem:[#allocation12_spill]] }
 0x88c   : > { %p18_p3 = scmp.ge.s32.totalorder %s21_s26, 6   ;;  %s19713_s17 = smov %s8002_s18 }
 0x88d   : > { %s19714_s18 = smov %s8006_s19  ;;  %s19715_s19 = smov %s8167_s14 }
 0x88e   : > { %s19716_s20 = smov %s8014_s21  ;;  %s19717_s21 = smov %s8018_s22 }
 0x88f   : > { %s19718_s22 = smov %s8164_s13  ;;  %s19719_s23 = smov %s8030_s3 }
 0x890   : > { %s19720_s24 = smov %s8034_s25  ;;  %s19721_s3 = smov %s19724_s29 }
 0x891   : > { %s19722_s25 = smov %s19712_s12  ;;  %20 = sbr.rel (!%p18_p3) target bundleno = 11 (0xb), region = 87 }
 0x898   :  { %6111 = vsyncpa [#allocation7], 1 }
 0x899   :  { %6113 = vsyncpa [#allocation7 + $0x1], 1 }
 0x89a   :  { %6114 = vsyncpa [#allocation8], 1 }
 0x89b   :  { %6116 = vsyncpa [#allocation8 + $0x1], 1 }

</bundles_post_ra>
